<compile_context>
chip_gen: v7x
topology: tpu7x:2x2x1
jax: 0.10.0
libtpu: 0.0.40
codegen_flags: <defaults>
</compile_context>

<pallas_src>
import functools

import jax
import jax.numpy as jnp
from jax.experimental import pallas as pl
from jax.experimental.pallas import tpu as pltpu

# Channel plan of Low_enhance_net.
CINS = (1, 8, 16, 32, 16)
COUTS = (8, 16, 32, 16, 8)
BN_EPS = 1e-5
LEAKY_SLOPE = 0.01
N_LAYERS = 5


def _fused_kernel(*refs, N, H, W):
    """All 5 (conv3x3 -> BN(batch stats) -> LeakyReLU) layers in one kernel.

    refs layout:
      refs[0]                       : x        (N, H, W)                         f32
      refs[1+4l .. 4+4l], l=0..4    : layer l params:
          w_banded (3, W*Cin, W*Cout)  bf16   banded dx-Toeplitz weights, W-padding folded in
          P        (W*Cout, W*Cout)    f32    channel replication: P[a,b] = (a%Cout == b%Cout)
          gamma_t  (1, W*Cout)         f32    pre-tiled BN weight
          beta_t   (1, W*Cout)         f32    pre-tiled BN bias
      refs[21]                      : out      (N*H, W*COUTS[-1])                f32
      refs[22..26]                  : per-layer padded activation scratch
                                       (N, H+2, W*Cin_l)                         bf16
    """
    x_ref = refs[0]
    o_ref = refs[1 + 4 * N_LAYERS]
    pads = refs[2 + 4 * N_LAYERS:]

    inv_nhw = 1.0 / float(N * H * W)

    # Zero only the two H-halo rows of each padded buffer (interiors are fully overwritten,
    # W-padding lives in the weights now, so there are no halo columns).
    for pb in pads:
        kdim = pb.shape[-1]
        zrow = jnp.zeros((N, 1, kdim), pb.dtype)
        pb[:, 0:1, :] = zrow
        pb[:, H + 1:H + 2, :] = zrow

    # Place the (bf16) network input in the interior of the first buffer; lane offset 0.
    pads[0][:, 1:H + 1, :] = x_ref[...].astype(jnp.bfloat16)

    for l in range(N_LAYERS):
        w_ref, p_ref, g_ref, b_ref = refs[1 + 4 * l: 5 + 4 * l]
        cout = COUTS[l]
        wc = W * cout
        p_in = pads[l]
        kdim = p_in.shape[-1]                      # W * Cin_l

        # Conv3x3: 3 accumulated MXU matmuls (one per kernel row dy) against banded weights;
        # bf16 operands (loaded straight from bf16 scratch, no per-dy cast), f32 accumulation.
        acc = None
        for dy in range(3):
            lhs = p_in[:, dy:dy + H, :].reshape(N * H, kdim)
            part = jnp.dot(lhs, w_ref[dy], preferred_element_type=jnp.float32)
            acc = part if acc is None else acc + part

        # BatchNorm2d (training-mode batch stats, biased variance) folded into one lane-dense
        # affine.  One (2, wc) @ (wc, wc) dot against the hoisted replication matrix produces
        # lane-dense [mean, E[y^2]] tiles (no in-kernel selector build / lane concats).
        # NOTE: single-pass var = E[y^2] - mean^2; fine for these magnitudes (review concern).
        s1 = jnp.sum(acc, axis=0, keepdims=True)                 # (1, wc)
        s2 = jnp.sum(acc * acc, axis=0, keepdims=True)           # (1, wc)
        stats = jnp.dot(jnp.concatenate([s1, s2], axis=0), p_ref[...],
                        preferred_element_type=jnp.float32) * inv_nhw   # (2, wc)
        mean_t = stats[0:1]
        var_t = stats[1:2] - mean_t * mean_t
        scale_t = g_ref[...] * jax.lax.rsqrt(var_t + BN_EPS)     # (1, wc)
        shift_t = b_ref[...] - mean_t * scale_t                  # conv bias cancels exactly

        y = acc * scale_t + shift_t
        y = jnp.where(y >= 0, y, LEAKY_SLOPE * y)                # LeakyReLU(0.01)

        if l < N_LAYERS - 1:
            # Lane-aligned interior store into the next layer's padded bf16 buffer
            # (single cast, full lane width, offset 0).
            pads[l + 1][:, 1:H + 1, :] = y.reshape(N, H, wc).astype(jnp.bfloat16)
        else:
            # Lane-dense final store: (N*H, W*8) = (32, 128) for the test shape.
            o_ref[...] = y


def _banded_weight(w, W):
    """PyTorch conv weight (Cout, Cin, 3, 3) -> banded dx-Toeplitz weights with the W
    zero-padding folded in, bf16, shape (3, W*Cin, W*Cout):
      big[dy, (j+dx-1)*Cin + ci, j*Cout + co] = w[co, ci, dy, dx]
    (terms with j+dx-1 outside [0, W) are simply absent = the zero padding)."""
    cout, cin = w.shape[0], w.shape[1]
    wt = jnp.transpose(w.astype(jnp.float32), (2, 3, 1, 0))   # (dy, dx, ci, co)
    big = jnp.zeros((3, W * cin, W * cout), jnp.float32)
    for dx in range(3):
        eye = jnp.eye(W, W, k=-(dx - 1), dtype=jnp.float32)   # eye[j+dx-1, j] = 1 (clipped)
        big = big + jnp.einsum('ab,dio->daibo', eye, wt[:, dx]).reshape(3, W * cin, W * cout)
    return big.astype(jnp.bfloat16)


def prep_params(params, W):
    """One-time (hoisted) parameter preprocessing: banded bf16 weights, the per-layer channel
    replication matrix P, and pre-tiled gamma/beta rows."""
    flat = []
    for (w, gamma, beta) in params:
        cout = w.shape[0]
        ch = jnp.arange(W * cout) % cout                               # works for any Cout
        P = (ch[:, None] == ch[None, :]).astype(jnp.float32)           # (wc, wc)
        flat.append(_banded_weight(w, W))
        flat.append(P)
        flat.append(jnp.tile(gamma.reshape(1, cout).astype(jnp.float32), (1, W)))
        flat.append(jnp.tile(beta.reshape(1, cout).astype(jnp.float32), (1, W)))
    return tuple(flat)


@jax.jit
def low_enhance_net(x_nchw, prepped):
    """x_nchw: (N, 1, H, W).  Returns the torch.split(x, 1, dim=1) list of 8 (N,1,H,W) arrays."""
    N, C, H, W = x_nchw.shape
    assert C == 1
    x3 = x_nchw.astype(jnp.float32).reshape(N, H, W)

    kernel = functools.partial(_fused_kernel, N=N, H=H, W=W)
    vmem = pl.BlockSpec(memory_space=pltpu.MemorySpace.VMEM)

    # Advisory cost estimate (banded-matmul flops dominate; weight/P bytes dominate traffic).
    flops = 2 * 3 * N * H * sum((W * ci) * (W * co) for ci, co in zip(CINS, COUTS))
    bytes_accessed = int(sum(a.size * a.dtype.itemsize for a in prepped)
                         + x3.size * 4 + N * H * W * COUTS[-1] * 4)
    cost = pl.CostEstimate(flops=flops,
                           transcendentals=sum(W * c for c in COUTS),
                           bytes_accessed=bytes_accessed)

    out = pl.pallas_call(
        kernel,
        out_shape=jax.ShapeDtypeStruct((N * H, W * COUTS[-1]), jnp.float32),
        in_specs=[vmem] * (1 + 4 * N_LAYERS),
        out_specs=vmem,
        scratch_shapes=[pltpu.VMEM((N, H + 2, W * c), jnp.bfloat16) for c in CINS],
        cost_estimate=cost,
    )(x3, *prepped)

    o_nchw = jnp.transpose(out.reshape(N, H, W, COUTS[-1]), (0, 3, 1, 2))
    return [o_nchw[:, c:c + 1] for c in range(COUTS[-1])]


def init_params(key):
    """Deterministic synthetic parameters with the shapes implied by __init__.
    Conv biases are omitted: training-mode BatchNorm mean subtraction cancels them exactly."""
    params = []
    for i, (cin, cout) in enumerate(zip(CINS, COUTS)):
        kw, kg, kb = jax.random.split(jax.random.fold_in(key, i), 3)
        w = jax.random.normal(kw, (cout, cin, 3, 3), jnp.float32) / jnp.sqrt(9.0 * cin)
        gamma = 1.0 + 0.1 * jax.random.normal(kg, (cout,), jnp.float32)
        beta = 0.1 * jax.random.normal(kb, (cout,), jnp.float32)
        params.append((w, gamma, beta))
    return params


def reference_forward(x_nchw, params):
    """Pure-JAX (XLA) reference with the same bf16-operand / f32-accumulate conv numerics."""
    x = x_nchw.astype(jnp.float32)
    for (w, gamma, beta) in params:
        y = jax.lax.conv_general_dilated(
            x.astype(jnp.bfloat16), w.astype(jnp.bfloat16),
            window_strides=(1, 1), padding=((1, 1), (1, 1)),
            dimension_numbers=('NCHW', 'OIHW', 'NCHW'),
            preferred_element_type=jnp.float32)
        mean = jnp.mean(y, axis=(0, 2, 3), keepdims=True)
        var = jnp.mean(jnp.square(y - mean), axis=(0, 2, 3), keepdims=True)
        yn = (y - mean) * jax.lax.rsqrt(var + BN_EPS)
        yn = yn * gamma.reshape(1, -1, 1, 1) + beta.reshape(1, -1, 1, 1)
        x = jnp.where(yn >= 0, yn, LEAKY_SLOPE * yn)
    return x   # (N, 8, H, W)


if __name__ == "__main__":
    key = jax.random.PRNGKey(0)
    k_x, k_p = jax.random.split(key)

    # conv1 expects a single input channel; small NCHW input like the PyTorch module.
    x = jax.random.uniform(k_x, (2, 1, 16, 16), jnp.float32)

    params = init_params(k_p)
    prepped = prep_params(params, x.shape[-1])   # hoisted one-time preprocessing

    outs = jax.block_until_ready(low_enhance_net(x, prepped))

    assert len(outs) == 8
    for r in outs:
        assert r.shape == (2, 1, 16, 16)
        assert bool(jnp.all(jnp.isfinite(r)))

    # Correctness check against a pure-JAX reference (same mixed precision; loose tolerance only
    # absorbs bf16 rounding-order differences; indexing bugs would produce O(1) errors).
    ref = reference_forward(x, params)
    got = jnp.concatenate(outs, axis=1)
    max_diff = float(jnp.max(jnp.abs(got - ref)))
    assert max_diff < 5e-2, f"max |diff| vs reference = {max_diff}"

    print("KERNEL_OK")
</pallas_src>

<mosaic_0001>
module attributes {stable_mosaic.version = 11 : i64} {
  func.func @_fused_kernel(%arg0: memref<2x16x16xf32, #tpu.memory_space<vmem>>, %arg1: memref<3x16x128xbf16, #tpu.memory_space<vmem>>, %arg2: memref<128x128xf32, #tpu.memory_space<vmem>>, %arg3: memref<1x128xf32, #tpu.memory_space<vmem>>, %arg4: memref<1x128xf32, #tpu.memory_space<vmem>>, %arg5: memref<3x128x256xbf16, #tpu.memory_space<vmem>>, %arg6: memref<256x256xf32, #tpu.memory_space<vmem>>, %arg7: memref<1x256xf32, #tpu.memory_space<vmem>>, %arg8: memref<1x256xf32, #tpu.memory_space<vmem>>, %arg9: memref<3x256x512xbf16, #tpu.memory_space<vmem>>, %arg10: memref<512x512xf32, #tpu.memory_space<vmem>>, %arg11: memref<1x512xf32, #tpu.memory_space<vmem>>, %arg12: memref<1x512xf32, #tpu.memory_space<vmem>>, %arg13: memref<3x512x256xbf16, #tpu.memory_space<vmem>>, %arg14: memref<256x256xf32, #tpu.memory_space<vmem>>, %arg15: memref<1x256xf32, #tpu.memory_space<vmem>>, %arg16: memref<1x256xf32, #tpu.memory_space<vmem>>, %arg17: memref<3x256x128xbf16, #tpu.memory_space<vmem>>, %arg18: memref<128x128xf32, #tpu.memory_space<vmem>>, %arg19: memref<1x128xf32, #tpu.memory_space<vmem>>, %arg20: memref<1x128xf32, #tpu.memory_space<vmem>>, %arg21: memref<32x128xf32, #tpu.memory_space<vmem>>, %arg22: memref<2x18x16xbf16, #tpu.memory_space<vmem>>, %arg23: memref<2x18x128xbf16, #tpu.memory_space<vmem>>, %arg24: memref<2x18x256xbf16, #tpu.memory_space<vmem>>, %arg25: memref<2x18x512xbf16, #tpu.memory_space<vmem>>, %arg26: memref<2x18x256xbf16, #tpu.memory_space<vmem>>) attributes {dimension_semantics = [], scalar_prefetch = 0 : i64, scratch_operands = 5 : i64, tpu.core_type = #tpu.core_type<tc>} {
    %cst = arith.constant 0.000000e+00 : bf16
    %0 = vector.broadcast %cst : bf16 to vector<2x1x16xbf16>
    %c0 = arith.constant 0 : index
    %c0_0 = arith.constant 0 : index
    %c0_1 = arith.constant 0 : index
    %1 = vector.load %arg22[%c0, %c0_0, %c0_1] : memref<2x18x16xbf16, #tpu.memory_space<vmem>>, vector<2x1x16xbf16>
    tpu.vector_store %arg22[%c0, %c0_0, %c0_1], %0 {strides = array<i32>} : memref<2x18x16xbf16, #tpu.memory_space<vmem>>, vector<2x1x16xbf16>,
    %c0_2 = arith.constant 0 : index
    %c17 = arith.constant 17 : index
    %c0_3 = arith.constant 0 : index
    %2 = vector.load %arg22[%c0_2, %c17, %c0_3] : memref<2x18x16xbf16, #tpu.memory_space<vmem>>, vector<2x1x16xbf16>
    tpu.vector_store %arg22[%c0_2, %c17, %c0_3], %0 {strides = array<i32>} : memref<2x18x16xbf16, #tpu.memory_space<vmem>>, vector<2x1x16xbf16>,
    %cst_4 = arith.constant 0.000000e+00 : bf16
    %3 = vector.broadcast %cst_4 : bf16 to vector<2x1x128xbf16>
    %c0_5 = arith.constant 0 : index
    %c0_6 = arith.constant 0 : index
    %c0_7 = arith.constant 0 : index
    %4 = vector.load %arg23[%c0_5, %c0_6, %c0_7] : memref<2x18x128xbf16, #tpu.memory_space<vmem>>, vector<2x1x128xbf16>
    tpu.vector_store %arg23[%c0_5, %c0_6, %c0_7], %3 {strides = array<i32>} : memref<2x18x128xbf16, #tpu.memory_space<vmem>>, vector<2x1x128xbf16>,
    %c0_8 = arith.constant 0 : index
    %c17_9 = arith.constant 17 : index
    %c0_10 = arith.constant 0 : index
    %5 = vector.load %arg23[%c0_8, %c17_9, %c0_10] : memref<2x18x128xbf16, #tpu.memory_space<vmem>>, vector<2x1x128xbf16>
    tpu.vector_store %arg23[%c0_8, %c17_9, %c0_10], %3 {strides = array<i32>} : memref<2x18x128xbf16, #tpu.memory_space<vmem>>, vector<2x1x128xbf16>,
    %cst_11 = arith.constant 0.000000e+00 : bf16
    %6 = vector.broadcast %cst_11 : bf16 to vector<2x1x256xbf16>
    %c0_12 = arith.constant 0 : index
    %c0_13 = arith.constant 0 : index
    %c0_14 = arith.constant 0 : index
    %7 = vector.load %arg24[%c0_12, %c0_13, %c0_14] : memref<2x18x256xbf16, #tpu.memory_space<vmem>>, vector<2x1x256xbf16>
    tpu.vector_store %arg24[%c0_12, %c0_13, %c0_14], %6 {strides = array<i32>} : memref<2x18x256xbf16, #tpu.memory_space<vmem>>, vector<2x1x256xbf16>,
    %c0_15 = arith.constant 0 : index
    %c17_16 = arith.constant 17 : index
    %c0_17 = arith.constant 0 : index
    %8 = vector.load %arg24[%c0_15, %c17_16, %c0_17] : memref<2x18x256xbf16, #tpu.memory_space<vmem>>, vector<2x1x256xbf16>
    tpu.vector_store %arg24[%c0_15, %c17_16, %c0_17], %6 {strides = array<i32>} : memref<2x18x256xbf16, #tpu.memory_space<vmem>>, vector<2x1x256xbf16>,
    %cst_18 = arith.constant 0.000000e+00 : bf16
    %9 = vector.broadcast %cst_18 : bf16 to vector<2x1x512xbf16>
    %c0_19 = arith.constant 0 : index
    %c0_20 = arith.constant 0 : index
    %c0_21 = arith.constant 0 : index
    %10 = vector.load %arg25[%c0_19, %c0_20, %c0_21] : memref<2x18x512xbf16, #tpu.memory_space<vmem>>, vector<2x1x512xbf16>
    tpu.vector_store %arg25[%c0_19, %c0_20, %c0_21], %9 {strides = array<i32>} : memref<2x18x512xbf16, #tpu.memory_space<vmem>>, vector<2x1x512xbf16>,
    %c0_22 = arith.constant 0 : index
    %c17_23 = arith.constant 17 : index
    %c0_24 = arith.constant 0 : index
    %11 = vector.load %arg25[%c0_22, %c17_23, %c0_24] : memref<2x18x512xbf16, #tpu.memory_space<vmem>>, vector<2x1x512xbf16>
    tpu.vector_store %arg25[%c0_22, %c17_23, %c0_24], %9 {strides = array<i32>} : memref<2x18x512xbf16, #tpu.memory_space<vmem>>, vector<2x1x512xbf16>,
    %cst_25 = arith.constant 0.000000e+00 : bf16
    %12 = vector.broadcast %cst_25 : bf16 to vector<2x1x256xbf16>
    %c0_26 = arith.constant 0 : index
    %c0_27 = arith.constant 0 : index
    %c0_28 = arith.constant 0 : index
    %13 = vector.load %arg26[%c0_26, %c0_27, %c0_28] : memref<2x18x256xbf16, #tpu.memory_space<vmem>>, vector<2x1x256xbf16>
    tpu.vector_store %arg26[%c0_26, %c0_27, %c0_28], %12 {strides = array<i32>} : memref<2x18x256xbf16, #tpu.memory_space<vmem>>, vector<2x1x256xbf16>,
    %c0_29 = arith.constant 0 : index
    %c17_30 = arith.constant 17 : index
    %c0_31 = arith.constant 0 : index
    %14 = vector.load %arg26[%c0_29, %c17_30, %c0_31] : memref<2x18x256xbf16, #tpu.memory_space<vmem>>, vector<2x1x256xbf16>
    tpu.vector_store %arg26[%c0_29, %c17_30, %c0_31], %12 {strides = array<i32>} : memref<2x18x256xbf16, #tpu.memory_space<vmem>>, vector<2x1x256xbf16>,
    %c0_32 = arith.constant 0 : index
    %c0_33 = arith.constant 0 : index
    %c0_34 = arith.constant 0 : index
    %15 = vector.load %arg0[%c0_32, %c0_33, %c0_34] : memref<2x16x16xf32, #tpu.memory_space<vmem>>, vector<2x16x16xf32>
    %16 = arith.truncf %15 : vector<2x16x16xf32> to vector<2x16x16xbf16>
    %c0_35 = arith.constant 0 : index
    %c1 = arith.constant 1 : index
    %c0_36 = arith.constant 0 : index
    %17 = vector.load %arg22[%c0_35, %c1, %c0_36] : memref<2x18x16xbf16, #tpu.memory_space<vmem>>, vector<2x16x16xbf16>
    tpu.vector_store %arg22[%c0_35, %c1, %c0_36], %16 {strides = array<i32>} : memref<2x18x16xbf16, #tpu.memory_space<vmem>>, vector<2x16x16xbf16>,
    %c0_37 = arith.constant 0 : index
    %c0_38 = arith.constant 0 : index
    %c0_39 = arith.constant 0 : index
    %18 = vector.load %arg22[%c0_37, %c0_38, %c0_39] : memref<2x18x16xbf16, #tpu.memory_space<vmem>>, vector<2x16x16xbf16>
    %19 = vector.shape_cast %18 : vector<2x16x16xbf16> to vector<32x16xbf16>
    %c0_40 = arith.constant 0 : index
    %c0_41 = arith.constant 0 : index
    %c0_42 = arith.constant 0 : index
    %20 = vector.load %arg1[%c0_40, %c0_41, %c0_42] : memref<3x16x128xbf16, #tpu.memory_space<vmem>>, vector<1x16x128xbf16>
    %21 = vector.shape_cast %20 : vector<1x16x128xbf16> to vector<16x128xbf16>
    %cst_43 = arith.constant dense<0.000000e+00> : vector<32x128xf32>
    %22 = tpu.matmul %19, %21, %cst_43 {dimension_numbers = #tpu.dot_dimension_numbers<[1], [0], [0], [1], [0, 0, 1, 1], [], []>} : vector<32x16xbf16>, vector<16x128xbf16>, vector<32x128xf32> -> vector<32x128xf32>
    %c0_44 = arith.constant 0 : index
    %c1_45 = arith.constant 1 : index
    %c0_46 = arith.constant 0 : index
    %23 = vector.load %arg22[%c0_44, %c1_45, %c0_46] : memref<2x18x16xbf16, #tpu.memory_space<vmem>>, vector<2x16x16xbf16>
    %24 = vector.shape_cast %23 : vector<2x16x16xbf16> to vector<32x16xbf16>
    %c1_47 = arith.constant 1 : index
    %c0_48 = arith.constant 0 : index
    %c0_49 = arith.constant 0 : index
    %25 = vector.load %arg1[%c1_47, %c0_48, %c0_49] : memref<3x16x128xbf16, #tpu.memory_space<vmem>>, vector<1x16x128xbf16>
    %26 = vector.shape_cast %25 : vector<1x16x128xbf16> to vector<16x128xbf16>
    %cst_50 = arith.constant dense<0.000000e+00> : vector<32x128xf32>
    %27 = tpu.matmul %24, %26, %cst_50 {dimension_numbers = #tpu.dot_dimension_numbers<[1], [0], [0], [1], [0, 0, 1, 1], [], []>} : vector<32x16xbf16>, vector<16x128xbf16>, vector<32x128xf32> -> vector<32x128xf32>
    %28 = arith.addf %22, %27 : vector<32x128xf32>
    %c0_51 = arith.constant 0 : index
    %c2 = arith.constant 2 : index
    %c0_52 = arith.constant 0 : index
    %29 = vector.load %arg22[%c0_51, %c2, %c0_52] : memref<2x18x16xbf16, #tpu.memory_space<vmem>>, vector<2x16x16xbf16>
    %30 = vector.shape_cast %29 : vector<2x16x16xbf16> to vector<32x16xbf16>
    %c2_53 = arith.constant 2 : index
    %c0_54 = arith.constant 0 : index
    %c0_55 = arith.constant 0 : index
    %31 = vector.load %arg1[%c2_53, %c0_54, %c0_55] : memref<3x16x128xbf16, #tpu.memory_space<vmem>>, vector<1x16x128xbf16>
    %32 = vector.shape_cast %31 : vector<1x16x128xbf16> to vector<16x128xbf16>
    %cst_56 = arith.constant dense<0.000000e+00> : vector<32x128xf32>
    %33 = tpu.matmul %30, %32, %cst_56 {dimension_numbers = #tpu.dot_dimension_numbers<[1], [0], [0], [1], [0, 0, 1, 1], [], []>} : vector<32x16xbf16>, vector<16x128xbf16>, vector<32x128xf32> -> vector<32x128xf32>
    %34 = arith.addf %28, %33 : vector<32x128xf32>
    %cst_57 = arith.constant dense<0.000000e+00> : vector<128xf32>
    %35 = vector.multi_reduction <add>, %34, %cst_57 [0] : vector<32x128xf32> to vector<128xf32>
    %36 = vector.shape_cast %35 : vector<128xf32> to vector<1x128xf32>
    %37 = arith.mulf %34, %34 : vector<32x128xf32>
    %cst_58 = arith.constant dense<0.000000e+00> : vector<128xf32>
    %38 = vector.multi_reduction <add>, %37, %cst_58 [0] : vector<32x128xf32> to vector<128xf32>
    %39 = vector.shape_cast %38 : vector<128xf32> to vector<1x128xf32>
    %40 = tpu.concatenate %36, %39 in 0 : vector<1x128xf32>, vector<1x128xf32> -> vector<2x128xf32>
    %c0_59 = arith.constant 0 : index
    %c0_60 = arith.constant 0 : index
    %41 = vector.load %arg2[%c0_59, %c0_60] : memref<128x128xf32, #tpu.memory_space<vmem>>, vector<128x128xf32>
    %cst_61 = arith.constant dense<0.000000e+00> : vector<2x128xf32>
    %42 = tpu.matmul %40, %41, %cst_61 {dimension_numbers = #tpu.dot_dimension_numbers<[1], [0], [0], [1], [0, 0, 1, 1], [], []>} : vector<2x128xf32>, vector<128x128xf32>, vector<2x128xf32> -> vector<2x128xf32>
    %cst_62 = arith.constant 0.001953125 : f32
    %43 = vector.broadcast %cst_62 : f32 to vector<2x128xf32>
    %44 = arith.mulf %42, %43 : vector<2x128xf32>
    %45 = vector.extract_strided_slice %44 {offsets = [0, 0], sizes = [1, 128], strides = [1, 1]} : vector<2x128xf32> to vector<1x128xf32>
    %46 = vector.extract_strided_slice %44 {offsets = [1, 0], sizes = [1, 128], strides = [1, 1]} : vector<2x128xf32> to vector<1x128xf32>
    %47 = arith.mulf %45, %45 : vector<1x128xf32>
    %48 = arith.subf %46, %47 : vector<1x128xf32>
    %c0_63 = arith.constant 0 : index
    %c0_64 = arith.constant 0 : index
    %49 = vector.load %arg3[%c0_63, %c0_64] : memref<1x128xf32, #tpu.memory_space<vmem>>, vector<1x128xf32>
    %cst_65 = arith.constant 9.99999974E-6 : f32
    %50 = vector.broadcast %cst_65 : f32 to vector<1x128xf32>
    %51 = arith.addf %48, %50 : vector<1x128xf32>
    %52 = math.rsqrt %51 : vector<1x128xf32>
    %53 = arith.mulf %49, %52 : vector<1x128xf32>
    %c0_66 = arith.constant 0 : index
    %c0_67 = arith.constant 0 : index
    %54 = vector.load %arg4[%c0_66, %c0_67] : memref<1x128xf32, #tpu.memory_space<vmem>>, vector<1x128xf32>
    %55 = arith.mulf %45, %53 : vector<1x128xf32>
    %56 = arith.subf %54, %55 : vector<1x128xf32>
    %57 = vector.broadcast %53 : vector<1x128xf32> to vector<32x128xf32>
    %58 = arith.mulf %34, %57 : vector<32x128xf32>
    %59 = vector.broadcast %56 : vector<1x128xf32> to vector<32x128xf32>
    %60 = arith.addf %58, %59 : vector<32x128xf32>
    %cst_68 = arith.constant 0.000000e+00 : f32
    %61 = vector.broadcast %cst_68 : f32 to vector<32x128xf32>
    %62 = arith.cmpf oge, %60, %61 : vector<32x128xf32>
    %cst_69 = arith.constant 0.00999999977 : f32
    %63 = vector.broadcast %cst_69 : f32 to vector<32x128xf32>
    %64 = arith.mulf %63, %60 : vector<32x128xf32>
    %65 = arith.select %62, %60, %64 : vector<32x128xi1>, vector<32x128xf32>
    %66 = vector.shape_cast %65 : vector<32x128xf32> to vector<2x16x128xf32>
    %67 = arith.truncf %66 : vector<2x16x128xf32> to vector<2x16x128xbf16>
    %c0_70 = arith.constant 0 : index
    %c1_71 = arith.constant 1 : index
    %c0_72 = arith.constant 0 : index
    %68 = vector.load %arg23[%c0_70, %c1_71, %c0_72] : memref<2x18x128xbf16, #tpu.memory_space<vmem>>, vector<2x16x128xbf16>
    tpu.vector_store %arg23[%c0_70, %c1_71, %c0_72], %67 {strides = array<i32>} : memref<2x18x128xbf16, #tpu.memory_space<vmem>>, vector<2x16x128xbf16>,
    %c0_73 = arith.constant 0 : index
    %c0_74 = arith.constant 0 : index
    %c0_75 = arith.constant 0 : index
    %69 = vector.load %arg23[%c0_73, %c0_74, %c0_75] : memref<2x18x128xbf16, #tpu.memory_space<vmem>>, vector<2x16x128xbf16>
    %70 = vector.shape_cast %69 : vector<2x16x128xbf16> to vector<32x128xbf16>
    %c0_76 = arith.constant 0 : index
    %c0_77 = arith.constant 0 : index
    %c0_78 = arith.constant 0 : index
    %71 = vector.load %arg5[%c0_76, %c0_77, %c0_78] : memref<3x128x256xbf16, #tpu.memory_space<vmem>>, vector<1x128x256xbf16>
    %72 = vector.shape_cast %71 : vector<1x128x256xbf16> to vector<128x256xbf16>
    %cst_79 = arith.constant dense<0.000000e+00> : vector<32x256xf32>
    %73 = tpu.matmul %70, %72, %cst_79 {dimension_numbers = #tpu.dot_dimension_numbers<[1], [0], [0], [1], [0, 0, 1, 1], [], []>} : vector<32x128xbf16>, vector<128x256xbf16>, vector<32x256xf32> -> vector<32x256xf32>
    %c0_80 = arith.constant 0 : index
    %c1_81 = arith.constant 1 : index
    %c0_82 = arith.constant 0 : index
    %74 = vector.load %arg23[%c0_80, %c1_81, %c0_82] : memref<2x18x128xbf16, #tpu.memory_space<vmem>>, vector<2x16x128xbf16>
    %75 = vector.shape_cast %74 : vector<2x16x128xbf16> to vector<32x128xbf16>
    %c1_83 = arith.constant 1 : index
    %c0_84 = arith.constant 0 : index
    %c0_85 = arith.constant 0 : index
    %76 = vector.load %arg5[%c1_83, %c0_84, %c0_85] : memref<3x128x256xbf16, #tpu.memory_space<vmem>>, vector<1x128x256xbf16>
    %77 = vector.shape_cast %76 : vector<1x128x256xbf16> to vector<128x256xbf16>
    %cst_86 = arith.constant dense<0.000000e+00> : vector<32x256xf32>
    %78 = tpu.matmul %75, %77, %cst_86 {dimension_numbers = #tpu.dot_dimension_numbers<[1], [0], [0], [1], [0, 0, 1, 1], [], []>} : vector<32x128xbf16>, vector<128x256xbf16>, vector<32x256xf32> -> vector<32x256xf32>
    %79 = arith.addf %73, %78 : vector<32x256xf32>
    %c0_87 = arith.constant 0 : index
    %c2_88 = arith.constant 2 : index
    %c0_89 = arith.constant 0 : index
    %80 = vector.load %arg23[%c0_87, %c2_88, %c0_89] : memref<2x18x128xbf16, #tpu.memory_space<vmem>>, vector<2x16x128xbf16>
    %81 = vector.shape_cast %80 : vector<2x16x128xbf16> to vector<32x128xbf16>
    %c2_90 = arith.constant 2 : index
    %c0_91 = arith.constant 0 : index
    %c0_92 = arith.constant 0 : index
    %82 = vector.load %arg5[%c2_90, %c0_91, %c0_92] : memref<3x128x256xbf16, #tpu.memory_space<vmem>>, vector<1x128x256xbf16>
    %83 = vector.shape_cast %82 : vector<1x128x256xbf16> to vector<128x256xbf16>
    %cst_93 = arith.constant dense<0.000000e+00> : vector<32x256xf32>
    %84 = tpu.matmul %81, %83, %cst_93 {dimension_numbers = #tpu.dot_dimension_numbers<[1], [0], [0], [1], [0, 0, 1, 1], [], []>} : vector<32x128xbf16>, vector<128x256xbf16>, vector<32x256xf32> -> vector<32x256xf32>
    %85 = arith.addf %79, %84 : vector<32x256xf32>
    %cst_94 = arith.constant dense<0.000000e+00> : vector<256xf32>
    %86 = vector.multi_reduction <add>, %85, %cst_94 [0] : vector<32x256xf32> to vector<256xf32>
    %87 = vector.shape_cast %86 : vector<256xf32> to vector<1x256xf32>
    %88 = arith.mulf %85, %85 : vector<32x256xf32>
    %cst_95 = arith.constant dense<0.000000e+00> : vector<256xf32>
    %89 = vector.multi_reduction <add>, %88, %cst_95 [0] : vector<32x256xf32> to vector<256xf32>
    %90 = vector.shape_cast %89 : vector<256xf32> to vector<1x256xf32>
    %91 = tpu.concatenate %87, %90 in 0 : vector<1x256xf32>, vector<1x256xf32> -> vector<2x256xf32>
    %c0_96 = arith.constant 0 : index
    %c0_97 = arith.constant 0 : index
    %92 = vector.load %arg6[%c0_96, %c0_97] : memref<256x256xf32, #tpu.memory_space<vmem>>, vector<256x256xf32>
    %cst_98 = arith.constant dense<0.000000e+00> : vector<2x256xf32>
    %93 = tpu.matmul %91, %92, %cst_98 {dimension_numbers = #tpu.dot_dimension_numbers<[1], [0], [0], [1], [0, 0, 1, 1], [], []>} : vector<2x256xf32>, vector<256x256xf32>, vector<2x256xf32> -> vector<2x256xf32>
    %cst_99 = arith.constant 0.001953125 : f32
    %94 = vector.broadcast %cst_99 : f32 to vector<2x256xf32>
    %95 = arith.mulf %93, %94 : vector<2x256xf32>
    %96 = vector.extract_strided_slice %95 {offsets = [0, 0], sizes = [1, 256], strides = [1, 1]} : vector<2x256xf32> to vector<1x256xf32>
    %97 = vector.extract_strided_slice %95 {offsets = [1, 0], sizes = [1, 256], strides = [1, 1]} : vector<2x256xf32> to vector<1x256xf32>
    %98 = arith.mulf %96, %96 : vector<1x256xf32>
    %99 = arith.subf %97, %98 : vector<1x256xf32>
    %c0_100 = arith.constant 0 : index
    %c0_101 = arith.constant 0 : index
    %100 = vector.load %arg7[%c0_100, %c0_101] : memref<1x256xf32, #tpu.memory_space<vmem>>, vector<1x256xf32>
    %cst_102 = arith.constant 9.99999974E-6 : f32
    %101 = vector.broadcast %cst_102 : f32 to vector<1x256xf32>
    %102 = arith.addf %99, %101 : vector<1x256xf32>
    %103 = math.rsqrt %102 : vector<1x256xf32>
    %104 = arith.mulf %100, %103 : vector<1x256xf32>
    %c0_103 = arith.constant 0 : index
    %c0_104 = arith.constant 0 : index
    %105 = vector.load %arg8[%c0_103, %c0_104] : memref<1x256xf32, #tpu.memory_space<vmem>>, vector<1x256xf32>
    %106 = arith.mulf %96, %104 : vector<1x256xf32>
    %107 = arith.subf %105, %106 : vector<1x256xf32>
    %108 = vector.broadcast %104 : vector<1x256xf32> to vector<32x256xf32>
    %109 = arith.mulf %85, %108 : vector<32x256xf32>
    %110 = vector.broadcast %107 : vector<1x256xf32> to vector<32x256xf32>
    %111 = arith.addf %109, %110 : vector<32x256xf32>
    %cst_105 = arith.constant 0.000000e+00 : f32
    %112 = vector.broadcast %cst_105 : f32 to vector<32x256xf32>
    %113 = arith.cmpf oge, %111, %112 : vector<32x256xf32>
    %cst_106 = arith.constant 0.00999999977 : f32
    %114 = vector.broadcast %cst_106 : f32 to vector<32x256xf32>
    %115 = arith.mulf %114, %111 : vector<32x256xf32>
    %116 = arith.select %113, %111, %115 : vector<32x256xi1>, vector<32x256xf32>
    %117 = vector.shape_cast %116 : vector<32x256xf32> to vector<2x16x256xf32>
    %118 = arith.truncf %117 : vector<2x16x256xf32> to vector<2x16x256xbf16>
    %c0_107 = arith.constant 0 : index
    %c1_108 = arith.constant 1 : index
    %c0_109 = arith.constant 0 : index
    %119 = vector.load %arg24[%c0_107, %c1_108, %c0_109] : memref<2x18x256xbf16, #tpu.memory_space<vmem>>, vector<2x16x256xbf16>
    tpu.vector_store %arg24[%c0_107, %c1_108, %c0_109], %118 {strides = array<i32>} : memref<2x18x256xbf16, #tpu.memory_space<vmem>>, vector<2x16x256xbf16>,
    %c0_110 = arith.constant 0 : index
    %c0_111 = arith.constant 0 : index
    %c0_112 = arith.constant 0 : index
    %120 = vector.load %arg24[%c0_110, %c0_111, %c0_112] : memref<2x18x256xbf16, #tpu.memory_space<vmem>>, vector<2x16x256xbf16>
    %121 = vector.shape_cast %120 : vector<2x16x256xbf16> to vector<32x256xbf16>
    %c0_113 = arith.constant 0 : index
    %c0_114 = arith.constant 0 : index
    %c0_115 = arith.constant 0 : index
    %122 = vector.load %arg9[%c0_113, %c0_114, %c0_115] : memref<3x256x512xbf16, #tpu.memory_space<vmem>>, vector<1x256x512xbf16>
    %123 = vector.shape_cast %122 : vector<1x256x512xbf16> to vector<256x512xbf16>
    %cst_116 = arith.constant dense<0.000000e+00> : vector<32x512xf32>
    %124 = tpu.matmul %121, %123, %cst_116 {dimension_numbers = #tpu.dot_dimension_numbers<[1], [0], [0], [1], [0, 0, 1, 1], [], []>} : vector<32x256xbf16>, vector<256x512xbf16>, vector<32x512xf32> -> vector<32x512xf32>
    %c0_117 = arith.constant 0 : index
    %c1_118 = arith.constant 1 : index
    %c0_119 = arith.constant 0 : index
    %125 = vector.load %arg24[%c0_117, %c1_118, %c0_119] : memref<2x18x256xbf16, #tpu.memory_space<vmem>>, vector<2x16x256xbf16>
    %126 = vector.shape_cast %125 : vector<2x16x256xbf16> to vector<32x256xbf16>
    %c1_120 = arith.constant 1 : index
    %c0_121 = arith.constant 0 : index
    %c0_122 = arith.constant 0 : index
    %127 = vector.load %arg9[%c1_120, %c0_121, %c0_122] : memref<3x256x512xbf16, #tpu.memory_space<vmem>>, vector<1x256x512xbf16>
    %128 = vector.shape_cast %127 : vector<1x256x512xbf16> to vector<256x512xbf16>
    %cst_123 = arith.constant dense<0.000000e+00> : vector<32x512xf32>
    %129 = tpu.matmul %126, %128, %cst_123 {dimension_numbers = #tpu.dot_dimension_numbers<[1], [0], [0], [1], [0, 0, 1, 1], [], []>} : vector<32x256xbf16>, vector<256x512xbf16>, vector<32x512xf32> -> vector<32x512xf32>
    %130 = arith.addf %124, %129 : vector<32x512xf32>
    %c0_124 = arith.constant 0 : index
    %c2_125 = arith.constant 2 : index
    %c0_126 = arith.constant 0 : index
    %131 = vector.load %arg24[%c0_124, %c2_125, %c0_126] : memref<2x18x256xbf16, #tpu.memory_space<vmem>>, vector<2x16x256xbf16>
    %132 = vector.shape_cast %131 : vector<2x16x256xbf16> to vector<32x256xbf16>
    %c2_127 = arith.constant 2 : index
    %c0_128 = arith.constant 0 : index
    %c0_129 = arith.constant 0 : index
    %133 = vector.load %arg9[%c2_127, %c0_128, %c0_129] : memref<3x256x512xbf16, #tpu.memory_space<vmem>>, vector<1x256x512xbf16>
    %134 = vector.shape_cast %133 : vector<1x256x512xbf16> to vector<256x512xbf16>
    %cst_130 = arith.constant dense<0.000000e+00> : vector<32x512xf32>
    %135 = tpu.matmul %132, %134, %cst_130 {dimension_numbers = #tpu.dot_dimension_numbers<[1], [0], [0], [1], [0, 0, 1, 1], [], []>} : vector<32x256xbf16>, vector<256x512xbf16>, vector<32x512xf32> -> vector<32x512xf32>
    %136 = arith.addf %130, %135 : vector<32x512xf32>
    %cst_131 = arith.constant dense<0.000000e+00> : vector<512xf32>
    %137 = vector.multi_reduction <add>, %136, %cst_131 [0] : vector<32x512xf32> to vector<512xf32>
    %138 = vector.shape_cast %137 : vector<512xf32> to vector<1x512xf32>
    %139 = arith.mulf %136, %136 : vector<32x512xf32>
    %cst_132 = arith.constant dense<0.000000e+00> : vector<512xf32>
    %140 = vector.multi_reduction <add>, %139, %cst_132 [0] : vector<32x512xf32> to vector<512xf32>
    %141 = vector.shape_cast %140 : vector<512xf32> to vector<1x512xf32>
    %142 = tpu.concatenate %138, %141 in 0 : vector<1x512xf32>, vector<1x512xf32> -> vector<2x512xf32>
    %c0_133 = arith.constant 0 : index
    %c0_134 = arith.constant 0 : index
    %143 = vector.load %arg10[%c0_133, %c0_134] : memref<512x512xf32, #tpu.memory_space<vmem>>, vector<512x512xf32>
    %cst_135 = arith.constant dense<0.000000e+00> : vector<2x512xf32>
    %144 = tpu.matmul %142, %143, %cst_135 {dimension_numbers = #tpu.dot_dimension_numbers<[1], [0], [0], [1], [0, 0, 1, 1], [], []>} : vector<2x512xf32>, vector<512x512xf32>, vector<2x512xf32> -> vector<2x512xf32>
    %cst_136 = arith.constant 0.001953125 : f32
    %145 = vector.broadcast %cst_136 : f32 to vector<2x512xf32>
    %146 = arith.mulf %144, %145 : vector<2x512xf32>
    %147 = vector.extract_strided_slice %146 {offsets = [0, 0], sizes = [1, 512], strides = [1, 1]} : vector<2x512xf32> to vector<1x512xf32>
    %148 = vector.extract_strided_slice %146 {offsets = [1, 0], sizes = [1, 512], strides = [1, 1]} : vector<2x512xf32> to vector<1x512xf32>
    %149 = arith.mulf %147, %147 : vector<1x512xf32>
    %150 = arith.subf %148, %149 : vector<1x512xf32>
    %c0_137 = arith.constant 0 : index
    %c0_138 = arith.constant 0 : index
    %151 = vector.load %arg11[%c0_137, %c0_138] : memref<1x512xf32, #tpu.memory_space<vmem>>, vector<1x512xf32>
    %cst_139 = arith.constant 9.99999974E-6 : f32
    %152 = vector.broadcast %cst_139 : f32 to vector<1x512xf32>
    %153 = arith.addf %150, %152 : vector<1x512xf32>
    %154 = math.rsqrt %153 : vector<1x512xf32>
    %155 = arith.mulf %151, %154 : vector<1x512xf32>
    %c0_140 = arith.constant 0 : index
    %c0_141 = arith.constant 0 : index
    %156 = vector.load %arg12[%c0_140, %c0_141] : memref<1x512xf32, #tpu.memory_space<vmem>>, vector<1x512xf32>
    %157 = arith.mulf %147, %155 : vector<1x512xf32>
    %158 = arith.subf %156, %157 : vector<1x512xf32>
    %159 = vector.broadcast %155 : vector<1x512xf32> to vector<32x512xf32>
    %160 = arith.mulf %136, %159 : vector<32x512xf32>
    %161 = vector.broadcast %158 : vector<1x512xf32> to vector<32x512xf32>
    %162 = arith.addf %160, %161 : vector<32x512xf32>
    %cst_142 = arith.constant 0.000000e+00 : f32
    %163 = vector.broadcast %cst_142 : f32 to vector<32x512xf32>
    %164 = arith.cmpf oge, %162, %163 : vector<32x512xf32>
    %cst_143 = arith.constant 0.00999999977 : f32
    %165 = vector.broadcast %cst_143 : f32 to vector<32x512xf32>
    %166 = arith.mulf %165, %162 : vector<32x512xf32>
    %167 = arith.select %164, %162, %166 : vector<32x512xi1>, vector<32x512xf32>
    %168 = vector.shape_cast %167 : vector<32x512xf32> to vector<2x16x512xf32>
    %169 = arith.truncf %168 : vector<2x16x512xf32> to vector<2x16x512xbf16>
    %c0_144 = arith.constant 0 : index
    %c1_145 = arith.constant 1 : index
    %c0_146 = arith.constant 0 : index
    %170 = vector.load %arg25[%c0_144, %c1_145, %c0_146] : memref<2x18x512xbf16, #tpu.memory_space<vmem>>, vector<2x16x512xbf16>
    tpu.vector_store %arg25[%c0_144, %c1_145, %c0_146], %169 {strides = array<i32>} : memref<2x18x512xbf16, #tpu.memory_space<vmem>>, vector<2x16x512xbf16>,
    %c0_147 = arith.constant 0 : index
    %c0_148 = arith.constant 0 : index
    %c0_149 = arith.constant 0 : index
    %171 = vector.load %arg25[%c0_147, %c0_148, %c0_149] : memref<2x18x512xbf16, #tpu.memory_space<vmem>>, vector<2x16x512xbf16>
    %172 = vector.shape_cast %171 : vector<2x16x512xbf16> to vector<32x512xbf16>
    %c0_150 = arith.constant 0 : index
    %c0_151 = arith.constant 0 : index
    %c0_152 = arith.constant 0 : index
    %173 = vector.load %arg13[%c0_150, %c0_151, %c0_152] : memref<3x512x256xbf16, #tpu.memory_space<vmem>>, vector<1x512x256xbf16>
    %174 = vector.shape_cast %173 : vector<1x512x256xbf16> to vector<512x256xbf16>
    %cst_153 = arith.constant dense<0.000000e+00> : vector<32x256xf32>
    %175 = tpu.matmul %172, %174, %cst_153 {dimension_numbers = #tpu.dot_dimension_numbers<[1], [0], [0], [1], [0, 0, 1, 1], [], []>} : vector<32x512xbf16>, vector<512x256xbf16>, vector<32x256xf32> -> vector<32x256xf32>
    %c0_154 = arith.constant 0 : index
    %c1_155 = arith.constant 1 : index
    %c0_156 = arith.constant 0 : index
    %176 = vector.load %arg25[%c0_154, %c1_155, %c0_156] : memref<2x18x512xbf16, #tpu.memory_space<vmem>>, vector<2x16x512xbf16>
    %177 = vector.shape_cast %176 : vector<2x16x512xbf16> to vector<32x512xbf16>
    %c1_157 = arith.constant 1 : index
    %c0_158 = arith.constant 0 : index
    %c0_159 = arith.constant 0 : index
    %178 = vector.load %arg13[%c1_157, %c0_158, %c0_159] : memref<3x512x256xbf16, #tpu.memory_space<vmem>>, vector<1x512x256xbf16>
    %179 = vector.shape_cast %178 : vector<1x512x256xbf16> to vector<512x256xbf16>
    %cst_160 = arith.constant dense<0.000000e+00> : vector<32x256xf32>
    %180 = tpu.matmul %177, %179, %cst_160 {dimension_numbers = #tpu.dot_dimension_numbers<[1], [0], [0], [1], [0, 0, 1, 1], [], []>} : vector<32x512xbf16>, vector<512x256xbf16>, vector<32x256xf32> -> vector<32x256xf32>
    %181 = arith.addf %175, %180 : vector<32x256xf32>
    %c0_161 = arith.constant 0 : index
    %c2_162 = arith.constant 2 : index
    %c0_163 = arith.constant 0 : index
    %182 = vector.load %arg25[%c0_161, %c2_162, %c0_163] : memref<2x18x512xbf16, #tpu.memory_space<vmem>>, vector<2x16x512xbf16>
    %183 = vector.shape_cast %182 : vector<2x16x512xbf16> to vector<32x512xbf16>
    %c2_164 = arith.constant 2 : index
    %c0_165 = arith.constant 0 : index
    %c0_166 = arith.constant 0 : index
    %184 = vector.load %arg13[%c2_164, %c0_165, %c0_166] : memref<3x512x256xbf16, #tpu.memory_space<vmem>>, vector<1x512x256xbf16>
    %185 = vector.shape_cast %184 : vector<1x512x256xbf16> to vector<512x256xbf16>
    %cst_167 = arith.constant dense<0.000000e+00> : vector<32x256xf32>
    %186 = tpu.matmul %183, %185, %cst_167 {dimension_numbers = #tpu.dot_dimension_numbers<[1], [0], [0], [1], [0, 0, 1, 1], [], []>} : vector<32x512xbf16>, vector<512x256xbf16>, vector<32x256xf32> -> vector<32x256xf32>
    %187 = arith.addf %181, %186 : vector<32x256xf32>
    %cst_168 = arith.constant dense<0.000000e+00> : vector<256xf32>
    %188 = vector.multi_reduction <add>, %187, %cst_168 [0] : vector<32x256xf32> to vector<256xf32>
    %189 = vector.shape_cast %188 : vector<256xf32> to vector<1x256xf32>
    %190 = arith.mulf %187, %187 : vector<32x256xf32>
    %cst_169 = arith.constant dense<0.000000e+00> : vector<256xf32>
    %191 = vector.multi_reduction <add>, %190, %cst_169 [0] : vector<32x256xf32> to vector<256xf32>
    %192 = vector.shape_cast %191 : vector<256xf32> to vector<1x256xf32>
    %193 = tpu.concatenate %189, %192 in 0 : vector<1x256xf32>, vector<1x256xf32> -> vector<2x256xf32>
    %c0_170 = arith.constant 0 : index
    %c0_171 = arith.constant 0 : index
    %194 = vector.load %arg14[%c0_170, %c0_171] : memref<256x256xf32, #tpu.memory_space<vmem>>, vector<256x256xf32>
    %cst_172 = arith.constant dense<0.000000e+00> : vector<2x256xf32>
    %195 = tpu.matmul %193, %194, %cst_172 {dimension_numbers = #tpu.dot_dimension_numbers<[1], [0], [0], [1], [0, 0, 1, 1], [], []>} : vector<2x256xf32>, vector<256x256xf32>, vector<2x256xf32> -> vector<2x256xf32>
    %cst_173 = arith.constant 0.001953125 : f32
    %196 = vector.broadcast %cst_173 : f32 to vector<2x256xf32>
    %197 = arith.mulf %195, %196 : vector<2x256xf32>
    %198 = vector.extract_strided_slice %197 {offsets = [0, 0], sizes = [1, 256], strides = [1, 1]} : vector<2x256xf32> to vector<1x256xf32>
    %199 = vector.extract_strided_slice %197 {offsets = [1, 0], sizes = [1, 256], strides = [1, 1]} : vector<2x256xf32> to vector<1x256xf32>
    %200 = arith.mulf %198, %198 : vector<1x256xf32>
    %201 = arith.subf %199, %200 : vector<1x256xf32>
    %c0_174 = arith.constant 0 : index
    %c0_175 = arith.constant 0 : index
    %202 = vector.load %arg15[%c0_174, %c0_175] : memref<1x256xf32, #tpu.memory_space<vmem>>, vector<1x256xf32>
    %cst_176 = arith.constant 9.99999974E-6 : f32
    %203 = vector.broadcast %cst_176 : f32 to vector<1x256xf32>
    %204 = arith.addf %201, %203 : vector<1x256xf32>
    %205 = math.rsqrt %204 : vector<1x256xf32>
    %206 = arith.mulf %202, %205 : vector<1x256xf32>
    %c0_177 = arith.constant 0 : index
    %c0_178 = arith.constant 0 : index
    %207 = vector.load %arg16[%c0_177, %c0_178] : memref<1x256xf32, #tpu.memory_space<vmem>>, vector<1x256xf32>
    %208 = arith.mulf %198, %206 : vector<1x256xf32>
    %209 = arith.subf %207, %208 : vector<1x256xf32>
    %210 = vector.broadcast %206 : vector<1x256xf32> to vector<32x256xf32>
    %211 = arith.mulf %187, %210 : vector<32x256xf32>
    %212 = vector.broadcast %209 : vector<1x256xf32> to vector<32x256xf32>
    %213 = arith.addf %211, %212 : vector<32x256xf32>
    %cst_179 = arith.constant 0.000000e+00 : f32
    %214 = vector.broadcast %cst_179 : f32 to vector<32x256xf32>
    %215 = arith.cmpf oge, %213, %214 : vector<32x256xf32>
    %cst_180 = arith.constant 0.00999999977 : f32
    %216 = vector.broadcast %cst_180 : f32 to vector<32x256xf32>
    %217 = arith.mulf %216, %213 : vector<32x256xf32>
    %218 = arith.select %215, %213, %217 : vector<32x256xi1>, vector<32x256xf32>
    %219 = vector.shape_cast %218 : vector<32x256xf32> to vector<2x16x256xf32>
    %220 = arith.truncf %219 : vector<2x16x256xf32> to vector<2x16x256xbf16>
    %c0_181 = arith.constant 0 : index
    %c1_182 = arith.constant 1 : index
    %c0_183 = arith.constant 0 : index
    %221 = vector.load %arg26[%c0_181, %c1_182, %c0_183] : memref<2x18x256xbf16, #tpu.memory_space<vmem>>, vector<2x16x256xbf16>
    tpu.vector_store %arg26[%c0_181, %c1_182, %c0_183], %220 {strides = array<i32>} : memref<2x18x256xbf16, #tpu.memory_space<vmem>>, vector<2x16x256xbf16>,
    %c0_184 = arith.constant 0 : index
    %c0_185 = arith.constant 0 : index
    %c0_186 = arith.constant 0 : index
    %222 = vector.load %arg26[%c0_184, %c0_185, %c0_186] : memref<2x18x256xbf16, #tpu.memory_space<vmem>>, vector<2x16x256xbf16>
    %223 = vector.shape_cast %222 : vector<2x16x256xbf16> to vector<32x256xbf16>
    %c0_187 = arith.constant 0 : index
    %c0_188 = arith.constant 0 : index
    %c0_189 = arith.constant 0 : index
    %224 = vector.load %arg17[%c0_187, %c0_188, %c0_189] : memref<3x256x128xbf16, #tpu.memory_space<vmem>>, vector<1x256x128xbf16>
    %225 = vector.shape_cast %224 : vector<1x256x128xbf16> to vector<256x128xbf16>
    %cst_190 = arith.constant dense<0.000000e+00> : vector<32x128xf32>
    %226 = tpu.matmul %223, %225, %cst_190 {dimension_numbers = #tpu.dot_dimension_numbers<[1], [0], [0], [1], [0, 0, 1, 1], [], []>} : vector<32x256xbf16>, vector<256x128xbf16>, vector<32x128xf32> -> vector<32x128xf32>
    %c0_191 = arith.constant 0 : index
    %c1_192 = arith.constant 1 : index
    %c0_193 = arith.constant 0 : index
    %227 = vector.load %arg26[%c0_191, %c1_192, %c0_193] : memref<2x18x256xbf16, #tpu.memory_space<vmem>>, vector<2x16x256xbf16>
    %228 = vector.shape_cast %227 : vector<2x16x256xbf16> to vector<32x256xbf16>
    %c1_194 = arith.constant 1 : index
    %c0_195 = arith.constant 0 : index
    %c0_196 = arith.constant 0 : index
    %229 = vector.load %arg17[%c1_194, %c0_195, %c0_196] : memref<3x256x128xbf16, #tpu.memory_space<vmem>>, vector<1x256x128xbf16>
    %230 = vector.shape_cast %229 : vector<1x256x128xbf16> to vector<256x128xbf16>
    %cst_197 = arith.constant dense<0.000000e+00> : vector<32x128xf32>
    %231 = tpu.matmul %228, %230, %cst_197 {dimension_numbers = #tpu.dot_dimension_numbers<[1], [0], [0], [1], [0, 0, 1, 1], [], []>} : vector<32x256xbf16>, vector<256x128xbf16>, vector<32x128xf32> -> vector<32x128xf32>
    %232 = arith.addf %226, %231 : vector<32x128xf32>
    %c0_198 = arith.constant 0 : index
    %c2_199 = arith.constant 2 : index
    %c0_200 = arith.constant 0 : index
    %233 = vector.load %arg26[%c0_198, %c2_199, %c0_200] : memref<2x18x256xbf16, #tpu.memory_space<vmem>>, vector<2x16x256xbf16>
    %234 = vector.shape_cast %233 : vector<2x16x256xbf16> to vector<32x256xbf16>
    %c2_201 = arith.constant 2 : index
    %c0_202 = arith.constant 0 : index
    %c0_203 = arith.constant 0 : index
    %235 = vector.load %arg17[%c2_201, %c0_202, %c0_203] : memref<3x256x128xbf16, #tpu.memory_space<vmem>>, vector<1x256x128xbf16>
    %236 = vector.shape_cast %235 : vector<1x256x128xbf16> to vector<256x128xbf16>
    %cst_204 = arith.constant dense<0.000000e+00> : vector<32x128xf32>
    %237 = tpu.matmul %234, %236, %cst_204 {dimension_numbers = #tpu.dot_dimension_numbers<[1], [0], [0], [1], [0, 0, 1, 1], [], []>} : vector<32x256xbf16>, vector<256x128xbf16>, vector<32x128xf32> -> vector<32x128xf32>
    %238 = arith.addf %232, %237 : vector<32x128xf32>
    %cst_205 = arith.constant dense<0.000000e+00> : vector<128xf32>
    %239 = vector.multi_reduction <add>, %238, %cst_205 [0] : vector<32x128xf32> to vector<128xf32>
    %240 = vector.shape_cast %239 : vector<128xf32> to vector<1x128xf32>
    %241 = arith.mulf %238, %238 : vector<32x128xf32>
    %cst_206 = arith.constant dense<0.000000e+00> : vector<128xf32>
    %242 = vector.multi_reduction <add>, %241, %cst_206 [0] : vector<32x128xf32> to vector<128xf32>
    %243 = vector.shape_cast %242 : vector<128xf32> to vector<1x128xf32>
    %244 = tpu.concatenate %240, %243 in 0 : vector<1x128xf32>, vector<1x128xf32> -> vector<2x128xf32>
    %c0_207 = arith.constant 0 : index
    %c0_208 = arith.constant 0 : index
    %245 = vector.load %arg18[%c0_207, %c0_208] : memref<128x128xf32, #tpu.memory_space<vmem>>, vector<128x128xf32>
    %cst_209 = arith.constant dense<0.000000e+00> : vector<2x128xf32>
    %246 = tpu.matmul %244, %245, %cst_209 {dimension_numbers = #tpu.dot_dimension_numbers<[1], [0], [0], [1], [0, 0, 1, 1], [], []>} : vector<2x128xf32>, vector<128x128xf32>, vector<2x128xf32> -> vector<2x128xf32>
    %cst_210 = arith.constant 0.001953125 : f32
    %247 = vector.broadcast %cst_210 : f32 to vector<2x128xf32>
    %248 = arith.mulf %246, %247 : vector<2x128xf32>
    %249 = vector.extract_strided_slice %248 {offsets = [0, 0], sizes = [1, 128], strides = [1, 1]} : vector<2x128xf32> to vector<1x128xf32>
    %250 = vector.extract_strided_slice %248 {offsets = [1, 0], sizes = [1, 128], strides = [1, 1]} : vector<2x128xf32> to vector<1x128xf32>
    %251 = arith.mulf %249, %249 : vector<1x128xf32>
    %252 = arith.subf %250, %251 : vector<1x128xf32>
    %c0_211 = arith.constant 0 : index
    %c0_212 = arith.constant 0 : index
    %253 = vector.load %arg19[%c0_211, %c0_212] : memref<1x128xf32, #tpu.memory_space<vmem>>, vector<1x128xf32>
    %cst_213 = arith.constant 9.99999974E-6 : f32
    %254 = vector.broadcast %cst_213 : f32 to vector<1x128xf32>
    %255 = arith.addf %252, %254 : vector<1x128xf32>
    %256 = math.rsqrt %255 : vector<1x128xf32>
    %257 = arith.mulf %253, %256 : vector<1x128xf32>
    %c0_214 = arith.constant 0 : index
    %c0_215 = arith.constant 0 : index
    %258 = vector.load %arg20[%c0_214, %c0_215] : memref<1x128xf32, #tpu.memory_space<vmem>>, vector<1x128xf32>
    %259 = arith.mulf %249, %257 : vector<1x128xf32>
    %260 = arith.subf %258, %259 : vector<1x128xf32>
    %261 = vector.broadcast %257 : vector<1x128xf32> to vector<32x128xf32>
    %262 = arith.mulf %238, %261 : vector<32x128xf32>
    %263 = vector.broadcast %260 : vector<1x128xf32> to vector<32x128xf32>
    %264 = arith.addf %262, %263 : vector<32x128xf32>
    %cst_216 = arith.constant 0.000000e+00 : f32
    %265 = vector.broadcast %cst_216 : f32 to vector<32x128xf32>
    %266 = arith.cmpf oge, %264, %265 : vector<32x128xf32>
    %cst_217 = arith.constant 0.00999999977 : f32
    %267 = vector.broadcast %cst_217 : f32 to vector<32x128xf32>
    %268 = arith.mulf %267, %264 : vector<32x128xf32>
    %269 = arith.select %266, %264, %268 : vector<32x128xi1>, vector<32x128xf32>
    %c0_218 = arith.constant 0 : index
    %c0_219 = arith.constant 0 : index
    %270 = vector.load %arg21[%c0_218, %c0_219] : memref<32x128xf32, #tpu.memory_space<vmem>>, vector<32x128xf32>
    tpu.vector_store %arg21[%c0_218, %c0_219], %269 {strides = array<i32>} : memref<32x128xf32, #tpu.memory_space<vmem>>, vector<32x128xf32>,
    return
  }
}

</mosaic_0001>

<bundles_post_ra>
// kernel: low_enhance_net.1
= control target key start
LH: loop header
LB: loop body
LE: loop exit
PB: predicated region body
PF: predicated region fallthrough
CT: control target
= control target key end

     0   :  { %s11096_s0 = inlined_call_operand.hbm [shape: f32[2,16,16], index: 0, kind: input, shape index: {}]   ;;  %s11097_s1 = inlined_call_operand.hbm [shape: bf16[3,16,128], index: 1, kind: input, shape index: {}]   ;;  %s11098_s2 = inlined_call_operand.hbm [shape: f32[128,128], index: 2, kind: input, shape index: {}]   ;;  %s11099_s3 = inlined_call_operand.vmem [shape: f32[1,128], index: 3, kind: input, shape index: {}]   ;;  %s11100_s4 = inlined_call_operand.vmem [shape: f32[1,128], index: 4, kind: input, shape index: {}]   ;;  %s11101_s5 = inlined_call_operand.hbm [shape: bf16[3,128,256], index: 5, kind: input, shape index: {}]   ;;  %s11102_s6 = inlined_call_operand.hbm [shape: f32[256,256], index: 6, kind: input, shape index: {}]   ;;  %s11103_s7 = inlined_call_operand.vmem [shape: f32[1,256], index: 7, kind: input, shape index: {}]   ;;  %s11104_s8 = inlined_call_operand.vmem [shape: f32[1,256], index: 8, kind: input, shape index: {}]   ;;  %s11105_s9 = inlined_call_operand.hbm [shape: bf16[3,256,512], index: 9, kind: input, shape index: {}]   ;;  %s11106_s10 = inlined_call_operand.hbm [shape: f32[512,512], index: 10, kind: input, shape index: {}]   ;;  %s11107_s11 = inlined_call_operand.vmem [shape: f32[1,512], index: 11, kind: input, shape index: {}]   ;;  %s11108_s12 = inlined_call_operand.vmem [shape: f32[1,512], index: 12, kind: input, shape index: {}]   ;;  %s11109_s13 = inlined_call_operand.hbm [shape: bf16[3,512,256], index: 13, kind: input, shape index: {}]   ;;  %s11110_s14 = inlined_call_operand.hbm [shape: f32[256,256], index: 14, kind: input, shape index: {}]   ;;  %s11111_s15 = inlined_call_operand.vmem [shape: f32[1,256], index: 15, kind: input, shape index: {}]   ;;  %s11112_s16 = inlined_call_operand.vmem [shape: f32[1,256], index: 16, kind: input, shape index: {}]   ;;  %s11113_s17 = inlined_call_operand.hbm [shape: bf16[3,256,128], index: 17, kind: input, shape index: {}]   ;;  %s11114_s18 = inlined_call_operand.hbm [shape: f32[128,128], index: 18, kind: input, shape index: {}]   ;;  %s11115_s19 = inlined_call_operand.vmem [shape: f32[1,128], index: 19, kind: input, shape index: {}]   ;;  %s11116_s20 = inlined_call_operand.vmem [shape: f32[1,128], index: 20, kind: input, shape index: {}]   ;;  %s11117_s21 = inlined_call_operand.vmem [shape: f32[32,128], index: 21, kind: output, shape index: {}]  }
   0x1   :  { %11137 = sst [smem:[#allocation30_spill]] %s11096_s0 }
   0x2   :  { %11138 = sst [smem:[#allocation31_spill]] %s11097_s1 }
   0x3   :  { %11139 = sst [smem:[#allocation32_spill]] %s11098_s2 }
   0x4   :  { %11140 = sst [smem:[#allocation33_spill]] %s11099_s3 }
   0x5   :  { %11141 = sst [smem:[#allocation34_spill]] %s11100_s4 }
   0x6   :  { %11142 = sst [smem:[#allocation35_spill]] %s11101_s5 }
   0x7   :  { %11143 = sst [smem:[#allocation36_spill]] %s11116_s20 }
   0x8   :  { %11144 = sst [smem:[#allocation37_spill]] %s11117_s21 }
   0x9   :  { %26 = vsyncpa [#allocation8], 0 }
   0xa   :  { %27 = vsyncpa [#allocation10], 0 }
   0xb   :  { %28 = vsyncpa [#allocation13], 0 }
   0xc   :  { %29 = vsyncpa [#allocation16], 0 }
   0xd   :  { %30 = vsyncpa [#allocation19], 0 }
   0xe   :  { %31 = vsyncpa [#allocation22], 0  ;;  %s9783_s2 = smov [#allocation9]   ;;  %s11145_s3 = sld [smem:[#allocation31_spill]] }
   0xf   :  { %s49_s25 = sshll.u32 %s9783_s2, 4  ;;  %s50_s25 = int_to_ptr.vmem [resolvable:$true] %s49_s25 }
  0x14   :  { %s9529_s28 = scalar_lea.hbm %s11145_s3, 384 }
  0x15   :  { %p9530_p0 = scmp.ne.s32.totalorder %s11145_s3, %s9529_s28  ;;  %p9533_p1 = scmp.lt.u32.totalorder %s9529_s28, %s11145_s3 }
  0x17   :  { %p9535_p2 = pnand %p9533_p1, %p9530_p0 }
  0x19   :  { %9538 = shalt.err (!%p9535_p2)
}
  0x1a   :  { %s9539_s5 = scalar_lea.vmem %s50_s25, 384  ;;  %p9544_p4 = scmp.lt.s32.totalorder %s50_s25, %s50_s25 }
  0x1b   :  { %p9540_p3 = scmp.ne.s32.totalorder %s50_s25, %s9539_s5  ;;  %p9545_p5 = scmp.lt.s32.totalorder %s9539_s5, %s9539_s5 }
  0x1d   :  { %p9546_p6 = por %p9545_p5, %p9544_p4 }
  0x1f   :  { %p9547_p7 = pnand %p9546_p6, %p9540_p3 }
  0x21   :  { %9550 = shalt.err (!%p9547_p7)
}
  0x22   :  { %s11123_s22 = smov 64   ;;  %s11124_s23 = smov 4  }
  0x23   :  { %55 = dma.hbm_to_vmem [thread:$0]  %s11145_s3, 384, %s50_s25, [#allocation10], %s11123_s22, %s11123_s22, %s11124_s23  }
  0x24   :  { %s9786_s2 = smov [#allocation12]   ;;  %s11146_s29 = sld [smem:[#allocation35_spill]] }
  0x25   :  { %s77_s26 = sshll.u32 %s9786_s2, 4  ;;  %s78_s26 = int_to_ptr.vmem [resolvable:$true] %s77_s26 }
  0x2a   :  { %s9551_s0 = scalar_lea.hbm %s11146_s29, 6144 }
  0x2b   :  { %p9552_p8 = scmp.ne.s32.totalorder %s11146_s29, %s9551_s0  ;;  %p9555_p9 = scmp.lt.u32.totalorder %s9551_s0, %s11146_s29 }
  0x2d   :  { %p9557_p10 = pnand %p9555_p9, %p9552_p8 }
  0x2f   :  { %9560 = shalt.err (!%p9557_p10)
}
  0x30   :  { %s9561_s20 = scalar_lea.vmem %s78_s26, 6144  ;;  %p9566_p12 = scmp.lt.s32.totalorder %s78_s26, %s78_s26 }
  0x31   :  { %p9562_p11 = scmp.ne.s32.totalorder %s78_s26, %s9561_s20  ;;  %p9567_p13 = scmp.lt.s32.totalorder %s9561_s20, %s9561_s20 }
  0x33   :  { %p9568_p0 = por %p9567_p13, %p9566_p12 }
  0x35   :  { %p9569_p1 = pnand %p9568_p0, %p9562_p11 }
  0x37   :  { %9572 = shalt.err (!%p9569_p1)
}
  0x38   :  { %s9787_s25 = smov 128   ;;  %s9788_s3 = smov 8  }
  0x39   :  { %83 = dma.hbm_to_vmem [thread:$0]  %s11146_s29, 6144, %s78_s26, [#allocation13], %s9787_s25, %s9787_s25, %s9788_s3  }
  0x3a   :  { %s9789_s21 = smov [#allocation15]   ;;  %s9790_s27 = smov [#allocation18]  }
  0x3b   :  { %s105_s2 = sshll.u32 %s9789_s21, 4  ;;  %s133_s28 = sshll.u32 %s9790_s27, 4  ;;  %s106_s2 = int_to_ptr.vmem [resolvable:$true] %s105_s2  ;;  %s9947_s28 = int_to_ptr.vmem [resolvable:$true] %s133_s28 }
  0x3c   :  { %s9573_s4 = scalar_lea.hbm %s11105_s9, 24576 }
  0x3d   :  { %p9574_p2 = scmp.ne.s32.totalorder %s11105_s9, %s9573_s4  ;;  %p9577_p3 = scmp.lt.u32.totalorder %s9573_s4, %s11105_s9 }
  0x3f   :  { %p9579_p4 = pnand %p9577_p3, %p9574_p2 }
  0x41   :  { %9582 = shalt.err (!%p9579_p4)
}
  0x42   :  { %s9583_s26 = scalar_lea.vmem %s106_s2, 24576  ;;  %p9588_p6 = scmp.lt.s32.totalorder %s106_s2, %s106_s2 }
  0x43   :  { %p9584_p5 = scmp.ne.s32.totalorder %s106_s2, %s9583_s26  ;;  %p9589_p7 = scmp.lt.s32.totalorder %s9583_s26, %s9583_s26 }
  0x45   :  { %p9590_p8 = por %p9589_p7, %p9588_p6 }
  0x47   :  { %p9591_p9 = pnand %p9590_p8, %p9584_p5 }
  0x49   :  { %9594 = shalt.err (!%p9591_p9)
}
  0x4a   :  { %s9791_s29 = smov 256   ;;  %s9792_s1 = smov 16  }
  0x4b   :  { %111 = dma.hbm_to_vmem [thread:$0]  %s11105_s9, 24576, %s106_s2, [#allocation16], %s9791_s29, %s9791_s29, %s9792_s1  }
  0x4c   :  { %s9595_s27 = scalar_lea.hbm %s11109_s13, 24576 }
  0x4d   :  { %p9596_p10 = scmp.ne.s32.totalorder %s11109_s13, %s9595_s27  ;;  %p9599_p11 = scmp.lt.u32.totalorder %s9595_s27, %s11109_s13 }
  0x4f   :  { %p9601_p12 = pnand %p9599_p11, %p9596_p10 }
  0x51   :  { %9604 = shalt.err (!%p9601_p12)
}
  0x52   :  { %s9605_s5 = scalar_lea.vmem %s9947_s28, 24576  ;;  %p9610_p0 = scmp.lt.s32.totalorder %s9947_s28, %s9947_s28 }
  0x53   :  { %p9606_p13 = scmp.ne.s32.totalorder %s9947_s28, %s9605_s5  ;;  %p9611_p1 = scmp.lt.s32.totalorder %s9605_s5, %s9605_s5 }
  0x55   :  { %p9612_p2 = por %p9611_p1, %p9610_p0 }
  0x57   :  { %p9613_p3 = pnand %p9612_p2, %p9606_p13 }
  0x59   :  { %9616 = shalt.err (!%p9613_p3)
}
  0x5a   :  { %139 = dma.hbm_to_vmem [thread:$0]  %s11109_s13, 24576, %s9947_s28, [#allocation19], %s9787_s25, %s9787_s25, %s9788_s3  }
  0x5b   :  { %s9793_s26 = smov [#allocation21]   ;;  %s9794_s21 = smov [#allocation7]  }
  0x5c   :  { %s161_s24 = sshll.u32 %s9793_s26, 4  ;;  %s37_s22 = sshll.u32 %s9794_s21, 4  ;;  %s162_s24 = int_to_ptr.vmem [resolvable:$true] %s161_s24  ;;  %s9984_s22 = int_to_ptr.vmem [resolvable:$true] %s37_s22 }
  0x5d   :  { %s9617_s20 = scalar_lea.hbm %s11113_s17, 6144 }
  0x5e   :  { %p9618_p4 = scmp.ne.s32.totalorder %s11113_s17, %s9617_s20  ;;  %p9621_p5 = scmp.lt.u32.totalorder %s9617_s20, %s11113_s17 }
  0x60   :  { %p9623_p6 = pnand %p9621_p5, %p9618_p4 }
  0x62   :  { %9626 = shalt.err (!%p9623_p6)
}
  0x63   :  { %s9627_s13 = scalar_lea.vmem %s162_s24, 6144  ;;  %p9632_p8 = scmp.lt.s32.totalorder %s162_s24, %s162_s24 }
  0x64   :  { %p9628_p7 = scmp.ne.s32.totalorder %s162_s24, %s9627_s13  ;;  %p9633_p9 = scmp.lt.s32.totalorder %s9627_s13, %s9627_s13 }
  0x66   :  { %p9634_p10 = por %p9633_p9, %p9632_p8 }
  0x68   :  { %p9635_p11 = pnand %p9634_p10, %p9628_p7 }
  0x6a   :  { %9638 = shalt.err (!%p9635_p11)
}
  0x6b   :  { %s11147_s28 = smov 4   ;;  %s11148_s9 = smov 64  }
  0x6c   :  { %167 = dma.hbm_to_vmem [thread:$0]  %s11113_s17, 6144, %s162_s24, [#allocation22], %s11148_s9, %s11148_s9, %s11147_s28  }
  0x6d   :  { %s11149_s27 = sld [smem:[#allocation30_spill]] }
  0x73   :  { %s9639_s20 = scalar_lea.hbm %s11149_s27, 512 }
  0x74   :  { %p9640_p12 = scmp.ne.s32.totalorder %s11149_s27, %s9639_s20  ;;  %p9643_p13 = scmp.lt.u32.totalorder %s9639_s20, %s11149_s27 }
  0x76   :  { %p9645_p0 = pnand %p9643_p13, %p9640_p12 }
  0x78   :  { %9648 = shalt.err (!%p9645_p0)
}
  0x79   :  { %s9649_s13 = scalar_lea.vmem %s9984_s22, 512  ;;  %p9654_p2 = scmp.lt.s32.totalorder %s9984_s22, %s9984_s22 }
  0x7a   :  { %p9650_p1 = scmp.ne.s32.totalorder %s9984_s22, %s9649_s13  ;;  %p9655_p3 = scmp.lt.s32.totalorder %s9649_s13, %s9649_s13 }
  0x7c   :  { %p9656_p4 = por %p9655_p3, %p9654_p2 }
  0x7e   :  { %p9657_p5 = pnand %p9656_p4, %p9650_p1 }
  0x80   :  { %9660 = shalt.err (!%p9657_p5)
}
  0x81   :  { %43 = dma.hbm_to_vmem [thread:$0]  %s11149_s27, 512, %s9984_s22, [#allocation8], %s9787_s25, %s9787_s25, %s9788_s3  }
  0x82   :  { %s9795_s28 = smov [#allocation11]   ;;  %s9796_s2 = smov [#allocation14]  }
  0x83   :  { %s61_s9 = sshll.u32 %s9795_s28, 4  ;;  %s89_s26 = sshll.u32 %s9796_s2, 4  ;;  %s62_s9 = int_to_ptr.vmem [resolvable:$true] %s61_s9  ;;  %s10021_s26 = int_to_ptr.vmem [resolvable:$true] %s89_s26 }
  0x84   :  { %s11150_s20 = sld [smem:[#allocation32_spill]] }
  0x8a   :  { %s9661_s0 = scalar_lea.hbm %s11150_s20, 2048 }
  0x8b   :  { %p9662_p6 = scmp.ne.s32.totalorder %s11150_s20, %s9661_s0  ;;  %p9665_p7 = scmp.lt.u32.totalorder %s9661_s0, %s11150_s20 }
  0x8d   :  { %p9667_p8 = pnand %p9665_p7, %p9662_p6 }
  0x8f   :  { %9670 = shalt.err (!%p9667_p8)
}
  0x90   :  { %s9671_s22 = scalar_lea.vmem %s62_s9, 2048  ;;  %p9676_p10 = scmp.lt.s32.totalorder %s62_s9, %s62_s9 }
  0x91   :  { %p9672_p9 = scmp.ne.s32.totalorder %s62_s9, %s9671_s22  ;;  %p9677_p11 = scmp.lt.s32.totalorder %s9671_s22, %s9671_s22 }
  0x93   :  { %p9678_p12 = por %p9677_p11, %p9676_p10 }
  0x95   :  { %p9679_p13 = pnand %p9678_p12, %p9672_p9 }
  0x97   :  { %9682 = shalt.err (!%p9679_p13)
}
  0x98   :  { %67 = dma.hbm_to_vmem [thread:$0]  %s11150_s20, 2048, %s62_s9, [#allocation10], %s9787_s25, %s9787_s25, %s9788_s3  }
  0x99   :  { %s9683_s2 = scalar_lea.hbm %s11102_s6, 8192 }
  0x9a   :  { %p9684_p0 = scmp.ne.s32.totalorder %s11102_s6, %s9683_s2  ;;  %p9687_p1 = scmp.lt.u32.totalorder %s9683_s2, %s11102_s6 }
  0x9c   :  { %p9689_p2 = pnand %p9687_p1, %p9684_p0 }
  0x9e   :  { %9692 = shalt.err (!%p9689_p2)
}
  0x9f   :  { %s9693_s30 = scalar_lea.vmem %s10021_s26, 8192  ;;  %p9698_p4 = scmp.lt.s32.totalorder %s10021_s26, %s10021_s26 }
  0xa0   :  { %p9694_p3 = scmp.ne.s32.totalorder %s10021_s26, %s9693_s30  ;;  %p9699_p5 = scmp.lt.s32.totalorder %s9693_s30, %s9693_s30 }
  0xa2   :  { %p9700_p6 = por %p9699_p5, %p9698_p4 }
  0xa4   :  { %p9701_p7 = pnand %p9700_p6, %p9694_p3 }
  0xa6   :  { %9704 = shalt.err (!%p9701_p7)
}
  0xa7   :  { %95 = dma.hbm_to_vmem [thread:$0]  %s11102_s6, 8192, %s10021_s26, [#allocation13], %s9791_s29, %s9791_s29, %s9792_s1  }
  0xa8   :  { %s9797_s5 = smov [#allocation17]   ;;  %s9705_s17 = scalar_lea.hbm %s11106_s10, 32768 }
  0xa9   :  { %s117_s13 = sshll.u32 %s9797_s5, 4  ;;  %p9706_p8 = scmp.ne.s32.totalorder %s11106_s10, %s9705_s17  ;;  %s118_s13 = int_to_ptr.vmem [resolvable:$true] %s117_s13 }
  0xaa   :  { %p9709_p9 = scmp.lt.u32.totalorder %s9705_s17, %s11106_s10 }
  0xac   :  { %p9711_p10 = pnand %p9709_p9, %p9706_p8 }
  0xae   :  { %9714 = shalt.err (!%p9711_p10)
}
  0xaf   :  { %s9715_s23 = scalar_lea.vmem %s118_s13, 32768  ;;  %p9720_p12 = scmp.lt.s32.totalorder %s118_s13, %s118_s13 }
  0xb0   :  { %p9716_p11 = scmp.ne.s32.totalorder %s118_s13, %s9715_s23  ;;  %p9721_p13 = scmp.lt.s32.totalorder %s9715_s23, %s9715_s23 }
  0xb2   :  { %p9722_p0 = por %p9721_p13, %p9720_p12 }
  0xb4   :  { %p9723_p1 = pnand %p9722_p0, %p9716_p11 }
  0xb6   :  { %9726 = shalt.err (!%p9723_p1)
}
  0xb7   :  { %s9798_s6 = smov 512   ;;  %s9799_s26 = smov 32  }
  0xb8   :  { %123 = dma.hbm_to_vmem [thread:$0]  %s11106_s10, 32768, %s118_s13, [#allocation16], %s9798_s6, %s9798_s6, %s9799_s26  }
  0xb9   :  { %s9800_s30 = smov [#allocation20]   ;;  %s9801_s20 = smov [#allocation23]  }
  0xba   :  { %s145_s9 = sshll.u32 %s9800_s30, 4  ;;  %s173_s5 = sshll.u32 %s9801_s20, 4  ;;  %s146_s9 = int_to_ptr.vmem [resolvable:$true] %s145_s9  ;;  %s174_s5 = int_to_ptr.vmem [resolvable:$true] %s173_s5 }
  0xbb   :  { %s9727_s17 = scalar_lea.hbm %s11110_s14, 8192 }
  0xbc   :  { %p9728_p2 = scmp.ne.s32.totalorder %s11110_s14, %s9727_s17  ;;  %p9731_p3 = scmp.lt.u32.totalorder %s9727_s17, %s11110_s14 }
  0xbe   :  { %p9733_p4 = pnand %p9731_p3, %p9728_p2 }
  0xc0   :  { %9736 = shalt.err (!%p9733_p4)
}
  0xc1   :  { %s9737_s10 = scalar_lea.vmem %s146_s9, 8192  ;;  %p9742_p6 = scmp.lt.s32.totalorder %s146_s9, %s146_s9 }
  0xc2   :  { %p9738_p5 = scmp.ne.s32.totalorder %s146_s9, %s9737_s10  ;;  %p9743_p7 = scmp.lt.s32.totalorder %s9737_s10, %s9737_s10 }
  0xc4   :  { %p9744_p8 = por %p9743_p7, %p9742_p6 }
  0xc6   :  { %p9745_p9 = pnand %p9744_p8, %p9738_p5 }
  0xc8   :  { %9748 = shalt.err (!%p9745_p9)
}
  0xc9   :  { %151 = dma.hbm_to_vmem [thread:$0]  %s11110_s14, 8192, %s146_s9, [#allocation19], %s9791_s29, %s9791_s29, %s9792_s1  }
  0xca   :  { %s9749_s0 = scalar_lea.hbm %s11114_s18, 2048 }
  0xcb   :  { %p9750_p10 = scmp.ne.s32.totalorder %s11114_s18, %s9749_s0  ;;  %p9753_p11 = scmp.lt.u32.totalorder %s9749_s0, %s11114_s18 }
  0xcd   :  { %p9755_p12 = pnand %p9753_p11, %p9750_p10 }
  0xcf   :  { %9758 = shalt.err (!%p9755_p12)
}
  0xd0   :  { %s9759_s27 = scalar_lea.vmem %s174_s5, 2048  ;;  %p9764_p0 = scmp.lt.s32.totalorder %s174_s5, %s174_s5 }
  0xd1   :  { %p9760_p13 = scmp.ne.s32.totalorder %s174_s5, %s9759_s27  ;;  %p9765_p1 = scmp.lt.s32.totalorder %s9759_s27, %s9759_s27 }
  0xd3   :  { %p9766_p2 = por %p9765_p1, %p9764_p0 }
  0xd5   :  { %p9767_p3 = pnand %p9766_p2, %p9760_p13 }
  0xd7   :  { %9770 = shalt.err (!%p9767_p3)
}
  0xd8   :  { %179 = dma.hbm_to_vmem [thread:$0]  %s11114_s18, 2048, %s174_s5, [#allocation22], %s9787_s25, %s9787_s25, %s9788_s3  }
  0xd9   :  { %9771 = dma.done.wait [#allocation8], 512  }
  0xda   :  { %9772 = vsyncadd [#allocation8], 4294966784 }
  0xdb   :  { %9773 = dma.done.wait [#allocation10], 2432  }
  0xdc   :  { %9774 = vsyncadd [#allocation10], 4294964864 }
  0xdd   :  { %9775 = dma.done.wait [#allocation13], 14336  }
  0xde   :  { %9776 = vsyncadd [#allocation13], 4294952960 }
  0xdf   :  { %9777 = dma.done.wait [#allocation16], 57344  }
  0xe0   :  { %9778 = vsyncadd [#allocation16], 4294909952 }
  0xe1   :  { %9779 = dma.done.wait [#allocation19], 32768  }
  0xe2   :  { %9780 = vsyncadd [#allocation19], 4294934528 }
  0xe3   :  { %9781 = dma.done.wait [#allocation22], 8192  }
  0xe4   :  { %9782 = vsyncadd [#allocation22], 4294959104  ;;  %vm218_vm0 = vcmask 122880   ;;  %vm219_vm1 = vsmask.f32 256  ;;  %v8806_v1 = vld [vmem:[#allocation9] sm:$0xff]  }
  0xe5   :  { %vm10102_vm2 = vmand %vm218_vm0, %vm219_vm1  ;;  %vm227_vm3 = vsmask.f32 7938  ;;  %vm321_vm4 = vsmask.f32 4368  ;;  %v221_v2 = vld [vmem:[#allocation2] sm:$0x1]  ;;  %8168 = vmatprep.subr.bf16.mxu0 %v8806_v1 }
  0xe6   :  { %v224_v3 = vld [vmem:[#allocation2 + $0xc] sm:$0x1]  ;;  %v305_v4 = vld [vmem:[#allocation7] sm:$0xff]  ;;  %v222_v5 = vsel %vm10102_vm2, 0, %v221_v2  ;;  %v306_v7 = vld [vmem:[#allocation7 + $0x8] sm:$0xff]  ;;  %8169 = vmatpush3.bf16.msra.mxu0 %v8806_v1  ;;  %vm363_vm5 = vcmask 125952  }
  0xe7   :  { %v225_v6 = vsel %vm10102_vm2, 0, %v224_v3  ;;  %v307_v8 = vld [vmem:[#allocation7 + $0x10] sm:$0xff]  ;;  %v308_v9 = vld [vmem:[#allocation7 + $0x18] sm:$0xff]  ;;  %v8011_v10 = vpack.c.bf16 %v305_v4, %v305_v4  ;;  %223 = vst [vmem:[#allocation2] sm:$0x1] %v222_v5  ;;  %v8012_v11 = vpack.c.bf16 %v306_v7, %v306_v7  ;;  %vm10114_vm6 = vmand %vm218_vm0, %vm227_vm3  ;;  %v11155_v23 = vmov 0 }
  0xe8   :  { %226 = vst [vmem:[#allocation2 + $0xc] sm:$0x1] %v225_v6  ;;  %v8013_v12 = vpack.c.bf16 %v307_v8, %v307_v8  ;;  %v8014_v13 = vpack.c.bf16 %v308_v9, %v308_v9  ;;  %v10110_v14 = vld [vmem:[#allocation9 + $0x10] sm:$0xff]   ;;  %v8810_v22 = vld [vmem:[#allocation9 + $0x8] sm:$0xff]   ;;  %vm10121_vm7 = vmor %vm219_vm1, %vm321_vm4  ;;  %vm454_vm9 = vcmask 130048   ;;  %vm587_vm11 = vcmask 1042432  }
  0xe9   :  { %v324_v15 = vshrl.u32 %v8011_v10, 16  ;;  %v327_v16 = vshll.u32 %v8011_v10, 16  ;;  %v332_v18 = vshrl.u32 %v8012_v11, 16  ;;  %v335_v19 = vshll.u32 %v8012_v11, 16  ;;  %8174 = vmatprep.subr.bf16.mxu0 %v10110_v14  ;;  %v229_v27 = vld [vmem:[#allocation2 + $0x8] sm:$0x1]  ;;  %vm10127_vm8 = vmand %vm363_vm5, %vm227_vm3  ;;  %8162 = vmatprep.subr.bf16.mxu1 %v8810_v22 }
  0xea   :  { %v341_v20 = vshrl.u32 %v8013_v12, 16  ;;  %v344_v21 = vshll.u32 %v8013_v12, 16  ;;  %v11156_v23 = vsel %vm10121_vm7, 4294967295, %v11155_v23  ;;  %v349_v25 = vshrl.u32 %v8014_v13, 16  ;;  %v232_v32 = vld [vmem:[#allocation2 + $0x14] sm:$0x1]  ;;  %8163 = vmatpush3.bf16.msra.mxu1 %v8810_v22 }
  0xeb   :  { %v326_v24 = vrot.slane %v324_v15, 7  ;;  %v352_v26 = vshll.u32 %v8014_v13, 16  ;;  %v334_v28 = vrot.slane %v332_v18, 7  ;;  %v230_v31 = vsel %vm10114_vm6, 0, %v229_v27  ;;  %s11169_s3 = sld [smem:[#allocation33_spill]]  ;;  %s11170_s5 = sld [smem:[#allocation34_spill]] }
  0xec   :  { %v343_v29 = vrot.slane %v341_v20, 7  ;;  %v351_v35 = vrot.slane %v349_v25, 7  ;;  %231 = vst [vmem:[#allocation2 + $0x8] sm:$0x1] %v230_v31  ;;  %v233_v36 = vsel %vm10114_vm6, 0, %v232_v32  ;;  %vm588_vm13 = vcmask 1046532  }
  0xed   :  { %v329_v33 = vor.u32 %v327_v16, %v326_v24  ;;  %v330_v34 = vrot.slane %v326_v24, 4  ;;  %v337_v37 = vor.u32 %v335_v19, %v334_v28  ;;  %234 = vst [vmem:[#allocation2 + $0x14] sm:$0x1] %v233_v36  ;;  %v339_v46 = vrot.slane %v334_v28, 4  ;;  %vm10154_vm14 = vmor %vm587_vm11, %vm588_vm13  ;;  %v702_v36 = vld [vmem:[#allocation11] sm:$0xff]  ;;  %s11186_s0 = sld [smem:[#allocation36_spill]] }
  0xee   :  { %v346_v38 = vor.u32 %v344_v21, %v343_v29  ;;  %v347_v39 = vrot.slane %v343_v29, 4  ;;  %v354_v40 = vor.u32 %v352_v26, %v351_v35  ;;  %v365_v41 = vld [vmem:[#allocation2] sm:$0xf]  ;;  %v356_v48 = vrot.slane %v351_v35, 4  ;;  %s11187_s30 = sld [smem:[#allocation37_spill]] }
  0xef   :  { %v373_v42 = vld [vmem:[#allocation2 + $0xc] sm:$0xf]  ;;  %v338_v43 = vsel %vm10121_vm7, %v330_v34, %v337_v37  ;;  %v366_v44 = vsel %vm10127_vm8, %v329_v33, %v365_v41  ;;  %vm388_vm10 = vsmask.f32 3328  ;;  %vm389_vm12 = vsmask.f32 7440 }
  0xf0   :  { %v374_v45 = vsel %vm10127_vm8, %v346_v38, %v373_v42  ;;  %v355_v47 = vsel %vm10121_vm7, %v347_v39, %v354_v40  ;;  %367 = vst [vmem:[#allocation2] sm:$0xf] %v366_v44  ;;  %369 = vst.msk [vmem:[#allocation2 + $0x4] sm:$0xf] %vm363_vm5, %v338_v43  ;;  %v11159_v21 = vmov 0  ;;  %v11161_v24 = vmov 0 }
  0xf1   :  { %375 = vst [vmem:[#allocation2 + $0xc] sm:$0xf] %v374_v45  ;;  %376 = vst.msk [vmem:[#allocation2 + $0x10] sm:$0xf] %vm363_vm5, %v355_v47  ;;  %v11160_v21 = vsel %vm10154_vm14, 4294967295, %v11159_v21  ;;  %v9802_v27 = vmov 0.0|0.0  }
  0xf2   :  { %vm10160_vm15 = vmor %vm388_vm10, %vm389_vm12  ;;  %v703_v37 = vld [vmem:[#allocation11 + $0x8] sm:$0xff]  ;;  %vm11125_vm0 = vmmov 0   ;;  %vm260_vm6 = vsmask.f32 7954 }
  0xf3   :  { %v370_v49 = vld [vmem:[#allocation2 + $0x8] sm:$0x1]  ;;  %v11162_v24 = vsel %vm10160_vm15, 4294967295, %v11161_v24 }
  0xf4   :  { %v371_v50 = vsel %vm10102_vm2, %v339_v46, %v370_v49  ;;  %v377_v51 = vld [vmem:[#allocation2 + $0x14] sm:$0x1] }
  0xf5   :  { %372 = vst [vmem:[#allocation2 + $0x8] sm:$0x1] %v371_v50  ;;  %v378_v52 = vsel %vm10102_vm2, %v356_v48, %v377_v51  ;;  %vm11126_vm2 = vcmask 1040384  }
  0xf6   :  { %379 = vst [vmem:[#allocation2 + $0x14] sm:$0x1] %v378_v52  ;;  %vm10196_vm4 = vmand %vm11126_vm2, %vm219_vm1  ;;  %vm250_vm1 = vcmask 1044484  }
  0xf7   :  { %v380_v53 = vld [vmem:[#allocation2] sm:$0xf]  ;;  %v381_v54 = vld [vmem:[#allocation2 + $0x4] sm:$0xf]  ;;  %vm10206_vm5 = vmand %vm11126_vm2, %vm227_vm3 }
  0xf8   :  { %v382_v55 = vld [vmem:[#allocation2 + $0xc] sm:$0xf]  ;;  %v392_v56 = vshrl.u32 %v380_v53, 16  ;;  %v395_v57 = vshll.u32 %v380_v53, 16  ;;  %v405_v58 = vshrl.u32 %v381_v54, 16  ;;  %v7435_v59 = vcombine.low %v380_v53, %v381_v54  ;;  %vm261_vm8 = vmand %vm250_vm1, %vm260_vm6 }
  0xf9   :  { %v383_v60 = vld [vmem:[#allocation2 + $0x10] sm:$0xf]  ;;  %v592_v61 = vrot.slane %v381_v54, 5  ;;  %v416_v62 = vshrl.u32 %v382_v55, 16  ;;  %v419_v63 = vshll.u32 %v382_v55, 16  ;;  %v401_v8 = vshll.u32 %v381_v54, 16 }
  0xfa   :  { %v429_v1 = vshrl.u32 %v383_v60, 16  ;;  %v394_v2 = vrot.slane %v392_v56, 4  ;;  %v397_v3 = vrot.slane %v395_v57, 5  ;;  %8170 = vmatprep.mubr.msk.bf16.mxu0 %vm454_vm9, %v7435_v59  ;;  %v7436_v0 = vcombine.low %v382_v55, %v383_v60  ;;  %v581_v4 = vld [vmem:[#allocation2] sm:$0xe]  ;;  %v704_v54 = vld [vmem:[#allocation11 + $0x10] sm:$0xff] }
  0xfb   :  { %v594_v5 = vrot.slane %v592_v61, 4  ;;  %v418_v6 = vrot.slane %v416_v62, 4  ;;  %v421_v7 = vrot.slane %v419_v63, 5  ;;  %v407_v11 = vrot.slane %v405_v58, 4  ;;  %v582_v15 = vld [vmem:[#allocation2 + $0xc] sm:$0xe] }
  0xfc   :  { %8171 = vmatmul.mubr.msk.bf16.vlgmr.msra.gmra.mrb[0].mxu0 %vm454_vm9, %v7436_v0  ;;  %v386_v9 = vld [vmem:[#allocation2 + $0x8] sm:$0x1]  ;;  %v398_v10 = vor.u32 %v397_v3, %v394_v2  ;;  %v425_v12 = vshll.u32 %v383_v60, 16  ;;  %v431_v13 = vrot.slane %v429_v1, 4  ;;  %v403_v16 = vrot.slane %v401_v8, 5  ;;  %v705_v55 = vld [vmem:[#allocation11 + $0x18] sm:$0xff] }
  0xfd   :  { %8175 = vmatpush3.bf16.msra.mxu0 %v10110_v14  ;;  %v411_v17 = vshll.u32 %v386_v9, 16  ;;  %v595_v18 = vrot.slane %v386_v9, 5  ;;  %v387_v19 = vld [vmem:[#allocation2 + $0x14] sm:$0x1]  ;;  %v422_v20 = vor.u32 %v421_v7, %v418_v6  ;;  %v599_v22 = vrot.slane %v383_v60, 5  ;;  %v706_v57 = vld [vmem:[#allocation11 + $0x20] sm:$0xff] }
  0xfe   :  { %v399_v25 = vrot.slane %v398_v10, 4  ;;  %v427_v14 = vrot.slane %v425_v12, 5  ;;  %v435_v26 = vshll.u32 %v387_v19, 16  ;;  %8250 = vmatprep.subr.bf16.mxu0 %v9802_v27  ;;  %v408_v28 = vor.u32 %v407_v11, %v403_v16  ;;  %v707_v58 = vld [vmem:[#allocation11 + $0x28] sm:$0xff]  ;;  %v708_v60 = vld [vmem:[#allocation11 + $0x30] sm:$0xff]  ;;  %v710_v63 = vld [vmem:[#allocation11 + $0x40] sm:$0xff] }
  0xff   :  { %v413_v29 = vrot.slane %v411_v17, 5  ;;  %v423_v30 = vrot.slane %v422_v20, 4  ;;  %v7440_v31 = vrot.slane %v581_v4, 9  ;;  %v602_v34 = vrot.slane %v387_v19, 5  ;;  %v711_v1 = vld [vmem:[#allocation11 + $0x48] sm:$0xff]  ;;  %v712_v3 = vld [vmem:[#allocation11 + $0x50] sm:$0xff] }
 0x100   :  { %v432_v32 = vor.u32 %v431_v13, %v427_v14  ;;  %v437_v33 = vrot.slane %v435_v26, 5  ;;  %v596_v35 = vsel %vm10154_vm14, %v594_v5, %v595_v18  ;;  %v404_v38 = vsel %vm10160_vm15, %v399_v25, %v403_v16  ;;  %v713_v0 = vld [vmem:[#allocation11 + $0x58] sm:$0xff]  ;;  %v714_v5 = vld [vmem:[#allocation11 + $0x60] sm:$0xff]  ;;  %v715_v6 = vld [vmem:[#allocation11 + $0x68] sm:$0xff] }
 0x101   :  { %v409_v39 = vrot.slane %v408_v28, 4  ;;  %v593_v40 = vsel %vm10154_vm14, %v7440_v31, %v592_v61  ;;  %v7441_v41 = vrot.slane %v582_v15, 9  ;;  %v428_v42 = vsel %vm10160_vm15, %v423_v30, %v427_v14  ;;  %v709_v61 = vld [vmem:[#allocation11 + $0x38] sm:$0xff]  ;;  %v716_v8 = vld [vmem:[#allocation11 + $0x70] sm:$0xff]  ;;  %v247_v20 = vld [vmem:[#allocation3 + $0x14] sm:$0x1] }
 0x102   :  { %v433_v43 = vrot.slane %v432_v32, 4  ;;  %v7442_v44 = vcombine.low %v593_v40, %v596_v35  ;;  %v601_v45 = vrot.slane %v599_v22, 4  ;;  %v8251_v53 = vpack.c.bf16 %v703_v37, %v702_v36  ;;  %v717_v9 = vld [vmem:[#allocation11 + $0x78] sm:$0xff]  ;;  %v237_v13 = vld [vmem:[#allocation3] sm:$0x1] }
 0x103   :  { %v414_v46 = vsel %vm10160_vm15, %v409_v39, %v413_v29  ;;  %v600_v47 = vsel %vm10154_vm14, %v7441_v41, %v599_v22  ;;  %v8254_v56 = vpack.c.bf16 %v705_v55, %v704_v54  ;;  %v8257_v59 = vpack.c.bf16 %v707_v58, %v706_v57  ;;  %v240_v15 = vld [vmem:[#allocation3 + $0xc] sm:$0x1]  ;;  %v244_v19 = vld [vmem:[#allocation3 + $0x8] sm:$0x1]  ;;  %v266_v26 = vld [vmem:[#allocation4 + $0x28] sm:$0x11] }
 0x104   :  { %v7430_v48 = vcombine.low %v404_v38, %v414_v46  ;;  %v438_v49 = vsel %vm10160_vm15, %v433_v43, %v437_v33  ;;  %8176 = vmatprep.mubr.msk.bf16.mxu0 %vm454_vm9, %v7442_v44  ;;  %v603_v50 = vsel %vm10154_vm14, %v601_v45, %v602_v34  ;;  %v8260_v62 = vpack.c.bf16 %v709_v61, %v708_v60  ;;  %v263_v14 = vld [vmem:[#allocation4 + $0x10] sm:$0x11]  ;;  %v284_v29 = vld [vmem:[#allocation5 + $0x28] sm:$0x11]  ;;  %v287_v30 = vld [vmem:[#allocation5 + $0x50] sm:$0x11] }
 0x105   :  { %v7431_v51 = vcombine.low %v428_v42, %v438_v49  ;;  %v7443_v52 = vcombine.low %v600_v47, %v603_v50  ;;  %v8263_v2 = vpack.c.bf16 %v711_v1, %v710_v63  ;;  %v8266_v4 = vpack.c.bf16 %v713_v0, %v712_v3  ;;  %v281_v28 = vld [vmem:[#allocation5 + $0x20] sm:$0x11]  ;;  %v290_v31 = vld [vmem:[#allocation5 + $0x58] sm:$0x11]  ;;  %v299_v33 = vld [vmem:[#allocation6 + $0x10] sm:$0x11] }
 0x106   :  { %8164 = vmatprep.mubr.msk.bf16.mxu1 %vm454_vm9, %v7430_v48  ;;  %v9804_v7 = vmov 0.0   ;;  %v8269_v10 = vpack.c.bf16 %v715_v6, %v714_v5  ;;  %v8272_v11 = vpack.c.bf16 %v717_v9, %v716_v8  ;;  %v238_v16 = vsel %vm10196_vm4, 0, %v237_v13  ;;  %v302_v34 = vld [vmem:[#allocation6 + $0x28] sm:$0x11]  ;;  %v8826_v32 = vld [vmem:[#allocation12 + $0xd0] ss:$8 sps:$4 sm:$0xff]  }
 0x107   :  { %8165 = vmatmul.mubr.msk.bf16.vlgmr.msra.gmra.mrb[0].mxu1 %vm454_vm9, %v7431_v51  ;;  %v241_v17 = vsel %vm10196_vm4, 0, %v240_v15  ;;  %239 = vst [vmem:[#allocation3] sm:$0x1] %v238_v16  ;;  %v245_v22 = vsel %vm10206_vm5, 0, %v244_v19  ;;  %v248_v25 = vsel %vm10206_vm5, 0, %v247_v20 }
 0x108   :  { %8177 = vmatmul.mubr.msk.bf16.vlgmr.msra.gmra.mrb[0].mxu0 %vm454_vm9, %v7443_v52  ;;  %242 = vst [vmem:[#allocation3 + $0xc] sm:$0x1] %v241_v17  ;;  %246 = vst [vmem:[#allocation3 + $0x8] sm:$0x1] %v245_v22  ;;  %v8813_v17 = vld [vmem:[#allocation12 + $0x84] ss:$8 sps:$4 sm:$0xff]  }
 0x109   :  { %8252 = vmatpush3.bf16.msra.mxu0 %v8251_v53  ;;  %8212 = vmatprep.mubr.msk.f32.mxu0 %vm11125_vm0, %v9804_v7  ;;  %249 = vst [vmem:[#allocation3 + $0x14] sm:$0x1] %v248_v25  ;;  %vm10218_vm9 = vmor %vm261_vm8, %vm10206_vm5  ;;  %v8811_v18 = vld [vmem:[#allocation12 + $0x80] ss:$8 sps:$4 sm:$0xff]   ;;  %v8816_v19 = vld [vmem:[#allocation12 + $0x94] ss:$8 sps:$4 sm:$0xff]  }
 0x10a   :  { %8253 = vmatprep.subr.bf16.mxu0 %v9802_v27  ;;  %v264_v35 = vsel %vm10218_vm9, 0, %v263_v14  ;;  %v267_v36 = vsel %vm10218_vm9, 0, %v266_v26  ;;  %v282_v37 = vsel %vm10218_vm9, 0, %v281_v28  ;;  %v285_v38 = vsel %vm10218_vm9, 0, %v284_v29  ;;  %v8814_v20 = vld [vmem:[#allocation12 + $0x90] ss:$8 sps:$4 sm:$0xff]  }
 0x10b   :  { %265 = vst [vmem:[#allocation4 + $0x10] sm:$0x11] %v264_v35  ;;  %268 = vst [vmem:[#allocation4 + $0x28] sm:$0x11] %v267_v36  ;;  %v288_v39 = vsel %vm10218_vm9, 0, %v287_v30  ;;  %v291_v40 = vsel %vm10218_vm9, 0, %v290_v31 }
 0x10c   :  { %283 = vst [vmem:[#allocation5 + $0x20] sm:$0x11] %v282_v37  ;;  %286 = vst [vmem:[#allocation5 + $0x28] sm:$0x11] %v285_v38  ;;  %v300_v41 = vsel %vm10218_vm9, 0, %v299_v33  ;;  %v303_v42 = vsel %vm10218_vm9, 0, %v302_v34 }
 0x10d   :  { %8255 = vmatpush3.bf16.msra.mxu0 %v8254_v56  ;;  %289 = vst [vmem:[#allocation5 + $0x50] sm:$0x11] %v288_v39  ;;  %292 = vst [vmem:[#allocation5 + $0x58] sm:$0x11] %v291_v40  ;;  %v8819_v22 = vld [vmem:[#allocation12 + $0xa4] ss:$8 sps:$4 sm:$0xff]  }
 0x10e   :  { %8256 = vmatprep.subr.bf16.mxu0 %v9802_v27  ;;  %301 = vst [vmem:[#allocation6 + $0x10] sm:$0x11] %v300_v41  ;;  %304 = vst [vmem:[#allocation6 + $0x28] sm:$0x11] %v303_v42  ;;  %v8817_v25 = vld [vmem:[#allocation12 + $0xa0] ss:$8 sps:$4 sm:$0xff]  }
 0x10f   :  { %v8822_v14 = vld [vmem:[#allocation12 + $0xb4] ss:$8 sps:$4 sm:$0xff]   ;;  %v8820_v26 = vld [vmem:[#allocation12 + $0xb0] ss:$8 sps:$4 sm:$0xff]   ;;  %v8823_v28 = vld [vmem:[#allocation12 + $0xc0] ss:$8 sps:$4 sm:$0xff]  }
 0x110   :  { %v8825_v29 = vld [vmem:[#allocation12 + $0xc4] ss:$8 sps:$4 sm:$0xff]   ;;  %v8828_v30 = vld [vmem:[#allocation12 + $0xd4] ss:$8 sps:$4 sm:$0xff]   ;;  %v9805_v31 = vmov 0   ;;  %vm902_vm5 = vcmask 1043456  }
 0x111   :  { %8258 = vmatpush3.bf16.msra.mxu0 %v8257_v59  ;;  %v8831_v33 = vld [vmem:[#allocation12 + $0xe4] ss:$8 sps:$4 sm:$0xff]   ;;  %v8829_v34 = vld [vmem:[#allocation12 + $0xe0] ss:$8 sps:$4 sm:$0xff]   ;;  %v8834_v35 = vld [vmem:[#allocation12 + $0xf4] ss:$8 sps:$4 sm:$0xff]  }
 0x112   :  { %8259 = vmatprep.subr.bf16.mxu0 %v9802_v27  ;;  %v8832_v36 = vld [vmem:[#allocation12 + $0xf0] ss:$8 sps:$4 sm:$0xff]   ;;  %v8837_v37 = vld [vmem:[#allocation12 + $0x4] ss:$8 sps:$4 sm:$0xff]   ;;  %vm10283_vm8 = vmand %vm902_vm5, %vm227_vm3  ;;  %vm251_vm3 = vsmask.f32 4352 }
 0x113   :  { %vm252_vm9 = vmand %vm250_vm1, %vm251_vm3  ;;  %v8893_v12 = vld [vmem:[#allocation15 + $0x224] ss:$16 sps:$4 sm:$0xff]  }
 0x115   :  { %8261 = vmatpush3.bf16.msra.mxu0 %v8260_v62 }
 0x116   :  { %8262 = vmatprep.subr.bf16.mxu0 %v9802_v27 }
 0x119   :  { %8264 = vmatpush3.bf16.msra.mxu0 %v8263_v2 }
 0x11a   :  { %8265 = vmatprep.subr.bf16.mxu0 %v9802_v27 }
 0x11d   :  { %8267 = vmatpush3.bf16.msra.mxu0 %v8266_v4 }
 0x11e   :  { %8268 = vmatprep.subr.bf16.mxu0 %v9802_v27 }
 0x121   :  { %8270 = vmatpush3.bf16.msra.mxu0 %v8269_v10 }
 0x122   :  { %8271 = vmatprep.subr.bf16.mxu0 %v9802_v27 }
 0x125   :  { %8273 = vmatpush3.bf16.msra.mxu0 %v8272_v11 }
 0x126   :  { %1093 = vmatprep.subr.bf16.mxu0 %v8813_v17 }
 0x1da   :  { %v8166_v43 = vpop.f32.mrb[0].mxu1 }
 0x1db   :  { %v495_v44 = vpop.f32.mrb[1].mxu1  ;;  %v8178_v45 = vpop.f32.mrb[0].mxu0 }
 0x1dc   :  { %v8167_v46 = vpop.f32.mrb[2].mxu1  ;;  %v10238_v47 = vadd.f32 %v8178_v45, %v8166_v43  ;;  %v659_v48 = vpop.f32.mrb[1].mxu0  ;;  %v9806_v45 = vmov 1966171168  }
 0x1dd   :  { %v498_v49 = vpop.f32.mrb[3].mxu1  ;;  %v10240_v50 = vadd.f32 %v659_v48, %v495_v44  ;;  %v8179_v51 = vpop.f32.mrb[2].mxu0  ;;  %v801_v48 = vlaneseq }
 0x1de   :  { %v10242_v52 = vadd.f32 %v8179_v51, %v8167_v46  ;;  %v662_v53 = vpop.f32.mrb[3].mxu0  ;;  %v689_v58 = vmul.f32 %v10238_v47, %v10238_v47  ;;  %v799_v46 = vunpack.c.l.s4 %v9806_v45  ;;  %v911_v45 = vld [vmem:[#allocation3 + $0xc] sm:$0xf] }
 0x1df   :  { %v10244_v54 = vadd.f32 %v662_v53, %v498_v49  ;;  %v687_v55 = vmul.f32 %v10240_v50, %v10240_v50  ;;  %v10260_v51 = vshrl.u32 %v801_v48, 7 }
 0x1e0   :  { %v690_v61 = vmul.f32 %v10242_v52, %v10242_v52  ;;  %v800_v49 = vunpack.c.0.s8 %v799_v46  ;;  %v915_v46 = vld [vmem:[#allocation3 + $0x14] sm:$0x1] }
 0x1e1   :  { %v678_v56 = vadd.f32 %v10244_v54, %v10240_v50  ;;  %v688_v57 = vmul.f32 %v10244_v54, %v10244_v54 }
 0x1e2   :  { %v10263_v53 = vsub.s32 %v800_v49, %v10260_v51 }
 0x1e3   :  { %v679_v59 = vadd.f32 %v10238_v47, %v678_v56  ;;  %v691_v60 = vadd.f32 %v688_v57, %v687_v55 }
 0x1e5   :  { %v680_v62 = vadd.f32 %v10242_v52, %v679_v59  ;;  %v692_v63 = vadd.f32 %v691_v60, %v689_v58  ;;  %v794_v58 = vld [vmem:[%s11169_s3] sm:$0x1]  ;;  %v10271_v60 = vsub.s32 0, %v10260_v51 }
 0x1e7   :  { %v681_v1 = vrot.slane %v680_v62, 4  ;;  %v693_v2 = vadd.f32 %v692_v63, %v690_v61 }
 0x1e9   :  { %v682_v3 = vadd.f32 %v681_v1, %v680_v62  ;;  %v694_v0 = vrot.slane %v693_v2, 4  ;;  %v815_v62 = vld [vmem:[%s11170_s5] sm:$0x1] }
 0x1eb   :  { %v683_v4 = vrot.slane %v682_v3, 2  ;;  %v695_v5 = vadd.f32 %v694_v0, %v693_v2 }
 0x1ed   :  { %v684_v6 = vadd.f32 %v683_v4, %v682_v3  ;;  %v696_v8 = vrot.slane %v695_v5, 2 }
 0x1ef   :  { %v685_v9 = vrot.slane %v684_v6, 1  ;;  %v697_v10 = vadd.f32 %v696_v8, %v695_v5 }
 0x1f1   :  { %v698_v11 = vrot.slane %v697_v10, 1  ;;  %v686_v13 = vadd.f32 %v685_v9, %v684_v6 }
 0x1f3   :  { %v699_v15 = vadd.f32 %v698_v11, %v697_v10 }
 0x1f5   :  { %v701_v16 = vsel %vm11126_vm2, %v686_v13, %v699_v15 }
 0x1f6   :  { %8213 = vmatmul.mubr.f32.vlgmr.msra.gmra.mrb[4].mxu0 %v701_v16 }
 0x1f7   :  { %1094 = vmatpush1.bf16.msra.mxu0 %v8811_v18  ;;  %1125 = vmatprep.mubr.bf16.mxu0 %v9805_v31 }
 0x1f8   :  { %1095 = vmatprep.subr.bf16.mxu0 %v8816_v19 }
 0x1fb   :  { %1096 = vmatpush1.bf16.msra.mxu0 %v8814_v20 }
 0x1fc   :  { %1097 = vmatprep.subr.bf16.mxu0 %v8819_v22 }
 0x1ff   :  { %1098 = vmatpush1.bf16.msra.mxu0 %v8817_v25 }
 0x200   :  { %1099 = vmatprep.subr.bf16.mxu0 %v8822_v14 }
 0x203   :  { %1100 = vmatpush1.bf16.msra.mxu0 %v8820_v26 }
 0x204   :  { %1101 = vmatprep.subr.bf16.mxu0 %v8825_v29 }
 0x207   :  { %1102 = vmatpush1.bf16.msra.mxu0 %v8823_v28 }
 0x208   :  { %1103 = vmatprep.subr.bf16.mxu0 %v8828_v30 }
 0x20b   :  { %1104 = vmatpush1.bf16.msra.mxu0 %v8826_v32 }
 0x20c   :  { %1105 = vmatprep.subr.bf16.mxu0 %v8831_v33 }
 0x20f   :  { %1106 = vmatpush1.bf16.msra.mxu0 %v8829_v34  ;;  %v904_v34 = vld [vmem:[#allocation3] sm:$0xf] }
 0x210   :  { %1107 = vmatprep.subr.bf16.mxu0 %v8834_v35 }
 0x213   :  { %1108 = vmatpush1.bf16.msra.mxu0 %v8832_v36 }
 0x214   :  { %1238 = vmatprep.subr.bf16.mxu0 %v8837_v37 }
 0x2c9   :  { %v784_v38 = vpop.f32.mrb[4].mxu0 }
 0x2ca   :  { %v788_v39 = vmul.f32 0.001953125, %v784_v38  ;;  %v8214_v40 = vpop.f32.mrb[5].mxu0 }
 0x2cb   :  { %v908_v40 = vld [vmem:[#allocation3 + $0x8] sm:$0x1] }
 0x2cc   :  { %v789_v41 = vmul.f32 %v788_v39, %v788_v39 }
 0x2ce   :  { %v791_v42 = vrot.slane %v789_v41, 7 }
 0x2d0   :  { %v793_v43 = vsub.f32 %v788_v39, %v791_v42 }
 0x2d2   :  { %v795_v44 = vadd.f32 1e-05, %v793_v43 }
 0x2d4   :  { %9509 = vrsqrt.f32 %v795_v44 }
 0x2de   :  { %v9510_v55 = vpop.eup %9509 }
 0x2df   :  { %v804_v56 = vrot.slane %v9510_v55, %v10263_v53 }
 0x2e1   :  { %v805_v57 = vcombine.high %v804_v56, %v804_v56 }
 0x2e3   :  { %v812_v59 = vrot.slane %v805_v57, %v10263_v53 }
 0x2e5   :  { %v814_v61 = vmul.f32 %v812_v59, %v794_v58 }
 0x2e7   :  { %v816_v63 = vmul.f32 %v814_v61, %v788_v39  ;;  %v822_v1 = vrot.slane %v814_v61, %v10271_v60 }
 0x2e9   :  { %v817_v2 = vsub.f32 %v815_v62, %v816_v63  ;;  %v824_v3 = vmul.f32 %v10240_v50, %v822_v1  ;;  %v825_v0 = vmul.f32 %v10244_v54, %v822_v1  ;;  %v826_v4 = vmul.f32 %v10238_v47, %v822_v1 }
 0x2ea   :  { %v827_v5 = vmul.f32 %v10242_v52, %v822_v1 }
 0x2eb   :  { %v832_v6 = vrot.slane %v817_v2, %v10271_v60 }
 0x2ed   :  { %v834_v8 = vadd.f32 %v832_v6, %v824_v3  ;;  %v835_v9 = vadd.f32 %v832_v6, %v825_v0  ;;  %v836_v10 = vadd.f32 %v832_v6, %v826_v4  ;;  %v837_v11 = vadd.f32 %v832_v6, %v827_v5 }
 0x2ef   :  { %vm838_vm10 = vcmp.ge.f32.partialorder %v834_v8, 0.0  ;;  %vm839_vm11 = vcmp.ge.f32.partialorder %v835_v9, 0.0  ;;  %vm840_vm12 = vcmp.ge.f32.partialorder %v836_v10, 0.0  ;;  %vm841_vm13 = vcmp.ge.f32.partialorder %v837_v11, 0.0 }
 0x2f0   :  { %v842_v13 = vmul.f32 0.01, %v834_v8  ;;  %v843_v15 = vmul.f32 0.01, %v835_v9  ;;  %v844_v16 = vmul.f32 0.01, %v836_v10 }
 0x2f1   :  { %v845_v50 = vmul.f32 0.01, %v837_v11 }
 0x2f2   :  { %v846_v17 = vsel %vm838_vm10, %v834_v8, %v842_v13  ;;  %v847_v54 = vsel %vm839_vm11, %v835_v9, %v843_v15  ;;  %v848_v18 = vsel %vm840_vm12, %v836_v10, %v844_v16  ;;  %vm10405_vm10 = vmor %vm252_vm9, %vm10196_vm4 }
 0x2f3   :  { %v849_v47 = vsel %vm841_vm13, %v837_v11, %v845_v50  ;;  %v8015_v19 = vpack.c.bf16 %v846_v17, %v846_v17  ;;  %v8016_v52 = vpack.c.bf16 %v847_v54, %v847_v54  ;;  %v8017_v20 = vpack.c.bf16 %v848_v18, %v848_v18 }
 0x2f4   :  { %v8018_v22 = vpack.c.bf16 %v849_v47, %v849_v47 }
 0x2f5   :  { %v863_v25 = vshrl.u32 %v8015_v19, 16  ;;  %v871_v14 = vshrl.u32 %v8016_v52, 16  ;;  %v880_v26 = vshrl.u32 %v8017_v20, 16  ;;  %v866_v30 = vshll.u32 %v8015_v19, 16 }
 0x2f6   :  { %v888_v28 = vshrl.u32 %v8018_v22, 16  ;;  %v874_v33 = vshll.u32 %v8016_v52, 16  ;;  %v883_v36 = vshll.u32 %v8017_v20, 16  ;;  %v891_v38 = vshll.u32 %v8018_v22, 16 }
 0x2f7   :  { %v865_v29 = vrot.slane %v863_v25, 7  ;;  %v873_v32 = vrot.slane %v871_v14, 7  ;;  %v882_v35 = vrot.slane %v880_v26, 7 }
 0x2f8   :  { %v890_v37 = vrot.slane %v888_v28, 7 }
 0x2f9   :  { %v868_v41 = vor.u32 %v866_v30, %v865_v29  ;;  %v869_v42 = vrot.slane %v865_v29, 4  ;;  %v876_v43 = vor.u32 %v874_v33, %v873_v32  ;;  %v878_v44 = vrot.slane %v873_v32, 4 }
 0x2fa   :  { %v885_v48 = vor.u32 %v883_v36, %v882_v35  ;;  %v886_v49 = vrot.slane %v882_v35, 4  ;;  %v893_v55 = vor.u32 %v891_v38, %v890_v37  ;;  %v895_v56 = vrot.slane %v890_v37, 4  ;;  %v8835_v38 = vld [vmem:[#allocation12] ss:$8 sps:$4 sm:$0xff]  }
 0x2fb   :  { %v877_v57 = vsel %vm10121_vm7, %v869_v42, %v876_v43  ;;  %v905_v58 = vsel %vm10283_vm8, %v868_v41, %v904_v34  ;;  %v909_v59 = vsel %vm10196_vm4, %v878_v44, %v908_v40 }
 0x2fc   :  { %v894_v61 = vsel %vm10121_vm7, %v886_v49, %v893_v55  ;;  %906 = vst [vmem:[#allocation3] sm:$0xf] %v905_v58  ;;  %907 = vst [vmem:[#allocation3 + $0x4] sm:$0xf] %v877_v57  ;;  %v912_v62 = vsel %vm10283_vm8, %v885_v48, %v911_v45  ;;  %v916_v63 = vsel %vm10196_vm4, %v895_v56, %v915_v46  ;;  %v8840_v46 = vld [vmem:[#allocation12 + $0x14] ss:$8 sps:$4 sm:$0xff]  }
 0x2fd   :  { %910 = vst [vmem:[#allocation3 + $0x8] sm:$0x1] %v909_v59  ;;  %913 = vst [vmem:[#allocation3 + $0xc] sm:$0xf] %v912_v62  ;;  %vm1839_vm4 = vcmask 1047556  }
 0x2fe   :  { %914 = vst [vmem:[#allocation3 + $0x10] sm:$0xf] %v894_v61  ;;  %917 = vst [vmem:[#allocation3 + $0x14] sm:$0x1] %v916_v63  ;;  %v8838_v61 = vld [vmem:[#allocation12 + $0x10] ss:$8 sps:$4 sm:$0xff]  }
 0x303   :  { %v10299_v1 = vld [vmem:[#allocation3] sm:$0xf]  ;;  %v10301_v2 = vld [vmem:[#allocation3 + $0x4] sm:$0xf] }
 0x304   :  { %v938_v3 = vld [vmem:[#allocation3 + $0x8] sm:$0x1]  ;;  %v941_v0 = vshrl.u32 %v10299_v1, 16  ;;  %v944_v4 = vshll.u32 %v10299_v1, 16  ;;  %v950_v5 = vshll.u32 %v10301_v2, 16  ;;  %v954_v6 = vshrl.u32 %v10301_v2, 16 }
 0x305   :  { %v10307_v8 = vld [vmem:[#allocation3 + $0xc] sm:$0xf]  ;;  %v960_v9 = vshll.u32 %v938_v3, 16  ;;  %v10309_v10 = vld [vmem:[#allocation3 + $0x10] sm:$0xf]  ;;  %v1299_v36 = vrot.slane %v10301_v2, 5 }
 0x306   :  { %v943_v11 = vrot.slane %v941_v0, 4  ;;  %v946_v13 = vrot.slane %v944_v4, 5  ;;  %v952_v15 = vrot.slane %v950_v5, 5  ;;  %v956_v16 = vrot.slane %v954_v6, 4  ;;  %v939_v50 = vld [vmem:[#allocation3 + $0x14] sm:$0x1] }
 0x307   :  { %v965_v17 = vshrl.u32 %v10307_v8, 16  ;;  %v968_v54 = vshll.u32 %v10307_v8, 16  ;;  %v974_v18 = vshll.u32 %v10309_v10, 16  ;;  %v978_v52 = vshrl.u32 %v10309_v10, 16  ;;  %v1291_v20 = vld [vmem:[#allocation3] sm:$0xe] }
 0x308   :  { %v947_v47 = vor.u32 %v946_v13, %v943_v11  ;;  %v957_v19 = vor.u32 %v956_v16, %v952_v15  ;;  %v1292_v22 = vld [vmem:[#allocation3 + $0xc] sm:$0xe]  ;;  %v962_v25 = vrot.slane %v960_v9, 5  ;;  %v984_v33 = vshll.u32 %v939_v50, 16  ;;  %v8843_v4 = vld [vmem:[#allocation12 + $0x24] ss:$8 sps:$4 sm:$0xff]  }
 0x309   :  { %v967_v14 = vrot.slane %v965_v17, 4  ;;  %v970_v26 = vrot.slane %v968_v54, 5  ;;  %v976_v28 = vrot.slane %v974_v18, 5  ;;  %v980_v32 = vrot.slane %v978_v52, 4  ;;  %v8841_v11 = vld [vmem:[#allocation12 + $0x20] ss:$8 sps:$4 sm:$0xff]  }
 0x30a   :  { %v948_v29 = vrot.slane %v947_v47, 4  ;;  %v958_v30 = vrot.slane %v957_v19, 4  ;;  %v7487_v35 = vrot.slane %v1291_v20, 9  ;;  %v7488_v37 = vrot.slane %v1292_v22, 9  ;;  %v8844_v16 = vld [vmem:[#allocation12 + $0x30] ss:$8 sps:$4 sm:$0xff]  }
 0x30b   :  { %v971_v34 = vor.u32 %v970_v26, %v967_v14  ;;  %v981_v42 = vor.u32 %v980_v32, %v976_v28  ;;  %v1306_v43 = vrot.slane %v10309_v10, 5  ;;  %v1302_v45 = vrot.slane %v938_v3, 5  ;;  %v8847_v17 = vld [vmem:[#allocation12 + $0x40] ss:$8 sps:$4 sm:$0xff]   ;;  %v8852_v54 = vld [vmem:[#allocation12 + $0x54] ss:$8 sps:$4 sm:$0xff]  }
 0x30c   :  { %v953_v40 = vsel %vm10160_vm15, %v948_v29, %v952_v15  ;;  %v963_v41 = vsel %vm10160_vm15, %v958_v30, %v962_v25  ;;  %v1301_v48 = vrot.slane %v1299_v36, 4  ;;  %v1309_v57 = vrot.slane %v939_v50, 5  ;;  %v8846_v15 = vld [vmem:[#allocation12 + $0x34] ss:$8 sps:$4 sm:$0xff]   ;;  %v8849_v50 = vld [vmem:[#allocation12 + $0x44] ss:$8 sps:$4 sm:$0xff]  }
 0x30d   :  { %v7451_v44 = vcombine.low %v953_v40, %v963_v41  ;;  %v972_v49 = vrot.slane %v971_v34, 4  ;;  %v982_v55 = vrot.slane %v981_v42, 4  ;;  %v1308_v56 = vrot.slane %v1306_v43, 4  ;;  %v8850_v18 = vld [vmem:[#allocation12 + $0x50] ss:$8 sps:$4 sm:$0xff]  }
 0x30e   :  { %v10323_v58 = vsel %vm10154_vm14, %v7487_v35, %v1299_v36  ;;  %v10327_v59 = vsel %vm10154_vm14, %v1301_v48, %v1302_v45  ;;  %v986_v62 = vrot.slane %v984_v33, 5  ;;  %v10334_v3 = vsel %vm10154_vm14, %v7488_v37, %v1306_v43  ;;  %v8855_v47 = vld [vmem:[#allocation12 + $0x64] ss:$8 sps:$4 sm:$0xff]   ;;  %v8853_v19 = vld [vmem:[#allocation12 + $0x60] ss:$8 sps:$4 sm:$0xff]   ;;  %v1526_v40 = vld [vmem:[#allocation14 + $0x18] sm:$0xff] }
 0x30f   :  { %1126 = vmatmul.mubr.bf16.vlgmr.msra.gmra.mrb[8].mxu0 %v7451_v44  ;;  %v7489_v63 = vcombine.low %v10323_v58, %v10327_v59  ;;  %v10338_v0 = vsel %vm10154_vm14, %v1308_v56, %v1309_v57  ;;  %v977_v6 = vsel %vm10160_vm15, %v972_v49, %v976_v28  ;;  %v8858_v52 = vld [vmem:[#allocation12 + $0x74] ss:$8 sps:$4 sm:$0xff]   ;;  %v8856_v20 = vld [vmem:[#allocation12 + $0x70] ss:$8 sps:$4 sm:$0xff]   ;;  %v8862_v22 = vld [vmem:[#allocation12 + $0x104] ss:$8 sps:$4 sm:$0xff]   ;;  %v7469_v14 = vcombine.low %v10299_v1, %v10301_v2 }
 0x310   :  { %1239 = vmatpush1.bf16.msra.mxu0 %v8835_v38  ;;  %1135 = vmatprep.mubr.bf16.mxu0 %v9805_v31  ;;  %v7490_v5 = vcombine.low %v10334_v3, %v10338_v0  ;;  %v987_v9 = vsel %vm10160_vm15, %v982_v55, %v986_v62  ;;  %v8860_v25 = vld [vmem:[#allocation12 + $0x100] ss:$8 sps:$4 sm:$0xff]   ;;  %v8865_v26 = vld [vmem:[#allocation12 + $0x114] ss:$8 sps:$4 sm:$0xff]   ;;  %v8863_v28 = vld [vmem:[#allocation12 + $0x110] ss:$8 sps:$4 sm:$0xff]   ;;  %v7470_v32 = vcombine.low %v10307_v8, %v10309_v10 }
 0x311   :  { %1240 = vmatprep.subr.bf16.mxu0 %v8840_v46  ;;  %v7452_v13 = vcombine.low %v977_v6, %v987_v9  ;;  %v8869_v29 = vld [vmem:[#allocation12 + $0x124] ss:$8 sps:$4 sm:$0xff]   ;;  %v8867_v30 = vld [vmem:[#allocation12 + $0x120] ss:$8 sps:$4 sm:$0xff]   ;;  %v8872_v33 = vld [vmem:[#allocation12 + $0x134] ss:$8 sps:$4 sm:$0xff]  }
 0x312   :  { %v8870_v34 = vld [vmem:[#allocation12 + $0x130] ss:$8 sps:$4 sm:$0xff]   ;;  %v8875_v1 = vld [vmem:[#allocation12 + $0x144] ss:$8 sps:$4 sm:$0xff]   ;;  %v8873_v2 = vld [vmem:[#allocation12 + $0x140] ss:$8 sps:$4 sm:$0xff]  }
 0x313   :  { %v8878_v35 = vld [vmem:[#allocation12 + $0x154] ss:$8 sps:$4 sm:$0xff]   ;;  %v8876_v36 = vld [vmem:[#allocation12 + $0x150] ss:$8 sps:$4 sm:$0xff]   ;;  %v8881_v37 = vld [vmem:[#allocation12 + $0x164] ss:$8 sps:$4 sm:$0xff]  }
 0x314   :  { %1241 = vmatpush1.bf16.msra.mxu0 %v8838_v61  ;;  %v8879_v38 = vld [vmem:[#allocation12 + $0x160] ss:$8 sps:$4 sm:$0xff]   ;;  %v8884_v8 = vld [vmem:[#allocation12 + $0x174] ss:$8 sps:$4 sm:$0xff]   ;;  %v8882_v41 = vld [vmem:[#allocation12 + $0x170] ss:$8 sps:$4 sm:$0xff]  }
 0x315   :  { %1242 = vmatprep.subr.bf16.mxu0 %v8843_v4  ;;  %v1524_v10 = vld [vmem:[#allocation14 + $0x8] sm:$0xff]  ;;  %v1523_v43 = vld [vmem:[#allocation14] sm:$0xff]  ;;  %v1525_v44 = vld [vmem:[#allocation14 + $0x10] sm:$0xff] }
 0x316   :  { %v8274_v42 = vpack.c.bf16 %v1526_v40, %v1524_v10  ;;  %v1528_v45 = vld [vmem:[#allocation14 + $0x28] sm:$0xff]  ;;  %v1530_v46 = vld [vmem:[#allocation14 + $0x38] sm:$0xff]  ;;  %v8276_v48 = vpack.c.bf16 %v1525_v44, %v1523_v43  ;;  %v1527_v55 = vld [vmem:[#allocation14 + $0x20] sm:$0xff] }
 0x317   :  { %1136 = vmatmul.mubr.bf16.gmra.mrb[12].mxu0 %v7452_v13  ;;  %v8278_v49 = vpack.c.bf16 %v1530_v46, %v1528_v45  ;;  %v1529_v56 = vld [vmem:[#allocation14 + $0x30] sm:$0xff]  ;;  %v1532_v57 = vld [vmem:[#allocation14 + $0x48] sm:$0xff]  ;;  %v1534_v61 = vld [vmem:[#allocation14 + $0x58] sm:$0xff] }
 0x318   :  { %1243 = vmatpush1.bf16.msra.mxu0 %v8841_v11  ;;  %1270 = vmatprep.mubr.bf16.mxu0 %v9805_v31  ;;  %v8280_v62 = vpack.c.bf16 %v1529_v56, %v1527_v55  ;;  %v8282_v4 = vpack.c.bf16 %v1534_v61, %v1532_v57  ;;  %v1531_v6 = vld [vmem:[#allocation14 + $0x40] sm:$0xff]  ;;  %v1533_v9 = vld [vmem:[#allocation14 + $0x50] sm:$0xff]  ;;  %v1536_v11 = vld [vmem:[#allocation14 + $0x68] sm:$0xff] }
 0x319   :  { %1244 = vmatprep.subr.bf16.mxu0 %v8846_v15  ;;  %v1538_v13 = vld [vmem:[#allocation14 + $0x78] sm:$0xff]  ;;  %v8284_v15 = vpack.c.bf16 %v1533_v9, %v1531_v6  ;;  %v1539_v59 = vld [vmem:[#allocation14 + $0x80] sm:$0xff]  ;;  %v1560_v40 = vld [vmem:[#allocation14 + $0x128] sm:$0xff] }
 0x31a   :  { %v1547_v0 = vld [vmem:[#allocation14 + $0xc0] sm:$0xff]  ;;  %v1561_v44 = vld [vmem:[#allocation14 + $0x130] sm:$0xff]  ;;  %v1564_v45 = vld [vmem:[#allocation14 + $0x148] sm:$0xff] }
 0x31b   :  { %v1559_v43 = vld [vmem:[#allocation14 + $0x120] sm:$0xff]  ;;  %v1565_v55 = vld [vmem:[#allocation14 + $0x150] sm:$0xff]  ;;  %v1568_v61 = vld [vmem:[#allocation14 + $0x168] sm:$0xff] }
 0x31c   :  { %1245 = vmatpush1.bf16.msra.mxu0 %v8844_v16  ;;  %v8286_v16 = vpack.c.bf16 %v1538_v13, %v1536_v11  ;;  %v8312_v46 = vpack.c.bf16 %v1561_v44, %v1559_v43  ;;  %v1567_v6 = vld [vmem:[#allocation14 + $0x160] sm:$0xff]  ;;  %v1569_v9 = vld [vmem:[#allocation14 + $0x170] sm:$0xff]  ;;  %v1572_v13 = vld [vmem:[#allocation14 + $0x188] sm:$0xff] }
 0x31d   :  { %1246 = vmatprep.subr.bf16.mxu0 %v8849_v50  ;;  %v1535_v50 = vld [vmem:[#allocation14 + $0x60] sm:$0xff]  ;;  %v8320_v11 = vpack.c.bf16 %v1569_v9, %v1567_v6 }
 0x320   :  { %1247 = vmatpush1.bf16.msra.mxu0 %v8847_v17  ;;  %v1537_v17 = vld [vmem:[#allocation14 + $0x70] sm:$0xff] }
 0x321   :  { %1248 = vmatprep.subr.bf16.mxu0 %v8852_v54  ;;  %v1540_v54 = vld [vmem:[#allocation14 + $0x88] sm:$0xff] }
 0x324   :  { %1249 = vmatpush1.bf16.msra.mxu0 %v8850_v18  ;;  %v1542_v18 = vld [vmem:[#allocation14 + $0x98] sm:$0xff] }
 0x325   :  { %1250 = vmatprep.subr.bf16.mxu0 %v8855_v47  ;;  %v8290_v58 = vpack.c.bf16 %v1542_v18, %v1540_v54  ;;  %v1544_v47 = vld [vmem:[#allocation14 + $0xa8] sm:$0xff] }
 0x326   :  { %v1576_v18 = vld [vmem:[#allocation14 + $0x1a8] sm:$0xff] }
 0x328   :  { %1251 = vmatpush1.bf16.msra.mxu0 %v8853_v19  ;;  %v1546_v19 = vld [vmem:[#allocation14 + $0xb8] sm:$0xff] }
 0x329   :  { %1252 = vmatprep.subr.bf16.mxu0 %v8858_v52 }
 0x32c   :  { %1253 = vmatpush1.bf16.msra.mxu0 %v8856_v20  ;;  %v8294_v20 = vpack.c.bf16 %v1546_v19, %v1544_v47  ;;  %v1580_v47 = vld [vmem:[#allocation14 + $0x1c8] sm:$0xff]  ;;  %v1582_v19 = vld [vmem:[#allocation14 + $0x1d8] sm:$0xff] }
 0x32d   :  { %1416 = vmatprep.subr.bf16.mxu0 %v8862_v22  ;;  %v1543_v22 = vld [vmem:[#allocation14 + $0xa0] sm:$0xff] }
 0x32f   :  { %1271 = vmatmul.mubr.bf16.vlgmr.msra.gmra.mrb[8].mxu0 %v7469_v14  ;;  %v1548_v14 = vld [vmem:[#allocation14 + $0xc8] sm:$0xff] }
 0x330   :  { %1417 = vmatpush1.bf16.msra.mxu0 %v8860_v25  ;;  %1280 = vmatprep.mubr.bf16.mxu0 %v9805_v31  ;;  %v1545_v25 = vld [vmem:[#allocation14 + $0xb0] sm:$0xff] }
 0x331   :  { %1418 = vmatprep.subr.bf16.mxu0 %v8865_v26  ;;  %v1550_v26 = vld [vmem:[#allocation14 + $0xd8] sm:$0xff] }
 0x332   :  { %v8298_v3 = vpack.c.bf16 %v1550_v26, %v1548_v14  ;;  %v1584_v14 = vld [vmem:[#allocation14 + $0x1e8] sm:$0xff]  ;;  %v1586_v26 = vld [vmem:[#allocation14 + $0x1f8] sm:$0xff] }
 0x334   :  { %1419 = vmatpush1.bf16.msra.mxu0 %v8863_v28  ;;  %v8296_v28 = vpack.c.bf16 %v1545_v25, %v1543_v22  ;;  %v1579_v22 = vld [vmem:[#allocation14 + $0x1c0] sm:$0xff]  ;;  %v1581_v25 = vld [vmem:[#allocation14 + $0x1d0] sm:$0xff] }
 0x335   :  { %1420 = vmatprep.subr.bf16.mxu0 %v8869_v29  ;;  %v1552_v29 = vld [vmem:[#allocation14 + $0xe8] sm:$0xff] }
 0x337   :  { %1281 = vmatmul.mubr.bf16.gmra.mrb[12].mxu0 %v7470_v32 }
 0x338   :  { %1421 = vmatpush1.bf16.msra.mxu0 %v8867_v30  ;;  %1448 = vmatprep.mubr.bf16.mxu0 %v9805_v31  ;;  %v1554_v30 = vld [vmem:[#allocation14 + $0xf8] sm:$0xff] }
 0x339   :  { %1422 = vmatprep.subr.bf16.mxu0 %v8872_v33  ;;  %v8302_v33 = vpack.c.bf16 %v1554_v30, %v1552_v29 }
 0x33c   :  { %1423 = vmatpush1.bf16.msra.mxu0 %v8870_v34  ;;  %v1551_v34 = vld [vmem:[#allocation14 + $0xe0] sm:$0xff] }
 0x33d   :  { %1424 = vmatprep.subr.bf16.mxu0 %v8875_v1  ;;  %v1553_v1 = vld [vmem:[#allocation14 + $0xf0] sm:$0xff] }
 0x340   :  { %1425 = vmatpush1.bf16.msra.mxu0 %v8873_v2  ;;  %v1556_v2 = vld [vmem:[#allocation14 + $0x108] sm:$0xff] }
 0x341   :  { %1426 = vmatprep.subr.bf16.mxu0 %v8878_v35  ;;  %v1558_v35 = vld [vmem:[#allocation14 + $0x118] sm:$0xff] }
 0x344   :  { %1427 = vmatpush1.bf16.msra.mxu0 %v8876_v36  ;;  %v8304_v36 = vpack.c.bf16 %v1553_v1, %v1551_v34 }
 0x345   :  { %1428 = vmatprep.subr.bf16.mxu0 %v8881_v37  ;;  %v8306_v37 = vpack.c.bf16 %v1558_v35, %v1556_v2 }
 0x348   :  { %1429 = vmatpush1.bf16.msra.mxu0 %v8879_v38  ;;  %v1555_v38 = vld [vmem:[#allocation14 + $0x100] sm:$0xff] }
 0x349   :  { %1430 = vmatprep.subr.bf16.mxu0 %v8884_v8  ;;  %v1557_v8 = vld [vmem:[#allocation14 + $0x110] sm:$0xff] }
 0x34a   :  { %v8308_v10 = vpack.c.bf16 %v1557_v8, %v1555_v38 }
 0x34c   :  { %1431 = vmatpush1.bf16.msra.mxu0 %v8882_v41  ;;  %v1562_v41 = vld [vmem:[#allocation14 + $0x138] sm:$0xff] }
 0x34d   :  { %8275 = vmatprep.subr.bf16.mxu0 %v8274_v42  ;;  %v8310_v42 = vpack.c.bf16 %v1562_v41, %v1560_v40 }
 0x34f   :  { %1449 = vmatmul.mubr.bf16.vlgmr.msra.gmra.mrb[8].mxu0 %v7489_v63  ;;  %v1541_v63 = vld [vmem:[#allocation14 + $0x90] sm:$0xff] }
 0x350   :  { %1458 = vmatprep.mubr.bf16.mxu0 %v9805_v31  ;;  %8277 = vmatpush1.bf16.msra.mxu0 %v8276_v48  ;;  %v8288_v31 = vpack.c.bf16 %v1537_v17, %v1535_v50  ;;  %v8292_v52 = vpack.c.bf16 %v1541_v63, %v1539_v59  ;;  %v1566_v48 = vld [vmem:[#allocation14 + $0x158] sm:$0xff]  ;;  %v1571_v50 = vld [vmem:[#allocation14 + $0x180] sm:$0xff]  ;;  %v1573_v17 = vld [vmem:[#allocation14 + $0x190] sm:$0xff] }
 0x351   :  { %8279 = vmatprep.subr.bf16.mxu0 %v8278_v49  ;;  %v1563_v49 = vld [vmem:[#allocation14 + $0x140] sm:$0xff]  ;;  %v8314_v56 = vpack.c.bf16 %v1566_v48, %v1564_v45  ;;  %v8324_v54 = vpack.c.bf16 %v1573_v17, %v1571_v50  ;;  %v1577_v63 = vld [vmem:[#allocation14 + $0x1b0] sm:$0xff] }
 0x352   :  { %v8316_v57 = vpack.c.bf16 %v1565_v55, %v1563_v49 }
 0x354   :  { %8281 = vmatpush1.bf16.msra.mxu0 %v8280_v62  ;;  %v1570_v62 = vld [vmem:[#allocation14 + $0x178] sm:$0xff] }
 0x355   :  { %8283 = vmatprep.subr.bf16.mxu0 %v8282_v4  ;;  %v8318_v4 = vpack.c.bf16 %v1570_v62, %v1568_v61 }
 0x357   :  { %1459 = vmatmul.mubr.bf16.gmra.mrb[12].mxu0 %v7490_v5  ;;  %v1549_v5 = vld [vmem:[#allocation14 + $0xd0] sm:$0xff] }
 0x358   :  { %8285 = vmatpush1.bf16.msra.mxu0 %v8284_v15  ;;  %v8300_v32 = vpack.c.bf16 %v1549_v5, %v1547_v0  ;;  %v1574_v15 = vld [vmem:[#allocation14 + $0x198] sm:$0xff]  ;;  %v1583_v0 = vld [vmem:[#allocation14 + $0x1e0] sm:$0xff]  ;;  %v1585_v5 = vld [vmem:[#allocation14 + $0x1f0] sm:$0xff] }
 0x359   :  { %8287 = vmatprep.subr.bf16.mxu0 %v8286_v16  ;;  %v8322_v16 = vpack.c.bf16 %v1574_v15, %v1572_v13  ;;  %v8336_v29 = vpack.c.bf16 %v1585_v5, %v1583_v0 }
 0x35c   :  { %8289 = vmatpush1.bf16.msra.mxu0 %v8288_v31  ;;  %v1578_v31 = vld [vmem:[#allocation14 + $0x1b8] sm:$0xff] }
 0x35d   :  { %8291 = vmatprep.subr.bf16.mxu0 %v8290_v58  ;;  %v1575_v58 = vld [vmem:[#allocation14 + $0x1a0] sm:$0xff]  ;;  %v8326_v59 = vpack.c.bf16 %v1578_v31, %v1576_v18 }
 0x360   :  { %8293 = vmatpush1.bf16.msra.mxu0 %v8292_v52  ;;  %v8328_v52 = vpack.c.bf16 %v1577_v63, %v1575_v58 }
 0x361   :  { %8295 = vmatprep.subr.bf16.mxu0 %v8294_v20  ;;  %v8330_v20 = vpack.c.bf16 %v1582_v19, %v1580_v47 }
 0x364   :  { %8297 = vmatpush1.bf16.msra.mxu0 %v8296_v28  ;;  %v8332_v28 = vpack.c.bf16 %v1581_v25, %v1579_v22 }
 0x365   :  { %8299 = vmatprep.subr.bf16.mxu0 %v8298_v3  ;;  %v8334_v3 = vpack.c.bf16 %v1586_v26, %v1584_v14 }
 0x368   :  { %8301 = vmatpush1.bf16.msra.mxu0 %v8300_v32 }
 0x369   :  { %8303 = vmatprep.subr.bf16.mxu0 %v8302_v33 }
 0x36c   :  { %8305 = vmatpush1.bf16.msra.mxu0 %v8304_v36 }
 0x36d   :  { %8307 = vmatprep.subr.bf16.mxu0 %v8306_v37 }
 0x370   :  { %8309 = vmatpush1.bf16.msra.mxu0 %v8308_v10 }
 0x371   :  { %8311 = vmatprep.subr.bf16.mxu0 %v8310_v42 }
 0x374   :  { %8313 = vmatpush1.bf16.msra.mxu0 %v8312_v46 }
 0x375   :  { %8315 = vmatprep.subr.bf16.mxu0 %v8314_v56 }
 0x378   :  { %8317 = vmatpush1.bf16.msra.mxu0 %v8316_v57 }
 0x379   :  { %8319 = vmatprep.subr.bf16.mxu0 %v8318_v4 }
 0x37c   :  { %8321 = vmatpush1.bf16.msra.mxu0 %v8320_v11 }
 0x37d   :  { %8323 = vmatprep.subr.bf16.mxu0 %v8322_v16 }
 0x380   :  { %8325 = vmatpush1.bf16.msra.mxu0 %v8324_v54 }
 0x381   :  { %8327 = vmatprep.subr.bf16.mxu0 %v8326_v59 }
 0x384   :  { %8329 = vmatpush1.bf16.msra.mxu0 %v8328_v52 }
 0x385   :  { %8331 = vmatprep.subr.bf16.mxu0 %v8330_v20 }
 0x388   :  { %8333 = vmatpush1.bf16.msra.mxu0 %v8332_v28 }
 0x389   :  { %8335 = vmatprep.subr.bf16.mxu0 %v8334_v3 }
 0x38c   :  { %8337 = vmatpush1.bf16.msra.mxu0 %v8336_v29 }
 0x422   :  { %v10360_v30 = vpop.f32.mrb[8].mxu0 }
 0x423   :  { %v10362_v32 = vpop.f32.mrb[9].mxu0  ;;  %v1495_v34 = vmul.f32 %v10360_v30, %v10360_v30 }
 0x424   :  { %v10364_v33 = vpop.f32.mrb[10].mxu0  ;;  %v1496_v36 = vmul.f32 %v10362_v32, %v10362_v32 }
 0x425   :  { %v1477_v1 = vadd.f32 %v10364_v33, %v10360_v30  ;;  %v1497_v2 = vmul.f32 %v10364_v33, %v10364_v33  ;;  %v10372_v35 = vpop.f32.mrb[11].mxu0 }
 0x426   :  { %v1486_v37 = vadd.f32 %v10372_v35, %v10362_v32  ;;  %v1498_v38 = vmul.f32 %v10372_v35, %v10372_v35 }
 0x427   :  { %v1503_v8 = vadd.f32 %v1497_v2, %v1495_v34  ;;  %v11173_v34 = vmov 0  ;;  %v257_v2 = vld [vmem:[#allocation4 + $0x18] sm:$0x11] }
 0x428   :  { %v1512_v10 = vadd.f32 %v1498_v38, %v1496_v36  ;;  %v11174_v34 = vsel %vm10405_vm10, 4294967295, %v11173_v34  ;;  %v8887_v38 = vld [vmem:[#allocation15 + $0x204] ss:$16 sps:$4 sm:$0xff]  }
 0x429   :  { %2375 = vmatprep.subr.bf16.mxu1 %v8887_v38  ;;  %v8951_v38 = vld [vmem:[#allocation15 + $0x360] ss:$16 sps:$4 sm:$0xff]  }
 0x42a   :  { %v10380_v40 = vpop.f32.mrb[12].mxu0 }
 0x42b   :  { %v1478_v41 = vadd.f32 %v1477_v1, %v10380_v40  ;;  %v1499_v42 = vmul.f32 %v10380_v40, %v10380_v40  ;;  %v10385_v43 = vpop.f32.mrb[13].mxu0  ;;  %v254_v1 = vld [vmem:[#allocation4] sm:$0x11] }
 0x42c   :  { %v1487_v44 = vadd.f32 %v1486_v37, %v10385_v43  ;;  %v1500_v45 = vmul.f32 %v10385_v43, %v10385_v43  ;;  %v10390_v46 = vpop.f32.mrb[14].mxu0  ;;  %v255_v36 = vsel %vm10405_vm10, 0, %v254_v1  ;;  %v258_v37 = vsel %vm10405_vm10, 0, %v257_v2  ;;  %v8945_v1 = vld [vmem:[#allocation15 + $0x340] ss:$16 sps:$4 sm:$0xff]  }
 0x42d   :  { %v1504_v48 = vadd.f32 %v1503_v8, %v1499_v42  ;;  %v1479_v49 = vadd.f32 %v1478_v41, %v10390_v46  ;;  %v1501_v55 = vmul.f32 %v10390_v46, %v10390_v46  ;;  %v10395_v56 = vpop.f32.mrb[15].mxu0  ;;  %256 = vst [vmem:[#allocation4] sm:$0x11] %v255_v36  ;;  %259 = vst [vmem:[#allocation4 + $0x18] sm:$0x11] %v258_v37 }
 0x42e   :  { %v1513_v57 = vadd.f32 %v1512_v10, %v1500_v45  ;;  %v1488_v61 = vadd.f32 %v1487_v44, %v10395_v56  ;;  %v1502_v62 = vmul.f32 %v10395_v56, %v10395_v56  ;;  %v8890_v8 = vld [vmem:[#allocation15 + $0x20c] ss:$16 sps:$4 sm:$0xff]   ;;  %v8885_v10 = vld [vmem:[#allocation15 + $0x200] ss:$16 sps:$4 sm:$0xff]   ;;  %v8888_v41 = vld [vmem:[#allocation15 + $0x208] ss:$16 sps:$4 sm:$0xff]  }
 0x42f   :  { %v1480_v4 = vrot.slane %v1479_v49, 4  ;;  %v1505_v6 = vadd.f32 %v1504_v48, %v1501_v55  ;;  %2428 = vmatprep.subr.bf16.mxu0 %v8890_v8  ;;  %2376 = vmatpush1.bf16.msra.mxu1 %v8885_v10  ;;  %v8896_v42 = vld [vmem:[#allocation15 + $0x22c] ss:$16 sps:$4 sm:$0xff]   ;;  %v8891_v44 = vld [vmem:[#allocation15 + $0x220] ss:$16 sps:$4 sm:$0xff]  }
 0x430   :  { %v1489_v9 = vrot.slane %v1488_v61, 4  ;;  %v1514_v11 = vadd.f32 %v1513_v57, %v1502_v62  ;;  %v8894_v45 = vld [vmem:[#allocation15 + $0x228] ss:$16 sps:$4 sm:$0xff]   ;;  %2377 = vmatprep.subr.bf16.mxu1 %v8893_v12  ;;  %v8899_v48 = vld [vmem:[#allocation15 + $0x244] ss:$16 sps:$4 sm:$0xff]  }
 0x431   :  { %v1481_v13 = vadd.f32 %v1480_v4, %v1479_v49  ;;  %v1506_v15 = vrot.slane %v1505_v6, 4  ;;  %v8902_v49 = vld [vmem:[#allocation15 + $0x24c] ss:$16 sps:$4 sm:$0xff]   ;;  %v8897_v55 = vld [vmem:[#allocation15 + $0x240] ss:$16 sps:$4 sm:$0xff]  }
 0x432   :  { %v1490_v16 = vadd.f32 %v1489_v9, %v1488_v61  ;;  %v1515_v50 = vrot.slane %v1514_v11, 4  ;;  %v8900_v57 = vld [vmem:[#allocation15 + $0x248] ss:$16 sps:$4 sm:$0xff]   ;;  %v8905_v61 = vld [vmem:[#allocation15 + $0x264] ss:$16 sps:$4 sm:$0xff]  }
 0x433   :  { %v1482_v17 = vrot.slane %v1481_v13, 2  ;;  %v1507_v54 = vadd.f32 %v1506_v15, %v1505_v6  ;;  %2378 = vmatpush1.bf16.msra.mxu1 %v8891_v44  ;;  %v8908_v62 = vld [vmem:[#allocation15 + $0x26c] ss:$16 sps:$4 sm:$0xff]   ;;  %v8903_v4 = vld [vmem:[#allocation15 + $0x260] ss:$16 sps:$4 sm:$0xff]  }
 0x434   :  { %v1491_v18 = vrot.slane %v1490_v16, 2  ;;  %v1516_v31 = vadd.f32 %v1515_v50, %v1514_v11  ;;  %2379 = vmatprep.subr.bf16.mxu1 %v8899_v48  ;;  %v8906_v6 = vld [vmem:[#allocation15 + $0x268] ss:$16 sps:$4 sm:$0xff]   ;;  %v8911_v9 = vld [vmem:[#allocation15 + $0x284] ss:$16 sps:$4 sm:$0xff]  }
 0x435   :  { %v1483_v58 = vadd.f32 %v1482_v17, %v1481_v13  ;;  %v1508_v59 = vrot.slane %v1507_v54, 2  ;;  %v8914_v11 = vld [vmem:[#allocation15 + $0x28c] ss:$16 sps:$4 sm:$0xff]   ;;  %v8909_v13 = vld [vmem:[#allocation15 + $0x280] ss:$16 sps:$4 sm:$0xff]  }
 0x436   :  { %v1492_v63 = vadd.f32 %v1491_v18, %v1490_v16  ;;  %v1517_v47 = vrot.slane %v1516_v31, 2  ;;  %v8912_v15 = vld [vmem:[#allocation15 + $0x288] ss:$16 sps:$4 sm:$0xff]   ;;  %v8917_v16 = vld [vmem:[#allocation15 + $0x2a4] ss:$16 sps:$4 sm:$0xff]  }
 0x437   :  { %v1484_v19 = vrot.slane %v1483_v58, 1  ;;  %v1509_v52 = vadd.f32 %v1508_v59, %v1507_v54  ;;  %2380 = vmatpush1.bf16.msra.mxu1 %v8897_v55  ;;  %v8920_v50 = vld [vmem:[#allocation15 + $0x2ac] ss:$16 sps:$4 sm:$0xff]   ;;  %v8915_v17 = vld [vmem:[#allocation15 + $0x2a0] ss:$16 sps:$4 sm:$0xff]  }
 0x438   :  { %v1493_v20 = vrot.slane %v1492_v63, 1  ;;  %v1518_v22 = vadd.f32 %v1517_v47, %v1516_v31  ;;  %2381 = vmatprep.subr.bf16.mxu1 %v8905_v61  ;;  %v8918_v54 = vld [vmem:[#allocation15 + $0x2a8] ss:$16 sps:$4 sm:$0xff]   ;;  %v8923_v18 = vld [vmem:[#allocation15 + $0x2c4] ss:$16 sps:$4 sm:$0xff]  }
 0x439   :  { %v1510_v25 = vrot.slane %v1509_v52, 1  ;;  %v1485_v26 = vadd.f32 %v1484_v19, %v1483_v58  ;;  %v8926_v31 = vld [vmem:[#allocation15 + $0x2cc] ss:$16 sps:$4 sm:$0xff]   ;;  %v8921_v58 = vld [vmem:[#allocation15 + $0x2c0] ss:$16 sps:$4 sm:$0xff]  }
 0x43a   :  { %v1519_v14 = vrot.slane %v1518_v22, 1  ;;  %v1494_v3 = vadd.f32 %v1493_v20, %v1492_v63  ;;  %v8924_v59 = vld [vmem:[#allocation15 + $0x2c8] ss:$16 sps:$4 sm:$0xff]   ;;  %v8929_v63 = vld [vmem:[#allocation15 + $0x2e4] ss:$16 sps:$4 sm:$0xff]  }
 0x43b   :  { %v1511_v28 = vadd.f32 %v1510_v25, %v1509_v52  ;;  %2382 = vmatpush1.bf16.msra.mxu1 %v8903_v4  ;;  %v8932_v47 = vld [vmem:[#allocation15 + $0x2ec] ss:$16 sps:$4 sm:$0xff]   ;;  %v8927_v19 = vld [vmem:[#allocation15 + $0x2e0] ss:$16 sps:$4 sm:$0xff]   ;;  %v8930_v52 = vld [vmem:[#allocation15 + $0x2e8] ss:$16 sps:$4 sm:$0xff]  }
 0x43c   :  { %v1520_v0 = vadd.f32 %v1519_v14, %v1518_v22  ;;  %2383 = vmatprep.subr.bf16.mxu1 %v8911_v9  ;;  %v8935_v20 = vld [vmem:[#allocation15 + $0x304] ss:$16 sps:$4 sm:$0xff]   ;;  %v8938_v22 = vld [vmem:[#allocation15 + $0x30c] ss:$16 sps:$4 sm:$0xff]   ;;  %v8933_v25 = vld [vmem:[#allocation15 + $0x300] ss:$16 sps:$4 sm:$0xff]  }
 0x43d   :  { %v1521_v5 = vsel %vm11126_vm2, %v1485_v26, %v1511_v28  ;;  %v8936_v14 = vld [vmem:[#allocation15 + $0x308] ss:$16 sps:$4 sm:$0xff]   ;;  %v8941_v26 = vld [vmem:[#allocation15 + $0x324] ss:$16 sps:$4 sm:$0xff]   ;;  %v8944_v28 = vld [vmem:[#allocation15 + $0x32c] ss:$16 sps:$4 sm:$0xff]  }
 0x43e   :  { %v1522_v29 = vsel %vm11126_vm2, %v1494_v3, %v1520_v0  ;;  %v8939_v3 = vld [vmem:[#allocation15 + $0x320] ss:$16 sps:$4 sm:$0xff]   ;;  %v8942_v0 = vld [vmem:[#allocation15 + $0x328] ss:$16 sps:$4 sm:$0xff]   ;;  %v8953_v36 = vld [vmem:[#allocation15 + $0x364] ss:$16 sps:$4 sm:$0xff]  }
 0x43f   :  { %1651 = vmatprep.mubr.f32.mxu0 %v1522_v29  ;;  %2384 = vmatpush1.bf16.msra.mxu1 %v8909_v13  ;;  %v8950_v29 = vld [vmem:[#allocation15 + $0x34c] ss:$16 sps:$4 sm:$0xff]   ;;  %v8948_v2 = vld [vmem:[#allocation15 + $0x348] ss:$16 sps:$4 sm:$0xff]   ;;  %v8959_v10 = vld [vmem:[#allocation15 + $0x384] ss:$16 sps:$4 sm:$0xff]  }
 0x440   :  { %1652 = vmatmul.mubr.f32.vlgmr.msra.gmra.mrb[6].mxu0 %v1521_v5  ;;  %2385 = vmatprep.subr.bf16.mxu1 %v8917_v16  ;;  %v8947_v5 = vld [vmem:[#allocation15 + $0x344] ss:$16 sps:$4 sm:$0xff]   ;;  %v8956_v37 = vld [vmem:[#allocation15 + $0x36c] ss:$16 sps:$4 sm:$0xff]   ;;  %v8954_v8 = vld [vmem:[#allocation15 + $0x368] ss:$16 sps:$4 sm:$0xff]  }
 0x441   :  { %2429 = vmatpush1.bf16.msra.mxu0 %v8888_v41  ;;  %v8957_v41 = vld [vmem:[#allocation15 + $0x380] ss:$16 sps:$4 sm:$0xff]   ;;  %v8960_v12 = vld [vmem:[#allocation15 + $0x388] ss:$16 sps:$4 sm:$0xff]   ;;  %v8965_v44 = vld [vmem:[#allocation15 + $0x3a4] ss:$16 sps:$4 sm:$0xff]  }
 0x442   :  { %2430 = vmatprep.subr.bf16.mxu0 %v8896_v42  ;;  %v8962_v42 = vld [vmem:[#allocation15 + $0x38c] ss:$16 sps:$4 sm:$0xff]   ;;  %v8963_v48 = vld [vmem:[#allocation15 + $0x3a0] ss:$16 sps:$4 sm:$0xff]   ;;  %v8971_v55 = vld [vmem:[#allocation15 + $0x3c4] ss:$16 sps:$4 sm:$0xff]  }
 0x443   :  { %2386 = vmatpush1.bf16.msra.mxu1 %v8915_v17  ;;  %v8969_v61 = vld [vmem:[#allocation15 + $0x3c0] ss:$16 sps:$4 sm:$0xff]   ;;  %v8977_v4 = vld [vmem:[#allocation15 + $0x3e4] ss:$16 sps:$4 sm:$0xff]  }
 0x444   :  { %2387 = vmatprep.subr.bf16.mxu1 %v8923_v18  ;;  %v8975_v9 = vld [vmem:[#allocation15 + $0x3e0] ss:$16 sps:$4 sm:$0xff]   ;;  %v8983_v13 = vld [vmem:[#allocation15 + $0x4] ss:$16 sps:$4 sm:$0xff]  }
 0x445   :  { %2431 = vmatpush1.bf16.msra.mxu0 %v8894_v45  ;;  %v8968_v45 = vld [vmem:[#allocation15 + $0x3ac] ss:$16 sps:$4 sm:$0xff]  }
 0x446   :  { %2432 = vmatprep.subr.bf16.mxu0 %v8902_v49  ;;  %v8966_v49 = vld [vmem:[#allocation15 + $0x3a8] ss:$16 sps:$4 sm:$0xff]  }
 0x447   :  { %2388 = vmatpush1.bf16.msra.mxu1 %v8921_v58 }
 0x448   :  { %2389 = vmatprep.subr.bf16.mxu1 %v8929_v63 }
 0x449   :  { %2433 = vmatpush1.bf16.msra.mxu0 %v8900_v57  ;;  %v8974_v57 = vld [vmem:[#allocation15 + $0x3cc] ss:$16 sps:$4 sm:$0xff]  }
 0x44a   :  { %2434 = vmatprep.subr.bf16.mxu0 %v8908_v62  ;;  %v8972_v62 = vld [vmem:[#allocation15 + $0x3c8] ss:$16 sps:$4 sm:$0xff]  }
 0x44b   :  { %2390 = vmatpush1.bf16.msra.mxu1 %v8927_v19 }
 0x44c   :  { %2391 = vmatprep.subr.bf16.mxu1 %v8935_v20 }
 0x44d   :  { %2435 = vmatpush1.bf16.msra.mxu0 %v8906_v6  ;;  %v8980_v6 = vld [vmem:[#allocation15 + $0x3ec] ss:$16 sps:$4 sm:$0xff]  }
 0x44e   :  { %2436 = vmatprep.subr.bf16.mxu0 %v8914_v11  ;;  %v8978_v11 = vld [vmem:[#allocation15 + $0x3e8] ss:$16 sps:$4 sm:$0xff]  }
 0x44f   :  { %2392 = vmatpush1.bf16.msra.mxu1 %v8933_v25 }
 0x450   :  { %2393 = vmatprep.subr.bf16.mxu1 %v8941_v26 }
 0x451   :  { %2437 = vmatpush1.bf16.msra.mxu0 %v8912_v15  ;;  %v8986_v15 = vld [vmem:[#allocation15 + $0xc] ss:$16 sps:$4 sm:$0xff]  }
 0x452   :  { %2438 = vmatprep.subr.bf16.mxu0 %v8920_v50 }
 0x453   :  { %2394 = vmatpush1.bf16.msra.mxu1 %v8939_v3 }
 0x454   :  { %2395 = vmatprep.subr.bf16.mxu1 %v8947_v5 }
 0x455   :  { %2439 = vmatpush1.bf16.msra.mxu0 %v8918_v54 }
 0x456   :  { %2440 = vmatprep.subr.bf16.mxu0 %v8926_v31 }
 0x457   :  { %2396 = vmatpush1.bf16.msra.mxu1 %v8945_v1 }
 0x458   :  { %2397 = vmatprep.subr.bf16.mxu1 %v8953_v36 }
 0x459   :  { %2441 = vmatpush1.bf16.msra.mxu0 %v8924_v59 }
 0x45a   :  { %2442 = vmatprep.subr.bf16.mxu0 %v8932_v47 }
 0x45b   :  { %2398 = vmatpush1.bf16.msra.mxu1 %v8951_v38 }
 0x45c   :  { %2399 = vmatprep.subr.bf16.mxu1 %v8959_v10 }
 0x45d   :  { %2443 = vmatpush1.bf16.msra.mxu0 %v8930_v52 }
 0x45e   :  { %2444 = vmatprep.subr.bf16.mxu0 %v8938_v22 }
 0x45f   :  { %2400 = vmatpush1.bf16.msra.mxu1 %v8957_v41 }
 0x460   :  { %2401 = vmatprep.subr.bf16.mxu1 %v8965_v44 }
 0x461   :  { %2445 = vmatpush1.bf16.msra.mxu0 %v8936_v14 }
 0x462   :  { %2446 = vmatprep.subr.bf16.mxu0 %v8944_v28  ;;  %v1670_v28 = vld [vmem:[%s11103_s7] sm:$0x3] }
 0x463   :  { %2402 = vmatpush1.bf16.msra.mxu1 %v8963_v48 }
 0x464   :  { %2403 = vmatprep.subr.bf16.mxu1 %v8971_v55 }
 0x465   :  { %2447 = vmatpush1.bf16.msra.mxu0 %v8942_v0  ;;  %v10419_v0 = vsub.s32 1, %v10260_v51 }
 0x466   :  { %2448 = vmatprep.subr.bf16.mxu0 %v8950_v29 }
 0x467   :  { %2404 = vmatpush1.bf16.msra.mxu1 %v8969_v61 }
 0x468   :  { %2405 = vmatprep.subr.bf16.mxu1 %v8977_v4 }
 0x469   :  { %2449 = vmatpush1.bf16.msra.mxu0 %v8948_v2 }
 0x46a   :  { %2450 = vmatprep.subr.bf16.mxu0 %v8956_v37 }
 0x46b   :  { %2406 = vmatpush1.bf16.msra.mxu1 %v8975_v9 }
 0x46c   :  { %2821 = vmatprep.subr.bf16.mxu1 %v8983_v13 }
 0x46d   :  { %2451 = vmatpush1.bf16.msra.mxu0 %v8954_v8 }
 0x46e   :  { %2452 = vmatprep.subr.bf16.mxu0 %v8962_v42 }
 0x471   :  { %2453 = vmatpush1.bf16.msra.mxu0 %v8960_v12 }
 0x472   :  { %2454 = vmatprep.subr.bf16.mxu0 %v8968_v45 }
 0x475   :  { %2455 = vmatpush1.bf16.msra.mxu0 %v8966_v49 }
 0x476   :  { %2456 = vmatprep.subr.bf16.mxu0 %v8974_v57 }
 0x479   :  { %2457 = vmatpush1.bf16.msra.mxu0 %v8972_v62 }
 0x47a   :  { %2458 = vmatprep.subr.bf16.mxu0 %v8980_v6 }
 0x47d   :  { %2459 = vmatpush1.bf16.msra.mxu0 %v8978_v11 }
 0x47e   :  { %2874 = vmatprep.subr.bf16.mxu0 %v8986_v15 }
 0x513   :  { %v1653_v16 = vpop.f32.mrb[6].mxu0 }
 0x514   :  { %v1658_v50 = vmul.f32 0.001953125, %v1653_v16  ;;  %v1655_v17 = vpop.f32.mrb[7].mxu0 }
 0x515   :  { %v1659_v54 = vmul.f32 0.001953125, %v1655_v17 }
 0x516   :  { %v1660_v18 = vmul.f32 %v1658_v50, %v1658_v50 }
 0x517   :  { %v1661_v31 = vmul.f32 %v1659_v54, %v1659_v54 }
 0x518   :  { %v1664_v58 = vrot.slane %v1660_v18, 7 }
 0x519   :  { %v1665_v59 = vrot.slane %v1661_v31, 7 }
 0x51a   :  { %v1668_v63 = vsub.f32 %v1658_v50, %v1664_v58 }
 0x51b   :  { %v1669_v47 = vsub.f32 %v1659_v54, %v1665_v59 }
 0x51c   :  { %v1671_v19 = vadd.f32 1e-05, %v1668_v63 }
 0x51d   :  { %v1672_v52 = vadd.f32 1e-05, %v1669_v47 }
 0x51e   :  { %9511 = vrsqrt.f32 %v1671_v19 }
 0x51f   :  { %9513 = vrsqrt.f32 %v1672_v52 }
 0x528   :  { %v9512_v20 = vpop.eup %9511 }
 0x529   :  { %v9514_v22 = vpop.eup %9513 }
 0x52a   :  { %v1677_v25 = vcombine.low %v9512_v20, %v9514_v22 }
 0x52c   :  { %v1684_v14 = vrot.slane %v1677_v25, %v10263_v53 }
 0x52e   :  { %v1685_v26 = vcombine.high %v1684_v14, %v1684_v14 }
 0x530   :  { %v1692_v3 = vrot.slane %v1685_v26, %v10263_v53 }
 0x532   :  { %v1694_v5 = vmul.f32 %v1692_v3, %v1670_v28 }
 0x534   :  { %v1700_v29 = vrot.slane %v1694_v5, %v10271_v60  ;;  %v1704_v1 = vrot.slane %v1694_v5, %v10419_v0 }
 0x536   :  { %v1707_v2 = vmul.f32 %v1700_v29, %v1658_v50  ;;  %v1708_v36 = vmul.f32 %v1704_v1, %v1659_v54  ;;  %v1728_v37 = vmul.f32 %v1700_v29, %v10360_v30  ;;  %v1729_v38 = vmul.f32 %v1704_v1, %v10362_v32  ;;  %v1695_v30 = vld [vmem:[%s11104_s8] sm:$0x3] }
 0x537   :  { %v1730_v8 = vmul.f32 %v1700_v29, %v10364_v33  ;;  %v1731_v10 = vmul.f32 %v1704_v1, %v10372_v35  ;;  %v1732_v41 = vmul.f32 %v1700_v29, %v10380_v40  ;;  %v1733_v12 = vmul.f32 %v1704_v1, %v10385_v43 }
 0x538   :  { %v1711_v42 = vcombine.low %v1707_v2, %v1708_v36  ;;  %v1734_v44 = vmul.f32 %v1700_v29, %v10390_v46  ;;  %v1735_v45 = vmul.f32 %v1704_v1, %v10395_v56  ;;  %v1842_v2 = vld [vmem:[#allocation4] sm:$0xff]  ;;  %v11175_v36 = vmov 0 }
 0x53a   :  { %v1718_v48 = vrot.slane %v1711_v42, %v10263_v53 }
 0x53c   :  { %v1725_v32 = vrot.slane %v1718_v48, %v10263_v53  ;;  %v1849_v48 = vld [vmem:[#allocation4 + $0x18] sm:$0xff] }
 0x53e   :  { %v1727_v33 = vsub.f32 %v1695_v30, %v1725_v32  ;;  %v1853_v30 = vld [vmem:[#allocation4 + $0x28] sm:$0x11] }
 0x540   :  { %v1740_v35 = vrot.slane %v1727_v33, %v10271_v60  ;;  %v1744_v40 = vrot.slane %v1727_v33, %v10419_v0 }
 0x542   :  { %v1747_v43 = vadd.f32 %v1740_v35, %v1728_v37  ;;  %v1748_v49 = vadd.f32 %v1744_v40, %v1729_v38  ;;  %v1749_v55 = vadd.f32 %v1740_v35, %v1730_v8  ;;  %v1750_v46 = vadd.f32 %v1744_v40, %v1731_v10 }
 0x543   :  { %v1751_v57 = vadd.f32 %v1740_v35, %v1732_v41  ;;  %v1752_v56 = vadd.f32 %v1744_v40, %v1733_v12  ;;  %v1753_v61 = vadd.f32 %v1740_v35, %v1734_v44  ;;  %v1754_v62 = vadd.f32 %v1744_v40, %v1735_v45  ;;  %v1846_v41 = vld [vmem:[#allocation4 + $0x10] sm:$0x11] }
 0x544   :  { %vm1755_vm1 = vcmp.ge.f32.partialorder %v1747_v43, 0.0  ;;  %vm1756_vm11 = vcmp.ge.f32.partialorder %v1748_v49, 0.0  ;;  %vm1757_vm12 = vcmp.ge.f32.partialorder %v1749_v55, 0.0  ;;  %vm1758_vm13 = vcmp.ge.f32.partialorder %v1750_v46, 0.0 }
 0x545   :  { %vm1759_vm5 = vcmp.ge.f32.partialorder %v1751_v57, 0.0  ;;  %vm1760_vm3 = vcmp.ge.f32.partialorder %v1752_v56, 0.0  ;;  %vm1761_vm9 = vcmp.ge.f32.partialorder %v1753_v61, 0.0  ;;  %vm1762_vm0 = vcmp.ge.f32.partialorder %v1754_v62, 0.0 }
 0x546   :  { %v1763_v4 = vmul.f32 0.01, %v1747_v43  ;;  %v1764_v6 = vmul.f32 0.01, %v1748_v49  ;;  %v1765_v9 = vmul.f32 0.01, %v1749_v55 }
 0x547   :  { %v1766_v11 = vmul.f32 0.01, %v1750_v46  ;;  %v1767_v13 = vmul.f32 0.01, %v1751_v57  ;;  %v1768_v15 = vmul.f32 0.01, %v1752_v56 }
 0x548   :  { %v1769_v16 = vmul.f32 0.01, %v1753_v61  ;;  %v1770_v50 = vmul.f32 0.01, %v1754_v62  ;;  %v1771_v17 = vsel %vm1755_vm1, %v1747_v43, %v1763_v4  ;;  %v1772_v54 = vsel %vm1756_vm11, %v1748_v49, %v1764_v6  ;;  %vm1840_vm1 = vmand %vm1839_vm4, %vm260_vm6 }
 0x549   :  { %v1773_v18 = vsel %vm1757_vm12, %v1749_v55, %v1765_v9  ;;  %v1774_v31 = vsel %vm1758_vm13, %v1750_v46, %v1766_v11  ;;  %v1775_v58 = vsel %vm1759_vm5, %v1751_v57, %v1767_v13  ;;  %v1776_v59 = vsel %vm1760_vm3, %v1752_v56, %v1768_v15  ;;  %vm10450_vm11 = vmor %vm1840_vm1, %vm10283_vm8 }
 0x54a   :  { %v1777_v63 = vsel %vm1761_vm9, %v1753_v61, %v1769_v16  ;;  %v1778_v47 = vsel %vm1762_vm0, %v1754_v62, %v1770_v50  ;;  %v8019_v19 = vpack.c.bf16 %v1772_v54, %v1771_v17  ;;  %v8020_v52 = vpack.c.bf16 %v1774_v31, %v1773_v18 }
 0x54b   :  { %v8021_v20 = vpack.c.bf16 %v1776_v59, %v1775_v58  ;;  %v8022_v22 = vpack.c.bf16 %v1778_v47, %v1777_v63  ;;  %v11176_v36 = vsel %vm10450_vm11, 4294967295, %v11175_v36 }
 0x54c   :  { %v1800_v25 = vshrl.u32 %v8019_v19, 16  ;;  %v1808_v14 = vshrl.u32 %v8020_v52, 16  ;;  %v1803_v5 = vshll.u32 %v8019_v19, 16  ;;  %v1811_v1 = vshll.u32 %v8020_v52, 16 }
 0x54d   :  { %v1817_v26 = vshrl.u32 %v8021_v20, 16  ;;  %v1825_v28 = vshrl.u32 %v8022_v22, 16  ;;  %v1820_v38 = vshll.u32 %v8021_v20, 16  ;;  %v1828_v10 = vshll.u32 %v8022_v22, 16 }
 0x54e   :  { %v1802_v3 = vrot.slane %v1800_v25, 7  ;;  %v1810_v29 = vrot.slane %v1808_v14, 7 }
 0x54f   :  { %v1819_v37 = vrot.slane %v1817_v26, 7  ;;  %v1827_v8 = vrot.slane %v1825_v28, 7 }
 0x550   :  { %v1805_v12 = vor.u32 %v1803_v5, %v1802_v3  ;;  %v1806_v42 = vrot.slane %v1802_v3, 4  ;;  %v1813_v44 = vor.u32 %v1811_v1, %v1810_v29  ;;  %v1815_v45 = vrot.slane %v1810_v29, 4 }
 0x551   :  { %v1822_v32 = vor.u32 %v1820_v38, %v1819_v37  ;;  %v1823_v33 = vrot.slane %v1819_v37, 4  ;;  %v1830_v35 = vor.u32 %v1828_v10, %v1827_v8  ;;  %v1832_v40 = vrot.slane %v1827_v8, 4 }
 0x552   :  { %v1814_v39 = vsel %vm10121_vm7, %v1806_v42, %v1813_v44  ;;  %v1843_v43 = vsel %vm10450_vm11, %v1805_v12, %v1842_v2  ;;  %v1847_v49 = vsel %vm10405_vm10, %v1815_v45, %v1846_v41 }
 0x553   :  { %v10462_v55 = vsel %vm10121_vm7, %v1823_v33, %v1830_v35  ;;  %1844 = vst [vmem:[#allocation4] sm:$0xff] %v1843_v43  ;;  %v1850_v46 = vsel %vm10450_vm11, %v1822_v32, %v1849_v48  ;;  %v1854_v57 = vsel %vm10405_vm10, %v1832_v40, %v1853_v30  ;;  %1848 = vst [vmem:[#allocation4 + $0x10] sm:$0x11] %v1847_v49  ;;  %v1927_v56 = vshrl.u32 %v1843_v43, 16 }
 0x554   :  { %1851 = vst [vmem:[#allocation4 + $0x18] sm:$0xff] %v1850_v46  ;;  %1855 = vst [vmem:[#allocation4 + $0x28] sm:$0x11] %v1854_v57  ;;  %v1930_v61 = vshll.u32 %v1843_v43, 16  ;;  %v1936_v62 = vshll.u32 %v1814_v39, 16  ;;  %v1940_v4 = vshrl.u32 %v1814_v39, 16  ;;  %v10470_v59 = vcombine.high %v1843_v43, %v1814_v39 }
 0x555   :  { %v1951_v6 = vshrl.u32 %v1850_v46, 16  ;;  %v1929_v9 = vrot.slane %v1927_v56, 4  ;;  %v1954_v11 = vshll.u32 %v1850_v46, 16  ;;  %v1960_v13 = vshll.u32 %v10462_v55, 16  ;;  %v8981_v56 = vld [vmem:[#allocation15] ss:$16 sps:$4 sm:$0xff]  }
 0x556   :  { %v1964_v15 = vshrl.u32 %v10462_v55, 16  ;;  %v1932_v16 = vrot.slane %v1930_v61, 5  ;;  %v1938_v50 = vrot.slane %v1936_v62, 5  ;;  %v1942_v17 = vrot.slane %v1940_v4, 4  ;;  %v8984_v61 = vld [vmem:[#allocation15 + $0x8] ss:$16 sps:$4 sm:$0xff]  }
 0x557   :  { %v1953_v54 = vrot.slane %v1951_v6, 4  ;;  %v1956_v18 = vrot.slane %v1954_v11, 5  ;;  %v1962_v31 = vrot.slane %v1960_v13, 5  ;;  %v10472_v19 = vcombine.low %v1843_v43, %v1814_v39  ;;  %v8989_v11 = vld [vmem:[#allocation15 + $0x24] ss:$16 sps:$4 sm:$0xff]  }
 0x558   :  { %v1966_v58 = vrot.slane %v1964_v15, 4  ;;  %v1933_v63 = vor.u32 %v1932_v16, %v1929_v9  ;;  %v1943_v47 = vor.u32 %v1942_v17, %v1938_v50  ;;  %v10475_v52 = vcombine.high %v1850_v46, %v10462_v55  ;;  %v8992_v13 = vld [vmem:[#allocation15 + $0x2c] ss:$16 sps:$4 sm:$0xff]   ;;  %v8987_v17 = vld [vmem:[#allocation15 + $0x20] ss:$16 sps:$4 sm:$0xff]  }
 0x559   :  { %v1957_v20 = vor.u32 %v1956_v18, %v1953_v54  ;;  %v10478_v22 = vcombine.low %v1850_v46, %v10462_v55  ;;  %v2935_v25 = vrot.slane %v1814_v39, 5  ;;  %v2942_v45 = vrot.slane %v10462_v55, 5  ;;  %v8990_v54 = vld [vmem:[#allocation15 + $0x28] ss:$16 sps:$4 sm:$0xff]   ;;  %v8995_v18 = vld [vmem:[#allocation15 + $0x44] ss:$16 sps:$4 sm:$0xff]  }
 0x55a   :  { %v1924_v14 = vld [vmem:[#allocation4 + $0x10] sm:$0x11]  ;;  %v1934_v26 = vrot.slane %v1933_v63, 4  ;;  %v1967_v28 = vor.u32 %v1966_v58, %v1962_v31  ;;  %v2927_v3 = vld [vmem:[#allocation4] sm:$0xee]  ;;  %v1944_v5 = vrot.slane %v1943_v47, 4 }
 0x55b   :  { %v1946_v29 = vshll.u32 %v1924_v14, 16  ;;  %v1925_v1 = vld [vmem:[#allocation4 + $0x28] sm:$0x11]  ;;  %v1958_v2 = vrot.slane %v1957_v20, 4  ;;  %v7647_v37 = vrot.slane %v2927_v3, 9  ;;  %v2937_v10 = vrot.slane %v2935_v25, 4 }
 0x55c   :  { %v1939_v38 = vsel %vm10160_vm15, %v1934_v26, %v1938_v50  ;;  %v1970_v8 = vshll.u32 %v1925_v1, 16  ;;  %v2938_v41 = vrot.slane %v1924_v14, 5  ;;  %v1968_v48 = vrot.slane %v1967_v28, 4  ;;  %v2928_v43 = vld [vmem:[#allocation4 + $0x18] sm:$0xee] }
 0x55d   :  { %v1948_v12 = vrot.slane %v1946_v29, 5  ;;  %v1963_v42 = vsel %vm10160_vm15, %v1958_v2, %v1962_v31  ;;  %v2936_v44 = vsel %vm10154_vm14, %v7647_v37, %v2935_v25  ;;  %v2945_v33 = vrot.slane %v1925_v1, 5  ;;  %v8998_v31 = vld [vmem:[#allocation15 + $0x4c] ss:$16 sps:$4 sm:$0xff]   ;;  %v8993_v58 = vld [vmem:[#allocation15 + $0x40] ss:$16 sps:$4 sm:$0xff]  }
 0x55e   :  { %v1972_v30 = vrot.slane %v1970_v8, 5  ;;  %v2939_v32 = vsel %vm10154_vm14, %v2937_v10, %v2938_v41  ;;  %v2944_v49 = vrot.slane %v2942_v45, 4  ;;  %v7648_v62 = vrot.slane %v2928_v43, 9  ;;  %v8996_v63 = vld [vmem:[#allocation15 + $0x48] ss:$16 sps:$4 sm:$0xff]  }
 0x55f   :  { %v1949_v35 = vsel %vm10160_vm15, %v1944_v5, %v1948_v12  ;;  %v10491_v40 = vcombine.low %v2936_v44, %v2939_v32  ;;  %v10493_v39 = vcombine.high %v2936_v44, %v2939_v32  ;;  %v9001_v47 = vld [vmem:[#allocation15 + $0x64] ss:$16 sps:$4 sm:$0xff]   ;;  %v9004_v20 = vld [vmem:[#allocation15 + $0x6c] ss:$16 sps:$4 sm:$0xff]   ;;  %v8999_v25 = vld [vmem:[#allocation15 + $0x60] ss:$16 sps:$4 sm:$0xff]  }
 0x560   :  { %v7511_v46 = vcombine.low %v1939_v38, %v1949_v35  ;;  %v7512_v57 = vcombine.high %v1939_v38, %v1949_v35  ;;  %v1973_v55 = vsel %vm10160_vm15, %v1968_v48, %v1972_v30  ;;  %v2946_v9 = vsel %vm10154_vm14, %v2944_v49, %v2945_v33  ;;  %v9002_v14 = vld [vmem:[#allocation15 + $0x68] ss:$16 sps:$4 sm:$0xff]   ;;  %v9007_v26 = vld [vmem:[#allocation15 + $0x84] ss:$16 sps:$4 sm:$0xff]   ;;  %v9010_v28 = vld [vmem:[#allocation15 + $0x8c] ss:$16 sps:$4 sm:$0xff]  }
 0x561   :  { %v7514_v4 = vcombine.high %v1963_v42, %v1973_v55  ;;  %v7513_v6 = vcombine.low %v1963_v42, %v1973_v55  ;;  %v2943_v15 = vsel %vm10154_vm14, %v7648_v62, %v2942_v45  ;;  %v9005_v3 = vld [vmem:[#allocation15 + $0x80] ss:$16 sps:$4 sm:$0xff]   ;;  %v9008_v5 = vld [vmem:[#allocation15 + $0x88] ss:$16 sps:$4 sm:$0xff]   ;;  %v9013_v29 = vld [vmem:[#allocation15 + $0xa4] ss:$16 sps:$4 sm:$0xff]  }
 0x562   :  { %2407 = vmatprep.mubr.bf16.mxu1 %v7512_v57  ;;  %2460 = vmatprep.mubr.bf16.mxu0 %v7512_v57  ;;  %v10501_v16 = vcombine.high %v2943_v15, %v2946_v9  ;;  %v10503_v50 = vcombine.low %v2943_v15, %v2946_v9  ;;  %v9016_v1 = vld [vmem:[#allocation15 + $0xac] ss:$16 sps:$4 sm:$0xff]   ;;  %v9011_v2 = vld [vmem:[#allocation15 + $0xa0] ss:$16 sps:$4 sm:$0xff]   ;;  %v9014_v37 = vld [vmem:[#allocation15 + $0xa8] ss:$16 sps:$4 sm:$0xff]  }
 0x563   :  { %2408 = vmatmul.mubr.bf16.vlgmr.msra.gmra.mrb[4].mxu1 %v7511_v46  ;;  %2461 = vmatmul.mubr.bf16.vlgmr.msra.gmra.mrb[16].mxu0 %v7511_v46  ;;  %v9019_v38 = vld [vmem:[#allocation15 + $0xc4] ss:$16 sps:$4 sm:$0xff]   ;;  %v9017_v8 = vld [vmem:[#allocation15 + $0xc0] ss:$16 sps:$4 sm:$0xff]   ;;  %v9020_v10 = vld [vmem:[#allocation15 + $0xc8] ss:$16 sps:$4 sm:$0xff]  }
 0x564   :  { %2822 = vmatpush1.bf16.msra.mxu1 %v8981_v56  ;;  %2875 = vmatpush1.bf16.msra.mxu0 %v8984_v61  ;;  %v9025_v41 = vld [vmem:[#allocation15 + $0xe4] ss:$16 sps:$4 sm:$0xff]   ;;  %v9028_v12 = vld [vmem:[#allocation15 + $0xec] ss:$16 sps:$4 sm:$0xff]   ;;  %v9023_v42 = vld [vmem:[#allocation15 + $0xe0] ss:$16 sps:$4 sm:$0xff]  }
 0x565   :  { %2417 = vmatprep.mubr.bf16.mxu1 %v7514_v4  ;;  %2470 = vmatprep.mubr.bf16.mxu0 %v7514_v4  ;;  %v9026_v44 = vld [vmem:[#allocation15 + $0xe8] ss:$16 sps:$4 sm:$0xff]   ;;  %v9031_v45 = vld [vmem:[#allocation15 + $0x104] ss:$16 sps:$4 sm:$0xff]   ;;  %v9034_v48 = vld [vmem:[#allocation15 + $0x10c] ss:$16 sps:$4 sm:$0xff]  }
 0x566   :  { %2823 = vmatprep.subr.bf16.mxu1 %v8989_v11  ;;  %2876 = vmatprep.subr.bf16.mxu0 %v8992_v13  ;;  %v9029_v30 = vld [vmem:[#allocation15 + $0x100] ss:$16 sps:$4 sm:$0xff]   ;;  %v9032_v32 = vld [vmem:[#allocation15 + $0x108] ss:$16 sps:$4 sm:$0xff]   ;;  %v9037_v33 = vld [vmem:[#allocation15 + $0x124] ss:$16 sps:$4 sm:$0xff]  }
 0x567   :  { %v9040_v35 = vld [vmem:[#allocation15 + $0x12c] ss:$16 sps:$4 sm:$0xff]   ;;  %v9035_v43 = vld [vmem:[#allocation15 + $0x120] ss:$16 sps:$4 sm:$0xff]   ;;  %v9038_v49 = vld [vmem:[#allocation15 + $0x128] ss:$16 sps:$4 sm:$0xff]  }
 0x568   :  { %2824 = vmatpush1.bf16.msra.mxu1 %v8987_v17  ;;  %2877 = vmatpush1.bf16.msra.mxu0 %v8990_v54  ;;  %v9043_v46 = vld [vmem:[#allocation15 + $0x144] ss:$16 sps:$4 sm:$0xff]   ;;  %v9046_v57 = vld [vmem:[#allocation15 + $0x14c] ss:$16 sps:$4 sm:$0xff]   ;;  %v9041_v56 = vld [vmem:[#allocation15 + $0x140] ss:$16 sps:$4 sm:$0xff]  }
 0x569   :  { %2825 = vmatprep.subr.bf16.mxu1 %v8995_v18  ;;  %2878 = vmatprep.subr.bf16.mxu0 %v8998_v31  ;;  %v9044_v61 = vld [vmem:[#allocation15 + $0x148] ss:$16 sps:$4 sm:$0xff]   ;;  %v9049_v55 = vld [vmem:[#allocation15 + $0x164] ss:$16 sps:$4 sm:$0xff]   ;;  %v9052_v62 = vld [vmem:[#allocation15 + $0x16c] ss:$16 sps:$4 sm:$0xff]  }
 0x56a   :  { %v9047_v4 = vld [vmem:[#allocation15 + $0x160] ss:$16 sps:$4 sm:$0xff]   ;;  %v9055_v9 = vld [vmem:[#allocation15 + $0x184] ss:$16 sps:$4 sm:$0xff]   ;;  %v9058_v11 = vld [vmem:[#allocation15 + $0x18c] ss:$16 sps:$4 sm:$0xff]  }
 0x56b   :  { %2418 = vmatmul.mubr.bf16.gmra.mrb[8].mxu1 %v7513_v6  ;;  %2471 = vmatmul.mubr.bf16.gmra.mrb[20].mxu0 %v7513_v6  ;;  %v9050_v6 = vld [vmem:[#allocation15 + $0x168] ss:$16 sps:$4 sm:$0xff]   ;;  %v9053_v13 = vld [vmem:[#allocation15 + $0x180] ss:$16 sps:$4 sm:$0xff]   ;;  %v9061_v17 = vld [vmem:[#allocation15 + $0x1a4] ss:$16 sps:$4 sm:$0xff]  }
 0x56c   :  { %2826 = vmatpush1.bf16.msra.mxu1 %v8993_v58  ;;  %2879 = vmatpush1.bf16.msra.mxu0 %v8996_v63  ;;  %v9056_v15 = vld [vmem:[#allocation15 + $0x188] ss:$16 sps:$4 sm:$0xff]   ;;  %v9064_v54 = vld [vmem:[#allocation15 + $0x1ac] ss:$16 sps:$4 sm:$0xff]   ;;  %v9059_v18 = vld [vmem:[#allocation15 + $0x1a0] ss:$16 sps:$4 sm:$0xff]  }
 0x56d   :  { %2853 = vmatprep.mubr.bf16.mxu1 %v10470_v59  ;;  %2906 = vmatprep.mubr.bf16.mxu0 %v10470_v59  ;;  %v9022_v59 = vld [vmem:[#allocation15 + $0xcc] ss:$16 sps:$4 sm:$0xff]   ;;  %v9062_v31 = vld [vmem:[#allocation15 + $0x1a8] ss:$16 sps:$4 sm:$0xff]   ;;  %v9067_v58 = vld [vmem:[#allocation15 + $0x1c4] ss:$16 sps:$4 sm:$0xff]  }
 0x56e   :  { %2827 = vmatprep.subr.bf16.mxu1 %v9001_v47  ;;  %2880 = vmatprep.subr.bf16.mxu0 %v9004_v20  ;;  %v9070_v63 = vld [vmem:[#allocation15 + $0x1cc] ss:$16 sps:$4 sm:$0xff]   ;;  %v9065_v47 = vld [vmem:[#allocation15 + $0x1c0] ss:$16 sps:$4 sm:$0xff]   ;;  %v9068_v20 = vld [vmem:[#allocation15 + $0x1c8] ss:$16 sps:$4 sm:$0xff]  }
 0x570   :  { %2828 = vmatpush1.bf16.msra.mxu1 %v8999_v25  ;;  %2881 = vmatpush1.bf16.msra.mxu0 %v9002_v14  ;;  %v9073_v25 = vld [vmem:[#allocation15 + $0x1e4] ss:$16 sps:$4 sm:$0xff]   ;;  %v9076_v14 = vld [vmem:[#allocation15 + $0x1ec] ss:$16 sps:$4 sm:$0xff]  }
 0x571   :  { %2829 = vmatprep.subr.bf16.mxu1 %v9007_v26  ;;  %2882 = vmatprep.subr.bf16.mxu0 %v9010_v28  ;;  %v9071_v26 = vld [vmem:[#allocation15 + $0x1e0] ss:$16 sps:$4 sm:$0xff]   ;;  %v9074_v28 = vld [vmem:[#allocation15 + $0x1e8] ss:$16 sps:$4 sm:$0xff]  }
 0x574   :  { %2830 = vmatpush1.bf16.msra.mxu1 %v9005_v3  ;;  %2883 = vmatpush1.bf16.msra.mxu0 %v9008_v5  ;;  %v9079_v3 = vld [vmem:[#allocation15 + $0x404] ss:$16 sps:$4 sm:$0xff]   ;;  %v9082_v5 = vld [vmem:[#allocation15 + $0x40c] ss:$16 sps:$4 sm:$0xff]  }
 0x575   :  { %2831 = vmatprep.subr.bf16.mxu1 %v9013_v29  ;;  %2884 = vmatprep.subr.bf16.mxu0 %v9016_v1  ;;  %v9077_v29 = vld [vmem:[#allocation15 + $0x400] ss:$16 sps:$4 sm:$0xff]   ;;  %v9080_v1 = vld [vmem:[#allocation15 + $0x408] ss:$16 sps:$4 sm:$0xff]  }
 0x578   :  { %2832 = vmatpush1.bf16.msra.mxu1 %v9011_v2  ;;  %2885 = vmatpush1.bf16.msra.mxu0 %v9014_v37  ;;  %v9085_v2 = vld [vmem:[#allocation15 + $0x424] ss:$16 sps:$4 sm:$0xff]   ;;  %v9088_v37 = vld [vmem:[#allocation15 + $0x42c] ss:$16 sps:$4 sm:$0xff]  }
 0x579   :  { %2833 = vmatprep.subr.bf16.mxu1 %v9019_v38  ;;  %2886 = vmatprep.subr.bf16.mxu0 %v9022_v59  ;;  %v9083_v38 = vld [vmem:[#allocation15 + $0x420] ss:$16 sps:$4 sm:$0xff]   ;;  %v9086_v59 = vld [vmem:[#allocation15 + $0x428] ss:$16 sps:$4 sm:$0xff]  }
 0x57c   :  { %2834 = vmatpush1.bf16.msra.mxu1 %v9017_v8  ;;  %2887 = vmatpush1.bf16.msra.mxu0 %v9020_v10  ;;  %v9091_v8 = vld [vmem:[#allocation15 + $0x444] ss:$16 sps:$4 sm:$0xff]   ;;  %v9094_v10 = vld [vmem:[#allocation15 + $0x44c] ss:$16 sps:$4 sm:$0xff]  }
 0x57d   :  { %2835 = vmatprep.subr.bf16.mxu1 %v9025_v41  ;;  %2888 = vmatprep.subr.bf16.mxu0 %v9028_v12  ;;  %v9089_v41 = vld [vmem:[#allocation15 + $0x440] ss:$16 sps:$4 sm:$0xff]   ;;  %v9092_v12 = vld [vmem:[#allocation15 + $0x448] ss:$16 sps:$4 sm:$0xff]  }
 0x580   :  { %2836 = vmatpush1.bf16.msra.mxu1 %v9023_v42  ;;  %2889 = vmatpush1.bf16.msra.mxu0 %v9026_v44  ;;  %v9097_v42 = vld [vmem:[#allocation15 + $0x464] ss:$16 sps:$4 sm:$0xff]   ;;  %v9098_v44 = vld [vmem:[#allocation15 + $0x468] ss:$16 sps:$4 sm:$0xff]  }
 0x581   :  { %2837 = vmatprep.subr.bf16.mxu1 %v9031_v45  ;;  %2890 = vmatprep.subr.bf16.mxu0 %v9034_v48  ;;  %v9103_v45 = vld [vmem:[#allocation15 + $0x484] ss:$16 sps:$4 sm:$0xff]   ;;  %v9106_v48 = vld [vmem:[#allocation15 + $0x48c] ss:$16 sps:$4 sm:$0xff]  }
 0x584   :  { %2838 = vmatpush1.bf16.msra.mxu1 %v9029_v30  ;;  %2891 = vmatpush1.bf16.msra.mxu0 %v9032_v32  ;;  %v9101_v30 = vld [vmem:[#allocation15 + $0x480] ss:$16 sps:$4 sm:$0xff]   ;;  %v9104_v32 = vld [vmem:[#allocation15 + $0x488] ss:$16 sps:$4 sm:$0xff]  }
 0x585   :  { %2839 = vmatprep.subr.bf16.mxu1 %v9037_v33  ;;  %2892 = vmatprep.subr.bf16.mxu0 %v9040_v35  ;;  %v9109_v33 = vld [vmem:[#allocation15 + $0x4a4] ss:$16 sps:$4 sm:$0xff]   ;;  %v9107_v35 = vld [vmem:[#allocation15 + $0x4a0] ss:$16 sps:$4 sm:$0xff]  }
 0x588   :  { %2840 = vmatpush1.bf16.msra.mxu1 %v9035_v43  ;;  %2893 = vmatpush1.bf16.msra.mxu0 %v9038_v49  ;;  %v9115_v43 = vld [vmem:[#allocation15 + $0x4c4] ss:$16 sps:$4 sm:$0xff]   ;;  %v9118_v49 = vld [vmem:[#allocation15 + $0x4cc] ss:$16 sps:$4 sm:$0xff]  }
 0x589   :  { %2841 = vmatprep.subr.bf16.mxu1 %v9043_v46  ;;  %2894 = vmatprep.subr.bf16.mxu0 %v9046_v57  ;;  %v9113_v46 = vld [vmem:[#allocation15 + $0x4c0] ss:$16 sps:$4 sm:$0xff]   ;;  %v9116_v57 = vld [vmem:[#allocation15 + $0x4c8] ss:$16 sps:$4 sm:$0xff]  }
 0x58c   :  { %2842 = vmatpush1.bf16.msra.mxu1 %v9041_v56  ;;  %2895 = vmatpush1.bf16.msra.mxu0 %v9044_v61  ;;  %v9121_v56 = vld [vmem:[#allocation15 + $0x4e4] ss:$16 sps:$4 sm:$0xff]   ;;  %v9124_v61 = vld [vmem:[#allocation15 + $0x4ec] ss:$16 sps:$4 sm:$0xff]  }
 0x58d   :  { %2843 = vmatprep.subr.bf16.mxu1 %v9049_v55  ;;  %2896 = vmatprep.subr.bf16.mxu0 %v9052_v62  ;;  %v9119_v55 = vld [vmem:[#allocation15 + $0x4e0] ss:$16 sps:$4 sm:$0xff]   ;;  %v9122_v62 = vld [vmem:[#allocation15 + $0x4e8] ss:$16 sps:$4 sm:$0xff]  }
 0x590   :  { %2844 = vmatpush1.bf16.msra.mxu1 %v9047_v4  ;;  %2897 = vmatpush1.bf16.msra.mxu0 %v9050_v6  ;;  %v9127_v4 = vld [vmem:[#allocation15 + $0x504] ss:$16 sps:$4 sm:$0xff]   ;;  %v9130_v6 = vld [vmem:[#allocation15 + $0x50c] ss:$16 sps:$4 sm:$0xff]  }
 0x591   :  { %2845 = vmatprep.subr.bf16.mxu1 %v9055_v9  ;;  %2898 = vmatprep.subr.bf16.mxu0 %v9058_v11  ;;  %v9125_v9 = vld [vmem:[#allocation15 + $0x500] ss:$16 sps:$4 sm:$0xff]   ;;  %v9128_v11 = vld [vmem:[#allocation15 + $0x508] ss:$16 sps:$4 sm:$0xff]  }
 0x594   :  { %2846 = vmatpush1.bf16.msra.mxu1 %v9053_v13  ;;  %2899 = vmatpush1.bf16.msra.mxu0 %v9056_v15  ;;  %v9133_v13 = vld [vmem:[#allocation15 + $0x524] ss:$16 sps:$4 sm:$0xff]   ;;  %v9136_v15 = vld [vmem:[#allocation15 + $0x52c] ss:$16 sps:$4 sm:$0xff]  }
 0x595   :  { %2847 = vmatprep.subr.bf16.mxu1 %v9061_v17  ;;  %2900 = vmatprep.subr.bf16.mxu0 %v9064_v54  ;;  %v9131_v17 = vld [vmem:[#allocation15 + $0x520] ss:$16 sps:$4 sm:$0xff]   ;;  %v9134_v54 = vld [vmem:[#allocation15 + $0x528] ss:$16 sps:$4 sm:$0xff]  }
 0x598   :  { %2848 = vmatpush1.bf16.msra.mxu1 %v9059_v18  ;;  %2901 = vmatpush1.bf16.msra.mxu0 %v9062_v31  ;;  %v9139_v18 = vld [vmem:[#allocation15 + $0x544] ss:$16 sps:$4 sm:$0xff]   ;;  %v9142_v31 = vld [vmem:[#allocation15 + $0x54c] ss:$16 sps:$4 sm:$0xff]  }
 0x599   :  { %2849 = vmatprep.subr.bf16.mxu1 %v9067_v58  ;;  %2902 = vmatprep.subr.bf16.mxu0 %v9070_v63  ;;  %v9137_v58 = vld [vmem:[#allocation15 + $0x540] ss:$16 sps:$4 sm:$0xff]   ;;  %v9140_v63 = vld [vmem:[#allocation15 + $0x548] ss:$16 sps:$4 sm:$0xff]  }
 0x59c   :  { %2850 = vmatpush1.bf16.msra.mxu1 %v9065_v47  ;;  %2903 = vmatpush1.bf16.msra.mxu0 %v9068_v20  ;;  %v9145_v47 = vld [vmem:[#allocation15 + $0x564] ss:$16 sps:$4 sm:$0xff]   ;;  %v9148_v20 = vld [vmem:[#allocation15 + $0x56c] ss:$16 sps:$4 sm:$0xff]  }
 0x59d   :  { %2851 = vmatprep.subr.bf16.mxu1 %v9073_v25  ;;  %2904 = vmatprep.subr.bf16.mxu0 %v9076_v14  ;;  %v9143_v25 = vld [vmem:[#allocation15 + $0x560] ss:$16 sps:$4 sm:$0xff]   ;;  %v9146_v14 = vld [vmem:[#allocation15 + $0x568] ss:$16 sps:$4 sm:$0xff]  }
 0x5a0   :  { %2852 = vmatpush1.bf16.msra.mxu1 %v9071_v26  ;;  %2905 = vmatpush1.bf16.msra.mxu0 %v9074_v28  ;;  %v9151_v26 = vld [vmem:[#allocation15 + $0x584] ss:$16 sps:$4 sm:$0xff]   ;;  %v9154_v28 = vld [vmem:[#allocation15 + $0x58c] ss:$16 sps:$4 sm:$0xff]  }
 0x5a1   :  { %3348 = vmatprep.subr.bf16.mxu1 %v9079_v3  ;;  %3401 = vmatprep.subr.bf16.mxu0 %v9082_v5  ;;  %v9149_v3 = vld [vmem:[#allocation15 + $0x580] ss:$16 sps:$4 sm:$0xff]   ;;  %v9152_v5 = vld [vmem:[#allocation15 + $0x588] ss:$16 sps:$4 sm:$0xff]  }
 0x5a3   :  { %2854 = vmatmul.mubr.bf16.vlgmr.msra.gmra.mrb[4].mxu1 %v10472_v19  ;;  %2907 = vmatmul.mubr.bf16.vlgmr.msra.gmra.mrb[16].mxu0 %v10472_v19  ;;  %v9100_v19 = vld [vmem:[#allocation15 + $0x46c] ss:$16 sps:$4 sm:$0xff]  }
 0x5a4   :  { %2863 = vmatprep.mubr.bf16.mxu1 %v10475_v52  ;;  %2916 = vmatprep.mubr.bf16.mxu0 %v10475_v52  ;;  %v9095_v52 = vld [vmem:[#allocation15 + $0x460] ss:$16 sps:$4 sm:$0xff]  }
 0x5a5   :  { %3349 = vmatpush1.bf16.msra.mxu1 %v9077_v29  ;;  %3402 = vmatpush1.bf16.msra.mxu0 %v9080_v1  ;;  %v9157_v29 = vld [vmem:[#allocation15 + $0x5a4] ss:$16 sps:$4 sm:$0xff]   ;;  %v9160_v1 = vld [vmem:[#allocation15 + $0x5ac] ss:$16 sps:$4 sm:$0xff]  }
 0x5a6   :  { %3350 = vmatprep.subr.bf16.mxu1 %v9085_v2  ;;  %3403 = vmatprep.subr.bf16.mxu0 %v9088_v37  ;;  %v9155_v2 = vld [vmem:[#allocation15 + $0x5a0] ss:$16 sps:$4 sm:$0xff]   ;;  %v9158_v37 = vld [vmem:[#allocation15 + $0x5a8] ss:$16 sps:$4 sm:$0xff]  }
 0x5a9   :  { %3351 = vmatpush1.bf16.msra.mxu1 %v9083_v38  ;;  %3404 = vmatpush1.bf16.msra.mxu0 %v9086_v59  ;;  %v9163_v38 = vld [vmem:[#allocation15 + $0x5c4] ss:$16 sps:$4 sm:$0xff]   ;;  %v9166_v59 = vld [vmem:[#allocation15 + $0x5cc] ss:$16 sps:$4 sm:$0xff]  }
 0x5aa   :  { %3352 = vmatprep.subr.bf16.mxu1 %v9091_v8  ;;  %3405 = vmatprep.subr.bf16.mxu0 %v9094_v10  ;;  %v9161_v8 = vld [vmem:[#allocation15 + $0x5c0] ss:$16 sps:$4 sm:$0xff]   ;;  %v9164_v10 = vld [vmem:[#allocation15 + $0x5c8] ss:$16 sps:$4 sm:$0xff]  }
 0x5ab   :  { %2864 = vmatmul.mubr.bf16.gmra.mrb[8].mxu1 %v10478_v22  ;;  %2917 = vmatmul.mubr.bf16.gmra.mrb[20].mxu0 %v10478_v22  ;;  %v9112_v22 = vld [vmem:[#allocation15 + $0x4ac] ss:$16 sps:$4 sm:$0xff]  }
 0x5ac   :  { %3380 = vmatprep.mubr.bf16.mxu1 %v10493_v39  ;;  %3433 = vmatprep.mubr.bf16.mxu0 %v10493_v39  ;;  %v9110_v39 = vld [vmem:[#allocation15 + $0x4a8] ss:$16 sps:$4 sm:$0xff]  }
 0x5ad   :  { %3353 = vmatpush1.bf16.msra.mxu1 %v9089_v41  ;;  %3406 = vmatpush1.bf16.msra.mxu0 %v9092_v12  ;;  %v9169_v41 = vld [vmem:[#allocation15 + $0x5e4] ss:$16 sps:$4 sm:$0xff]   ;;  %v9172_v12 = vld [vmem:[#allocation15 + $0x5ec] ss:$16 sps:$4 sm:$0xff]  }
 0x5ae   :  { %3354 = vmatprep.subr.bf16.mxu1 %v9097_v42  ;;  %3407 = vmatprep.subr.bf16.mxu0 %v9100_v19  ;;  %v3563_v42 = vld [vmem:[#allocation17 + $0x8] sm:$0xff] }
 0x5af   :  { %v3567_v19 = vld [vmem:[#allocation17 + $0x28] sm:$0xff] }
 0x5b1   :  { %3355 = vmatpush1.bf16.msra.mxu1 %v9095_v52  ;;  %3408 = vmatpush1.bf16.msra.mxu0 %v9098_v44  ;;  %v3565_v52 = vld [vmem:[#allocation17 + $0x18] sm:$0xff] }
 0x5b2   :  { %3356 = vmatprep.subr.bf16.mxu1 %v9103_v45  ;;  %3409 = vmatprep.subr.bf16.mxu0 %v9106_v48  ;;  %v3569_v44 = vld [vmem:[#allocation17 + $0x38] sm:$0xff]  ;;  %v9167_v45 = vld [vmem:[#allocation15 + $0x5e0] ss:$16 sps:$4 sm:$0xff]  }
 0x5b3   :  { %v9170_v48 = vld [vmem:[#allocation15 + $0x5e8] ss:$16 sps:$4 sm:$0xff]  }
 0x5b5   :  { %3357 = vmatpush1.bf16.msra.mxu1 %v9101_v30  ;;  %3410 = vmatpush1.bf16.msra.mxu0 %v9104_v32  ;;  %v8338_v30 = vpack.c.bf16 %v3567_v19, %v3563_v42  ;;  %v8466_v32 = vpack.c.bf16 %v3569_v44, %v3565_v52  ;;  %v3594_v52 = vld [vmem:[#allocation17 + $0x100] sm:$0xff] }
 0x5b6   :  { %3358 = vmatprep.subr.bf16.mxu1 %v9109_v33  ;;  %3411 = vmatprep.subr.bf16.mxu0 %v9112_v22  ;;  %v3562_v33 = vld [vmem:[#allocation17] sm:$0xff] }
 0x5b7   :  { %v3566_v22 = vld [vmem:[#allocation17 + $0x20] sm:$0xff] }
 0x5b8   :  { %v3598_v44 = vld [vmem:[#allocation17 + $0x120] sm:$0xff] }
 0x5b9   :  { %3359 = vmatpush1.bf16.msra.mxu1 %v9107_v35  ;;  %3412 = vmatpush1.bf16.msra.mxu0 %v9110_v39  ;;  %v3564_v35 = vld [vmem:[#allocation17 + $0x10] sm:$0xff] }
 0x5ba   :  { %3360 = vmatprep.subr.bf16.mxu1 %v9115_v43  ;;  %3413 = vmatprep.subr.bf16.mxu0 %v9118_v49  ;;  %v3568_v39 = vld [vmem:[#allocation17 + $0x30] sm:$0xff]  ;;  %v3571_v43 = vld [vmem:[#allocation17 + $0x48] sm:$0xff] }
 0x5bb   :  { %v3575_v49 = vld [vmem:[#allocation17 + $0x68] sm:$0xff] }
 0x5bd   :  { %3361 = vmatpush1.bf16.msra.mxu1 %v9113_v46  ;;  %3414 = vmatpush1.bf16.msra.mxu0 %v9116_v57  ;;  %v3573_v46 = vld [vmem:[#allocation17 + $0x58] sm:$0xff] }
 0x5be   :  { %3362 = vmatprep.subr.bf16.mxu1 %v9121_v56  ;;  %3415 = vmatprep.subr.bf16.mxu0 %v9124_v61  ;;  %v3577_v57 = vld [vmem:[#allocation17 + $0x78] sm:$0xff]  ;;  %v8340_v56 = vpack.c.bf16 %v3566_v22, %v3562_v33  ;;  %v8468_v61 = vpack.c.bf16 %v3568_v39, %v3564_v35  ;;  %v3603_v33 = vld [vmem:[#allocation17 + $0x148] sm:$0xff] }
 0x5bf   :  { %v3607_v22 = vld [vmem:[#allocation17 + $0x168] sm:$0xff]  ;;  %v3605_v35 = vld [vmem:[#allocation17 + $0x158] sm:$0xff] }
 0x5c0   :  { %v3609_v39 = vld [vmem:[#allocation17 + $0x178] sm:$0xff] }
 0x5c1   :  { %3363 = vmatpush1.bf16.msra.mxu1 %v9119_v55  ;;  %3416 = vmatpush1.bf16.msra.mxu0 %v9122_v62  ;;  %v3570_v55 = vld [vmem:[#allocation17 + $0x40] sm:$0xff] }
 0x5c2   :  { %3364 = vmatprep.subr.bf16.mxu1 %v9127_v4  ;;  %3417 = vmatprep.subr.bf16.mxu0 %v9130_v6  ;;  %v3574_v62 = vld [vmem:[#allocation17 + $0x60] sm:$0xff]  ;;  %v8342_v4 = vpack.c.bf16 %v3575_v49, %v3571_v43  ;;  %v8470_v6 = vpack.c.bf16 %v3577_v57, %v3573_v46  ;;  %v8358_v57 = vpack.c.bf16 %v3607_v22, %v3603_v33  ;;  %v3641_v22 = vld [vmem:[#allocation17 + $0x278] sm:$0xff] }
 0x5c3   :  { %v3602_v49 = vld [vmem:[#allocation17 + $0x140] sm:$0xff] }
 0x5c4   :  { %v3606_v46 = vld [vmem:[#allocation17 + $0x160] sm:$0xff] }
 0x5c5   :  { %3365 = vmatpush1.bf16.msra.mxu1 %v9125_v9  ;;  %3418 = vmatpush1.bf16.msra.mxu0 %v9128_v11  ;;  %v3572_v9 = vld [vmem:[#allocation17 + $0x50] sm:$0xff] }
 0x5c6   :  { %3366 = vmatprep.subr.bf16.mxu1 %v9133_v13  ;;  %3419 = vmatprep.subr.bf16.mxu0 %v9136_v15  ;;  %v3576_v11 = vld [vmem:[#allocation17 + $0x70] sm:$0xff]  ;;  %v3579_v13 = vld [vmem:[#allocation17 + $0x88] sm:$0xff] }
 0x5c7   :  { %v3583_v15 = vld [vmem:[#allocation17 + $0xa8] sm:$0xff] }
 0x5c9   :  { %3367 = vmatpush1.bf16.msra.mxu1 %v9131_v17  ;;  %3420 = vmatpush1.bf16.msra.mxu0 %v9134_v54  ;;  %v3581_v17 = vld [vmem:[#allocation17 + $0x98] sm:$0xff] }
 0x5ca   :  { %3368 = vmatprep.subr.bf16.mxu1 %v9139_v18  ;;  %3421 = vmatprep.subr.bf16.mxu0 %v9142_v31  ;;  %v3585_v54 = vld [vmem:[#allocation17 + $0xb8] sm:$0xff]  ;;  %v8344_v18 = vpack.c.bf16 %v3574_v62, %v3570_v55  ;;  %v8472_v31 = vpack.c.bf16 %v3576_v11, %v3572_v9  ;;  %v3608_v55 = vld [vmem:[#allocation17 + $0x170] sm:$0xff]  ;;  %v3611_v62 = vld [vmem:[#allocation17 + $0x188] sm:$0xff]  ;;  %v8360_v11 = vpack.c.bf16 %v3606_v46, %v3602_v49 }
 0x5cb   :  { %v3617_v9 = vld [vmem:[#allocation17 + $0x1b8] sm:$0xff]  ;;  %v3640_v46 = vld [vmem:[#allocation17 + $0x270] sm:$0xff] }
 0x5cd   :  { %3369 = vmatpush1.bf16.msra.mxu1 %v9137_v58  ;;  %3422 = vmatpush1.bf16.msra.mxu0 %v9140_v63  ;;  %v3578_v58 = vld [vmem:[#allocation17 + $0x80] sm:$0xff] }
 0x5ce   :  { %3370 = vmatprep.subr.bf16.mxu1 %v9145_v47  ;;  %3423 = vmatprep.subr.bf16.mxu0 %v9148_v20  ;;  %v3582_v63 = vld [vmem:[#allocation17 + $0xa0] sm:$0xff]  ;;  %v8346_v47 = vpack.c.bf16 %v3583_v15, %v3579_v13  ;;  %v8474_v20 = vpack.c.bf16 %v3585_v54, %v3581_v17 }
 0x5cf   :  { %v3610_v15 = vld [vmem:[#allocation17 + $0x180] sm:$0xff] }
 0x5d0   :  { %v3614_v17 = vld [vmem:[#allocation17 + $0x1a0] sm:$0xff] }
 0x5d1   :  { %3371 = vmatpush1.bf16.msra.mxu1 %v9143_v25  ;;  %3424 = vmatpush1.bf16.msra.mxu0 %v9146_v14  ;;  %v3580_v25 = vld [vmem:[#allocation17 + $0x90] sm:$0xff] }
 0x5d2   :  { %3372 = vmatprep.subr.bf16.mxu1 %v9151_v26  ;;  %3425 = vmatprep.subr.bf16.mxu0 %v9154_v28  ;;  %v3584_v14 = vld [vmem:[#allocation17 + $0xb0] sm:$0xff]  ;;  %v3591_v26 = vld [vmem:[#allocation17 + $0xe8] sm:$0xff]  ;;  %v3589_v28 = vld [vmem:[#allocation17 + $0xd8] sm:$0xff] }
 0x5d5   :  { %3373 = vmatpush1.bf16.msra.mxu1 %v9149_v3  ;;  %3426 = vmatpush1.bf16.msra.mxu0 %v9152_v5  ;;  %v3593_v3 = vld [vmem:[#allocation17 + $0xf8] sm:$0xff]  ;;  %v8348_v5 = vpack.c.bf16 %v3582_v63, %v3578_v58  ;;  %v3616_v58 = vld [vmem:[#allocation17 + $0x1b0] sm:$0xff]  ;;  %v3619_v63 = vld [vmem:[#allocation17 + $0x1c8] sm:$0xff] }
 0x5d6   :  { %3374 = vmatprep.subr.bf16.mxu1 %v9157_v29  ;;  %3427 = vmatprep.subr.bf16.mxu0 %v9160_v1  ;;  %v3586_v29 = vld [vmem:[#allocation17 + $0xc0] sm:$0xff] }
 0x5d7   :  { %v3590_v1 = vld [vmem:[#allocation17 + $0xe0] sm:$0xff] }
 0x5d8   :  { %v8352_v42 = vpack.c.bf16 %v3590_v1, %v3586_v29  ;;  %v3624_v29 = vld [vmem:[#allocation17 + $0x1f0] sm:$0xff]  ;;  %v3627_v1 = vld [vmem:[#allocation17 + $0x208] sm:$0xff] }
 0x5d9   :  { %3375 = vmatpush1.bf16.msra.mxu1 %v9155_v2  ;;  %3428 = vmatpush1.bf16.msra.mxu0 %v9158_v37  ;;  %v8478_v37 = vpack.c.bf16 %v3593_v3, %v3589_v28  ;;  %v3622_v28 = vld [vmem:[#allocation17 + $0x1e0] sm:$0xff] }
 0x5da   :  { %3376 = vmatprep.subr.bf16.mxu1 %v9163_v38  ;;  %3429 = vmatprep.subr.bf16.mxu0 %v9166_v59  ;;  %v3588_v38 = vld [vmem:[#allocation17 + $0xd0] sm:$0xff] }
 0x5db   :  { %v3592_v59 = vld [vmem:[#allocation17 + $0xf0] sm:$0xff] }
 0x5dc   :  { %v8480_v19 = vpack.c.bf16 %v3592_v59, %v3588_v38  ;;  %v3633_v38 = vld [vmem:[#allocation17 + $0x238] sm:$0xff] }
 0x5dd   :  { %3377 = vmatpush1.bf16.msra.mxu1 %v9161_v8  ;;  %3430 = vmatpush1.bf16.msra.mxu0 %v9164_v10  ;;  %v3595_v8 = vld [vmem:[#allocation17 + $0x108] sm:$0xff] }
 0x5de   :  { %3378 = vmatprep.subr.bf16.mxu1 %v9169_v41  ;;  %3431 = vmatprep.subr.bf16.mxu0 %v9172_v12  ;;  %v3599_v10 = vld [vmem:[#allocation17 + $0x128] sm:$0xff]  ;;  %v3597_v41 = vld [vmem:[#allocation17 + $0x118] sm:$0xff] }
 0x5df   :  { %v3601_v12 = vld [vmem:[#allocation17 + $0x138] sm:$0xff] }
 0x5e1   :  { %3379 = vmatpush1.bf16.msra.mxu1 %v9167_v45  ;;  %3432 = vmatpush1.bf16.msra.mxu0 %v9170_v48  ;;  %v8354_v45 = vpack.c.bf16 %v3599_v10, %v3595_v8  ;;  %v8482_v48 = vpack.c.bf16 %v3601_v12, %v3597_v41  ;;  %v3626_v10 = vld [vmem:[#allocation17 + $0x200] sm:$0xff] }
 0x5e2   :  { %8339 = vmatprep.subr.bf16.mxu1 %v8338_v30  ;;  %8467 = vmatprep.subr.bf16.mxu0 %v8466_v32  ;;  %v3596_v30 = vld [vmem:[#allocation17 + $0x110] sm:$0xff] }
 0x5e3   :  { %v3600_v32 = vld [vmem:[#allocation17 + $0x130] sm:$0xff] }
 0x5e4   :  { %3381 = vmatmul.mubr.bf16.vlgmr.msra.gmra.mrb[4].mxu1 %v10491_v40  ;;  %3434 = vmatmul.mubr.bf16.vlgmr.msra.gmra.mrb[16].mxu0 %v10491_v40  ;;  %v3587_v40 = vld [vmem:[#allocation17 + $0xc8] sm:$0xff]  ;;  %v8484_v43 = vpack.c.bf16 %v3600_v32, %v3596_v30  ;;  %v3637_v32 = vld [vmem:[#allocation17 + $0x258] sm:$0xff] }
 0x5e5   :  { %3390 = vmatprep.mubr.bf16.mxu1 %v10501_v16  ;;  %3443 = vmatprep.mubr.bf16.mxu0 %v10501_v16  ;;  %v8476_v16 = vpack.c.bf16 %v3584_v14, %v3580_v25  ;;  %v8350_v2 = vpack.c.bf16 %v3591_v26, %v3587_v40  ;;  %v3625_v25 = vld [vmem:[#allocation17 + $0x1f8] sm:$0xff]  ;;  %v8364_v14 = vpack.c.bf16 %v3614_v17, %v3610_v15  ;;  %v3618_v26 = vld [vmem:[#allocation17 + $0x1c0] sm:$0xff]  ;;  %v3639_v30 = vld [vmem:[#allocation17 + $0x268] sm:$0xff] }
 0x5e6   :  { %8341 = vmatpush1.bf16.msra.mxu1 %v8340_v56  ;;  %8469 = vmatpush1.bf16.msra.mxu0 %v8468_v61  ;;  %v8486_v56 = vpack.c.bf16 %v3609_v39, %v3605_v35  ;;  %v3604_v61 = vld [vmem:[#allocation17 + $0x150] sm:$0xff]  ;;  %v8368_v59 = vpack.c.bf16 %v3622_v28, %v3618_v26  ;;  %v8502_v35 = vpack.c.bf16 %v3641_v22, %v3637_v32  ;;  %v3634_v39 = vld [vmem:[#allocation17 + $0x240] sm:$0xff] }
 0x5e7   :  { %8343 = vmatprep.subr.bf16.mxu1 %v8342_v4  ;;  %8471 = vmatprep.subr.bf16.mxu0 %v8470_v6  ;;  %v3615_v4 = vld [vmem:[#allocation17 + $0x1a8] sm:$0xff]  ;;  %v3613_v6 = vld [vmem:[#allocation17 + $0x198] sm:$0xff]  ;;  %v8488_v13 = vpack.c.bf16 %v3608_v55, %v3604_v61  ;;  %v3648_v15 = vld [vmem:[#allocation17 + $0x2b0] sm:$0xff] }
 0x5e8   :  { %v8362_v54 = vpack.c.bf16 %v3615_v4, %v3611_v62  ;;  %v3645_v62 = vld [vmem:[#allocation17 + $0x298] sm:$0xff]  ;;  %v3656_v28 = vld [vmem:[#allocation17 + $0x2f0] sm:$0xff] }
 0x5e9   :  { %v3649_v4 = vld [vmem:[#allocation17 + $0x2b8] sm:$0xff]  ;;  %v3668_v22 = vld [vmem:[#allocation17 + $0x350] sm:$0xff] }
 0x5ea   :  { %8345 = vmatpush1.bf16.msra.mxu1 %v8344_v18  ;;  %8473 = vmatpush1.bf16.msra.mxu0 %v8472_v31  ;;  %v8490_v18 = vpack.c.bf16 %v3617_v9, %v3613_v6  ;;  %v3612_v31 = vld [vmem:[#allocation17 + $0x190] sm:$0xff]  ;;  %v3642_v6 = vld [vmem:[#allocation17 + $0x280] sm:$0xff]  ;;  %v8506_v9 = vpack.c.bf16 %v3649_v4, %v3645_v62 }
 0x5eb   :  { %8347 = vmatprep.subr.bf16.mxu1 %v8346_v47  ;;  %8475 = vmatprep.subr.bf16.mxu0 %v8474_v20  ;;  %v3623_v47 = vld [vmem:[#allocation17 + $0x1e8] sm:$0xff]  ;;  %v3621_v20 = vld [vmem:[#allocation17 + $0x1d8] sm:$0xff]  ;;  %v8492_v40 = vpack.c.bf16 %v3616_v58, %v3612_v31  ;;  %v3676_v62 = vld [vmem:[#allocation17 + $0x390] sm:$0xff] }
 0x5ec   :  { %3391 = vmatmul.mubr.bf16.gmra.mrb[8].mxu1 %v10503_v50  ;;  %3444 = vmatmul.mubr.bf16.gmra.mrb[20].mxu0 %v10503_v50  ;;  %v8356_v50 = vpack.c.bf16 %v3598_v44, %v3594_v52  ;;  %v8366_v3 = vpack.c.bf16 %v3623_v47, %v3619_v63  ;;  %v3632_v52 = vld [vmem:[#allocation17 + $0x230] sm:$0xff]  ;;  %v3655_v31 = vld [vmem:[#allocation17 + $0x2e8] sm:$0xff]  ;;  %v3653_v58 = vld [vmem:[#allocation17 + $0x2d8] sm:$0xff] }
 0x5ed   :  { %v3657_v47 = vld [vmem:[#allocation17 + $0x2f8] sm:$0xff] }
 0x5ee   :  { %8349 = vmatpush1.bf16.msra.mxu1 %v8348_v5  ;;  %8477 = vmatpush1.bf16.msra.mxu0 %v8476_v16  ;;  %v8494_v5 = vpack.c.bf16 %v3625_v25, %v3621_v20  ;;  %v3620_v16 = vld [vmem:[#allocation17 + $0x1d0] sm:$0xff]  ;;  %v8510_v20 = vpack.c.bf16 %v3657_v47, %v3653_v58  ;;  %v3650_v25 = vld [vmem:[#allocation17 + $0x2c0] sm:$0xff] }
 0x5ef   :  { %8351 = vmatprep.subr.bf16.mxu1 %v8350_v2  ;;  %8479 = vmatprep.subr.bf16.mxu0 %v8478_v37  ;;  %v3631_v2 = vld [vmem:[#allocation17 + $0x228] sm:$0xff]  ;;  %v3629_v37 = vld [vmem:[#allocation17 + $0x218] sm:$0xff]  ;;  %v8496_v8 = vpack.c.bf16 %v3624_v29, %v3620_v16  ;;  %v3686_v58 = vld [vmem:[#allocation17 + $0x3e0] sm:$0xff] }
 0x5f0   :  { %v8370_v41 = vpack.c.bf16 %v3631_v2, %v3627_v1  ;;  %v8498_v12 = vpack.c.bf16 %v3633_v38, %v3629_v37  ;;  %v3663_v16 = vld [vmem:[#allocation17 + $0x328] sm:$0xff]  ;;  %v3661_v29 = vld [vmem:[#allocation17 + $0x318] sm:$0xff]  ;;  %v3658_v37 = vld [vmem:[#allocation17 + $0x300] sm:$0xff] }
 0x5f1   :  { %v3665_v2 = vld [vmem:[#allocation17 + $0x338] sm:$0xff]  ;;  %v3662_v38 = vld [vmem:[#allocation17 + $0x320] sm:$0xff]  ;;  %v3688_v47 = vld [vmem:[#allocation17 + $0x3f0] sm:$0xff] }
 0x5f2   :  { %8353 = vmatpush1.bf16.msra.mxu1 %v8352_v42  ;;  %8481 = vmatpush1.bf16.msra.mxu0 %v8480_v19  ;;  %v3630_v42 = vld [vmem:[#allocation17 + $0x220] sm:$0xff]  ;;  %v3628_v19 = vld [vmem:[#allocation17 + $0x210] sm:$0xff] }
 0x5f3   :  { %8355 = vmatprep.subr.bf16.mxu1 %v8354_v45  ;;  %8483 = vmatprep.subr.bf16.mxu0 %v8482_v48  ;;  %v8372_v44 = vpack.c.bf16 %v3630_v42, %v3626_v10  ;;  %v8500_v45 = vpack.c.bf16 %v3632_v52, %v3628_v19  ;;  %v3635_v48 = vld [vmem:[#allocation17 + $0x248] sm:$0xff]  ;;  %v3660_v10 = vld [vmem:[#allocation17 + $0x310] sm:$0xff]  ;;  %v3669_v52 = vld [vmem:[#allocation17 + $0x358] sm:$0xff] }
 0x5f4   :  { %v8374_v33 = vpack.c.bf16 %v3639_v30, %v3635_v48  ;;  %v3667_v42 = vld [vmem:[#allocation17 + $0x348] sm:$0xff]  ;;  %v3666_v48 = vld [vmem:[#allocation17 + $0x340] sm:$0xff] }
 0x5f5   :  { %v3671_v19 = vld [vmem:[#allocation17 + $0x368] sm:$0xff]  ;;  %v3670_v30 = vld [vmem:[#allocation17 + $0x360] sm:$0xff] }
 0x5f6   :  { %8357 = vmatpush1.bf16.msra.mxu1 %v8356_v50  ;;  %8485 = vmatpush1.bf16.msra.mxu0 %v8484_v43  ;;  %v3638_v50 = vld [vmem:[#allocation17 + $0x260] sm:$0xff]  ;;  %v3636_v43 = vld [vmem:[#allocation17 + $0x250] sm:$0xff] }
 0x5f7   :  { %8359 = vmatprep.subr.bf16.mxu1 %v8358_v57  ;;  %8487 = vmatprep.subr.bf16.mxu0 %v8486_v56  ;;  %v8376_v49 = vpack.c.bf16 %v3638_v50, %v3634_v39  ;;  %v3643_v57 = vld [vmem:[#allocation17 + $0x288] sm:$0xff]  ;;  %v8504_v61 = vpack.c.bf16 %v3640_v46, %v3636_v43  ;;  %v3681_v46 = vld [vmem:[#allocation17 + $0x3b8] sm:$0xff] }
 0x5f8   :  { %v3647_v56 = vld [vmem:[#allocation17 + $0x2a8] sm:$0xff] }
 0x5f9   :  { %v8378_v55 = vpack.c.bf16 %v3647_v56, %v3643_v57  ;;  %v3675_v39 = vld [vmem:[#allocation17 + $0x388] sm:$0xff] }
 0x5fa   :  { %8361 = vmatpush1.bf16.msra.mxu1 %v8360_v11  ;;  %8489 = vmatpush1.bf16.msra.mxu0 %v8488_v13  ;;  %v3646_v11 = vld [vmem:[#allocation17 + $0x2a0] sm:$0xff]  ;;  %v3644_v13 = vld [vmem:[#allocation17 + $0x290] sm:$0xff]  ;;  %v3679_v43 = vld [vmem:[#allocation17 + $0x3a8] sm:$0xff] }
 0x5fb   :  { %8363 = vmatprep.subr.bf16.mxu1 %v8362_v54  ;;  %8491 = vmatprep.subr.bf16.mxu0 %v8490_v18  ;;  %v8380_v17 = vpack.c.bf16 %v3646_v11, %v3642_v6  ;;  %v8508_v54 = vpack.c.bf16 %v3648_v15, %v3644_v13  ;;  %v3651_v18 = vld [vmem:[#allocation17 + $0x2c8] sm:$0xff]  ;;  %v8394_v57 = vpack.c.bf16 %v3679_v43, %v3675_v39  ;;  %v3680_v6 = vld [vmem:[#allocation17 + $0x3b0] sm:$0xff] }
 0x5fc   :  { %v8382_v63 = vpack.c.bf16 %v3655_v31, %v3651_v18  ;;  %v3687_v11 = vld [vmem:[#allocation17 + $0x3e8] sm:$0xff]  ;;  %v8524_v13 = vpack.c.bf16 %v3680_v6, %v3676_v62  ;;  %v3682_v18 = vld [vmem:[#allocation17 + $0x3c0] sm:$0xff] }
 0x5fe   :  { %8365 = vmatpush1.bf16.msra.mxu1 %v8364_v14  ;;  %8493 = vmatpush1.bf16.msra.mxu0 %v8492_v40  ;;  %v3654_v14 = vld [vmem:[#allocation17 + $0x2e0] sm:$0xff]  ;;  %v3652_v40 = vld [vmem:[#allocation17 + $0x2d0] sm:$0xff] }
 0x5ff   :  { %8367 = vmatprep.subr.bf16.mxu1 %v8366_v3  ;;  %8495 = vmatprep.subr.bf16.mxu0 %v8494_v5  ;;  %v8384_v26 = vpack.c.bf16 %v3654_v14, %v3650_v25  ;;  %v8512_v3 = vpack.c.bf16 %v3656_v28, %v3652_v40  ;;  %v3659_v5 = vld [vmem:[#allocation17 + $0x308] sm:$0xff]  ;;  %v3693_v40 = vld [vmem:[#allocation17 + $0x418] sm:$0xff] }
 0x600   :  { %v8386_v1 = vpack.c.bf16 %v3663_v16, %v3659_v5  ;;  %v3691_v25 = vld [vmem:[#allocation17 + $0x408] sm:$0xff] }
 0x601   :  { %v3695_v14 = vld [vmem:[#allocation17 + $0x428] sm:$0xff] }
 0x602   :  { %8369 = vmatpush1.bf16.msra.mxu1 %v8368_v59  ;;  %8497 = vmatpush1.bf16.msra.mxu0 %v8496_v8  ;;  %v8514_v59 = vpack.c.bf16 %v3665_v2, %v3661_v29  ;;  %v8388_v8 = vpack.c.bf16 %v3662_v38, %v3658_v37  ;;  %v8402_v28 = vpack.c.bf16 %v3695_v14, %v3691_v25 }
 0x603   :  { %8371 = vmatprep.subr.bf16.mxu1 %v8370_v41  ;;  %8499 = vmatprep.subr.bf16.mxu0 %v8498_v12  ;;  %v3664_v41 = vld [vmem:[#allocation17 + $0x330] sm:$0xff] }
 0x604   :  { %v8516_v12 = vpack.c.bf16 %v3664_v41, %v3660_v10 }
 0x606   :  { %8373 = vmatpush1.bf16.msra.mxu1 %v8372_v44  ;;  %8501 = vmatpush1.bf16.msra.mxu0 %v8500_v45  ;;  %v8390_v44 = vpack.c.bf16 %v3671_v19, %v3667_v42  ;;  %v3673_v45 = vld [vmem:[#allocation17 + $0x378] sm:$0xff] }
 0x607   :  { %8375 = vmatprep.subr.bf16.mxu1 %v8374_v33  ;;  %8503 = vmatprep.subr.bf16.mxu0 %v8502_v35  ;;  %v8518_v32 = vpack.c.bf16 %v3673_v45, %v3669_v52  ;;  %v8392_v33 = vpack.c.bf16 %v3670_v30, %v3666_v48  ;;  %v3672_v35 = vld [vmem:[#allocation17 + $0x370] sm:$0xff] }
 0x608   :  { %v8520_v50 = vpack.c.bf16 %v3672_v35, %v3668_v22 }
 0x60a   :  { %8377 = vmatpush1.bf16.msra.mxu1 %v8376_v49  ;;  %8505 = vmatpush1.bf16.msra.mxu0 %v8504_v61  ;;  %v3677_v49 = vld [vmem:[#allocation17 + $0x398] sm:$0xff]  ;;  %v3674_v61 = vld [vmem:[#allocation17 + $0x380] sm:$0xff] }
 0x60b   :  { %8379 = vmatprep.subr.bf16.mxu1 %v8378_v55  ;;  %8507 = vmatprep.subr.bf16.mxu0 %v8506_v9  ;;  %v8522_v56 = vpack.c.bf16 %v3681_v46, %v3677_v49  ;;  %v3678_v55 = vld [vmem:[#allocation17 + $0x3a0] sm:$0xff]  ;;  %v3683_v9 = vld [vmem:[#allocation17 + $0x3c8] sm:$0xff] }
 0x60c   :  { %v8396_v4 = vpack.c.bf16 %v3678_v55, %v3674_v61  ;;  %v8398_v15 = vpack.c.bf16 %v3687_v11, %v3683_v9 }
 0x60e   :  { %8381 = vmatpush1.bf16.msra.mxu1 %v8380_v17  ;;  %8509 = vmatpush1.bf16.msra.mxu0 %v8508_v54  ;;  %v3685_v17 = vld [vmem:[#allocation17 + $0x3d8] sm:$0xff] }
 0x60f   :  { %8383 = vmatprep.subr.bf16.mxu1 %v8382_v63  ;;  %8511 = vmatprep.subr.bf16.mxu0 %v8510_v20  ;;  %v3689_v54 = vld [vmem:[#allocation17 + $0x3f8] sm:$0xff]  ;;  %v3684_v63 = vld [vmem:[#allocation17 + $0x3d0] sm:$0xff]  ;;  %v8400_v20 = vpack.c.bf16 %v3686_v58, %v3682_v18 }
 0x610   :  { %v8526_v31 = vpack.c.bf16 %v3689_v54, %v3685_v17 }
 0x612   :  { %8385 = vmatpush1.bf16.msra.mxu1 %v8384_v26  ;;  %8513 = vmatpush1.bf16.msra.mxu0 %v8512_v3  ;;  %v8528_v26 = vpack.c.bf16 %v3688_v47, %v3684_v63  ;;  %v3697_v3 = vld [vmem:[#allocation17 + $0x438] sm:$0xff] }
 0x613   :  { %8387 = vmatprep.subr.bf16.mxu1 %v8386_v1  ;;  %8515 = vmatprep.subr.bf16.mxu0 %v8514_v59  ;;  %v8530_v5 = vpack.c.bf16 %v3697_v3, %v3693_v40 }
 0x616   :  { %8389 = vmatpush1.bf16.msra.mxu1 %v8388_v8  ;;  %8517 = vmatpush1.bf16.msra.mxu0 %v8516_v12 }
 0x617   :  { %8391 = vmatprep.subr.bf16.mxu1 %v8390_v44  ;;  %8519 = vmatprep.subr.bf16.mxu0 %v8518_v32 }
 0x61a   :  { %8393 = vmatpush1.bf16.msra.mxu1 %v8392_v33  ;;  %8521 = vmatpush1.bf16.msra.mxu0 %v8520_v50 }
 0x61b   :  { %8395 = vmatprep.subr.bf16.mxu1 %v8394_v57  ;;  %8523 = vmatprep.subr.bf16.mxu0 %v8522_v56 }
 0x61e   :  { %8397 = vmatpush1.bf16.msra.mxu1 %v8396_v4  ;;  %8525 = vmatpush1.bf16.msra.mxu0 %v8524_v13 }
 0x61f   :  { %8399 = vmatprep.subr.bf16.mxu1 %v8398_v15  ;;  %8527 = vmatprep.subr.bf16.mxu0 %v8526_v31 }
 0x622   :  { %8401 = vmatpush1.bf16.msra.mxu1 %v8400_v20  ;;  %8529 = vmatpush1.bf16.msra.mxu0 %v8528_v26 }
 0x623   :  { %8403 = vmatprep.subr.bf16.mxu1 %v8402_v28  ;;  %8531 = vmatprep.subr.bf16.mxu0 %v8530_v5 }
 0x6b7   :  { %v10521_v16 = vpop.f32.mrb[4].mxu1  ;;  %v10523_v29 = vpop.f32.mrb[16].mxu0 }
 0x6b8   :  { %v10525_v1 = vpop.f32.mrb[5].mxu1  ;;  %v10527_v2 = vpop.f32.mrb[17].mxu0  ;;  %v3506_v37 = vmul.f32 %v10521_v16, %v10521_v16  ;;  %v3508_v38 = vmul.f32 %v10523_v29, %v10523_v29 }
 0x6b9   :  { %v3507_v59 = vmul.f32 %v10525_v1, %v10525_v1  ;;  %v3509_v8 = vmul.f32 %v10527_v2, %v10527_v2  ;;  %v10537_v10 = vpop.f32.mrb[6].mxu1  ;;  %v10539_v41 = vpop.f32.mrb[18].mxu0 }
 0x6ba   :  { %v3470_v12 = vadd.f32 %v10537_v10, %v10521_v16  ;;  %v3510_v42 = vmul.f32 %v10537_v10, %v10537_v10  ;;  %v3488_v19 = vadd.f32 %v10539_v41, %v10523_v29  ;;  %v3512_v52 = vmul.f32 %v10539_v41, %v10539_v41  ;;  %v10549_v44 = vpop.f32.mrb[7].mxu1  ;;  %v10551_v45 = vpop.f32.mrb[19].mxu0 }
 0x6bb   :  { %v3479_v48 = vadd.f32 %v10549_v44, %v10525_v1  ;;  %v3511_v30 = vmul.f32 %v10549_v44, %v10549_v44  ;;  %v3497_v32 = vadd.f32 %v10551_v45, %v10527_v2  ;;  %v3513_v33 = vmul.f32 %v10551_v45, %v10551_v45 }
 0x6bc   :  { %v3522_v22 = vadd.f32 %v3510_v42, %v3506_v37  ;;  %v3540_v35 = vadd.f32 %v3512_v52, %v3508_v38 }
 0x6bd   :  { %v3531_v39 = vadd.f32 %v3511_v30, %v3507_v59  ;;  %v3549_v50 = vadd.f32 %v3513_v33, %v3509_v8 }
 0x6bf   :  { %v10561_v43 = vpop.f32.mrb[8].mxu1  ;;  %v10563_v49 = vpop.f32.mrb[20].mxu0 }
 0x6c0   :  { %v3471_v46 = vadd.f32 %v3470_v12, %v10561_v43  ;;  %v3514_v57 = vmul.f32 %v10561_v43, %v10561_v43  ;;  %v3489_v56 = vadd.f32 %v3488_v19, %v10563_v49  ;;  %v3516_v61 = vmul.f32 %v10563_v49, %v10563_v49  ;;  %v10571_v55 = vpop.f32.mrb[9].mxu1  ;;  %v10573_v62 = vpop.f32.mrb[21].mxu0 }
 0x6c1   :  { %v3480_v4 = vadd.f32 %v3479_v48, %v10571_v55  ;;  %v3515_v6 = vmul.f32 %v10571_v55, %v10571_v55  ;;  %v3498_v9 = vadd.f32 %v3497_v32, %v10573_v62  ;;  %v3517_v11 = vmul.f32 %v10573_v62, %v10573_v62  ;;  %v10581_v13 = vpop.f32.mrb[10].mxu1  ;;  %v10583_v15 = vpop.f32.mrb[22].mxu0 }
 0x6c2   :  { %v3523_v17 = vadd.f32 %v3522_v22, %v3514_v57  ;;  %v3541_v54 = vadd.f32 %v3540_v35, %v3516_v61  ;;  %v3472_v18 = vadd.f32 %v3471_v46, %v10581_v13  ;;  %v3518_v31 = vmul.f32 %v10581_v13, %v10581_v13  ;;  %v10588_v58 = vpop.f32.mrb[11].mxu1  ;;  %v10590_v63 = vpop.f32.mrb[23].mxu0 }
 0x6c3   :  { %v3532_v47 = vadd.f32 %v3531_v39, %v3515_v6  ;;  %v3550_v20 = vadd.f32 %v3549_v50, %v3517_v11  ;;  %v3490_v25 = vadd.f32 %v3489_v56, %v10583_v15  ;;  %v3520_v14 = vmul.f32 %v10583_v15, %v10583_v15 }
 0x6c4   :  { %v3473_v40 = vrot.slane %v3472_v18, 4  ;;  %v3524_v26 = vadd.f32 %v3523_v17, %v3518_v31  ;;  %v3481_v28 = vadd.f32 %v3480_v4, %v10588_v58  ;;  %v3519_v3 = vmul.f32 %v10588_v58, %v10588_v58 }
 0x6c5   :  { %v3491_v5 = vrot.slane %v3490_v25, 4  ;;  %v3542_v37 = vadd.f32 %v3541_v54, %v3520_v14  ;;  %v3499_v38 = vadd.f32 %v3498_v9, %v10590_v63  ;;  %v3521_v59 = vmul.f32 %v10590_v63, %v10590_v63 }
 0x6c6   :  { %v3474_v8 = vadd.f32 %v3473_v40, %v3472_v18  ;;  %v3525_v12 = vrot.slane %v3524_v26, 4  ;;  %v3482_v42 = vrot.slane %v3481_v28, 4  ;;  %v3533_v19 = vadd.f32 %v3532_v47, %v3519_v3 }
 0x6c7   :  { %v3492_v52 = vadd.f32 %v3491_v5, %v3490_v25  ;;  %v3543_v48 = vrot.slane %v3542_v37, 4  ;;  %v3500_v30 = vrot.slane %v3499_v38, 4  ;;  %v3551_v32 = vadd.f32 %v3550_v20, %v3521_v59  ;;  %v3694_v59 = vld [vmem:[#allocation17 + $0x420] sm:$0xff] }
 0x6c8   :  { %v3475_v33 = vrot.slane %v3474_v8, 2  ;;  %v3526_v22 = vadd.f32 %v3525_v12, %v3524_v26  ;;  %v3483_v35 = vadd.f32 %v3482_v42, %v3481_v28  ;;  %v3534_v39 = vrot.slane %v3533_v19, 4 }
 0x6c9   :  { %v3493_v50 = vrot.slane %v3492_v52, 2  ;;  %v3544_v46 = vadd.f32 %v3543_v48, %v3542_v37  ;;  %v3501_v57 = vadd.f32 %v3500_v30, %v3499_v38  ;;  %v3552_v56 = vrot.slane %v3551_v32, 4  ;;  %v3690_v38 = vld [vmem:[#allocation17 + $0x400] sm:$0xff]  ;;  %v3692_v30 = vld [vmem:[#allocation17 + $0x410] sm:$0xff] }
 0x6ca   :  { %v3476_v61 = vadd.f32 %v3475_v33, %v3474_v8  ;;  %v3527_v4 = vrot.slane %v3526_v22, 2  ;;  %v3484_v6 = vrot.slane %v3483_v35, 2  ;;  %v3535_v9 = vadd.f32 %v3534_v39, %v3533_v19 }
 0x6cb   :  { %v3494_v11 = vadd.f32 %v3493_v50, %v3492_v52  ;;  %v3545_v17 = vrot.slane %v3544_v46, 2  ;;  %v3502_v54 = vrot.slane %v3501_v57, 2  ;;  %v3553_v18 = vadd.f32 %v3552_v56, %v3551_v32  ;;  %v3696_v32 = vld [vmem:[#allocation17 + $0x430] sm:$0xff] }
 0x6cc   :  { %v3477_v31 = vrot.slane %v3476_v61, 1  ;;  %v3528_v47 = vadd.f32 %v3527_v4, %v3526_v22  ;;  %v3485_v25 = vadd.f32 %v3484_v6, %v3483_v35  ;;  %v3536_v20 = vrot.slane %v3535_v9, 2  ;;  %v3699_v22 = vld [vmem:[#allocation17 + $0x448] sm:$0xff]  ;;  %v3701_v6 = vld [vmem:[#allocation17 + $0x458] sm:$0xff] }
 0x6cd   :  { %v3495_v14 = vrot.slane %v3494_v11, 1  ;;  %v3546_v40 = vadd.f32 %v3545_v17, %v3544_v46  ;;  %v3503_v26 = vadd.f32 %v3502_v54, %v3501_v57  ;;  %v3554_v28 = vrot.slane %v3553_v18, 2  ;;  %v3703_v4 = vld [vmem:[#allocation17 + $0x468] sm:$0xff] }
 0x6ce   :  { %v3529_v3 = vrot.slane %v3528_v47, 1  ;;  %v3486_v5 = vrot.slane %v3485_v25, 1  ;;  %v3537_v37 = vadd.f32 %v3536_v20, %v3535_v9  ;;  %v3478_v19 = vadd.f32 %v3477_v31, %v3476_v61  ;;  %v3705_v9 = vld [vmem:[#allocation17 + $0x478] sm:$0xff]  ;;  %v3698_v61 = vld [vmem:[#allocation17 + $0x440] sm:$0xff] }
 0x6cf   :  { %v3504_v8 = vrot.slane %v3503_v26, 1  ;;  %v3555_v12 = vadd.f32 %v3554_v28, %v3553_v18  ;;  %v3547_v42 = vrot.slane %v3546_v40, 1  ;;  %v3496_v35 = vadd.f32 %v3495_v14, %v3494_v11  ;;  %v3702_v31 = vld [vmem:[#allocation17 + $0x460] sm:$0xff]  ;;  %v3700_v11 = vld [vmem:[#allocation17 + $0x450] sm:$0xff] }
 0x6d0   :  { %v3538_v52 = vrot.slane %v3537_v37, 1  ;;  %v3530_v48 = vadd.f32 %v3529_v3, %v3528_v47  ;;  %v3487_v50 = vadd.f32 %v3486_v5, %v3485_v25  ;;  %v8404_v56 = vpack.c.bf16 %v3694_v59, %v3690_v38  ;;  %v3704_v14 = vld [vmem:[#allocation17 + $0x470] sm:$0xff]  ;;  %v3707_v25 = vld [vmem:[#allocation17 + $0x488] sm:$0xff] }
 0x6d1   :  { %v3556_v33 = vrot.slane %v3555_v12, 1  ;;  %v3548_v39 = vadd.f32 %v3547_v42, %v3546_v40  ;;  %v8532_v17 = vpack.c.bf16 %v3696_v32, %v3692_v30  ;;  %v3505_v54 = vadd.f32 %v3504_v8, %v3503_v26  ;;  %v3711_v5 = vld [vmem:[#allocation17 + $0x4a8] sm:$0xff]  ;;  %v3713_v26 = vld [vmem:[#allocation17 + $0x4b8] sm:$0xff]  ;;  %v3706_v8 = vld [vmem:[#allocation17 + $0x480] sm:$0xff] }
 0x6d2   :  { %v3539_v46 = vadd.f32 %v3538_v52, %v3537_v37  ;;  %v3558_v57 = vsel %vm11126_vm2, %v3478_v19, %v3530_v48  ;;  %v8406_v28 = vpack.c.bf16 %v3703_v4, %v3699_v22  ;;  %v8534_v3 = vpack.c.bf16 %v3705_v9, %v3701_v6  ;;  %v3709_v37 = vld [vmem:[#allocation17 + $0x498] sm:$0xff]  ;;  %v3708_v52 = vld [vmem:[#allocation17 + $0x490] sm:$0xff]  ;;  %v3715_v30 = vld [vmem:[#allocation17 + $0x4c8] sm:$0xff] }
 0x6d3   :  { %v3557_v18 = vadd.f32 %v3556_v33, %v3555_v12  ;;  %v10603_v47 = vsel %vm11126_vm2, %v3496_v35, %v3548_v39  ;;  %v8408_v38 = vpack.c.bf16 %v3702_v31, %v3698_v61  ;;  %v8536_v59 = vpack.c.bf16 %v3704_v14, %v3700_v11  ;;  %v3710_v12 = vld [vmem:[#allocation17 + $0x4a0] sm:$0xff]  ;;  %v3712_v48 = vld [vmem:[#allocation17 + $0x4b0] sm:$0xff]  ;;  %v3719_v32 = vld [vmem:[#allocation17 + $0x4e8] sm:$0xff] }
 0x6d4   :  { %v3559_v20 = vsel %vm11126_vm2, %v3487_v50, %v3539_v46  ;;  %v8410_v42 = vpack.c.bf16 %v3711_v5, %v3707_v25  ;;  %v8538_v19 = vpack.c.bf16 %v3713_v26, %v3709_v37  ;;  %v3717_v33 = vld [vmem:[#allocation17 + $0x4d8] sm:$0xff]  ;;  %v8412_v35 = vpack.c.bf16 %v3710_v12, %v3706_v8  ;;  %v3714_v50 = vld [vmem:[#allocation17 + $0x4c0] sm:$0xff]  ;;  %v3716_v4 = vld [vmem:[#allocation17 + $0x4d0] sm:$0xff] }
 0x6d5   :  { %3882 = vmatprep.mubr.f32.mxu1 %v3559_v20  ;;  %4024 = vmatprep.mubr.f32.mxu0 %v3559_v20  ;;  %v3561_v40 = vsel %vm11126_vm2, %v3505_v54, %v3557_v18  ;;  %v3721_v22 = vld [vmem:[#allocation17 + $0x4f8] sm:$0xff]  ;;  %v8540_v39 = vpack.c.bf16 %v3712_v48, %v3708_v52  ;;  %v3718_v46 = vld [vmem:[#allocation17 + $0x4e0] sm:$0xff]  ;;  %v3720_v6 = vld [vmem:[#allocation17 + $0x4f0] sm:$0xff] }
 0x6d6   :  { %3883 = vmatmul.mubr.f32.vlgmr.msra.gmra.mrb[12].mxu1 %v3558_v57  ;;  %4025 = vmatmul.mubr.f32.vlgmr.msra.gmra.mrb[24].mxu0 %v3558_v57  ;;  %v8414_v57 = vpack.c.bf16 %v3719_v32, %v3715_v30  ;;  %v3723_v9 = vld [vmem:[#allocation17 + $0x508] sm:$0xff]  ;;  %v3725_v54 = vld [vmem:[#allocation17 + $0x518] sm:$0xff]  ;;  %v8416_v61 = vpack.c.bf16 %v3718_v46, %v3714_v50  ;;  %v8544_v31 = vpack.c.bf16 %v3720_v6, %v3716_v4  ;;  %v3722_v20 = vld [vmem:[#allocation17 + $0x500] sm:$0xff] }
 0x6d7   :  { %8405 = vmatpush1.bf16.msra.mxu1 %v8404_v56  ;;  %8533 = vmatpush1.bf16.msra.mxu0 %v8532_v17  ;;  %v8542_v56 = vpack.c.bf16 %v3721_v22, %v3717_v33  ;;  %v3727_v17 = vld [vmem:[#allocation17 + $0x528] sm:$0xff]  ;;  %v3729_v18 = vld [vmem:[#allocation17 + $0x538] sm:$0xff]  ;;  %v3726_v11 = vld [vmem:[#allocation17 + $0x520] sm:$0xff] }
 0x6d8   :  { %3953 = vmatprep.mubr.f32.mxu1 %v3561_v40  ;;  %4095 = vmatprep.mubr.f32.mxu0 %v3561_v40  ;;  %v8418_v14 = vpack.c.bf16 %v3727_v17, %v3723_v9  ;;  %v8546_v25 = vpack.c.bf16 %v3729_v18, %v3725_v54  ;;  %v3724_v40 = vld [vmem:[#allocation17 + $0x510] sm:$0xff]  ;;  %v3735_v5 = vld [vmem:[#allocation17 + $0x568] sm:$0xff]  ;;  %v3733_v37 = vld [vmem:[#allocation17 + $0x558] sm:$0xff] }
 0x6d9   :  { %8407 = vmatprep.subr.bf16.mxu1 %v8406_v28  ;;  %8535 = vmatprep.subr.bf16.mxu0 %v8534_v3  ;;  %v3728_v28 = vld [vmem:[#allocation17 + $0x530] sm:$0xff]  ;;  %v3731_v3 = vld [vmem:[#allocation17 + $0x548] sm:$0xff]  ;;  %v3737_v26 = vld [vmem:[#allocation17 + $0x578] sm:$0xff] }
 0x6da   :  { %v3730_v8 = vld [vmem:[#allocation17 + $0x540] sm:$0xff]  ;;  %v3732_v52 = vld [vmem:[#allocation17 + $0x550] sm:$0xff]  ;;  %v3739_v30 = vld [vmem:[#allocation17 + $0x588] sm:$0xff] }
 0x6db   :  { %8409 = vmatpush1.bf16.msra.mxu1 %v8408_v38  ;;  %8537 = vmatpush1.bf16.msra.mxu0 %v8536_v59  ;;  %v8420_v38 = vpack.c.bf16 %v3726_v11, %v3722_v20  ;;  %v8548_v59 = vpack.c.bf16 %v3728_v28, %v3724_v40  ;;  %v3734_v12 = vld [vmem:[#allocation17 + $0x560] sm:$0xff]  ;;  %v3736_v48 = vld [vmem:[#allocation17 + $0x570] sm:$0xff]  ;;  %v3743_v32 = vld [vmem:[#allocation17 + $0x5a8] sm:$0xff] }
 0x6dc   :  { %8411 = vmatprep.subr.bf16.mxu1 %v8410_v42  ;;  %8539 = vmatprep.subr.bf16.mxu0 %v8538_v19  ;;  %v8422_v42 = vpack.c.bf16 %v3735_v5, %v3731_v3  ;;  %v8550_v19 = vpack.c.bf16 %v3737_v26, %v3733_v37  ;;  %v3741_v33 = vld [vmem:[#allocation17 + $0x598] sm:$0xff]  ;;  %v3738_v50 = vld [vmem:[#allocation17 + $0x580] sm:$0xff]  ;;  %v3740_v4 = vld [vmem:[#allocation17 + $0x590] sm:$0xff] }
 0x6dd   :  { %v3745_v22 = vld [vmem:[#allocation17 + $0x5b8] sm:$0xff]  ;;  %v3742_v46 = vld [vmem:[#allocation17 + $0x5a0] sm:$0xff]  ;;  %v3744_v6 = vld [vmem:[#allocation17 + $0x5b0] sm:$0xff] }
 0x6de   :  { %v3747_v9 = vld [vmem:[#allocation17 + $0x5c8] sm:$0xff]  ;;  %v3749_v54 = vld [vmem:[#allocation17 + $0x5d8] sm:$0xff]  ;;  %v3746_v20 = vld [vmem:[#allocation17 + $0x5c0] sm:$0xff] }
 0x6df   :  { %8413 = vmatpush1.bf16.msra.mxu1 %v8412_v35  ;;  %8541 = vmatpush1.bf16.msra.mxu0 %v8540_v39  ;;  %v8424_v35 = vpack.c.bf16 %v3734_v12, %v3730_v8  ;;  %v8552_v39 = vpack.c.bf16 %v3736_v48, %v3732_v52  ;;  %v3751_v17 = vld [vmem:[#allocation17 + $0x5e8] sm:$0xff]  ;;  %v3753_v18 = vld [vmem:[#allocation17 + $0x5f8] sm:$0xff]  ;;  %v3750_v11 = vld [vmem:[#allocation17 + $0x5e0] sm:$0xff] }
 0x6e0   :  { %8415 = vmatprep.subr.bf16.mxu1 %v8414_v57  ;;  %8543 = vmatprep.subr.bf16.mxu0 %v8542_v56  ;;  %v8426_v57 = vpack.c.bf16 %v3743_v32, %v3739_v30  ;;  %v8554_v56 = vpack.c.bf16 %v3745_v22, %v3741_v33  ;;  %v3748_v40 = vld [vmem:[#allocation17 + $0x5d0] sm:$0xff]  ;;  %v3755_v3 = vld [vmem:[#allocation17 + $0x608] sm:$0xff]  ;;  %v3757_v37 = vld [vmem:[#allocation17 + $0x618] sm:$0xff] }
 0x6e1   :  { %v3752_v28 = vld [vmem:[#allocation17 + $0x5f0] sm:$0xff]  ;;  %v3759_v5 = vld [vmem:[#allocation17 + $0x628] sm:$0xff]  ;;  %v3761_v26 = vld [vmem:[#allocation17 + $0x638] sm:$0xff] }
 0x6e2   :  { %v3754_v8 = vld [vmem:[#allocation17 + $0x600] sm:$0xff]  ;;  %v3756_v52 = vld [vmem:[#allocation17 + $0x610] sm:$0xff]  ;;  %v3763_v30 = vld [vmem:[#allocation17 + $0x648] sm:$0xff] }
 0x6e3   :  { %8417 = vmatpush1.bf16.msra.mxu1 %v8416_v61  ;;  %8545 = vmatpush1.bf16.msra.mxu0 %v8544_v31  ;;  %v8428_v61 = vpack.c.bf16 %v3742_v46, %v3738_v50  ;;  %v8556_v31 = vpack.c.bf16 %v3744_v6, %v3740_v4  ;;  %v3758_v12 = vld [vmem:[#allocation17 + $0x620] sm:$0xff]  ;;  %v3760_v48 = vld [vmem:[#allocation17 + $0x630] sm:$0xff]  ;;  %v3767_v32 = vld [vmem:[#allocation17 + $0x668] sm:$0xff] }
 0x6e4   :  { %8419 = vmatprep.subr.bf16.mxu1 %v8418_v14  ;;  %8547 = vmatprep.subr.bf16.mxu0 %v8546_v25  ;;  %v8430_v14 = vpack.c.bf16 %v3751_v17, %v3747_v9  ;;  %v8558_v25 = vpack.c.bf16 %v3753_v18, %v3749_v54  ;;  %v3765_v33 = vld [vmem:[#allocation17 + $0x658] sm:$0xff]  ;;  %v3762_v50 = vld [vmem:[#allocation17 + $0x640] sm:$0xff]  ;;  %v3764_v4 = vld [vmem:[#allocation17 + $0x650] sm:$0xff] }
 0x6e5   :  { %v3769_v22 = vld [vmem:[#allocation17 + $0x678] sm:$0xff]  ;;  %v3766_v46 = vld [vmem:[#allocation17 + $0x660] sm:$0xff]  ;;  %v3768_v6 = vld [vmem:[#allocation17 + $0x670] sm:$0xff] }
 0x6e6   :  { %v3771_v9 = vld [vmem:[#allocation17 + $0x688] sm:$0xff]  ;;  %v3773_v54 = vld [vmem:[#allocation17 + $0x698] sm:$0xff] }
 0x6e7   :  { %8421 = vmatpush1.bf16.msra.mxu1 %v8420_v38  ;;  %8549 = vmatpush1.bf16.msra.mxu0 %v8548_v59  ;;  %v8432_v38 = vpack.c.bf16 %v3750_v11, %v3746_v20  ;;  %v8560_v59 = vpack.c.bf16 %v3752_v28, %v3748_v40  ;;  %v3775_v17 = vld [vmem:[#allocation17 + $0x6a8] sm:$0xff]  ;;  %v3777_v18 = vld [vmem:[#allocation17 + $0x6b8] sm:$0xff]  ;;  %v3770_v20 = vld [vmem:[#allocation17 + $0x680] sm:$0xff] }
 0x6e8   :  { %8423 = vmatprep.subr.bf16.mxu1 %v8422_v42  ;;  %8551 = vmatprep.subr.bf16.mxu0 %v8550_v19  ;;  %v8434_v42 = vpack.c.bf16 %v3759_v5, %v3755_v3  ;;  %v8562_v19 = vpack.c.bf16 %v3761_v26, %v3757_v37  ;;  %v3774_v11 = vld [vmem:[#allocation17 + $0x6a0] sm:$0xff]  ;;  %v3772_v40 = vld [vmem:[#allocation17 + $0x690] sm:$0xff]  ;;  %v3779_v3 = vld [vmem:[#allocation17 + $0x6c8] sm:$0xff] }
 0x6e9   :  { %v3776_v28 = vld [vmem:[#allocation17 + $0x6b0] sm:$0xff]  ;;  %v3783_v5 = vld [vmem:[#allocation17 + $0x6e8] sm:$0xff]  ;;  %v3781_v37 = vld [vmem:[#allocation17 + $0x6d8] sm:$0xff] }
 0x6ea   :  { %v3785_v26 = vld [vmem:[#allocation17 + $0x6f8] sm:$0xff] }
 0x6eb   :  { %8425 = vmatpush1.bf16.msra.mxu1 %v8424_v35  ;;  %8553 = vmatpush1.bf16.msra.mxu0 %v8552_v39  ;;  %v8436_v35 = vpack.c.bf16 %v3758_v12, %v3754_v8  ;;  %v8564_v39 = vpack.c.bf16 %v3760_v48, %v3756_v52  ;;  %v3778_v8 = vld [vmem:[#allocation17 + $0x6c0] sm:$0xff]  ;;  %v3780_v52 = vld [vmem:[#allocation17 + $0x6d0] sm:$0xff] }
 0x6ec   :  { %8427 = vmatprep.subr.bf16.mxu1 %v8426_v57  ;;  %8555 = vmatprep.subr.bf16.mxu0 %v8554_v56  ;;  %v8438_v57 = vpack.c.bf16 %v3767_v32, %v3763_v30  ;;  %v8566_v56 = vpack.c.bf16 %v3769_v22, %v3765_v33  ;;  %v3782_v12 = vld [vmem:[#allocation17 + $0x6e0] sm:$0xff]  ;;  %v3784_v48 = vld [vmem:[#allocation17 + $0x6f0] sm:$0xff]  ;;  %v3787_v30 = vld [vmem:[#allocation17 + $0x708] sm:$0xff] }
 0x6ed   :  { %v3791_v32 = vld [vmem:[#allocation17 + $0x728] sm:$0xff]  ;;  %v3789_v33 = vld [vmem:[#allocation17 + $0x718] sm:$0xff] }
 0x6ee   :  { %v3793_v22 = vld [vmem:[#allocation17 + $0x738] sm:$0xff] }
 0x6ef   :  { %8429 = vmatpush1.bf16.msra.mxu1 %v8428_v61  ;;  %8557 = vmatpush1.bf16.msra.mxu0 %v8556_v31  ;;  %v8440_v61 = vpack.c.bf16 %v3766_v46, %v3762_v50  ;;  %v8568_v31 = vpack.c.bf16 %v3768_v6, %v3764_v4  ;;  %v3786_v50 = vld [vmem:[#allocation17 + $0x700] sm:$0xff]  ;;  %v3788_v4 = vld [vmem:[#allocation17 + $0x710] sm:$0xff] }
 0x6f0   :  { %8431 = vmatprep.subr.bf16.mxu1 %v8430_v14  ;;  %8559 = vmatprep.subr.bf16.mxu0 %v8558_v25  ;;  %v8442_v14 = vpack.c.bf16 %v3775_v17, %v3771_v9  ;;  %v8570_v25 = vpack.c.bf16 %v3777_v18, %v3773_v54  ;;  %v3790_v46 = vld [vmem:[#allocation17 + $0x720] sm:$0xff]  ;;  %v3792_v6 = vld [vmem:[#allocation17 + $0x730] sm:$0xff]  ;;  %v3795_v9 = vld [vmem:[#allocation17 + $0x748] sm:$0xff] }
 0x6f1   :  { %v3799_v17 = vld [vmem:[#allocation17 + $0x768] sm:$0xff]  ;;  %v3797_v54 = vld [vmem:[#allocation17 + $0x758] sm:$0xff] }
 0x6f2   :  { %v3801_v18 = vld [vmem:[#allocation17 + $0x778] sm:$0xff] }
 0x6f3   :  { %8433 = vmatpush1.bf16.msra.mxu1 %v8432_v38  ;;  %8561 = vmatpush1.bf16.msra.mxu0 %v8560_v59  ;;  %v8444_v38 = vpack.c.bf16 %v3774_v11, %v3770_v20  ;;  %v8572_v59 = vpack.c.bf16 %v3776_v28, %v3772_v40  ;;  %v3794_v20 = vld [vmem:[#allocation17 + $0x740] sm:$0xff]  ;;  %v3796_v40 = vld [vmem:[#allocation17 + $0x750] sm:$0xff] }
 0x6f4   :  { %8435 = vmatprep.subr.bf16.mxu1 %v8434_v42  ;;  %8563 = vmatprep.subr.bf16.mxu0 %v8562_v19  ;;  %v8446_v42 = vpack.c.bf16 %v3783_v5, %v3779_v3  ;;  %v8574_v19 = vpack.c.bf16 %v3785_v26, %v3781_v37  ;;  %v3798_v11 = vld [vmem:[#allocation17 + $0x760] sm:$0xff]  ;;  %v3800_v28 = vld [vmem:[#allocation17 + $0x770] sm:$0xff]  ;;  %v3803_v3 = vld [vmem:[#allocation17 + $0x788] sm:$0xff] }
 0x6f5   :  { %v3807_v5 = vld [vmem:[#allocation17 + $0x7a8] sm:$0xff]  ;;  %v3805_v37 = vld [vmem:[#allocation17 + $0x798] sm:$0xff] }
 0x6f6   :  { %v3809_v26 = vld [vmem:[#allocation17 + $0x7b8] sm:$0xff] }
 0x6f7   :  { %8437 = vmatpush1.bf16.msra.mxu1 %v8436_v35  ;;  %8565 = vmatpush1.bf16.msra.mxu0 %v8564_v39  ;;  %v8448_v35 = vpack.c.bf16 %v3782_v12, %v3778_v8  ;;  %v8576_v39 = vpack.c.bf16 %v3784_v48, %v3780_v52  ;;  %v3802_v8 = vld [vmem:[#allocation17 + $0x780] sm:$0xff]  ;;  %v3804_v52 = vld [vmem:[#allocation17 + $0x790] sm:$0xff] }
 0x6f8   :  { %8439 = vmatprep.subr.bf16.mxu1 %v8438_v57  ;;  %8567 = vmatprep.subr.bf16.mxu0 %v8566_v56  ;;  %v8450_v57 = vpack.c.bf16 %v3791_v32, %v3787_v30  ;;  %v8578_v56 = vpack.c.bf16 %v3793_v22, %v3789_v33  ;;  %v3806_v12 = vld [vmem:[#allocation17 + $0x7a0] sm:$0xff]  ;;  %v3808_v48 = vld [vmem:[#allocation17 + $0x7b0] sm:$0xff]  ;;  %v3811_v30 = vld [vmem:[#allocation17 + $0x7c8] sm:$0xff] }
 0x6f9   :  { %v3815_v32 = vld [vmem:[#allocation17 + $0x7e8] sm:$0xff]  ;;  %v3813_v33 = vld [vmem:[#allocation17 + $0x7d8] sm:$0xff] }
 0x6fa   :  { %v3817_v22 = vld [vmem:[#allocation17 + $0x7f8] sm:$0xff] }
 0x6fb   :  { %8441 = vmatpush1.bf16.msra.mxu1 %v8440_v61  ;;  %8569 = vmatpush1.bf16.msra.mxu0 %v8568_v31  ;;  %v8452_v61 = vpack.c.bf16 %v3790_v46, %v3786_v50  ;;  %v8580_v31 = vpack.c.bf16 %v3792_v6, %v3788_v4  ;;  %v3810_v50 = vld [vmem:[#allocation17 + $0x7c0] sm:$0xff]  ;;  %v8462_v46 = vpack.c.bf16 %v3815_v32, %v3811_v30  ;;  %v3812_v4 = vld [vmem:[#allocation17 + $0x7d0] sm:$0xff] }
 0x6fc   :  { %8443 = vmatprep.subr.bf16.mxu1 %v8442_v14  ;;  %8571 = vmatprep.subr.bf16.mxu0 %v8570_v25  ;;  %v8454_v14 = vpack.c.bf16 %v3799_v17, %v3795_v9  ;;  %v8582_v25 = vpack.c.bf16 %v3801_v18, %v3797_v54  ;;  %v3816_v6 = vld [vmem:[#allocation17 + $0x7f0] sm:$0xff]  ;;  %v269_v54 = vld [vmem:[#allocation5] sm:$0x11]  ;;  %v272_v18 = vld [vmem:[#allocation5 + $0x8] sm:$0x11] }
 0x6fd   :  { %v8592_v17 = vpack.c.bf16 %v3816_v6, %v3812_v4  ;;  %v9194_v30 = vld [vmem:[#allocation18 + $0x270] ss:$8 sps:$4 sm:$0xff]   ;;  %v9199_v32 = vld [vmem:[#allocation18 + $0x284] ss:$8 sps:$4 sm:$0xff]   ;;  %v9209_v4 = vld [vmem:[#allocation18 + $0x2c0] ss:$8 sps:$4 sm:$0xff]  }
 0x6fe   :  { %v9214_v6 = vld [vmem:[#allocation18 + $0x2d4] ss:$8 sps:$4 sm:$0xff]  }
 0x6ff   :  { %8445 = vmatpush1.bf16.msra.mxu1 %v8444_v38  ;;  %8573 = vmatpush1.bf16.msra.mxu0 %v8572_v59  ;;  %v8456_v38 = vpack.c.bf16 %v3798_v11, %v3794_v20  ;;  %v8584_v59 = vpack.c.bf16 %v3800_v28, %v3796_v40  ;;  %v273_v20 = vsel %vm10405_vm10, 0, %v272_v18  ;;  %v9173_v40 = vld [vmem:[#allocation18 + $0x200] ss:$8 sps:$4 sm:$0xff]   ;;  %v9178_v28 = vld [vmem:[#allocation18 + $0x214] ss:$8 sps:$4 sm:$0xff]  }
 0x700   :  { %8447 = vmatprep.subr.bf16.mxu1 %v8446_v42  ;;  %8575 = vmatprep.subr.bf16.mxu0 %v8574_v19  ;;  %v8458_v42 = vpack.c.bf16 %v3807_v5, %v3803_v3  ;;  %v8586_v19 = vpack.c.bf16 %v3809_v26, %v3805_v37  ;;  %274 = vst [vmem:[#allocation5 + $0x8] sm:$0x11] %v273_v20  ;;  %v9176_v3 = vld [vmem:[#allocation18 + $0x210] ss:$8 sps:$4 sm:$0xff]   ;;  %v9181_v5 = vld [vmem:[#allocation18 + $0x224] ss:$8 sps:$4 sm:$0xff]  }
 0x701   :  { %v9179_v37 = vld [vmem:[#allocation18 + $0x220] ss:$8 sps:$4 sm:$0xff]   ;;  %v9184_v26 = vld [vmem:[#allocation18 + $0x234] ss:$8 sps:$4 sm:$0xff]  }
 0x702   :  { %v9220_v18 = vld [vmem:[#allocation18 + $0x2f4] ss:$8 sps:$4 sm:$0xff]  }
 0x703   :  { %8449 = vmatpush1.bf16.msra.mxu1 %v8448_v35  ;;  %8577 = vmatpush1.bf16.msra.mxu0 %v8576_v39  ;;  %v8460_v35 = vpack.c.bf16 %v3806_v12, %v3802_v8  ;;  %v8588_v39 = vpack.c.bf16 %v3808_v48, %v3804_v52  ;;  %v9185_v8 = vld [vmem:[#allocation18 + $0x240] ss:$8 sps:$4 sm:$0xff]   ;;  %v9190_v12 = vld [vmem:[#allocation18 + $0x254] ss:$8 sps:$4 sm:$0xff]  }
 0x704   :  { %8451 = vmatprep.subr.bf16.mxu1 %v8450_v57  ;;  %8579 = vmatprep.subr.bf16.mxu0 %v8578_v56  ;;  %v8590_v57 = vpack.c.bf16 %v3817_v22, %v3813_v33  ;;  %v3814_v56 = vld [vmem:[#allocation17 + $0x7e0] sm:$0xff]  ;;  %v9196_v48 = vld [vmem:[#allocation18 + $0x274] ss:$8 sps:$4 sm:$0xff]  }
 0x705   :  { %v8464_v9 = vpack.c.bf16 %v3814_v56, %v3810_v50  ;;  %v9191_v52 = vld [vmem:[#allocation18 + $0x260] ss:$8 sps:$4 sm:$0xff]   ;;  %v9202_v22 = vld [vmem:[#allocation18 + $0x294] ss:$8 sps:$4 sm:$0xff]   ;;  %v9211_v56 = vld [vmem:[#allocation18 + $0x2c4] ss:$8 sps:$4 sm:$0xff]  }
 0x706   :  { %v9197_v33 = vld [vmem:[#allocation18 + $0x280] ss:$8 sps:$4 sm:$0xff]  }
 0x707   :  { %8453 = vmatpush1.bf16.msra.mxu1 %v8452_v61  ;;  %8581 = vmatpush1.bf16.msra.mxu0 %v8580_v31  ;;  %v275_v61 = vld [vmem:[#allocation5 + $0x30] sm:$0x11]  ;;  %v270_v31 = vsel %vm10405_vm10, 0, %v269_v54 }
 0x708   :  { %8455 = vmatprep.subr.bf16.mxu1 %v8454_v14  ;;  %8583 = vmatprep.subr.bf16.mxu0 %v8582_v25  ;;  %v276_v11 = vsel %vm10405_vm10, 0, %v275_v61  ;;  %v278_v14 = vld [vmem:[#allocation5 + $0x38] sm:$0x11]  ;;  %271 = vst [vmem:[#allocation5] sm:$0x11] %v270_v31 }
 0x709   :  { %277 = vst [vmem:[#allocation5 + $0x30] sm:$0x11] %v276_v11  ;;  %v279_v25 = vsel %vm10405_vm10, 0, %v278_v14  ;;  %v9203_v50 = vld [vmem:[#allocation18 + $0x2a0] ss:$8 sps:$4 sm:$0xff]  }
 0x70a   :  { %280 = vst [vmem:[#allocation5 + $0x38] sm:$0x11] %v279_v25  ;;  %v9215_v54 = vld [vmem:[#allocation18 + $0x2e0] ss:$8 sps:$4 sm:$0xff]   ;;  %v9218_v61 = vld [vmem:[#allocation18 + $0x2f0] ss:$8 sps:$4 sm:$0xff]  }
 0x70b   :  { %8457 = vmatpush1.bf16.msra.mxu1 %v8456_v38  ;;  %8585 = vmatpush1.bf16.msra.mxu0 %v8584_v59  ;;  %v9182_v38 = vld [vmem:[#allocation18 + $0x230] ss:$8 sps:$4 sm:$0xff]   ;;  %v9187_v59 = vld [vmem:[#allocation18 + $0x244] ss:$8 sps:$4 sm:$0xff]  }
 0x70c   :  { %8459 = vmatprep.subr.bf16.mxu1 %v8458_v42  ;;  %8587 = vmatprep.subr.bf16.mxu0 %v8586_v19  ;;  %v9188_v42 = vld [vmem:[#allocation18 + $0x250] ss:$8 sps:$4 sm:$0xff]   ;;  %v9193_v19 = vld [vmem:[#allocation18 + $0x264] ss:$8 sps:$4 sm:$0xff]  }
 0x70d   :  { %v9223_v31 = vld [vmem:[#allocation18 + $0x304] ss:$8 sps:$4 sm:$0xff]  }
 0x70f   :  { %8461 = vmatpush1.bf16.msra.mxu1 %v8460_v35  ;;  %8589 = vmatpush1.bf16.msra.mxu0 %v8588_v39  ;;  %v9200_v35 = vld [vmem:[#allocation18 + $0x290] ss:$8 sps:$4 sm:$0xff]   ;;  %v9205_v39 = vld [vmem:[#allocation18 + $0x2a4] ss:$8 sps:$4 sm:$0xff]  }
 0x710   :  { %8463 = vmatprep.subr.bf16.mxu1 %v8462_v46  ;;  %8591 = vmatprep.subr.bf16.mxu0 %v8590_v57  ;;  %v9208_v46 = vld [vmem:[#allocation18 + $0x2b4] ss:$8 sps:$4 sm:$0xff]   ;;  %v9206_v57 = vld [vmem:[#allocation18 + $0x2b0] ss:$8 sps:$4 sm:$0xff]  }
 0x713   :  { %8465 = vmatpush1.bf16.msra.mxu1 %v8464_v9  ;;  %8593 = vmatpush1.bf16.msra.mxu0 %v8592_v17  ;;  %v9212_v9 = vld [vmem:[#allocation18 + $0x2d0] ss:$8 sps:$4 sm:$0xff]   ;;  %v9217_v17 = vld [vmem:[#allocation18 + $0x2e4] ss:$8 sps:$4 sm:$0xff]  }
 0x716   :  { %3954 = vmatmul.mubr.f32.vlgmr.msra.gmra.mrb[12].mxu1 %v10603_v47  ;;  %4096 = vmatmul.mubr.f32.vlgmr.msra.gmra.mrb[24].mxu0 %v10603_v47  ;;  %v9175_v47 = vld [vmem:[#allocation18 + $0x204] ss:$8 sps:$4 sm:$0xff]  }
 0x717   :  { %5059 = vmatprep.subr.bf16.mxu1 %v9175_v47 }
 0x718   :  { %5060 = vmatpush1.bf16.msra.mxu1 %v9173_v40 }
 0x719   :  { %5061 = vmatprep.subr.bf16.mxu1 %v9178_v28 }
 0x71c   :  { %5062 = vmatpush1.bf16.msra.mxu1 %v9176_v3 }
 0x71d   :  { %5063 = vmatprep.subr.bf16.mxu1 %v9181_v5 }
 0x720   :  { %5064 = vmatpush1.bf16.msra.mxu1 %v9179_v37 }
 0x721   :  { %5065 = vmatprep.subr.bf16.mxu1 %v9184_v26 }
 0x724   :  { %5066 = vmatpush1.bf16.msra.mxu1 %v9182_v38 }
 0x725   :  { %5067 = vmatprep.subr.bf16.mxu1 %v9187_v59 }
 0x728   :  { %5068 = vmatpush1.bf16.msra.mxu1 %v9185_v8 }
 0x729   :  { %5069 = vmatprep.subr.bf16.mxu1 %v9190_v12 }
 0x72c   :  { %5070 = vmatpush1.bf16.msra.mxu1 %v9188_v42 }
 0x72d   :  { %5071 = vmatprep.subr.bf16.mxu1 %v9193_v19 }
 0x730   :  { %5072 = vmatpush1.bf16.msra.mxu1 %v9191_v52 }
 0x731   :  { %5073 = vmatprep.subr.bf16.mxu1 %v9196_v48 }
 0x734   :  { %5074 = vmatpush1.bf16.msra.mxu1 %v9194_v30 }
 0x735   :  { %5075 = vmatprep.subr.bf16.mxu1 %v9199_v32 }
 0x738   :  { %5076 = vmatpush1.bf16.msra.mxu1 %v9197_v33 }
 0x739   :  { %5077 = vmatprep.subr.bf16.mxu1 %v9202_v22 }
 0x73c   :  { %5078 = vmatpush1.bf16.msra.mxu1 %v9200_v35 }
 0x73d   :  { %5079 = vmatprep.subr.bf16.mxu1 %v9205_v39 }
 0x740   :  { %5080 = vmatpush1.bf16.msra.mxu1 %v9203_v50 }
 0x741   :  { %5081 = vmatprep.subr.bf16.mxu1 %v9208_v46 }
 0x744   :  { %5082 = vmatpush1.bf16.msra.mxu1 %v9206_v57 }
 0x745   :  { %5083 = vmatprep.subr.bf16.mxu1 %v9211_v56 }
 0x748   :  { %5084 = vmatpush1.bf16.msra.mxu1 %v9209_v4 }
 0x749   :  { %5085 = vmatprep.subr.bf16.mxu1 %v9214_v6 }
 0x74c   :  { %5086 = vmatpush1.bf16.msra.mxu1 %v9212_v9 }
 0x74d   :  { %5087 = vmatprep.subr.bf16.mxu1 %v9217_v17 }
 0x750   :  { %5088 = vmatpush1.bf16.msra.mxu1 %v9215_v54  ;;  %v4126_v54 = vld [vmem:[%s11107_s11] sm:$0xf] }
 0x751   :  { %5089 = vmatprep.subr.bf16.mxu1 %v9220_v18 }
 0x754   :  { %5090 = vmatpush1.bf16.msra.mxu1 %v9218_v61  ;;  %v4177_v61 = vsub.s32 2, %v10260_v51 }
 0x755   :  { %5112 = vmatprep.subr.bf16.mxu1 %v9223_v31  ;;  %v4181_v31 = vsub.s32 3, %v10260_v51 }
 0x7e9   :  { %v3955_v20 = vpop.f32.mrb[12].mxu1  ;;  %v4097_v11 = vpop.f32.mrb[24].mxu0 }
 0x7ea   :  { %v4102_v14 = vmul.f32 0.001953125, %v3955_v20  ;;  %v4104_v25 = vmul.f32 0.001953125, %v4097_v11  ;;  %v3957_v47 = vpop.f32.mrb[13].mxu1  ;;  %v4099_v40 = vpop.f32.mrb[25].mxu0 }
 0x7eb   :  { %v4103_v28 = vmul.f32 0.001953125, %v3957_v47  ;;  %v4105_v3 = vmul.f32 0.001953125, %v4099_v40 }
 0x7ec   :  { %v4106_v5 = vmul.f32 %v4102_v14, %v4102_v14  ;;  %v4108_v37 = vmul.f32 %v4104_v25, %v4104_v25 }
 0x7ed   :  { %v4107_v26 = vmul.f32 %v4103_v28, %v4103_v28  ;;  %v4109_v38 = vmul.f32 %v4105_v3, %v4105_v3 }
 0x7ee   :  { %v4114_v59 = vrot.slane %v4106_v5, 7  ;;  %v4116_v8 = vrot.slane %v4108_v37, 7 }
 0x7ef   :  { %v4115_v12 = vrot.slane %v4107_v26, 7  ;;  %v4117_v42 = vrot.slane %v4109_v38, 7 }
 0x7f0   :  { %v4122_v19 = vsub.f32 %v4102_v14, %v4114_v59  ;;  %v4124_v52 = vsub.f32 %v4104_v25, %v4116_v8 }
 0x7f1   :  { %v4123_v48 = vsub.f32 %v4103_v28, %v4115_v12  ;;  %v4125_v30 = vsub.f32 %v4105_v3, %v4117_v42 }
 0x7f2   :  { %v4127_v32 = vadd.f32 1e-05, %v4122_v19  ;;  %v4129_v33 = vadd.f32 1e-05, %v4124_v52 }
 0x7f3   :  { %v4128_v22 = vadd.f32 1e-05, %v4123_v48  ;;  %v4130_v35 = vadd.f32 1e-05, %v4125_v30 }
 0x7f4   :  { %9515 = vrsqrt.f32 %v4127_v32 }
 0x7f5   :  { %9517 = vrsqrt.f32 %v4129_v33 }
 0x7f6   :  { %9519 = vrsqrt.f32 %v4128_v22 }
 0x7f7   :  { %9521 = vrsqrt.f32 %v4130_v35 }
 0x7fe   :  { %v9516_v39 = vpop.eup %9515 }
 0x7ff   :  { %v9518_v50 = vpop.eup %9517 }
 0x800   :  { %v9520_v46 = vpop.eup %9519 }
 0x801   :  { %v9522_v57 = vpop.eup %9521  ;;  %v4139_v56 = vcombine.low %v9516_v39, %v9520_v46 }
 0x802   :  { %v4140_v4 = vcombine.low %v9518_v50, %v9522_v57 }
 0x803   :  { %v4147_v6 = vrot.slane %v4139_v56, %v10263_v53 }
 0x804   :  { %v4154_v9 = vrot.slane %v4140_v4, %v10263_v53 }
 0x806   :  { %v4155_v17 = vcombine.high %v4147_v6, %v4154_v9 }
 0x808   :  { %v4162_v18 = vrot.slane %v4155_v17, %v10263_v53 }
 0x80a   :  { %v4164_v20 = vmul.f32 %v4162_v18, %v4126_v54 }
 0x80c   :  { %v4170_v11 = vrot.slane %v4164_v20, %v10271_v60  ;;  %v4174_v47 = vrot.slane %v4164_v20, %v10419_v0  ;;  %v4178_v40 = vrot.slane %v4164_v20, %v4177_v61  ;;  %v4182_v5 = vrot.slane %v4164_v20, %v4181_v31 }
 0x80e   :  { %v4187_v37 = vmul.f32 %v4170_v11, %v4102_v14  ;;  %v4188_v26 = vmul.f32 %v4174_v47, %v4103_v28  ;;  %v4189_v38 = vmul.f32 %v4178_v40, %v4104_v25  ;;  %v4190_v59 = vmul.f32 %v4182_v5, %v4105_v3 }
 0x80f   :  { %v4221_v8 = vmul.f32 %v4170_v11, %v10521_v16  ;;  %v4222_v12 = vmul.f32 %v4174_v47, %v10525_v1  ;;  %v4223_v42 = vmul.f32 %v4178_v40, %v10523_v29  ;;  %v4224_v19 = vmul.f32 %v4182_v5, %v10527_v2 }
 0x810   :  { %v4195_v51 = vcombine.low %v4187_v37, %v4188_v26  ;;  %v4196_v52 = vcombine.low %v4189_v38, %v4190_v59  ;;  %v4225_v48 = vmul.f32 %v4170_v11, %v10537_v10  ;;  %v4226_v30 = vmul.f32 %v4174_v47, %v10549_v44 }
 0x811   :  { %v4227_v32 = vmul.f32 %v4178_v40, %v10539_v41  ;;  %v4228_v14 = vmul.f32 %v4182_v5, %v10551_v45  ;;  %v4229_v25 = vmul.f32 %v4170_v11, %v10561_v43  ;;  %v4230_v16 = vmul.f32 %v4174_v47, %v10571_v55  ;;  %v4165_v43 = vld [vmem:[%s11108_s12] sm:$0xf] }
 0x812   :  { %v4203_v1 = vrot.slane %v4195_v51, %v10263_v53  ;;  %v4210_v29 = vrot.slane %v4196_v52, %v10263_v53  ;;  %v4231_v2 = vmul.f32 %v4178_v40, %v10563_v49  ;;  %v4232_v28 = vmul.f32 %v4182_v5, %v10573_v62 }
 0x813   :  { %v4233_v10 = vmul.f32 %v4170_v11, %v10581_v13  ;;  %v4234_v44 = vmul.f32 %v4174_v47, %v10588_v58  ;;  %v4235_v41 = vmul.f32 %v4178_v40, %v10583_v15  ;;  %v4236_v45 = vmul.f32 %v4182_v5, %v10590_v63 }
 0x814   :  { %v4211_v3 = vcombine.low %v4203_v1, %v4210_v29 }
 0x816   :  { %v4218_v55 = vrot.slane %v4211_v3, %v10263_v53 }
 0x818   :  { %v4220_v33 = vsub.f32 %v4165_v43, %v4218_v55 }
 0x81a   :  { %v4241_v49 = vrot.slane %v4220_v33, %v10271_v60  ;;  %v4245_v62 = vrot.slane %v4220_v33, %v10419_v0  ;;  %v4249_v22 = vrot.slane %v4220_v33, %v4177_v61  ;;  %v4253_v13 = vrot.slane %v4220_v33, %v4181_v31 }
 0x81c   :  { %v4258_v35 = vadd.f32 %v4241_v49, %v4221_v8  ;;  %v4259_v58 = vadd.f32 %v4245_v62, %v4222_v12  ;;  %v4260_v39 = vadd.f32 %v4249_v22, %v4223_v42  ;;  %v4261_v15 = vadd.f32 %v4253_v13, %v4224_v19 }
 0x81d   :  { %v4262_v50 = vadd.f32 %v4241_v49, %v4225_v48  ;;  %v4263_v63 = vadd.f32 %v4245_v62, %v4226_v30  ;;  %v4264_v46 = vadd.f32 %v4249_v22, %v4227_v32  ;;  %v4265_v57 = vadd.f32 %v4253_v13, %v4228_v14 }
 0x81e   :  { %v4266_v56 = vadd.f32 %v4241_v49, %v4229_v25  ;;  %v4267_v4 = vadd.f32 %v4245_v62, %v4230_v16  ;;  %v4268_v6 = vadd.f32 %v4249_v22, %v4231_v2  ;;  %v4269_v9 = vadd.f32 %v4253_v13, %v4232_v28 }
 0x81f   :  { %v4270_v17 = vadd.f32 %v4241_v49, %v4233_v10  ;;  %v4271_v54 = vadd.f32 %v4245_v62, %v4234_v44  ;;  %v4272_v18 = vadd.f32 %v4249_v22, %v4235_v41  ;;  %v4273_v20 = vadd.f32 %v4253_v13, %v4236_v45 }
 0x820   :  { %vm4274_vm0 = vcmp.ge.f32.partialorder %v4258_v35, 0.0  ;;  %vm4275_vm6 = vcmp.ge.f32.partialorder %v4259_v58, 0.0  ;;  %vm4276_vm8 = vcmp.ge.f32.partialorder %v4260_v39, 0.0  ;;  %vm4277_vm4 = vcmp.ge.f32.partialorder %v4261_v15, 0.0 }
 0x821   :  { %vm4278_vm12 = vcmp.ge.f32.partialorder %v4262_v50, 0.0  ;;  %vm4279_vm13 = vcmp.ge.f32.partialorder %v4263_v63, 0.0  ;;  %vm4280_vm5 = vcmp.ge.f32.partialorder %v4264_v46, 0.0  ;;  %vm4281_vm3 = vcmp.ge.f32.partialorder %v4265_v57, 0.0 }
 0x822   :  { %vm4282_vm9 = vcmp.ge.f32.partialorder %v4266_v56, 0.0  ;;  %vm4283_vm1 = vcmp.ge.f32.partialorder %v4267_v4, 0.0  ;;  %vm4284_vm2 = vcmp.ge.f32.partialorder %v4268_v6, 0.0  ;;  %vm4285_vm14 = vcmp.ge.f32.partialorder %v4269_v9, 0.0 }
 0x823   :  { %vm4286_vm15 = vcmp.ge.f32.partialorder %v4270_v17, 0.0  ;;  %vm4287_vm10 = vcmp.ge.f32.partialorder %v4271_v54, 0.0  ;;  %vm4288_vm11 = vcmp.ge.f32.partialorder %v4272_v18, 0.0  ;;  %vm4289_vm7 = vcmp.ge.f32.partialorder %v4273_v20, 0.0 }
 0x824   :  { %v4290_v61 = vmul.f32 0.01, %v4258_v35  ;;  %v4291_v31 = vmul.f32 0.01, %v4259_v58  ;;  %v4292_v11 = vmul.f32 0.01, %v4260_v39 }
 0x825   :  { %v4293_v47 = vmul.f32 0.01, %v4261_v15  ;;  %v4294_v40 = vmul.f32 0.01, %v4262_v50  ;;  %v4295_v5 = vmul.f32 0.01, %v4263_v63 }
 0x826   :  { %v4296_v37 = vmul.f32 0.01, %v4264_v46  ;;  %v4297_v26 = vmul.f32 0.01, %v4265_v57  ;;  %v4298_v38 = vmul.f32 0.01, %v4266_v56  ;;  %v4306_v59 = vsel %vm4274_vm0, %v4258_v35, %v4290_v61 }
 0x827   :  { %v4299_v8 = vmul.f32 0.01, %v4267_v4  ;;  %v4300_v12 = vmul.f32 0.01, %v4268_v6  ;;  %v4301_v42 = vmul.f32 0.01, %v4269_v9  ;;  %v4307_v19 = vsel %vm4275_vm6, %v4259_v58, %v4291_v31 }
 0x828   :  { %v4302_v51 = vmul.f32 0.01, %v4270_v17  ;;  %v4303_v52 = vmul.f32 0.01, %v4271_v54  ;;  %v4304_v48 = vmul.f32 0.01, %v4272_v18  ;;  %v4308_v30 = vsel %vm4276_vm8, %v4260_v39, %v4292_v11 }
 0x829   :  { %v4305_v32 = vmul.f32 0.01, %v4273_v20  ;;  %v4309_v14 = vsel %vm4277_vm4, %v4261_v15, %v4293_v47  ;;  %v4310_v25 = vsel %vm4278_vm12, %v4262_v50, %v4294_v40  ;;  %v4311_v16 = vsel %vm4279_vm13, %v4263_v63, %v4295_v5 }
 0x82a   :  { %v4312_v1 = vsel %vm4280_vm5, %v4264_v46, %v4296_v37  ;;  %v4313_v29 = vsel %vm4281_vm3, %v4265_v57, %v4297_v26  ;;  %v4314_v2 = vsel %vm4282_vm9, %v4266_v56, %v4298_v38  ;;  %v4315_v28 = vsel %vm4283_vm1, %v4267_v4, %v4299_v8 }
 0x82b   :  { %v4316_v10 = vsel %vm4284_vm2, %v4268_v6, %v4300_v12  ;;  %v4317_v44 = vsel %vm4285_vm14, %v4269_v9, %v4301_v42  ;;  %v4318_v41 = vsel %vm4286_vm15, %v4270_v17, %v4302_v51  ;;  %v4319_v45 = vsel %vm4287_vm10, %v4271_v54, %v4303_v52  ;;  %v4442_v42 = vld [vmem:[#allocation5] sm:$0xff] }
 0x82c   :  { %v4320_v3 = vsel %vm4288_vm11, %v4272_v18, %v4304_v48  ;;  %v4321_v43 = vsel %vm4289_vm7, %v4273_v20, %v4305_v32  ;;  %v8023_v55 = vpack.c.bf16 %v4307_v19, %v4306_v59  ;;  %v8024_v33 = vpack.c.bf16 %v4309_v14, %v4308_v30  ;;  %v4450_v19 = vld [vmem:[#allocation5 + $0x20] sm:$0x11]  ;;  %v4445_v32 = vld [vmem:[#allocation5 + $0x8] sm:$0xff] }
 0x82d   :  { %v8025_v49 = vpack.c.bf16 %v4311_v16, %v4310_v25  ;;  %v8026_v62 = vpack.c.bf16 %v4313_v29, %v4312_v1  ;;  %v8027_v22 = vpack.c.bf16 %v4315_v28, %v4314_v2  ;;  %v8028_v13 = vpack.c.bf16 %v4317_v44, %v4316_v10  ;;  %v4453_v14 = vld [vmem:[#allocation5 + $0x28] sm:$0x11]  ;;  %v4456_v2 = vld [vmem:[#allocation5 + $0x30] sm:$0xff]  ;;  %v4459_v28 = vld [vmem:[#allocation5 + $0x38] sm:$0xff] }
 0x82e   :  { %v8029_v35 = vpack.c.bf16 %v4319_v45, %v4318_v41  ;;  %v8030_v58 = vpack.c.bf16 %v4321_v43, %v4320_v3  ;;  %v4363_v39 = vshrl.u32 %v8023_v55, 16  ;;  %v4366_v15 = vshll.u32 %v8023_v55, 16 }
 0x82f   :  { %v4370_v50 = vshrl.u32 %v8024_v33, 16  ;;  %v4373_v63 = vshll.u32 %v8024_v33, 16  ;;  %v4378_v46 = vshrl.u32 %v8025_v49, 16  ;;  %v4381_v57 = vshll.u32 %v8025_v49, 16  ;;  %v4464_v49 = vld [vmem:[#allocation5 + $0x50] sm:$0x11] }
 0x830   :  { %v4365_v56 = vrot.slane %v4363_v39, 7  ;;  %v4387_v4 = vshrl.u32 %v8026_v62, 16  ;;  %v4390_v6 = vshll.u32 %v8026_v62, 16  ;;  %v4397_v9 = vshrl.u32 %v8027_v22, 16 }
 0x831   :  { %v4372_v17 = vrot.slane %v4370_v50, 7  ;;  %v4380_v54 = vrot.slane %v4378_v46, 7  ;;  %v4400_v18 = vshll.u32 %v8027_v22, 16  ;;  %v4404_v20 = vshrl.u32 %v8028_v13, 16 }
 0x832   :  { %v4368_v61 = vor.u32 %v4366_v15, %v4365_v56  ;;  %v4376_v31 = vrot.slane %v4365_v56, 4  ;;  %v4389_v11 = vrot.slane %v4387_v4, 7  ;;  %v4399_v47 = vrot.slane %v4397_v9, 7 }
 0x833   :  { %v4375_v40 = vor.u32 %v4373_v63, %v4372_v17  ;;  %v4383_v5 = vor.u32 %v4381_v57, %v4380_v54  ;;  %v4385_v37 = vrot.slane %v4372_v17, 4  ;;  %v4394_v26 = vrot.slane %v4380_v54, 4 }
 0x834   :  { %v4392_v38 = vor.u32 %v4390_v6, %v4389_v11  ;;  %v4395_v59 = vrot.slane %v4389_v11, 4  ;;  %v4402_v8 = vor.u32 %v4400_v18, %v4399_v47  ;;  %v4406_v12 = vrot.slane %v4404_v20, 7 }
 0x835   :  { %vm11177_vm7 = vnez %v11156_v23  ;;  %v4407_v52 = vshll.u32 %v8028_v13, 16  ;;  %v4410_v48 = vrot.slane %v4399_v47, 4  ;;  %v4412_v30 = vshrl.u32 %v8029_v35, 16 }
 0x836   :  { %v10669_v51 = vsel %vm11177_vm7, %v4376_v31, %v4383_v5  ;;  %v10673_v25 = vsel %vm11177_vm7, %v4385_v37, %v4392_v38  ;;  %v4415_v16 = vshll.u32 %v8029_v35, 16  ;;  %v4419_v1 = vrot.slane %v4406_v12, 4 }
 0x837   :  { %v4421_v29 = vshrl.u32 %v8030_v58, 16  ;;  %v4409_v10 = vor.u32 %v4407_v52, %v4406_v12  ;;  %v4414_v44 = vrot.slane %v4412_v30, 7  ;;  %v4424_v41 = vshll.u32 %v8030_v58, 16  ;;  %v4467_v58 = vld [vmem:[#allocation5 + $0x58] sm:$0x11] }
 0x838   :  { %vm11178_vm14 = vnez %v11176_v36  ;;  %vm11179_vm15 = vnez %v11174_v34  ;;  %v4556_v56 = vshll.u32 %v10669_v51, 16  ;;  %v4574_v4 = vshrl.u32 %v10669_v51, 16 }
 0x839   :  { %v10677_v45 = vsel %vm11178_vm14, %v4368_v61, %v4442_v42  ;;  %v4423_v3 = vrot.slane %v4421_v29, 7  ;;  %v10681_v43 = vsel %vm11178_vm14, %v4375_v40, %v4445_v32  ;;  %v4451_v55 = vsel %vm11179_vm15, %v4394_v26, %v4450_v19 }
 0x83a   :  { %v4454_v33 = vsel %vm11179_vm15, %v4395_v59, %v4453_v14  ;;  %4444 = vst [vmem:[#allocation5] sm:$0xff] %v10677_v45  ;;  %v4417_v62 = vor.u32 %v4415_v16, %v4414_v44  ;;  %v4428_v22 = vrot.slane %v4414_v44, 4  ;;  %v10690_v13 = vsel %vm11178_vm14, %v4402_v8, %v4456_v2  ;;  %4447 = vst [vmem:[#allocation5 + $0x8] sm:$0xff] %v10681_v43 }
 0x83b   :  { %v10694_v35 = vsel %vm11178_vm14, %v4409_v10, %v4459_v28  ;;  %4452 = vst [vmem:[#allocation5 + $0x20] sm:$0x11] %v4451_v55  ;;  %4455 = vst [vmem:[#allocation5 + $0x28] sm:$0x11] %v4454_v33  ;;  %v4426_v39 = vor.u32 %v4424_v41, %v4423_v3  ;;  %v4429_v15 = vrot.slane %v4423_v3, 4  ;;  %v4547_v50 = vshrl.u32 %v10677_v45, 16 }
 0x83c   :  { %4458 = vst [vmem:[#allocation5 + $0x30] sm:$0xff] %v10690_v13  ;;  %4461 = vst [vmem:[#allocation5 + $0x38] sm:$0xff] %v10694_v35  ;;  %v4550_v63 = vshll.u32 %v10677_v45, 16  ;;  %v10703_v46 = vsel %vm11177_vm7, %v4410_v48, %v4417_v62  ;;  %v4465_v57 = vsel %vm11179_vm15, %v4428_v22, %v4464_v49  ;;  %v4558_v18 = vrot.slane %v4556_v56, 5 }
 0x83d   :  { %v10711_v6 = vsel %vm11177_vm7, %v4419_v1, %v4426_v39  ;;  %v4468_v9 = vsel %vm11179_vm15, %v4429_v15, %v4467_v58  ;;  %4466 = vst [vmem:[#allocation5 + $0x50] sm:$0x11] %v4465_v57  ;;  %v4549_v17 = vrot.slane %v4547_v50, 4  ;;  %v4576_v20 = vrot.slane %v4574_v4, 4  ;;  %v9221_v4 = vld [vmem:[#allocation18 + $0x300] ss:$8 sps:$4 sm:$0xff]  }
 0x83e   :  { %v4552_v54 = vrot.slane %v4550_v63, 5  ;;  %4469 = vst [vmem:[#allocation5 + $0x58] sm:$0x11] %v4468_v9  ;;  %v4595_v61 = vshrl.u32 %v10690_v13, 16  ;;  %v4598_v31 = vshll.u32 %v10690_v13, 16  ;;  %v4604_v47 = vshll.u32 %v10703_v46, 16 }
 0x83f   :  { %v4622_v40 = vshrl.u32 %v10703_v46, 16  ;;  %v4561_v5 = vshrl.u32 %v10681_v43, 16  ;;  %v4577_v37 = vor.u32 %v4576_v20, %v4558_v18  ;;  %v4564_v59 = vshll.u32 %v10681_v43, 16 }
 0x840   :  { %v4553_v11 = vor.u32 %v4552_v54, %v4549_v17  ;;  %v4597_v26 = vrot.slane %v4595_v61, 4  ;;  %v4600_v38 = vrot.slane %v4598_v31, 5  ;;  %v4606_v42 = vrot.slane %v4604_v47, 5  ;;  %v9226_v54 = vld [vmem:[#allocation18 + $0x314] ss:$8 sps:$4 sm:$0xff]  }
 0x841   :  { %v4624_v19 = vrot.slane %v4622_v40, 4  ;;  %v4563_v52 = vrot.slane %v4561_v5, 4  ;;  %v4578_v48 = vrot.slane %v4577_v37, 4  ;;  %v4566_v16 = vrot.slane %v4564_v59, 5  ;;  %v5631_v37 = vld [vmem:[#allocation5] sm:$0xee] }
 0x842   :  { %v10721_v8 = vld [vmem:[#allocation5 + $0x20] sm:$0x11]  ;;  %v4554_v12 = vrot.slane %v4553_v11, 4  ;;  %v4601_v32 = vor.u32 %v4600_v38, %v4597_v26  ;;  %v10724_v14 = vld [vmem:[#allocation5 + $0x28] sm:$0x11]  ;;  %vm11180_vm2 = vnez %v11162_v24  ;;  %v4570_v2 = vshll.u32 %v10673_v25, 16 }
 0x843   :  { %v4580_v30 = vshll.u32 %v10721_v8, 16  ;;  %v4625_v29 = vor.u32 %v4624_v19, %v4606_v42  ;;  %v4584_v28 = vshrl.u32 %v10673_v25, 16  ;;  %v4567_v3 = vor.u32 %v4566_v16, %v4563_v52 }
 0x844   :  { %v4559_v1 = vsel %vm11180_vm2, %v4554_v12, %v4558_v18  ;;  %v10730_v44 = vld [vmem:[#allocation5 + $0x50] sm:$0x11]  ;;  %v4602_v41 = vrot.slane %v4601_v32, 4  ;;  %v4590_v55 = vshll.u32 %v10724_v14, 16  ;;  %v4572_v62 = vrot.slane %v4570_v2, 5 }
 0x845   :  { %v4582_v10 = vrot.slane %v4580_v30, 5  ;;  %v4626_v33 = vrot.slane %v4625_v29, 4  ;;  %v4628_v49 = vshll.u32 %v10730_v44, 16  ;;  %v4586_v22 = vrot.slane %v4584_v28, 4  ;;  %v10740_v63 = vld [vmem:[#allocation5 + $0x58] sm:$0x11] }
 0x846   :  { %v10738_v39 = vsel %vm11180_vm2, %v4602_v41, %v4606_v42  ;;  %v4568_v15 = vrot.slane %v4567_v3, 4  ;;  %v4592_v50 = vrot.slane %v4590_v55, 5  ;;  %v4609_v20 = vshrl.u32 %v10694_v35, 16  ;;  %v9224_v42 = vld [vmem:[#allocation18 + $0x310] ss:$8 sps:$4 sm:$0xff]  }
 0x847   :  { %v4583_v58 = vsel %vm11180_vm2, %v4578_v48, %v4582_v10  ;;  %v4630_v9 = vrot.slane %v4628_v49, 5  ;;  %v4587_v17 = vor.u32 %v4586_v22, %v4572_v62  ;;  %v4612_v61 = vshll.u32 %v10694_v35, 16  ;;  %v9229_v32 = vld [vmem:[#allocation18 + $0x324] ss:$8 sps:$4 sm:$0xff]  }
 0x848   :  { %v7725_v57 = vcombine.low %v4559_v1, %v4583_v58  ;;  %v7726_v56 = vcombine.high %v4559_v1, %v4583_v58  ;;  %v10744_v18 = vsel %vm11180_vm2, %v4568_v15, %v4572_v62  ;;  %v4618_v31 = vshll.u32 %v10711_v6, 16  ;;  %v5633_v55 = vld [vmem:[#allocation5 + $0x30] sm:$0xee] }
 0x849   :  { %v4631_v11 = vsel %vm11180_vm2, %v4626_v33, %v4630_v9  ;;  %v4588_v47 = vrot.slane %v4587_v17, 4  ;;  %v4632_v40 = vshrl.u32 %v10711_v6, 16  ;;  %v4638_v5 = vshll.u32 %v10740_v63, 16  ;;  %v9227_v58 = vld [vmem:[#allocation18 + $0x320] ss:$8 sps:$4 sm:$0xff]  }
 0x84a   :  { %5091 = vmatprep.mubr.bf16.mxu1 %v7726_v56  ;;  %v7730_v26 = vcombine.high %v10738_v39, %v4631_v11  ;;  %v7729_v38 = vcombine.low %v10738_v39, %v4631_v11  ;;  %v4611_v59 = vrot.slane %v4609_v20, 4  ;;  %v4614_v12 = vrot.slane %v4612_v61, 5  ;;  %v9232_v39 = vld [vmem:[#allocation18 + $0x334] ss:$8 sps:$4 sm:$0xff]   ;;  %v5632_v20 = vld [vmem:[#allocation5 + $0x8] sm:$0xee] }
 0x84b   :  { %5092 = vmatmul.mubr.bf16.vlgmr.msra.gmra.mrb[16].mxu1 %v7725_v57  ;;  %v10757_v19 = vsel %vm11180_vm2, %v4588_v47, %v4592_v50  ;;  %v4620_v52 = vrot.slane %v4618_v31, 5  ;;  %v4634_v48 = vrot.slane %v4632_v40, 4  ;;  %v4640_v30 = vrot.slane %v4638_v5, 5 }
 0x84c   :  { %5113 = vmatpush1.bf16.msra.mxu1 %v9221_v4  ;;  %5101 = vmatprep.mubr.bf16.mxu1 %v7730_v26  ;;  %v7727_v16 = vcombine.low %v10744_v18, %v10757_v19  ;;  %v7728_v1 = vcombine.high %v10744_v18, %v10757_v19  ;;  %v4615_v29 = vor.u32 %v4614_v12, %v4611_v59  ;;  %v7869_v2 = vrot.slane %v5631_v37, 9  ;;  %v9230_v26 = vld [vmem:[#allocation18 + $0x330] ss:$8 sps:$4 sm:$0xff]   ;;  %v9283_v19 = vld [vmem:[#allocation18 + $0x44] ss:$8 sps:$4 sm:$0xff]  }
 0x84d   :  { %5114 = vmatprep.subr.bf16.mxu1 %v9226_v54  ;;  %v4635_v28 = vor.u32 %v4634_v48, %v4620_v52  ;;  %v7798_v10 = vcombine.high %v10677_v45, %v10669_v51  ;;  %v7797_v41 = vcombine.low %v10677_v45, %v10669_v51  ;;  %v7802_v3 = vcombine.high %v10690_v13, %v10703_v46  ;;  %v5634_v12 = vld [vmem:[#allocation5 + $0x38] sm:$0xee]  ;;  %v9331_v45 = vld [vmem:[#allocation18 + $0x144] ss:$8 sps:$4 sm:$0xff]  }
 0x84e   :  { %v4616_v33 = vrot.slane %v4615_v29, 4  ;;  %v7801_v49 = vcombine.low %v10690_v13, %v10703_v46  ;;  %v7800_v62 = vcombine.high %v10681_v43, %v10673_v25  ;;  %v7799_v22 = vcombine.low %v10681_v43, %v10673_v25  ;;  %v9278_v18 = vld [vmem:[#allocation18 + $0x30] ss:$8 sps:$4 sm:$0xff]   ;;  %v9340_v13 = vld [vmem:[#allocation18 + $0x174] ss:$8 sps:$4 sm:$0xff]  }
 0x84f   :  { %v4636_v15 = vrot.slane %v4635_v28, 4  ;;  %v7804_v50 = vcombine.high %v10694_v35, %v10711_v6  ;;  %v7803_v57 = vcombine.low %v10694_v35, %v10711_v6  ;;  %v5645_v56 = vrot.slane %v10669_v51, 5  ;;  %v9326_v51 = vld [vmem:[#allocation18 + $0x130] ss:$8 sps:$4 sm:$0xff]   ;;  %v6257_v35 = vld [vmem:[#allocation20 + $0x48] sm:$0xff] }
 0x850   :  { %5115 = vmatpush1.bf16.msra.mxu1 %v9224_v42  ;;  %v10782_v4 = vsel %vm11180_vm2, %v4616_v33, %v4620_v52  ;;  %v5652_v9 = vrot.slane %v10721_v8, 5  ;;  %v7871_v17 = vrot.slane %v5633_v55, 9  ;;  %v5659_v54 = vrot.slane %v10703_v46, 5  ;;  %v9235_v42 = vld [vmem:[#allocation18 + $0x344] ss:$8 sps:$4 sm:$0xff]   ;;  %v6251_v43 = vld [vmem:[#allocation20 + $0x18] sm:$0xff] }
 0x851   :  { %5116 = vmatprep.subr.bf16.mxu1 %v9229_v32  ;;  %v10788_v61 = vsel %vm11180_vm2, %v4636_v15, %v4640_v30  ;;  %vm11181_vm10 = vnez %v11160_v21  ;;  %v5651_v11 = vrot.slane %v5645_v56, 4  ;;  %v5666_v47 = vrot.slane %v10730_v44, 5  ;;  %v9238_v15 = vld [vmem:[#allocation18 + $0x354] ss:$8 sps:$4 sm:$0xff]   ;;  %v9338_v46 = vld [vmem:[#allocation18 + $0x170] ss:$8 sps:$4 sm:$0xff]  }
 0x852   :  { %v10792_v31 = vsel %vm11181_vm10, %v7869_v2, %v5645_v56  ;;  %v7732_v40 = vcombine.high %v10782_v4, %v10788_v61  ;;  %v7731_v8 = vcombine.low %v10782_v4, %v10788_v61  ;;  %v10801_v5 = vsel %vm11181_vm10, %v7871_v17, %v5659_v54  ;;  %v9292_v4 = vld [vmem:[#allocation18 + $0x74] ss:$8 sps:$4 sm:$0xff]   ;;  %v9290_v61 = vld [vmem:[#allocation18 + $0x70] ss:$8 sps:$4 sm:$0xff]   ;;  %v9504_v21 = vld [vmem:[#allocation21 + $0x128] sm:$0xff]  }
 0x853   :  { %5102 = vmatmul.mubr.bf16.gmra.mrb[20].mxu1 %v7729_v38  ;;  %v5665_v37 = vrot.slane %v5659_v54, 4  ;;  %v10805_v59 = vsel %vm11181_vm10, %v5651_v11, %v5652_v9  ;;  %v7870_v44 = vrot.slane %v5632_v20, 9  ;;  %v5649_v38 = vrot.slane %v10673_v25, 5  ;;  %v9236_v20 = vld [vmem:[#allocation18 + $0x350] ss:$8 sps:$4 sm:$0xff]   ;;  %v6249_v25 = vld [vmem:[#allocation20 + $0x8] sm:$0xff] }
 0x854   :  { %5117 = vmatpush1.bf16.msra.mxu1 %v9227_v58  ;;  %5144 = vmatprep.mubr.bf16.mxu1 %v7728_v1  ;;  %v7873_v52 = vcombine.low %v10792_v31, %v10805_v59  ;;  %v7874_v48 = vcombine.high %v10792_v31, %v10805_v59  ;;  %v5655_v32 = vrot.slane %v10724_v14, 5  ;;  %v7872_v55 = vrot.slane %v5634_v12, 9  ;;  %v9247_v12 = vld [vmem:[#allocation18 + $0x384] ss:$8 sps:$4 sm:$0xff]   ;;  %v9422_v31 = vld [vmem:[#allocation18 + $0x530] ss:$8 sps:$4 sm:$0xff]  }
 0x855   :  { %5118 = vmatprep.subr.bf16.mxu1 %v9232_v39  ;;  %v10814_v30 = vsel %vm11181_vm10, %v5665_v37, %v5666_v47  ;;  %v10823_v2 = vsel %vm11181_vm10, %v7870_v44, %v5649_v38  ;;  %v5654_v28 = vrot.slane %v5649_v38, 4  ;;  %v5663_v33 = vrot.slane %v10711_v6, 5  ;;  %v9233_v39 = vld [vmem:[#allocation18 + $0x340] ss:$8 sps:$4 sm:$0xff]   ;;  %v9241_v37 = vld [vmem:[#allocation18 + $0x364] ss:$8 sps:$4 sm:$0xff]  }
 0x856   :  { %v7878_v1 = vcombine.high %v10801_v5, %v10814_v30  ;;  %v7877_v29 = vcombine.low %v10801_v5, %v10814_v30  ;;  %v5669_v58 = vrot.slane %v10740_v63, 5  ;;  %v9244_v44 = vld [vmem:[#allocation18 + $0x374] ss:$8 sps:$4 sm:$0xff]   ;;  %v9242_v38 = vld [vmem:[#allocation18 + $0x370] ss:$8 sps:$4 sm:$0xff]   ;;  %vm11182_vm11 = vcmask 1040384  }
 0x857   :  { %v10829_v14 = vsel %vm11181_vm10, %v5654_v28, %v5655_v32  ;;  %v10837_v17 = vsel %vm11181_vm10, %v7872_v55, %v5663_v33  ;;  %v5668_v54 = vrot.slane %v5663_v33, 4  ;;  %v9250_v32 = vld [vmem:[#allocation18 + $0x394] ss:$8 sps:$4 sm:$0xff]   ;;  %v9248_v28 = vld [vmem:[#allocation18 + $0x390] ss:$8 sps:$4 sm:$0xff]   ;;  %vm11183_vm0 = vmmov %vm11182_vm11  ;;  %vm11184_vm1 = vmmov 0  }
 0x858   :  { %5119 = vmatpush1.bf16.msra.mxu1 %v9230_v26  ;;  %v7875_v56 = vcombine.low %v10823_v2, %v10829_v14  ;;  %v7876_v9 = vcombine.high %v10823_v2, %v10829_v14  ;;  %v9239_v26 = vld [vmem:[#allocation18 + $0x360] ss:$8 sps:$4 sm:$0xff]   ;;  %v9253_v55 = vld [vmem:[#allocation18 + $0x3a4] ss:$8 sps:$4 sm:$0xff]   ;;  %v6259_v6 = vld [vmem:[#allocation20 + $0x58] sm:$0xff] }
 0x859   :  { %5120 = vmatprep.subr.bf16.mxu1 %v9235_v42  ;;  %v10841_v63 = vsel %vm11181_vm10, %v5668_v54, %v5669_v58  ;;  %v9245_v42 = vld [vmem:[#allocation18 + $0x380] ss:$8 sps:$4 sm:$0xff]   ;;  %v9256_v58 = vld [vmem:[#allocation18 + $0x3b4] ss:$8 sps:$4 sm:$0xff]   ;;  %v9427_v59 = vld [vmem:[#allocation18 + $0x544] ss:$8 sps:$4 sm:$0xff]  }
 0x85a   :  { %v7880_v11 = vcombine.high %v10837_v17, %v10841_v63  ;;  %v7879_v47 = vcombine.low %v10837_v17, %v10841_v63  ;;  %v9251_v33 = vld [vmem:[#allocation18 + $0x3a0] ss:$8 sps:$4 sm:$0xff]   ;;  %v9436_v5 = vld [vmem:[#allocation18 + $0x574] ss:$8 sps:$4 sm:$0xff]   ;;  %v9434_v30 = vld [vmem:[#allocation18 + $0x570] ss:$8 sps:$4 sm:$0xff]  }
 0x85b   :  { %v9257_v54 = vld [vmem:[#allocation18 + $0x3c0] ss:$8 sps:$4 sm:$0xff]  }
 0x85c   :  { %5121 = vmatpush1.bf16.msra.mxu1 %v9233_v39  ;;  %v9254_v39 = vld [vmem:[#allocation18 + $0x3b0] ss:$8 sps:$4 sm:$0xff]   ;;  %v6292_v63 = vld [vmem:[#allocation20 + $0x160] sm:$0xff] }
 0x85d   :  { %5122 = vmatprep.subr.bf16.mxu1 %v9238_v15  ;;  %v9259_v15 = vld [vmem:[#allocation18 + $0x3c4] ss:$8 sps:$4 sm:$0xff]  }
 0x860   :  { %5123 = vmatpush1.bf16.msra.mxu1 %v9236_v20  ;;  %v9262_v20 = vld [vmem:[#allocation18 + $0x3d4] ss:$8 sps:$4 sm:$0xff]  }
 0x861   :  { %5124 = vmatprep.subr.bf16.mxu1 %v9241_v37  ;;  %v9260_v37 = vld [vmem:[#allocation18 + $0x3d0] ss:$8 sps:$4 sm:$0xff]  }
 0x864   :  { %5125 = vmatpush1.bf16.msra.mxu1 %v9239_v26  ;;  %v9265_v26 = vld [vmem:[#allocation18 + $0x3e4] ss:$8 sps:$4 sm:$0xff]  }
 0x865   :  { %5126 = vmatprep.subr.bf16.mxu1 %v9244_v44  ;;  %v9263_v44 = vld [vmem:[#allocation18 + $0x3e0] ss:$8 sps:$4 sm:$0xff]  }
 0x868   :  { %5127 = vmatpush1.bf16.msra.mxu1 %v9242_v38  ;;  %v9268_v38 = vld [vmem:[#allocation18 + $0x3f4] ss:$8 sps:$4 sm:$0xff]  }
 0x869   :  { %5128 = vmatprep.subr.bf16.mxu1 %v9247_v12  ;;  %v9266_v12 = vld [vmem:[#allocation18 + $0x3f0] ss:$8 sps:$4 sm:$0xff]  }
 0x86c   :  { %5129 = vmatpush1.bf16.msra.mxu1 %v9245_v42  ;;  %v9271_v42 = vld [vmem:[#allocation18 + $0x4] ss:$8 sps:$4 sm:$0xff]  }
 0x86d   :  { %5130 = vmatprep.subr.bf16.mxu1 %v9250_v32  ;;  %v9269_v32 = vld [vmem:[#allocation18] ss:$8 sps:$4 sm:$0xff]  }
 0x870   :  { %5131 = vmatpush1.bf16.msra.mxu1 %v9248_v28  ;;  %v9274_v28 = vld [vmem:[#allocation18 + $0x14] ss:$8 sps:$4 sm:$0xff]  }
 0x871   :  { %5132 = vmatprep.subr.bf16.mxu1 %v9253_v55  ;;  %v9272_v55 = vld [vmem:[#allocation18 + $0x10] ss:$8 sps:$4 sm:$0xff]  }
 0x874   :  { %5133 = vmatpush1.bf16.msra.mxu1 %v9251_v33  ;;  %v9277_v33 = vld [vmem:[#allocation18 + $0x24] ss:$8 sps:$4 sm:$0xff]  }
 0x875   :  { %5134 = vmatprep.subr.bf16.mxu1 %v9256_v58  ;;  %v9275_v58 = vld [vmem:[#allocation18 + $0x20] ss:$8 sps:$4 sm:$0xff]  }
 0x878   :  { %5135 = vmatpush1.bf16.msra.mxu1 %v9254_v39  ;;  %v9280_v39 = vld [vmem:[#allocation18 + $0x34] ss:$8 sps:$4 sm:$0xff]  }
 0x879   :  { %5136 = vmatprep.subr.bf16.mxu1 %v9259_v15  ;;  %v9284_v15 = vld [vmem:[#allocation18 + $0x50] ss:$8 sps:$4 sm:$0xff]  }
 0x87c   :  { %5137 = vmatpush1.bf16.msra.mxu1 %v9257_v54  ;;  %v9289_v54 = vld [vmem:[#allocation18 + $0x64] ss:$8 sps:$4 sm:$0xff]  }
 0x87d   :  { %5138 = vmatprep.subr.bf16.mxu1 %v9262_v20  ;;  %v9287_v20 = vld [vmem:[#allocation18 + $0x60] ss:$8 sps:$4 sm:$0xff]  }
 0x880   :  { %5139 = vmatpush1.bf16.msra.mxu1 %v9260_v37  ;;  %v9298_v37 = vld [vmem:[#allocation18 + $0x94] ss:$8 sps:$4 sm:$0xff]  }
 0x881   :  { %5140 = vmatprep.subr.bf16.mxu1 %v9265_v26  ;;  %v9296_v26 = vld [vmem:[#allocation18 + $0x90] ss:$8 sps:$4 sm:$0xff]  }
 0x884   :  { %5141 = vmatpush1.bf16.msra.mxu1 %v9263_v44  ;;  %v9301_v44 = vld [vmem:[#allocation18 + $0xa4] ss:$8 sps:$4 sm:$0xff]  }
 0x885   :  { %5142 = vmatprep.subr.bf16.mxu1 %v9268_v38  ;;  %v9299_v38 = vld [vmem:[#allocation18 + $0xa0] ss:$8 sps:$4 sm:$0xff]  }
 0x888   :  { %5143 = vmatpush1.bf16.msra.mxu1 %v9266_v12  ;;  %v9304_v12 = vld [vmem:[#allocation18 + $0xb4] ss:$8 sps:$4 sm:$0xff]  }
 0x889   :  { %5525 = vmatprep.subr.bf16.mxu1 %v9271_v42  ;;  %v9302_v42 = vld [vmem:[#allocation18 + $0xb0] ss:$8 sps:$4 sm:$0xff]  }
 0x88b   :  { %5145 = vmatmul.mubr.bf16.vlgmr.msra.gmra.mrb[16].mxu1 %v7727_v16  ;;  %v9281_v16 = vld [vmem:[#allocation18 + $0x40] ss:$8 sps:$4 sm:$0xff]  }
 0x88c   :  { %5154 = vmatprep.mubr.bf16.mxu1 %v7732_v40  ;;  %5526 = vmatpush1.bf16.msra.mxu1 %v9269_v32  ;;  %v9286_v40 = vld [vmem:[#allocation18 + $0x54] ss:$8 sps:$4 sm:$0xff]   ;;  %v9307_v32 = vld [vmem:[#allocation18 + $0xc4] ss:$8 sps:$4 sm:$0xff]  }
 0x88d   :  { %5527 = vmatprep.subr.bf16.mxu1 %v9274_v28  ;;  %v9305_v28 = vld [vmem:[#allocation18 + $0xc0] ss:$8 sps:$4 sm:$0xff]  }
 0x890   :  { %5528 = vmatpush1.bf16.msra.mxu1 %v9272_v55  ;;  %v9310_v55 = vld [vmem:[#allocation18 + $0xd4] ss:$8 sps:$4 sm:$0xff]  }
 0x891   :  { %5529 = vmatprep.subr.bf16.mxu1 %v9277_v33  ;;  %v9308_v33 = vld [vmem:[#allocation18 + $0xd0] ss:$8 sps:$4 sm:$0xff]  }
 0x893   :  { %5155 = vmatmul.mubr.bf16.gmra.mrb[20].mxu1 %v7731_v8  ;;  %v9295_v8 = vld [vmem:[#allocation18 + $0x84] ss:$8 sps:$4 sm:$0xff]  }
 0x894   :  { %5530 = vmatpush1.bf16.msra.mxu1 %v9275_v58  ;;  %5557 = vmatprep.mubr.bf16.mxu1 %v7798_v10  ;;  %v9293_v10 = vld [vmem:[#allocation18 + $0x80] ss:$8 sps:$4 sm:$0xff]   ;;  %v9313_v58 = vld [vmem:[#allocation18 + $0xe4] ss:$8 sps:$4 sm:$0xff]  }
 0x895   :  { %5531 = vmatprep.subr.bf16.mxu1 %v9280_v39  ;;  %v9311_v39 = vld [vmem:[#allocation18 + $0xe0] ss:$8 sps:$4 sm:$0xff]  }
 0x898   :  { %5532 = vmatpush1.bf16.msra.mxu1 %v9278_v18  ;;  %v9316_v18 = vld [vmem:[#allocation18 + $0xf4] ss:$8 sps:$4 sm:$0xff]  }
 0x899   :  { %5533 = vmatprep.subr.bf16.mxu1 %v9283_v19  ;;  %v9314_v19 = vld [vmem:[#allocation18 + $0xf0] ss:$8 sps:$4 sm:$0xff]  }
 0x89c   :  { %5534 = vmatpush1.bf16.msra.mxu1 %v9281_v16  ;;  %v9319_v16 = vld [vmem:[#allocation18 + $0x104] ss:$8 sps:$4 sm:$0xff]  }
 0x89d   :  { %5535 = vmatprep.subr.bf16.mxu1 %v9286_v40  ;;  %v9317_v40 = vld [vmem:[#allocation18 + $0x100] ss:$8 sps:$4 sm:$0xff]  }
 0x8a0   :  { %5536 = vmatpush1.bf16.msra.mxu1 %v9284_v15  ;;  %v9322_v15 = vld [vmem:[#allocation18 + $0x114] ss:$8 sps:$4 sm:$0xff]  }
 0x8a1   :  { %5537 = vmatprep.subr.bf16.mxu1 %v9289_v54  ;;  %v9320_v54 = vld [vmem:[#allocation18 + $0x110] ss:$8 sps:$4 sm:$0xff]  }
 0x8a4   :  { %5538 = vmatpush1.bf16.msra.mxu1 %v9287_v20  ;;  %v9325_v20 = vld [vmem:[#allocation18 + $0x124] ss:$8 sps:$4 sm:$0xff]  }
 0x8a5   :  { %5539 = vmatprep.subr.bf16.mxu1 %v9292_v4  ;;  %v9323_v4 = vld [vmem:[#allocation18 + $0x120] ss:$8 sps:$4 sm:$0xff]  }
 0x8a8   :  { %5540 = vmatpush1.bf16.msra.mxu1 %v9290_v61  ;;  %v9328_v61 = vld [vmem:[#allocation18 + $0x134] ss:$8 sps:$4 sm:$0xff]  }
 0x8a9   :  { %5541 = vmatprep.subr.bf16.mxu1 %v9295_v8  ;;  %v9332_v8 = vld [vmem:[#allocation18 + $0x150] ss:$8 sps:$4 sm:$0xff]  }
 0x8ac   :  { %5542 = vmatpush1.bf16.msra.mxu1 %v9293_v10  ;;  %v9337_v10 = vld [vmem:[#allocation18 + $0x164] ss:$8 sps:$4 sm:$0xff]  }
 0x8ad   :  { %5543 = vmatprep.subr.bf16.mxu1 %v9298_v37  ;;  %v9335_v37 = vld [vmem:[#allocation18 + $0x160] ss:$8 sps:$4 sm:$0xff]  }
 0x8b0   :  { %5544 = vmatpush1.bf16.msra.mxu1 %v9296_v26  ;;  %v9346_v26 = vld [vmem:[#allocation18 + $0x194] ss:$8 sps:$4 sm:$0xff]  }
 0x8b1   :  { %5545 = vmatprep.subr.bf16.mxu1 %v9301_v44  ;;  %v9344_v44 = vld [vmem:[#allocation18 + $0x190] ss:$8 sps:$4 sm:$0xff]  }
 0x8b4   :  { %5546 = vmatpush1.bf16.msra.mxu1 %v9299_v38  ;;  %v9349_v38 = vld [vmem:[#allocation18 + $0x1a4] ss:$8 sps:$4 sm:$0xff]  }
 0x8b5   :  { %5547 = vmatprep.subr.bf16.mxu1 %v9304_v12  ;;  %v9347_v12 = vld [vmem:[#allocation18 + $0x1a0] ss:$8 sps:$4 sm:$0xff]  }
 0x8b8   :  { %5548 = vmatpush1.bf16.msra.mxu1 %v9302_v42  ;;  %v9352_v42 = vld [vmem:[#allocation18 + $0x1b4] ss:$8 sps:$4 sm:$0xff]  }
 0x8b9   :  { %5549 = vmatprep.subr.bf16.mxu1 %v9307_v32  ;;  %v9350_v32 = vld [vmem:[#allocation18 + $0x1b0] ss:$8 sps:$4 sm:$0xff]  }
 0x8bc   :  { %5550 = vmatpush1.bf16.msra.mxu1 %v9305_v28  ;;  %v9355_v28 = vld [vmem:[#allocation18 + $0x1c4] ss:$8 sps:$4 sm:$0xff]  }
 0x8bd   :  { %5551 = vmatprep.subr.bf16.mxu1 %v9310_v55  ;;  %v9353_v55 = vld [vmem:[#allocation18 + $0x1c0] ss:$8 sps:$4 sm:$0xff]  }
 0x8c0   :  { %5552 = vmatpush1.bf16.msra.mxu1 %v9308_v33  ;;  %v9358_v33 = vld [vmem:[#allocation18 + $0x1d4] ss:$8 sps:$4 sm:$0xff]  }
 0x8c1   :  { %5553 = vmatprep.subr.bf16.mxu1 %v9313_v58  ;;  %v9356_v58 = vld [vmem:[#allocation18 + $0x1d0] ss:$8 sps:$4 sm:$0xff]  }
 0x8c4   :  { %5554 = vmatpush1.bf16.msra.mxu1 %v9311_v39  ;;  %v9361_v39 = vld [vmem:[#allocation18 + $0x1e4] ss:$8 sps:$4 sm:$0xff]  }
 0x8c5   :  { %5555 = vmatprep.subr.bf16.mxu1 %v9316_v18  ;;  %v9359_v18 = vld [vmem:[#allocation18 + $0x1e0] ss:$8 sps:$4 sm:$0xff]  }
 0x8c8   :  { %5556 = vmatpush1.bf16.msra.mxu1 %v9314_v19  ;;  %v9364_v19 = vld [vmem:[#allocation18 + $0x1f4] ss:$8 sps:$4 sm:$0xff]  }
 0x8c9   :  { %5578 = vmatprep.subr.bf16.mxu1 %v9319_v16  ;;  %v9362_v16 = vld [vmem:[#allocation18 + $0x1f0] ss:$8 sps:$4 sm:$0xff]  }
 0x8cb   :  { %5558 = vmatmul.mubr.bf16.vlgmr.msra.gmra.mrb[16].mxu1 %v7797_v41  ;;  %v9329_v41 = vld [vmem:[#allocation18 + $0x140] ss:$8 sps:$4 sm:$0xff]  }
 0x8cc   :  { %5567 = vmatprep.mubr.bf16.mxu1 %v7802_v3  ;;  %5579 = vmatpush1.bf16.msra.mxu1 %v9317_v40  ;;  %v9334_v3 = vld [vmem:[#allocation18 + $0x154] ss:$8 sps:$4 sm:$0xff]   ;;  %v9367_v40 = vld [vmem:[#allocation18 + $0x404] ss:$8 sps:$4 sm:$0xff]  }
 0x8cd   :  { %5580 = vmatprep.subr.bf16.mxu1 %v9322_v15  ;;  %v9365_v15 = vld [vmem:[#allocation18 + $0x400] ss:$8 sps:$4 sm:$0xff]  }
 0x8d0   :  { %5581 = vmatpush1.bf16.msra.mxu1 %v9320_v54  ;;  %v9370_v54 = vld [vmem:[#allocation18 + $0x414] ss:$8 sps:$4 sm:$0xff]  }
 0x8d1   :  { %5582 = vmatprep.subr.bf16.mxu1 %v9325_v20  ;;  %v9368_v20 = vld [vmem:[#allocation18 + $0x410] ss:$8 sps:$4 sm:$0xff]  }
 0x8d3   :  { %5568 = vmatmul.mubr.bf16.gmra.mrb[20].mxu1 %v7801_v49  ;;  %v9343_v49 = vld [vmem:[#allocation18 + $0x184] ss:$8 sps:$4 sm:$0xff]  }
 0x8d4   :  { %5583 = vmatpush1.bf16.msra.mxu1 %v9323_v4  ;;  %5610 = vmatprep.mubr.bf16.mxu1 %v7800_v62  ;;  %v9341_v62 = vld [vmem:[#allocation18 + $0x180] ss:$8 sps:$4 sm:$0xff]   ;;  %v9373_v4 = vld [vmem:[#allocation18 + $0x424] ss:$8 sps:$4 sm:$0xff]  }
 0x8d5   :  { %5584 = vmatprep.subr.bf16.mxu1 %v9328_v61  ;;  %v9371_v61 = vld [vmem:[#allocation18 + $0x420] ss:$8 sps:$4 sm:$0xff]  }
 0x8d8   :  { %5585 = vmatpush1.bf16.msra.mxu1 %v9326_v51  ;;  %v9376_v51 = vld [vmem:[#allocation18 + $0x434] ss:$8 sps:$4 sm:$0xff]  }
 0x8d9   :  { %5586 = vmatprep.subr.bf16.mxu1 %v9331_v45  ;;  %v9374_v45 = vld [vmem:[#allocation18 + $0x430] ss:$8 sps:$4 sm:$0xff]  }
 0x8dc   :  { %5587 = vmatpush1.bf16.msra.mxu1 %v9329_v41  ;;  %v9379_v41 = vld [vmem:[#allocation18 + $0x444] ss:$8 sps:$4 sm:$0xff]  }
 0x8dd   :  { %5588 = vmatprep.subr.bf16.mxu1 %v9334_v3  ;;  %v6250_v3 = vld [vmem:[#allocation20 + $0x10] sm:$0xff] }
 0x8e0   :  { %5589 = vmatpush1.bf16.msra.mxu1 %v9332_v8  ;;  %v6253_v8 = vld [vmem:[#allocation20 + $0x28] sm:$0xff] }
 0x8e1   :  { %5590 = vmatprep.subr.bf16.mxu1 %v9337_v10  ;;  %v6255_v10 = vld [vmem:[#allocation20 + $0x38] sm:$0xff] }
 0x8e4   :  { %5591 = vmatpush1.bf16.msra.mxu1 %v9335_v37 }
 0x8e5   :  { %5592 = vmatprep.subr.bf16.mxu1 %v9340_v13  ;;  %v8598_v13 = vpack.c.bf16 %v6255_v10, %v6253_v8  ;;  %v6275_v8 = vld [vmem:[#allocation20 + $0xd8] sm:$0xff] }
 0x8e8   :  { %5593 = vmatpush1.bf16.msra.mxu1 %v9338_v46  ;;  %v6252_v46 = vld [vmem:[#allocation20 + $0x20] sm:$0xff] }
 0x8e9   :  { %5594 = vmatprep.subr.bf16.mxu1 %v9343_v49  ;;  %v6254_v49 = vld [vmem:[#allocation20 + $0x30] sm:$0xff] }
 0x8ec   :  { %5595 = vmatpush1.bf16.msra.mxu1 %v9341_v62  ;;  %v9377_v62 = vld [vmem:[#allocation18 + $0x440] ss:$8 sps:$4 sm:$0xff]  }
 0x8ed   :  { %5596 = vmatprep.subr.bf16.mxu1 %v9346_v26  ;;  %v8602_v26 = vpack.c.bf16 %v6259_v6, %v6257_v35  ;;  %v9394_v35 = vld [vmem:[#allocation18 + $0x494] ss:$8 sps:$4 sm:$0xff]   ;;  %v6277_v6 = vld [vmem:[#allocation20 + $0xe8] sm:$0xff] }
 0x8f0   :  { %5597 = vmatpush1.bf16.msra.mxu1 %v9344_v44  ;;  %v6256_v44 = vld [vmem:[#allocation20 + $0x40] sm:$0xff] }
 0x8f1   :  { %5598 = vmatprep.subr.bf16.mxu1 %v9349_v38  ;;  %v9382_v38 = vld [vmem:[#allocation18 + $0x454] ss:$8 sps:$4 sm:$0xff]  }
 0x8f4   :  { %5599 = vmatpush1.bf16.msra.mxu1 %v9347_v12  ;;  %v6261_v12 = vld [vmem:[#allocation20 + $0x68] sm:$0xff] }
 0x8f5   :  { %5600 = vmatprep.subr.bf16.mxu1 %v9352_v42  ;;  %v6263_v42 = vld [vmem:[#allocation20 + $0x78] sm:$0xff] }
 0x8f8   :  { %5601 = vmatpush1.bf16.msra.mxu1 %v9350_v32 }
 0x8f9   :  { %5602 = vmatprep.subr.bf16.mxu1 %v9355_v28  ;;  %v9380_v28 = vld [vmem:[#allocation18 + $0x450] ss:$8 sps:$4 sm:$0xff]  }
 0x8fc   :  { %5603 = vmatpush1.bf16.msra.mxu1 %v9353_v55  ;;  %v8606_v55 = vpack.c.bf16 %v6263_v42, %v6261_v12  ;;  %v9397_v12 = vld [vmem:[#allocation18 + $0x4a4] ss:$8 sps:$4 sm:$0xff]  }
 0x8fd   :  { %5604 = vmatprep.subr.bf16.mxu1 %v9358_v33  ;;  %v6260_v33 = vld [vmem:[#allocation20 + $0x60] sm:$0xff]  ;;  %v6281_v42 = vld [vmem:[#allocation20 + $0x108] sm:$0xff] }
 0x900   :  { %5605 = vmatpush1.bf16.msra.mxu1 %v9356_v58  ;;  %v6262_v58 = vld [vmem:[#allocation20 + $0x70] sm:$0xff] }
 0x901   :  { %5606 = vmatprep.subr.bf16.mxu1 %v9361_v39  ;;  %v9385_v39 = vld [vmem:[#allocation18 + $0x464] ss:$8 sps:$4 sm:$0xff]  }
 0x904   :  { %5607 = vmatpush1.bf16.msra.mxu1 %v9359_v18  ;;  %v6265_v18 = vld [vmem:[#allocation20 + $0x88] sm:$0xff] }
 0x905   :  { %5608 = vmatprep.subr.bf16.mxu1 %v9364_v19  ;;  %v6267_v19 = vld [vmem:[#allocation20 + $0x98] sm:$0xff] }
 0x908   :  { %5609 = vmatpush1.bf16.msra.mxu1 %v9362_v16  ;;  %v8608_v16 = vpack.c.bf16 %v6262_v58, %v6260_v33  ;;  %v6280_v58 = vld [vmem:[#allocation20 + $0x100] sm:$0xff] }
 0x909   :  { %6088 = vmatprep.subr.bf16.mxu1 %v9367_v40  ;;  %v9383_v40 = vld [vmem:[#allocation18 + $0x460] ss:$8 sps:$4 sm:$0xff]  }
 0x90b   :  { %5611 = vmatmul.mubr.bf16.vlgmr.msra.gmra.mrb[16].mxu1 %v7799_v22  ;;  %v6248_v22 = vld [vmem:[#allocation20] sm:$0xff] }
 0x90c   :  { %5620 = vmatprep.mubr.bf16.mxu1 %v7804_v50  ;;  %6089 = vmatpush1.bf16.msra.mxu1 %v9365_v15  ;;  %v8594_v50 = vpack.c.bf16 %v6251_v43, %v6249_v25  ;;  %v8596_v37 = vpack.c.bf16 %v6250_v3, %v6248_v22  ;;  %v8610_v15 = vpack.c.bf16 %v6267_v19, %v6265_v18  ;;  %v6268_v43 = vld [vmem:[#allocation20 + $0xa0] sm:$0xff]  ;;  %v6270_v22 = vld [vmem:[#allocation20 + $0xb0] sm:$0xff]  ;;  %v6273_v3 = vld [vmem:[#allocation20 + $0xc8] sm:$0xff] }
 0x90d   :  { %6090 = vmatprep.subr.bf16.mxu1 %v9370_v54  ;;  %v6264_v54 = vld [vmem:[#allocation20 + $0x80] sm:$0xff]  ;;  %v8616_v10 = vpack.c.bf16 %v6270_v22, %v6268_v43  ;;  %v9400_v18 = vld [vmem:[#allocation18 + $0x4b4] ss:$8 sps:$4 sm:$0xff]   ;;  %v9416_v22 = vld [vmem:[#allocation18 + $0x510] ss:$8 sps:$4 sm:$0xff]  }
 0x90e   :  { %8595 = vmatprep.subr.bf16.mxu0 %v8594_v50  ;;  %v9391_v50 = vld [vmem:[#allocation18 + $0x484] ss:$8 sps:$4 sm:$0xff]   ;;  %v9418_v43 = vld [vmem:[#allocation18 + $0x514] ss:$8 sps:$4 sm:$0xff]  }
 0x90f   :  { %8597 = vmatpush1.bf16.msra.mxu0 %v8596_v37  ;;  %v9389_v37 = vld [vmem:[#allocation18 + $0x480] ss:$8 sps:$4 sm:$0xff]  }
 0x910   :  { %6091 = vmatpush1.bf16.msra.mxu1 %v9368_v20  ;;  %8599 = vmatprep.subr.bf16.mxu0 %v8598_v13  ;;  %v6266_v20 = vld [vmem:[#allocation20 + $0x90] sm:$0xff]  ;;  %v8618_v13 = vpack.c.bf16 %v6275_v8, %v6273_v3  ;;  %v9419_v3 = vld [vmem:[#allocation18 + $0x520] ss:$8 sps:$4 sm:$0xff]  }
 0x911   :  { %6092 = vmatprep.subr.bf16.mxu1 %v9373_v4  ;;  %v9388_v4 = vld [vmem:[#allocation18 + $0x474] ss:$8 sps:$4 sm:$0xff]  }
 0x912   :  { %v9424_v8 = vld [vmem:[#allocation18 + $0x534] ss:$8 sps:$4 sm:$0xff]  }
 0x913   :  { %5621 = vmatmul.mubr.bf16.gmra.mrb[20].mxu1 %v7803_v57  ;;  %v8600_v57 = vpack.c.bf16 %v6254_v49, %v6252_v46  ;;  %v6272_v46 = vld [vmem:[#allocation20 + $0xc0] sm:$0xff]  ;;  %v6274_v49 = vld [vmem:[#allocation20 + $0xd0] sm:$0xff] }
 0x914   :  { %6093 = vmatpush1.bf16.msra.mxu1 %v9371_v61  ;;  %6120 = vmatprep.mubr.bf16.mxu1 %v7874_v48  ;;  %v6258_v48 = vld [vmem:[#allocation20 + $0x50] sm:$0xff]  ;;  %v6269_v61 = vld [vmem:[#allocation20 + $0xa8] sm:$0xff] }
 0x915   :  { %6094 = vmatprep.subr.bf16.mxu1 %v9376_v51  ;;  %8601 = vmatpush1.bf16.msra.mxu0 %v8600_v57  ;;  %v8604_v32 = vpack.c.bf16 %v6258_v48, %v6256_v44  ;;  %v6271_v51 = vld [vmem:[#allocation20 + $0xb8] sm:$0xff]  ;;  %v6276_v48 = vld [vmem:[#allocation20 + $0xe0] sm:$0xff] }
 0x916   :  { %8603 = vmatprep.subr.bf16.mxu0 %v8602_v26  ;;  %v8614_v25 = vpack.c.bf16 %v6271_v51, %v6269_v61  ;;  %v6279_v57 = vld [vmem:[#allocation20 + $0xf8] sm:$0xff]  ;;  %v9407_v61 = vld [vmem:[#allocation18 + $0x4e0] ss:$8 sps:$4 sm:$0xff]  }
 0x917   :  { %v9392_v26 = vld [vmem:[#allocation18 + $0x490] ss:$8 sps:$4 sm:$0xff]   ;;  %v8622_v44 = vpack.c.bf16 %v6279_v57, %v6277_v6  ;;  %v9412_v51 = vld [vmem:[#allocation18 + $0x4f4] ss:$8 sps:$4 sm:$0xff]   ;;  %v9443_v6 = vld [vmem:[#allocation18 + $0x5a0] ss:$8 sps:$4 sm:$0xff]  }
 0x918   :  { %6095 = vmatpush1.bf16.msra.mxu1 %v9374_v45  ;;  %v8612_v45 = vpack.c.bf16 %v6266_v20, %v6264_v54  ;;  %v9406_v54 = vld [vmem:[#allocation18 + $0x4d4] ss:$8 sps:$4 sm:$0xff]   ;;  %v9404_v20 = vld [vmem:[#allocation18 + $0x4d0] ss:$8 sps:$4 sm:$0xff]  }
 0x919   :  { %6096 = vmatprep.subr.bf16.mxu1 %v9379_v41  ;;  %8605 = vmatpush1.bf16.msra.mxu0 %v8604_v32  ;;  %v9386_v41 = vld [vmem:[#allocation18 + $0x470] ss:$8 sps:$4 sm:$0xff]   ;;  %v9448_v57 = vld [vmem:[#allocation18 + $0x5b4] ss:$8 sps:$4 sm:$0xff]  }
 0x91a   :  { %8607 = vmatprep.subr.bf16.mxu0 %v8606_v55  ;;  %v6283_v32 = vld [vmem:[#allocation20 + $0x118] sm:$0xff]  ;;  %v9395_v55 = vld [vmem:[#allocation18 + $0x4a0] ss:$8 sps:$4 sm:$0xff]  }
 0x91b   :  { %v8626_v33 = vpack.c.bf16 %v6283_v32, %v6281_v42  ;;  %v9455_v42 = vld [vmem:[#allocation18 + $0x5e0] ss:$8 sps:$4 sm:$0xff]   ;;  %v9460_v32 = vld [vmem:[#allocation18 + $0x5f4] ss:$8 sps:$4 sm:$0xff]  }
 0x91c   :  { %6097 = vmatpush1.bf16.msra.mxu1 %v9377_v62  ;;  %v8620_v62 = vpack.c.bf16 %v6274_v49, %v6272_v46  ;;  %v9442_v46 = vld [vmem:[#allocation18 + $0x594] ss:$8 sps:$4 sm:$0xff]   ;;  %v9440_v49 = vld [vmem:[#allocation18 + $0x590] ss:$8 sps:$4 sm:$0xff]  }
 0x91d   :  { %6098 = vmatprep.subr.bf16.mxu1 %v9382_v38  ;;  %8609 = vmatpush1.bf16.msra.mxu0 %v8608_v16  ;;  %v6278_v38 = vld [vmem:[#allocation20 + $0xf0] sm:$0xff] }
 0x91e   :  { %8611 = vmatprep.subr.bf16.mxu0 %v8610_v15  ;;  %v9398_v16 = vld [vmem:[#allocation18 + $0x4b0] ss:$8 sps:$4 sm:$0xff]   ;;  %v9401_v15 = vld [vmem:[#allocation18 + $0x4c0] ss:$8 sps:$4 sm:$0xff]  }
 0x920   :  { %6099 = vmatpush1.bf16.msra.mxu1 %v9380_v28  ;;  %v8624_v28 = vpack.c.bf16 %v6278_v38, %v6276_v48  ;;  %v9454_v48 = vld [vmem:[#allocation18 + $0x5d4] ss:$8 sps:$4 sm:$0xff]   ;;  %v9452_v38 = vld [vmem:[#allocation18 + $0x5d0] ss:$8 sps:$4 sm:$0xff]  }
 0x921   :  { %6100 = vmatprep.subr.bf16.mxu1 %v9385_v39  ;;  %8613 = vmatpush1.bf16.msra.mxu0 %v8612_v45  ;;  %v6282_v39 = vld [vmem:[#allocation20 + $0x110] sm:$0xff] }
 0x922   :  { %8615 = vmatprep.subr.bf16.mxu0 %v8614_v25  ;;  %v8628_v19 = vpack.c.bf16 %v6282_v39, %v6280_v58  ;;  %v9410_v45 = vld [vmem:[#allocation18 + $0x4f0] ss:$8 sps:$4 sm:$0xff]   ;;  %v9413_v25 = vld [vmem:[#allocation18 + $0x500] ss:$8 sps:$4 sm:$0xff]  }
 0x923   :  { %v6284_v39 = vld [vmem:[#allocation20 + $0x120] sm:$0xff] }
 0x924   :  { %6101 = vmatpush1.bf16.msra.mxu1 %v9383_v40  ;;  %v9403_v40 = vld [vmem:[#allocation18 + $0x4c4] ss:$8 sps:$4 sm:$0xff]  }
 0x925   :  { %6102 = vmatprep.subr.bf16.mxu1 %v9388_v4  ;;  %8617 = vmatpush1.bf16.msra.mxu0 %v8616_v10  ;;  %v9409_v4 = vld [vmem:[#allocation18 + $0x4e4] ss:$8 sps:$4 sm:$0xff]   ;;  %v9428_v10 = vld [vmem:[#allocation18 + $0x550] ss:$8 sps:$4 sm:$0xff]  }
 0x926   :  { %8619 = vmatprep.subr.bf16.mxu0 %v8618_v13  ;;  %v9431_v13 = vld [vmem:[#allocation18 + $0x560] ss:$8 sps:$4 sm:$0xff]  }
 0x928   :  { %6103 = vmatpush1.bf16.msra.mxu1 %v9386_v41  ;;  %v9415_v41 = vld [vmem:[#allocation18 + $0x504] ss:$8 sps:$4 sm:$0xff]  }
 0x929   :  { %6104 = vmatprep.subr.bf16.mxu1 %v9391_v50  ;;  %8621 = vmatpush1.bf16.msra.mxu0 %v8620_v62  ;;  %v9421_v50 = vld [vmem:[#allocation18 + $0x524] ss:$8 sps:$4 sm:$0xff]   ;;  %v9446_v62 = vld [vmem:[#allocation18 + $0x5b0] ss:$8 sps:$4 sm:$0xff]  }
 0x92a   :  { %8623 = vmatprep.subr.bf16.mxu0 %v8622_v44  ;;  %v9449_v44 = vld [vmem:[#allocation18 + $0x5c0] ss:$8 sps:$4 sm:$0xff]  }
 0x92c   :  { %6105 = vmatpush1.bf16.msra.mxu1 %v9389_v37  ;;  %v9433_v37 = vld [vmem:[#allocation18 + $0x564] ss:$8 sps:$4 sm:$0xff]  }
 0x92d   :  { %6106 = vmatprep.subr.bf16.mxu1 %v9394_v35  ;;  %8625 = vmatpush1.bf16.msra.mxu0 %v8624_v28  ;;  %v9445_v35 = vld [vmem:[#allocation18 + $0x5a4] ss:$8 sps:$4 sm:$0xff]   ;;  %v9458_v28 = vld [vmem:[#allocation18 + $0x5f0] ss:$8 sps:$4 sm:$0xff]  }
 0x92e   :  { %8627 = vmatprep.subr.bf16.mxu0 %v8626_v33  ;;  %v6287_v33 = vld [vmem:[#allocation20 + $0x138] sm:$0xff] }
 0x930   :  { %6107 = vmatpush1.bf16.msra.mxu1 %v9392_v26  ;;  %v9451_v26 = vld [vmem:[#allocation18 + $0x5c4] ss:$8 sps:$4 sm:$0xff]  }
 0x931   :  { %6108 = vmatprep.subr.bf16.mxu1 %v9397_v12  ;;  %8629 = vmatpush1.bf16.msra.mxu0 %v8628_v19  ;;  %v9457_v12 = vld [vmem:[#allocation18 + $0x5e4] ss:$8 sps:$4 sm:$0xff]  }
 0x932   :  { %v6289_v19 = vld [vmem:[#allocation20 + $0x148] sm:$0xff] }
 0x934   :  { %6109 = vmatpush1.bf16.msra.mxu1 %v9395_v55  ;;  %v6285_v55 = vld [vmem:[#allocation20 + $0x128] sm:$0xff] }
 0x935   :  { %6110 = vmatprep.subr.bf16.mxu1 %v9400_v18  ;;  %v8630_v58 = vpack.c.bf16 %v6287_v33, %v6285_v55  ;;  %v6286_v18 = vld [vmem:[#allocation20 + $0x130] sm:$0xff] }
 0x937   :  { %8631 = vmatprep.subr.bf16.mxu0 %v8630_v58 }
 0x938   :  { %6111 = vmatpush1.bf16.msra.mxu1 %v9398_v16  ;;  %v8632_v16 = vpack.c.bf16 %v6286_v18, %v6284_v39 }
 0x939   :  { %6112 = vmatprep.subr.bf16.mxu1 %v9403_v40  ;;  %v6291_v40 = vld [vmem:[#allocation20 + $0x158] sm:$0xff] }
 0x93a   :  { %v8634_v2 = vpack.c.bf16 %v6291_v40, %v6289_v19  ;;  %8633 = vmatpush1.bf16.msra.mxu0 %v8632_v16 }
 0x93c   :  { %6113 = vmatpush1.bf16.msra.mxu1 %v9401_v15  ;;  %v6288_v15 = vld [vmem:[#allocation20 + $0x140] sm:$0xff]  ;;  %8635 = vmatprep.subr.bf16.mxu0 %v8634_v2 }
 0x93d   :  { %6114 = vmatprep.subr.bf16.mxu1 %v9406_v54  ;;  %v6290_v54 = vld [vmem:[#allocation20 + $0x150] sm:$0xff] }
 0x93e   :  { %v8636_v14 = vpack.c.bf16 %v6290_v54, %v6288_v15 }
 0x940   :  { %6115 = vmatpush1.bf16.msra.mxu1 %v9404_v20  ;;  %8637 = vmatpush1.bf16.msra.mxu0 %v8636_v14  ;;  %v6297_v20 = vld [vmem:[#allocation20 + $0x188] sm:$0xff] }
 0x941   :  { %6116 = vmatprep.subr.bf16.mxu1 %v9409_v4 }
 0x944   :  { %6117 = vmatpush1.bf16.msra.mxu1 %v9407_v61  ;;  %v6299_v61 = vld [vmem:[#allocation20 + $0x198] sm:$0xff] }
 0x945   :  { %6118 = vmatprep.subr.bf16.mxu1 %v9412_v51  ;;  %v6296_v51 = vld [vmem:[#allocation20 + $0x180] sm:$0xff] }
 0x948   :  { %6119 = vmatpush1.bf16.msra.mxu1 %v9410_v45  ;;  %v6298_v45 = vld [vmem:[#allocation20 + $0x190] sm:$0xff] }
 0x949   :  { %6141 = vmatprep.subr.bf16.mxu1 %v9415_v41  ;;  %v8642_v41 = vpack.c.bf16 %v6299_v61, %v6297_v20 }
 0x94b   :  { %6121 = vmatmul.mubr.bf16.vlgmr.msra.gmra.mrb[16].mxu1 %v7873_v52  ;;  %v9425_v52 = vld [vmem:[#allocation18 + $0x540] ss:$8 sps:$4 sm:$0xff]  }
 0x94c   :  { %6130 = vmatprep.mubr.bf16.mxu1 %v7878_v1  ;;  %6142 = vmatpush1.bf16.msra.mxu1 %v9413_v25  ;;  %v9430_v1 = vld [vmem:[#allocation18 + $0x554] ss:$8 sps:$4 sm:$0xff]   ;;  %v6301_v25 = vld [vmem:[#allocation20 + $0x1a8] sm:$0xff] }
 0x94d   :  { %6143 = vmatprep.subr.bf16.mxu1 %v9418_v43  ;;  %v6303_v43 = vld [vmem:[#allocation20 + $0x1b8] sm:$0xff] }
 0x950   :  { %6144 = vmatpush1.bf16.msra.mxu1 %v9416_v22  ;;  %v8644_v22 = vpack.c.bf16 %v6298_v45, %v6296_v51 }
 0x951   :  { %6145 = vmatprep.subr.bf16.mxu1 %v9421_v50  ;;  %v8646_v50 = vpack.c.bf16 %v6303_v43, %v6301_v25 }
 0x953   :  { %6131 = vmatmul.mubr.bf16.gmra.mrb[20].mxu1 %v7877_v29  ;;  %v9439_v29 = vld [vmem:[#allocation18 + $0x584] ss:$8 sps:$4 sm:$0xff]  }
 0x954   :  { %6146 = vmatpush1.bf16.msra.mxu1 %v9419_v3  ;;  %6173 = vmatprep.mubr.bf16.mxu1 %v7876_v9  ;;  %v9437_v9 = vld [vmem:[#allocation18 + $0x580] ss:$8 sps:$4 sm:$0xff]  }
 0x955   :  { %6147 = vmatprep.subr.bf16.mxu1 %v9424_v8  ;;  %v6300_v3 = vld [vmem:[#allocation20 + $0x1a0] sm:$0xff]  ;;  %v6302_v8 = vld [vmem:[#allocation20 + $0x1b0] sm:$0xff] }
 0x958   :  { %6148 = vmatpush1.bf16.msra.mxu1 %v9422_v31  ;;  %v6305_v31 = vld [vmem:[#allocation20 + $0x1c8] sm:$0xff] }
 0x959   :  { %6149 = vmatprep.subr.bf16.mxu1 %v9427_v59  ;;  %v6307_v59 = vld [vmem:[#allocation20 + $0x1d8] sm:$0xff] }
 0x95c   :  { %6150 = vmatpush1.bf16.msra.mxu1 %v9425_v52  ;;  %v8648_v52 = vpack.c.bf16 %v6302_v8, %v6300_v3 }
 0x95d   :  { %6151 = vmatprep.subr.bf16.mxu1 %v9430_v1  ;;  %v8650_v1 = vpack.c.bf16 %v6307_v59, %v6305_v31 }
 0x960   :  { %6152 = vmatpush1.bf16.msra.mxu1 %v9428_v10  ;;  %v6304_v10 = vld [vmem:[#allocation20 + $0x1c0] sm:$0xff] }
 0x961   :  { %6153 = vmatprep.subr.bf16.mxu1 %v9433_v37  ;;  %v6306_v37 = vld [vmem:[#allocation20 + $0x1d0] sm:$0xff] }
 0x964   :  { %6154 = vmatpush1.bf16.msra.mxu1 %v9431_v13  ;;  %v6309_v13 = vld [vmem:[#allocation20 + $0x1e8] sm:$0xff] }
 0x965   :  { %6155 = vmatprep.subr.bf16.mxu1 %v9436_v5  ;;  %v6311_v5 = vld [vmem:[#allocation20 + $0x1f8] sm:$0xff] }
 0x968   :  { %6156 = vmatpush1.bf16.msra.mxu1 %v9434_v30  ;;  %v8652_v30 = vpack.c.bf16 %v6306_v37, %v6304_v10 }
 0x969   :  { %6157 = vmatprep.subr.bf16.mxu1 %v9439_v29  ;;  %v8654_v29 = vpack.c.bf16 %v6311_v5, %v6309_v13 }
 0x96c   :  { %6158 = vmatpush1.bf16.msra.mxu1 %v9437_v9  ;;  %v6308_v9 = vld [vmem:[#allocation20 + $0x1e0] sm:$0xff] }
 0x96d   :  { %6159 = vmatprep.subr.bf16.mxu1 %v9442_v46  ;;  %v6310_v46 = vld [vmem:[#allocation20 + $0x1f0] sm:$0xff] }
 0x970   :  { %6160 = vmatpush1.bf16.msra.mxu1 %v9440_v49  ;;  %v8656_v49 = vpack.c.bf16 %v6310_v46, %v6308_v9 }
 0x971   :  { %6161 = vmatprep.subr.bf16.mxu1 %v9445_v35 }
 0x974   :  { %6162 = vmatpush1.bf16.msra.mxu1 %v9443_v6 }
 0x975   :  { %6163 = vmatprep.subr.bf16.mxu1 %v9448_v57 }
 0x978   :  { %6164 = vmatpush1.bf16.msra.mxu1 %v9446_v62 }
 0x979   :  { %6165 = vmatprep.subr.bf16.mxu1 %v9451_v26 }
 0x97c   :  { %6166 = vmatpush1.bf16.msra.mxu1 %v9449_v44 }
 0x97d   :  { %6167 = vmatprep.subr.bf16.mxu1 %v9454_v48 }
 0x980   :  { %6168 = vmatpush1.bf16.msra.mxu1 %v9452_v38 }
 0x981   :  { %6169 = vmatprep.subr.bf16.mxu1 %v9457_v12 }
 0x984   :  { %6170 = vmatpush1.bf16.msra.mxu1 %v9455_v42 }
 0x985   :  { %6171 = vmatprep.subr.bf16.mxu1 %v9460_v32 }
 0x988   :  { %6172 = vmatpush1.bf16.msra.mxu1 %v9458_v28 }
 0x98b   :  { %6174 = vmatmul.mubr.bf16.vlgmr.msra.gmra.mrb[16].mxu1 %v7875_v56  ;;  %v6293_v56 = vld [vmem:[#allocation20 + $0x168] sm:$0xff] }
 0x98c   :  { %6183 = vmatprep.mubr.bf16.mxu1 %v7880_v11  ;;  %v6295_v11 = vld [vmem:[#allocation20 + $0x178] sm:$0xff] }
 0x98d   :  { %v8638_v17 = vpack.c.bf16 %v6295_v11, %v6293_v56 }
 0x98f   :  { %8639 = vmatprep.subr.bf16.mxu0 %v8638_v17 }
 0x993   :  { %6184 = vmatmul.mubr.bf16.gmra.mrb[20].mxu1 %v7879_v47  ;;  %v6294_v47 = vld [vmem:[#allocation20 + $0x170] sm:$0xff] }
 0x994   :  { %v8640_v4 = vpack.c.bf16 %v6294_v47, %v6292_v63 }
 0x996   :  { %8641 = vmatpush1.bf16.msra.mxu0 %v8640_v4 }
 0x997   :  { %8643 = vmatprep.subr.bf16.mxu0 %v8642_v41 }
 0x99a   :  { %8645 = vmatpush1.bf16.msra.mxu0 %v8644_v22 }
 0x99b   :  { %8647 = vmatprep.subr.bf16.mxu0 %v8646_v50 }
 0x99e   :  { %8649 = vmatpush1.bf16.msra.mxu0 %v8648_v52 }
 0x99f   :  { %8651 = vmatprep.subr.bf16.mxu0 %v8650_v1 }
 0x9a2   :  { %8653 = vmatpush1.bf16.msra.mxu0 %v8652_v30 }
 0x9a3   :  { %8655 = vmatprep.subr.bf16.mxu0 %v8654_v29 }
 0x9a6   :  { %8657 = vmatpush1.bf16.msra.mxu0 %v8656_v49 }
 0xa5e   :  { %v10904_v35 = vpop.f32.mrb[16].mxu1 }
 0xa5f   :  { %v10906_v6 = vpop.f32.mrb[17].mxu1  ;;  %v6220_v62 = vmul.f32 %v10904_v35, %v10904_v35 }
 0xa60   :  { %v10908_v57 = vpop.f32.mrb[18].mxu1  ;;  %v6221_v38 = vmul.f32 %v10906_v6, %v10906_v6 }
 0xa61   :  { %v6202_v26 = vadd.f32 %v10908_v57, %v10904_v35  ;;  %v6222_v44 = vmul.f32 %v10908_v57, %v10908_v57  ;;  %v10916_v48 = vpop.f32.mrb[19].mxu1 }
 0xa62   :  { %v6211_v12 = vadd.f32 %v10916_v48, %v10906_v6  ;;  %v6223_v42 = vmul.f32 %v10916_v48, %v10916_v48 }
 0xa63   :  { %v6228_v32 = vadd.f32 %v6222_v44, %v6220_v62  ;;  %v293_v62 = vld [vmem:[#allocation6] sm:$0x11] }
 0xa64   :  { %v6237_v28 = vadd.f32 %v6223_v42, %v6221_v38  ;;  %v294_v44 = vsel %vm11179_vm15, 0, %v293_v62  ;;  %v9462_v42 = vld [vmem:[#allocation21 + $0x80] sm:$0xff]  }
 0xa65   :  { %295 = vst [vmem:[#allocation6] sm:$0x11] %v294_v44 }
 0xa66   :  { %v10924_v55 = vpop.f32.mrb[20].mxu1 }
 0xa67   :  { %v6203_v33 = vadd.f32 %v6202_v26, %v10924_v55  ;;  %v6224_v58 = vmul.f32 %v10924_v55, %v10924_v55  ;;  %v10929_v39 = vpop.f32.mrb[21].mxu1  ;;  %v296_v26 = vld [vmem:[#allocation6 + $0x18] sm:$0x11] }
 0xa68   :  { %v6212_v18 = vadd.f32 %v6211_v12, %v10929_v39  ;;  %v6225_v19 = vmul.f32 %v10929_v39, %v10929_v39  ;;  %v10934_v16 = vpop.f32.mrb[22].mxu1  ;;  %v297_v38 = vsel %vm11179_vm15, 0, %v296_v26  ;;  %v9461_v12 = vld [vmem:[#allocation21 + $0xc0] sm:$0xff]  }
 0xa69   :  { %v6229_v40 = vadd.f32 %v6228_v32, %v6224_v58  ;;  %v6204_v15 = vadd.f32 %v6203_v33, %v10934_v16  ;;  %v6226_v54 = vmul.f32 %v10934_v16, %v10934_v16  ;;  %v10939_v2 = vpop.f32.mrb[23].mxu1  ;;  %298 = vst [vmem:[#allocation6 + $0x18] sm:$0x11] %v297_v38  ;;  %v9463_v32 = vld [vmem:[#allocation21 + $0xc8] sm:$0xff]   ;;  %8061 = vmatprep.subr.bf16.mxu0 %v9461_v12  ;;  %v9465_v33 = vld [vmem:[#allocation21 + $0xd0] sm:$0xff]  }
 0xa6a   :  { %v6238_v14 = vadd.f32 %v6237_v28, %v6225_v19  ;;  %v6213_v56 = vadd.f32 %v6212_v18, %v10939_v2  ;;  %v6227_v11 = vmul.f32 %v10939_v2, %v10939_v2  ;;  %v9464_v28 = vld [vmem:[#allocation21 + $0x88] sm:$0xff]   ;;  %v9466_v58 = vld [vmem:[#allocation21 + $0x90] sm:$0xff]   ;;  %v9467_v18 = vld [vmem:[#allocation21 + $0xd8] sm:$0xff]  }
 0xa6b   :  { %v6205_v17 = vrot.slane %v6204_v15, 4  ;;  %v6230_v63 = vadd.f32 %v6229_v40, %v6226_v54  ;;  %v9468_v19 = vld [vmem:[#allocation21 + $0x98] sm:$0xff]   ;;  %v9469_v40 = vld [vmem:[#allocation21 + $0xe0] sm:$0xff]   ;;  %v9471_v54 = vld [vmem:[#allocation21 + $0xe8] sm:$0xff]  }
 0xa6c   :  { %v6214_v47 = vrot.slane %v6213_v56, 4  ;;  %v6239_v20 = vadd.f32 %v6238_v14, %v6227_v11  ;;  %v9472_v14 = vld [vmem:[#allocation21 + $0xa8] sm:$0xff]   ;;  %v9474_v11 = vld [vmem:[#allocation21 + $0xb0] sm:$0xff]  }
 0xa6d   :  { %v6206_v4 = vadd.f32 %v6205_v17, %v6204_v15  ;;  %v6231_v61 = vrot.slane %v6230_v63, 4  ;;  %v9470_v15 = vld [vmem:[#allocation21 + $0xa0] sm:$0xff]   ;;  %v9475_v17 = vld [vmem:[#allocation21 + $0xf8] sm:$0xff]  }
 0xa6e   :  { %v6215_v51 = vadd.f32 %v6214_v47, %v6213_v56  ;;  %v6240_v45 = vrot.slane %v6239_v20, 4  ;;  %v9473_v56 = vld [vmem:[#allocation21 + $0xf0] sm:$0xff]   ;;  %v9477_v47 = vld [vmem:[#allocation21 + $0x40] sm:$0xff]  }
 0xa6f   :  { %v6207_v41 = vrot.slane %v6206_v4, 2  ;;  %v6232_v25 = vadd.f32 %v6231_v61, %v6230_v63  ;;  %v9476_v63 = vld [vmem:[#allocation21 + $0xb8] sm:$0xff]  }
 0xa70   :  { %v6216_v43 = vrot.slane %v6215_v51, 2  ;;  %v6241_v22 = vadd.f32 %v6240_v45, %v6239_v20 }
 0xa71   :  { %v6208_v50 = vadd.f32 %v6207_v41, %v6206_v4  ;;  %v6233_v3 = vrot.slane %v6232_v25, 2 }
 0xa72   :  { %v6217_v8 = vadd.f32 %v6216_v43, %v6215_v51  ;;  %v6242_v31 = vrot.slane %v6241_v22, 2 }
 0xa73   :  { %v6209_v59 = vrot.slane %v6208_v50, 1  ;;  %v6234_v52 = vadd.f32 %v6233_v3, %v6232_v25 }
 0xa74   :  { %v6218_v1 = vrot.slane %v6217_v8, 1  ;;  %v6243_v10 = vadd.f32 %v6242_v31, %v6241_v22 }
 0xa75   :  { %v6235_v37 = vrot.slane %v6234_v52, 1  ;;  %v6210_v5 = vadd.f32 %v6209_v59, %v6208_v50 }
 0xa76   :  { %v6244_v13 = vrot.slane %v6243_v10, 1  ;;  %v6219_v29 = vadd.f32 %v6218_v1, %v6217_v8 }
 0xa77   :  { %v6236_v30 = vadd.f32 %v6235_v37, %v6234_v52  ;;  %v6395_v37 = vld [vmem:[%s11111_s15] sm:$0x3] }
 0xa78   :  { %v6245_v9 = vadd.f32 %v6244_v13, %v6243_v10 }
 0xa79   :  { %v6246_v46 = vsel %vm11182_vm11, %v6210_v5, %v6236_v30 }
 0xa7a   :  { %v6247_v49 = vsel %vm11183_vm0, %v6219_v29, %v6245_v9 }
 0xa7b   :  { %6376 = vmatprep.mubr.f32.mxu0 %v6247_v49 }
 0xa7c   :  { %6377 = vmatmul.mubr.f32.vlgmr.msra.gmra.mrb[26].mxu0 %v6246_v46 }
 0xa7d   :  { %8062 = vmatpush3.bf16.msra.mxu0 %v9462_v42 }
 0xa7e   :  { %8063 = vmatprep.subr.bf16.mxu0 %v9463_v32 }
 0xa81   :  { %8064 = vmatpush3.bf16.msra.mxu0 %v9464_v28 }
 0xa82   :  { %8065 = vmatprep.subr.bf16.mxu0 %v9465_v33 }
 0xa85   :  { %8066 = vmatpush3.bf16.msra.mxu0 %v9466_v58 }
 0xa86   :  { %8067 = vmatprep.subr.bf16.mxu0 %v9467_v18 }
 0xa89   :  { %8068 = vmatpush3.bf16.msra.mxu0 %v9468_v19 }
 0xa8a   :  { %8069 = vmatprep.subr.bf16.mxu0 %v9469_v40 }
 0xa8d   :  { %8070 = vmatpush3.bf16.msra.mxu0 %v9470_v15 }
 0xa8e   :  { %8071 = vmatprep.subr.bf16.mxu0 %v9471_v54 }
 0xa91   :  { %8072 = vmatpush3.bf16.msra.mxu0 %v9472_v14 }
 0xa92   :  { %8073 = vmatprep.subr.bf16.mxu0 %v9473_v56 }
 0xa95   :  { %8074 = vmatpush3.bf16.msra.mxu0 %v9474_v11 }
 0xa96   :  { %8075 = vmatprep.subr.bf16.mxu0 %v9475_v17 }
 0xa99   :  { %8076 = vmatpush3.bf16.msra.mxu0 %v9476_v63 }
 0xa9a   :  { %8089 = vmatprep.subr.bf16.mxu0 %v9477_v47 }
 0xb4f   :  { %v6378_v20 = vpop.f32.mrb[26].mxu0 }
 0xb50   :  { %v6383_v4 = vmul.f32 0.001953125, %v6378_v20  ;;  %v6380_v61 = vpop.f32.mrb[27].mxu0 }
 0xb51   :  { %v6384_v51 = vmul.f32 0.001953125, %v6380_v61 }
 0xb52   :  { %v6385_v45 = vmul.f32 %v6383_v4, %v6383_v4 }
 0xb53   :  { %v6386_v41 = vmul.f32 %v6384_v51, %v6384_v51 }
 0xb54   :  { %v6389_v25 = vrot.slane %v6385_v45, 7 }
 0xb55   :  { %v6390_v43 = vrot.slane %v6386_v41, 7 }
 0xb56   :  { %v6393_v22 = vsub.f32 %v6383_v4, %v6389_v25 }
 0xb57   :  { %v6394_v50 = vsub.f32 %v6384_v51, %v6390_v43 }
 0xb58   :  { %v6396_v3 = vadd.f32 1e-05, %v6393_v22 }
 0xb59   :  { %v6397_v8 = vadd.f32 1e-05, %v6394_v50 }
 0xb5a   :  { %9523 = vrsqrt.f32 %v6396_v3 }
 0xb5b   :  { %9525 = vrsqrt.f32 %v6397_v8 }
 0xb64   :  { %v9524_v31 = vpop.eup %9523 }
 0xb65   :  { %v9526_v59 = vpop.eup %9525 }
 0xb66   :  { %v6402_v52 = vcombine.low %v9524_v31, %v9526_v59 }
 0xb68   :  { %v6409_v1 = vrot.slane %v6402_v52, %v10263_v53 }
 0xb6a   :  { %v6410_v10 = vcombine.high %v6409_v1, %v6409_v1 }
 0xb6c   :  { %v6417_v13 = vrot.slane %v6410_v10, %v10263_v53 }
 0xb6e   :  { %v6419_v5 = vmul.f32 %v6417_v13, %v6395_v37 }
 0xb70   :  { %v6425_v30 = vrot.slane %v6419_v5, %v10271_v60  ;;  %v6429_v29 = vrot.slane %v6419_v5, %v10419_v0 }
 0xb72   :  { %v6432_v9 = vmul.f32 %v6425_v30, %v6383_v4  ;;  %v6433_v46 = vmul.f32 %v6429_v29, %v6384_v51  ;;  %v6453_v49 = vmul.f32 %v6425_v30, %v10904_v35  ;;  %v6454_v62 = vmul.f32 %v6429_v29, %v10906_v6  ;;  %v6420_v35 = vld [vmem:[%s11112_s16] sm:$0x3] }
 0xb73   :  { %v6455_v26 = vmul.f32 %v6425_v30, %v10908_v57  ;;  %v6456_v44 = vmul.f32 %v6429_v29, %v10916_v48  ;;  %v6457_v38 = vmul.f32 %v6425_v30, %v10924_v55  ;;  %v6458_v12 = vmul.f32 %v6429_v29, %v10929_v39 }
 0xb74   :  { %v6436_v42 = vcombine.low %v6432_v9, %v6433_v46  ;;  %v6459_v32 = vmul.f32 %v6425_v30, %v10934_v16  ;;  %v6460_v28 = vmul.f32 %v6429_v29, %v10939_v2  ;;  %v6564_v30 = vld [vmem:[#allocation6] sm:$0xff] }
 0xb76   :  { %v6443_v33 = vrot.slane %v6436_v42, %v10263_v53  ;;  %v6571_v42 = vld [vmem:[#allocation6 + $0x18] sm:$0xff] }
 0xb78   :  { %v6450_v6 = vrot.slane %v6443_v33, %v10263_v53 }
 0xb7a   :  { %v6452_v57 = vsub.f32 %v6420_v35, %v6450_v6 }
 0xb7c   :  { %v6465_v48 = vrot.slane %v6452_v57, %v10271_v60  ;;  %v6469_v55 = vrot.slane %v6452_v57, %v10419_v0 }
 0xb7e   :  { %v6472_v58 = vadd.f32 %v6465_v48, %v6453_v49  ;;  %v6473_v39 = vadd.f32 %v6469_v55, %v6454_v62  ;;  %v6474_v18 = vadd.f32 %v6465_v48, %v6455_v26  ;;  %v6475_v19 = vadd.f32 %v6469_v55, %v6456_v44  ;;  %v6568_v62 = vld [vmem:[#allocation6 + $0x10] sm:$0x11] }
 0xb7f   :  { %v6476_v16 = vadd.f32 %v6465_v48, %v6457_v38  ;;  %v6477_v40 = vadd.f32 %v6469_v55, %v6458_v12  ;;  %v6478_v2 = vadd.f32 %v6465_v48, %v6459_v32  ;;  %v6479_v15 = vadd.f32 %v6469_v55, %v6460_v28  ;;  %v6575_v32 = vld [vmem:[#allocation6 + $0x28] sm:$0x11] }
 0xb80   :  { %vm6480_vm6 = vcmp.ge.f32.partialorder %v6472_v58, 0.0  ;;  %vm6481_vm8 = vcmp.ge.f32.partialorder %v6473_v39, 0.0  ;;  %vm6482_vm4 = vcmp.ge.f32.partialorder %v6474_v18, 0.0  ;;  %vm6483_vm12 = vcmp.ge.f32.partialorder %v6475_v19, 0.0 }
 0xb81   :  { %vm6484_vm13 = vcmp.ge.f32.partialorder %v6476_v16, 0.0  ;;  %vm6485_vm5 = vcmp.ge.f32.partialorder %v6477_v40, 0.0  ;;  %vm6486_vm3 = vcmp.ge.f32.partialorder %v6478_v2, 0.0  ;;  %vm6487_vm9 = vcmp.ge.f32.partialorder %v6479_v15, 0.0 }
 0xb82   :  { %v6488_v54 = vmul.f32 0.01, %v6472_v58  ;;  %v6489_v14 = vmul.f32 0.01, %v6473_v39  ;;  %v6490_v56 = vmul.f32 0.01, %v6474_v18 }
 0xb83   :  { %v6491_v0 = vmul.f32 0.01, %v6475_v19  ;;  %v6492_v11 = vmul.f32 0.01, %v6476_v16  ;;  %v6493_v17 = vmul.f32 0.01, %v6477_v40 }
 0xb84   :  { %v6494_v63 = vmul.f32 0.01, %v6478_v2  ;;  %v6495_v47 = vmul.f32 0.01, %v6479_v15  ;;  %v6496_v20 = vsel %vm6480_vm6, %v6472_v58, %v6488_v54  ;;  %v6497_v4 = vsel %vm6481_vm8, %v6473_v39, %v6489_v14 }
 0xb85   :  { %v6498_v61 = vsel %vm6482_vm4, %v6474_v18, %v6490_v56  ;;  %v6499_v51 = vsel %vm6483_vm12, %v6475_v19, %v6491_v0  ;;  %v6500_v45 = vsel %vm6484_vm13, %v6476_v16, %v6492_v11  ;;  %v6501_v41 = vsel %vm6485_vm5, %v6477_v40, %v6493_v17 }
 0xb86   :  { %v6502_v25 = vsel %vm6486_vm3, %v6478_v2, %v6494_v63  ;;  %v6503_v43 = vsel %vm6487_vm9, %v6479_v15, %v6495_v47  ;;  %v8031_v22 = vpack.c.bf16 %v6497_v4, %v6496_v20  ;;  %v8032_v50 = vpack.c.bf16 %v6499_v51, %v6498_v61 }
 0xb87   :  { %v8033_v3 = vpack.c.bf16 %v6501_v41, %v6500_v45  ;;  %v8034_v8 = vpack.c.bf16 %v6503_v43, %v6502_v25 }
 0xb88   :  { %v6525_v31 = vshrl.u32 %v8031_v22, 16  ;;  %v6533_v59 = vshrl.u32 %v8032_v50, 16  ;;  %v6528_v37 = vshll.u32 %v8031_v22, 16  ;;  %v6536_v5 = vshll.u32 %v8032_v50, 16 }
 0xb89   :  { %v6542_v52 = vshrl.u32 %v8033_v3, 16  ;;  %v6550_v1 = vshrl.u32 %v8034_v8, 16  ;;  %v6545_v9 = vshll.u32 %v8033_v3, 16  ;;  %v6553_v49 = vshll.u32 %v8034_v8, 16 }
 0xb8a   :  { %v6527_v10 = vrot.slane %v6525_v31, 7  ;;  %v6535_v13 = vrot.slane %v6533_v59, 7 }
 0xb8b   :  { %v6544_v29 = vrot.slane %v6542_v52, 7  ;;  %v6552_v46 = vrot.slane %v6550_v1, 7 }
 0xb8c   :  { %v6530_v26 = vor.u32 %v6528_v37, %v6527_v10  ;;  %v6531_v44 = vrot.slane %v6527_v10, 4  ;;  %v6538_v38 = vor.u32 %v6536_v5, %v6535_v13  ;;  %v6540_v12 = vrot.slane %v6535_v13, 4 }
 0xb8d   :  { %v6547_v28 = vor.u32 %v6545_v9, %v6544_v29  ;;  %v6548_v33 = vrot.slane %v6544_v29, 4  ;;  %v6555_v35 = vor.u32 %v6553_v49, %v6552_v46  ;;  %v6557_v6 = vrot.slane %v6552_v46, 4 }
 0xb8e   :  { %v10982_v57 = vsel %vm11177_vm7, %v6531_v44, %v6538_v38  ;;  %v10986_v48 = vsel %vm11178_vm14, %v6530_v26, %v6564_v30  ;;  %v6569_v55 = vsel %vm11179_vm15, %v6540_v12, %v6568_v62  ;;  %v9478_v44 = vld [vmem:[#allocation21] sm:$0xff]  }
 0xb8f   :  { %v10992_v58 = vsel %vm11177_vm7, %v6548_v33, %v6555_v35  ;;  %6566 = vst [vmem:[#allocation6] sm:$0xff] %v10986_v48  ;;  %v10997_v39 = vsel %vm11178_vm14, %v6547_v28, %v6571_v42  ;;  %v6576_v18 = vsel %vm11179_vm15, %v6557_v6, %v6575_v32  ;;  %6570 = vst [vmem:[#allocation6 + $0x10] sm:$0x11] %v6569_v55  ;;  %v6617_v19 = vshrl.u32 %v10986_v48, 16  ;;  %v9479_v42 = vld [vmem:[#allocation21 + $0x48] sm:$0xff]  }
 0xb90   :  { %6573 = vst [vmem:[#allocation6 + $0x18] sm:$0xff] %v10997_v39  ;;  %6577 = vst [vmem:[#allocation6 + $0x28] sm:$0x11] %v6576_v18  ;;  %v6620_v16 = vshll.u32 %v10986_v48, 16  ;;  %v6626_v23 = vshll.u32 %v10982_v57, 16  ;;  %v6630_v40 = vshrl.u32 %v10982_v57, 16  ;;  %v7970_v20 = vcombine.high %v10986_v48, %v10982_v57 }
 0xb91   :  { %v6641_v2 = vshrl.u32 %v10997_v39, 16  ;;  %v6619_v36 = vrot.slane %v6617_v19, 4  ;;  %v6644_v15 = vshll.u32 %v10997_v39, 16  ;;  %v6650_v34 = vshll.u32 %v10992_v58, 16  ;;  %v9480_v6 = vld [vmem:[#allocation21 + $0x8] sm:$0xff]   ;;  %v9481_v18 = vld [vmem:[#allocation21 + $0x50] sm:$0xff]   ;;  %vm11185_vm7 = vmmov %vm11183_vm0 }
 0xb92   :  { %v6654_v54 = vshrl.u32 %v10992_v58, 16  ;;  %v6622_v14 = vrot.slane %v6620_v16, 5  ;;  %v6628_v56 = vrot.slane %v6626_v23, 5  ;;  %v6632_v0 = vrot.slane %v6630_v40, 4  ;;  %v9482_v19 = vld [vmem:[#allocation21 + $0x10] sm:$0xff]   ;;  %v9483_v16 = vld [vmem:[#allocation21 + $0x58] sm:$0xff]  }
 0xb93   :  { %v6643_v11 = vrot.slane %v6641_v2, 4  ;;  %v6646_v17 = vrot.slane %v6644_v15, 5  ;;  %v6652_v63 = vrot.slane %v6650_v34, 5  ;;  %v7969_v61 = vcombine.low %v10986_v48, %v10982_v57  ;;  %v9484_v23 = vld [vmem:[#allocation21 + $0x18] sm:$0xff]   ;;  %v9485_v40 = vld [vmem:[#allocation21 + $0x60] sm:$0xff]   ;;  %v9488_v15 = vld [vmem:[#allocation21 + $0x28] sm:$0xff]  }
 0xb94   :  { %v6656_v47 = vrot.slane %v6654_v54, 4  ;;  %v6623_v4 = vor.u32 %v6622_v14, %v6619_v36  ;;  %v7972_v51 = vcombine.high %v10997_v39, %v10992_v58  ;;  %v6633_v45 = vor.u32 %v6632_v0, %v6628_v56  ;;  %v9486_v2 = vld [vmem:[#allocation21 + $0x20] sm:$0xff]   ;;  %v9487_v36 = vld [vmem:[#allocation21 + $0x68] sm:$0xff]   ;;  %v9489_v34 = vld [vmem:[#allocation21 + $0x70] sm:$0xff]  }
 0xb95   :  { %v6647_v41 = vor.u32 %v6646_v17, %v6643_v11  ;;  %v7971_v25 = vcombine.low %v10997_v39, %v10992_v58  ;;  %v7038_v9 = vrot.slane %v10992_v58, 5  ;;  %v9490_v54 = vld [vmem:[#allocation21 + $0x30] sm:$0xff]   ;;  %v9491_v14 = vld [vmem:[#allocation21 + $0x78] sm:$0xff]   ;;  %v9493_v0 = vld [vmem:[#allocation21 + $0x140] sm:$0xff]  }
 0xb96   :  { %v11018_v43 = vld [vmem:[#allocation6 + $0x10] sm:$0x11]  ;;  %v6624_v22 = vrot.slane %v6623_v4, 4  ;;  %v6657_v50 = vor.u32 %v6656_v47, %v6652_v63  ;;  %v6634_v10 = vrot.slane %v6633_v45, 4  ;;  %v9494_v11 = vld [vmem:[#allocation21 + $0x100] sm:$0xff]   ;;  %v7031_v47 = vrot.slane %v10982_v57, 5 }
 0xb97   :  { %v6636_v3 = vshll.u32 %v11018_v43, 16  ;;  %v6615_v8 = vld [vmem:[#allocation6 + $0x28] sm:$0x11]  ;;  %v6648_v31 = vrot.slane %v6647_v41, 4  ;;  %v7024_v1 = vld [vmem:[#allocation6 + $0x18] sm:$0xee] }
 0xb98   :  { %v6629_v59 = vsel %vm11180_vm2, %v6624_v22, %v6628_v56  ;;  %v6660_v52 = vshll.u32 %v6615_v8, 16  ;;  %v7990_v5 = vrot.slane %v7024_v1, 9  ;;  %v6658_v30 = vrot.slane %v6657_v50, 4  ;;  %v9492_v56 = vld [vmem:[#allocation21 + $0x38] sm:$0xff]   ;;  %v9496_v45 = vld [vmem:[#allocation21 + $0x108] sm:$0xff]   ;;  %v9497_v41 = vld [vmem:[#allocation21 + $0x150] sm:$0xff]  }
 0xb99   :  { %v6638_v37 = vrot.slane %v6636_v3, 5  ;;  %v6653_v13 = vsel %vm11180_vm2, %v6648_v31, %v6652_v63  ;;  %v7041_v49 = vrot.slane %v6615_v8, 5  ;;  %v7040_v33 = vrot.slane %v7038_v9, 4  ;;  %v7023_v17 = vld [vmem:[#allocation6] sm:$0xee]  ;;  %v9495_v63 = vld [vmem:[#allocation21 + $0x148] sm:$0xff]  }
 0xb9a   :  { %v6662_v29 = vrot.slane %v6660_v52, 5  ;;  %v11032_v28 = vsel %vm11181_vm10, %v7990_v5, %v7038_v9  ;;  %v7034_v4 = vrot.slane %v11018_v43, 5  ;;  %v7033_v22 = vrot.slane %v7031_v47, 4  ;;  %v9498_v57 = vld [vmem:[#allocation21 + $0x110] sm:$0xff]   ;;  %v9499_v48 = vld [vmem:[#allocation21 + $0x158] sm:$0xff]   ;;  %v9501_v43 = vld [vmem:[#allocation21 + $0x160] sm:$0xff]  }
 0xb9b   :  { %v6639_v46 = vsel %vm11180_vm2, %v6634_v10, %v6638_v37  ;;  %v11036_v35 = vsel %vm11181_vm10, %v7040_v33, %v7041_v49  ;;  %v9502_v8 = vld [vmem:[#allocation21 + $0x120] sm:$0xff]   ;;  %v9503_v31 = vld [vmem:[#allocation21 + $0x168] sm:$0xff]   ;;  %v9506_v52 = vld [vmem:[#allocation21 + $0x130] sm:$0xff]  }
 0xb9c   :  { %v7949_v62 = vcombine.low %v6629_v59, %v6639_v46  ;;  %v7950_v26 = vcombine.high %v6629_v59, %v6639_v46  ;;  %v6663_v38 = vsel %vm11180_vm2, %v6658_v30, %v6662_v29  ;;  %v7994_v24 = vcombine.high %v11032_v28, %v11036_v35  ;;  %v9505_v59 = vld [vmem:[#allocation21 + $0x170] sm:$0xff]   ;;  %v9507_v1 = vld [vmem:[#allocation21 + $0x178] sm:$0xff]   ;;  %v7265_v10 = vld [vmem:[#allocation23 + $0x8] sm:$0xff] }
 0xb9d   :  { %v7952_v12 = vcombine.high %v6653_v13, %v6663_v38  ;;  %v7951_v32 = vcombine.low %v6653_v13, %v6663_v38  ;;  %v7993_v55 = vcombine.low %v11032_v28, %v11036_v35  ;;  %v7035_v3 = vsel %vm11181_vm10, %v7033_v22, %v7034_v4  ;;  %v9508_v58 = vld [vmem:[#allocation21 + $0x138] sm:$0xff]   ;;  %v7266_v13 = vld [vmem:[#allocation23 + $0x10] sm:$0xff]  ;;  %v7268_v29 = vld [vmem:[#allocation23 + $0x20] sm:$0xff] }
 0xb9e   :  { %6841 = vmatprep.mubr.bf16.mxu0 %v7950_v26  ;;  %v7267_v5 = vld [vmem:[#allocation23 + $0x18] sm:$0xff]  ;;  %v7269_v9 = vld [vmem:[#allocation23 + $0x28] sm:$0xff]  ;;  %v7270_v49 = vld [vmem:[#allocation23 + $0x30] sm:$0xff] }
 0xb9f   :  { %6842 = vmatmul.mubr.bf16.vlgmr.msra.gmra.mrb[28].mxu0 %v7949_v62  ;;  %v8662_v30 = vpack.c.bf16 %v7267_v5, %v7266_v13  ;;  %v8665_v46 = vpack.c.bf16 %v7269_v9, %v7268_v29  ;;  %v7272_v62 = vld [vmem:[#allocation23 + $0x40] sm:$0xff]  ;;  %v7277_v33 = vld [vmem:[#allocation23 + $0x68] sm:$0xff] }
 0xba0   :  { %8090 = vmatpush3.bf16.msra.mxu0 %v9478_v44  ;;  %6849 = vmatprep.mubr.bf16.mxu0 %v7952_v12  ;;  %v7273_v44 = vld [vmem:[#allocation23 + $0x48] sm:$0xff]  ;;  %v7274_v12 = vld [vmem:[#allocation23 + $0x50] sm:$0xff]  ;;  %v7276_v28 = vld [vmem:[#allocation23 + $0x60] sm:$0xff] }
 0xba1   :  { %8091 = vmatprep.subr.bf16.mxu0 %v9479_v42  ;;  %v8671_v38 = vpack.c.bf16 %v7273_v44, %v7272_v62  ;;  %v7275_v42 = vld [vmem:[#allocation23 + $0x58] sm:$0xff]  ;;  %v8677_v35 = vpack.c.bf16 %v7277_v33, %v7276_v28 }
 0xba4   :  { %8092 = vmatpush3.bf16.msra.mxu0 %v9480_v6  ;;  %v7278_v6 = vld [vmem:[#allocation23 + $0x70] sm:$0xff] }
 0xba5   :  { %8093 = vmatprep.subr.bf16.mxu0 %v9481_v18 }
 0xba7   :  { %6850 = vmatmul.mubr.bf16.gmra.mrb[32].mxu0 %v7951_v32  ;;  %v8674_v32 = vpack.c.bf16 %v7275_v42, %v7274_v12 }
 0xba8   :  { %8094 = vmatpush3.bf16.msra.mxu0 %v9482_v19  ;;  %7006 = vmatprep.mubr.bf16.mxu0 %v7970_v20  ;;  %v7989_v20 = vrot.slane %v7023_v17, 9 }
 0xba9   :  { %8095 = vmatprep.subr.bf16.mxu0 %v9483_v16 }
 0xbaa   :  { %v7032_v50 = vsel %vm11181_vm10, %v7989_v20, %v7031_v47 }
 0xbab   :  { %v7991_v39 = vcombine.low %v7032_v50, %v7035_v3 }
 0xbac   :  { %8096 = vmatpush3.bf16.msra.mxu0 %v9484_v23 }
 0xbad   :  { %8097 = vmatprep.subr.bf16.mxu0 %v9485_v40 }
 0xbb0   :  { %8098 = vmatpush3.bf16.msra.mxu0 %v9486_v2 }
 0xbb1   :  { %8099 = vmatprep.subr.bf16.mxu0 %v9487_v36 }
 0xbb4   :  { %8100 = vmatpush3.bf16.msra.mxu0 %v9488_v15 }
 0xbb5   :  { %8101 = vmatprep.subr.bf16.mxu0 %v9489_v34 }
 0xbb8   :  { %8102 = vmatpush3.bf16.msra.mxu0 %v9490_v54 }
 0xbb9   :  { %8103 = vmatprep.subr.bf16.mxu0 %v9491_v14 }
 0xbbc   :  { %8104 = vmatpush3.bf16.msra.mxu0 %v9492_v56 }
 0xbbd   :  { %8117 = vmatprep.subr.bf16.mxu0 %v9493_v0 }
 0xbbf   :  { %7007 = vmatmul.mubr.bf16.vlgmr.msra.gmra.mrb[36].mxu0 %v7969_v61  ;;  %v7992_v61 = vcombine.high %v7032_v50, %v7035_v3 }
 0xbc0   :  { %7014 = vmatprep.mubr.bf16.mxu0 %v7972_v51  ;;  %8118 = vmatpush3.bf16.msra.mxu0 %v9494_v11  ;;  %v9500_v51 = vld [vmem:[#allocation21 + $0x118] sm:$0xff]  }
 0xbc1   :  { %8119 = vmatprep.subr.bf16.mxu0 %v9495_v63 }
 0xbc4   :  { %8120 = vmatpush3.bf16.msra.mxu0 %v9496_v45 }
 0xbc5   :  { %8121 = vmatprep.subr.bf16.mxu0 %v9497_v41 }
 0xbc7   :  { %7015 = vmatmul.mubr.bf16.gmra.mrb[40].mxu0 %v7971_v25  ;;  %v7264_v25 = vld [vmem:[#allocation23] sm:$0xff] }
 0xbc8   :  { %8122 = vmatpush3.bf16.msra.mxu0 %v9498_v57  ;;  %7220 = vmatprep.mubr.bf16.mxu0 %v7992_v61  ;;  %v8659_v37 = vpack.c.bf16 %v7265_v10, %v7264_v25 }
 0xbc9   :  { %8123 = vmatprep.subr.bf16.mxu0 %v9499_v48 }
 0xbcc   :  { %8124 = vmatpush3.bf16.msra.mxu0 %v9500_v51 }
 0xbcd   :  { %8125 = vmatprep.subr.bf16.mxu0 %v9501_v43 }
 0xbd0   :  { %8126 = vmatpush3.bf16.msra.mxu0 %v9502_v8 }
 0xbd1   :  { %8127 = vmatprep.subr.bf16.mxu0 %v9503_v31 }
 0xbd4   :  { %8128 = vmatpush3.bf16.msra.mxu0 %v9504_v21 }
 0xbd5   :  { %8129 = vmatprep.subr.bf16.mxu0 %v9505_v59 }
 0xbd8   :  { %8130 = vmatpush3.bf16.msra.mxu0 %v9506_v52 }
 0xbd9   :  { %8131 = vmatprep.subr.bf16.mxu0 %v9507_v1 }
 0xbdc   :  { %8132 = vmatpush3.bf16.msra.mxu0 %v9508_v58 }
 0xbdd   :  { %8658 = vmatprep.subr.bf16.mxu0 %v9802_v27 }
 0xbdf   :  { %7221 = vmatmul.mubr.bf16.vlgmr.msra.gmra.mrb[44].mxu0 %v7991_v39 }
 0xbe0   :  { %7228 = vmatprep.mubr.bf16.mxu0 %v7994_v24  ;;  %8660 = vmatpush3.bf16.msra.mxu0 %v8659_v37  ;;  %v7279_v24 = vld [vmem:[#allocation23 + $0x78] sm:$0xff] }
 0xbe1   :  { %8661 = vmatprep.subr.bf16.mxu0 %v9802_v27 }
 0xbe4   :  { %8663 = vmatpush3.bf16.msra.mxu0 %v8662_v30 }
 0xbe5   :  { %8664 = vmatprep.subr.bf16.mxu0 %v9802_v27 }
 0xbe7   :  { %7229 = vmatmul.mubr.bf16.gmra.mrb[48].mxu0 %v7993_v55  ;;  %v8680_v55 = vpack.c.bf16 %v7279_v24, %v7278_v6 }
 0xbe8   :  { %8247 = vmatprep.mubr.msk.f32.mxu0 %vm11184_vm1, %v9804_v7  ;;  %8666 = vmatpush3.bf16.msra.mxu0 %v8665_v46  ;;  %v7271_v7 = vld [vmem:[#allocation23 + $0x38] sm:$0xff] }
 0xbe9   :  { %8667 = vmatprep.subr.bf16.mxu0 %v9802_v27  ;;  %v8668_v26 = vpack.c.bf16 %v7271_v7, %v7270_v49 }
 0xbec   :  { %8669 = vmatpush3.bf16.msra.mxu0 %v8668_v26 }
 0xbed   :  { %8670 = vmatprep.subr.bf16.mxu0 %v9802_v27 }
 0xbf0   :  { %8672 = vmatpush3.bf16.msra.mxu0 %v8671_v38 }
 0xbf1   :  { %8673 = vmatprep.subr.bf16.mxu0 %v9802_v27 }
 0xbf4   :  { %8675 = vmatpush3.bf16.msra.mxu0 %v8674_v32 }
 0xbf5   :  { %8676 = vmatprep.subr.bf16.mxu0 %v9802_v27 }
 0xbf8   :  { %8678 = vmatpush3.bf16.msra.mxu0 %v8677_v35 }
 0xbf9   :  { %8679 = vmatprep.subr.bf16.mxu0 %v9802_v27 }
 0xbfc   :  { %8681 = vmatpush3.bf16.msra.mxu0 %v8680_v55 }
 0xc72   :  { %v8077_v18 = vpop.f32.mrb[28].mxu0 }
 0xc73   :  { %v8078_v19 = vpop.f32.mrb[29].mxu0 }
 0xc74   :  { %v8079_v16 = vadd.f32 %v8078_v19, %v8077_v18  ;;  %v8080_v23 = vpop.f32.mrb[30].mxu0 }
 0xc75   :  { %v8081_v40 = vpop.f32.mrb[31].mxu0 }
 0xc76   :  { %v8082_v2 = vadd.f32 %v8081_v40, %v8080_v23 }
 0xc7a   :  { %v8083_v36 = vpop.f32.mrb[32].mxu0 }
 0xc7b   :  { %v8084_v15 = vpop.f32.mrb[33].mxu0 }
 0xc7c   :  { %v8085_v34 = vadd.f32 %v8084_v15, %v8083_v36  ;;  %v8086_v54 = vpop.f32.mrb[34].mxu0 }
 0xc7d   :  { %v8087_v14 = vpop.f32.mrb[35].mxu0 }
 0xc7e   :  { %v8088_v56 = vadd.f32 %v8087_v14, %v8086_v54 }
 0xc92   :  { %v8105_v0 = vpop.f32.mrb[36].mxu0 }
 0xc93   :  { %v8106_v11 = vpop.f32.mrb[37].mxu0 }
 0xc94   :  { %v8107_v17 = vadd.f32 %v8106_v11, %v8105_v0  ;;  %v8108_v63 = vpop.f32.mrb[38].mxu0 }
 0xc95   :  { %v8109_v47 = vpop.f32.mrb[39].mxu0 }
 0xc96   :  { %v7009_v20 = vadd.f32 %v8107_v17, %v8079_v16  ;;  %v8110_v27 = vadd.f32 %v8109_v47, %v8108_v63  ;;  %v7356_v63 = vld [vmem:[%s11115_s19] sm:$0x1] }
 0xc98   :  { %v7012_v4 = vadd.f32 %v8110_v27, %v8082_v2  ;;  %v7377_v27 = vld [vmem:[%s11186_s0] sm:$0x1] }
 0xc9a   :  { %v8111_v45 = vpop.f32.mrb[40].mxu0 }
 0xc9b   :  { %v8112_v41 = vpop.f32.mrb[41].mxu0 }
 0xc9c   :  { %v8113_v22 = vadd.f32 %v8112_v41, %v8111_v45  ;;  %v8114_v50 = vpop.f32.mrb[42].mxu0 }
 0xc9d   :  { %v8115_v3 = vpop.f32.mrb[43].mxu0 }
 0xc9e   :  { %v7017_v57 = vadd.f32 %v8113_v22, %v8085_v34  ;;  %v8116_v48 = vadd.f32 %v8115_v3, %v8114_v50 }
 0xca0   :  { %v7020_v61 = vadd.f32 %v8116_v48, %v8088_v56 }
 0xcb2   :  { %v8133_v51 = vpop.f32.mrb[44].mxu0 }
 0xcb3   :  { %v8134_v43 = vpop.f32.mrb[45].mxu0 }
 0xcb4   :  { %v8135_v8 = vadd.f32 %v8134_v43, %v8133_v51  ;;  %v8136_v31 = vpop.f32.mrb[46].mxu0 }
 0xcb5   :  { %v8137_v21 = vpop.f32.mrb[47].mxu0 }
 0xcb6   :  { %v7237_v59 = vadd.f32 %v8135_v8, %v7009_v20  ;;  %v8138_v52 = vadd.f32 %v8137_v21, %v8136_v31 }
 0xcb8   :  { %v7238_v1 = vadd.f32 %v8138_v52, %v7012_v4  ;;  %v7250_v5 = vmul.f32 %v7237_v59, %v7237_v59 }
 0xcba   :  { %v8139_v58 = vpop.f32.mrb[48].mxu0  ;;  %v7251_v25 = vmul.f32 %v7238_v1, %v7238_v1  ;;  %v7241_v30 = vadd.f32 %v7238_v1, %v7237_v59 }
 0xcbb   :  { %v8140_v39 = vpop.f32.mrb[49].mxu0 }
 0xcbc   :  { %v8141_v10 = vadd.f32 %v8140_v39, %v8139_v58  ;;  %v8142_v37 = vpop.f32.mrb[50].mxu0  ;;  %v7254_v46 = vadd.f32 %v7251_v25, %v7250_v5 }
 0xcbd   :  { %v8143_v13 = vpop.f32.mrb[51].mxu0 }
 0xcbe   :  { %v7239_v29 = vadd.f32 %v8141_v10, %v7017_v57  ;;  %v8144_v9 = vadd.f32 %v8143_v13, %v8142_v37 }
 0xcc0   :  { %v7242_v49 = vadd.f32 %v7241_v30, %v7239_v29  ;;  %v7252_v7 = vmul.f32 %v7239_v29, %v7239_v29  ;;  %v7240_v62 = vadd.f32 %v8144_v9, %v7020_v61 }
 0xcc2   :  { %v7255_v26 = vadd.f32 %v7254_v46, %v7252_v7  ;;  %v7243_v44 = vadd.f32 %v7242_v49, %v7240_v62  ;;  %v7253_v38 = vmul.f32 %v7240_v62, %v7240_v62 }
 0xcc4   :  { %v7244_v12 = vrot.slane %v7243_v44, 4  ;;  %v7256_v42 = vadd.f32 %v7255_v26, %v7253_v38 }
 0xcc6   :  { %v7245_v32 = vadd.f32 %v7244_v12, %v7243_v44  ;;  %v7257_v28 = vrot.slane %v7256_v42, 4 }
 0xcc8   :  { %v7246_v33 = vrot.slane %v7245_v32, 2  ;;  %v7258_v35 = vadd.f32 %v7257_v28, %v7256_v42 }
 0xcca   :  { %v7247_v6 = vadd.f32 %v7246_v33, %v7245_v32  ;;  %v7259_v24 = vrot.slane %v7258_v35, 2 }
 0xccc   :  { %v7248_v55 = vrot.slane %v7247_v6, 1  ;;  %v7260_v18 = vadd.f32 %v7259_v24, %v7258_v35 }
 0xcce   :  { %v7261_v19 = vrot.slane %v7260_v18, 1  ;;  %v7249_v16 = vadd.f32 %v7248_v55, %v7247_v6 }
 0xcd0   :  { %v7262_v23 = vadd.f32 %v7261_v19, %v7260_v18 }
 0xcd2   :  { %v7263_v40 = vsel %vm11185_vm7, %v7249_v16, %v7262_v23 }
 0xcd3   :  { %8248 = vmatmul.mubr.f32.vlgmr.msra.gmra.mrb[52].mxu0 %v7263_v40 }
 0xda6   :  { %v7346_v2 = vpop.f32.mrb[52].mxu0 }
 0xda7   :  { %v7350_v36 = vmul.f32 0.001953125, %v7346_v2  ;;  %v8249_v15 = vpop.f32.mrb[53].mxu0 }
 0xda9   :  { %v7351_v34 = vmul.f32 %v7350_v36, %v7350_v36 }
 0xdab   :  { %v7353_v54 = vrot.slane %v7351_v34, 7 }
 0xdad   :  { %v7355_v14 = vsub.f32 %v7350_v36, %v7353_v54 }
 0xdaf   :  { %v7357_v56 = vadd.f32 1e-05, %v7355_v14 }
 0xdb1   :  { %9527 = vrsqrt.f32 %v7357_v56 }
 0xdbb   :  { %v9528_v0 = vpop.eup %9527 }
 0xdbc   :  { %v7366_v11 = vrot.slane %v9528_v0, %v10263_v53 }
 0xdbe   :  { %v7367_v17 = vcombine.high %v7366_v11, %v7366_v11 }
 0xdc0   :  { %v7374_v47 = vrot.slane %v7367_v17, %v10263_v53 }
 0xdc2   :  { %v7376_v20 = vmul.f32 %v7374_v47, %v7356_v63 }
 0xdc4   :  { %v7378_v4 = vmul.f32 %v7376_v20, %v7350_v36  ;;  %v7384_v45 = vrot.slane %v7376_v20, %v10271_v60 }
 0xdc6   :  { %v7379_v41 = vsub.f32 %v7377_v27, %v7378_v4  ;;  %v7386_v22 = vmul.f32 %v7384_v45, %v7237_v59  ;;  %v7387_v50 = vmul.f32 %v7384_v45, %v7238_v1  ;;  %v7388_v3 = vmul.f32 %v7384_v45, %v7239_v29 }
 0xdc7   :  { %v7389_v57 = vmul.f32 %v7384_v45, %v7240_v62 }
 0xdc8   :  { %v7394_v48 = vrot.slane %v7379_v41, %v10271_v60 }
 0xdca   :  { %v7396_v61 = vadd.f32 %v7394_v48, %v7386_v22  ;;  %v7397_v51 = vadd.f32 %v7394_v48, %v7387_v50  ;;  %v7398_v43 = vadd.f32 %v7394_v48, %v7388_v3  ;;  %v7399_v8 = vadd.f32 %v7394_v48, %v7389_v57 }
 0xdcc   :  { %vm7400_vm14 = vcmp.ge.f32.partialorder %v7396_v61, 0.0  ;;  %vm7401_vm15 = vcmp.ge.f32.partialorder %v7397_v51, 0.0  ;;  %vm7402_vm2 = vcmp.ge.f32.partialorder %v7398_v43, 0.0  ;;  %vm7403_vm10 = vcmp.ge.f32.partialorder %v7399_v8, 0.0 }
 0xdcd   :  { %v7404_v53 = vmul.f32 0.01, %v7396_v61  ;;  %v7405_v31 = vmul.f32 0.01, %v7397_v51  ;;  %v7406_v21 = vmul.f32 0.01, %v7398_v43 }
 0xdce   :  { %v7407_v52 = vmul.f32 0.01, %v7399_v8 }
 0xdcf   :  { %v7408_v58 = vsel %vm7400_vm14, %v7396_v61, %v7404_v53  ;;  %v7409_v39 = vsel %vm7401_vm15, %v7397_v51, %v7405_v31  ;;  %v7410_v59 = vsel %vm7402_vm2, %v7398_v43, %v7406_v21 }
 0xdd0   :  { %v7411_v1 = vsel %vm7403_vm10, %v7399_v8, %v7407_v52  ;;  %7412 = vst [vmem:[%s11187_s30] sm:$0xff] %v7408_v58  ;;  %7413 = vst [vmem:[%s11187_s30 + $0x8] sm:$0xff] %v7409_v39 }
 0xdd1   :  { %7414 = vst [vmem:[%s11187_s30 + $0x10] sm:$0xff] %v7410_v59  ;;  %7415 = vst [vmem:[%s11187_s30 + $0x18] sm:$0xff] %v7411_v1 }
 0xdd2   :  { %7420 = vsyncpa [#allocation8], 1 }
 0xdd3   :  { %7421 = vsyncpa [#allocation10], 1 }
 0xdd4   :  { %7422 = vsyncpa [#allocation13], 1 }
 0xdd5   :  { %7423 = vsyncpa [#allocation16], 1 }
 0xdd6   :  { %7424 = vsyncpa [#allocation19], 1 }
 0xdd7   :  { %7425 = vsyncpa [#allocation22], 1 }

</bundles_post_ra>
